<compile_context>
chip_gen: v7x
topology: tpu7x:2x2x1
jax: 0.10.0
libtpu: 0.0.40
codegen_flags: <defaults>
</compile_context>

<pallas_src>
import functools

import jax
import jax.numpy as jnp
from jax.experimental import pallas as pl
from jax.experimental.pallas import tpu as pltpu


# ---------------------------------------------------------------------------
# Fused Pallas kernel: whole Bottleneck_SAConv forward for one sample.
# ---------------------------------------------------------------------------

def _fused_kernel(x_ref, w1_ref, ws_ref, wl_ref, prew_ref, postw_ref, vec_ref,
                  o_ref, xpad1, xpad3, swpad,
                  *, H, W, C1p, Cmp, C2p, add):
    f32 = jnp.float32
    bf16 = jnp.bfloat16
    HW = H * W

    # ---- packed per-channel vectors ---------------------------------------
    s1 = vec_ref[0:1, 0:Cmp]        # cv1 BN scale
    b1 = vec_ref[1:2, 0:Cmp]        # cv1 BN shift
    preb = vec_ref[2:3, 0:Cmp]      # pre-context bias
    s2 = vec_ref[3:4, 0:C2p]        # bn2 scale
    b2 = vec_ref[4:5, 0:C2p]        # bn2 shift
    postb = vec_ref[5:6, 0:C2p]     # post-context bias
    swb = vec_ref[6:7, 0:1]         # switch bias (scalar)
    sww = vec_ref[7:8, 0:Cmp]       # switch 1x1 weight

    # ---- cv1 = Conv(c1, c_, 3, 1): conv3x3(pad=1) + BN + SiLU --------------
    # Zero only the border strips (interior fully rewritten every step; done
    # every step so megacore "parallel" sharding stays correct).
    xpad1[0:1, :, :] = jnp.zeros((1, W + 2, C1p), f32)
    xpad1[H + 1:H + 2, :, :] = jnp.zeros((1, W + 2, C1p), f32)
    xpad1[:, 0:1, :] = jnp.zeros((H + 2, 1, C1p), f32)
    xpad1[:, W + 1:W + 2, :] = jnp.zeros((H + 2, 1, C1p), f32)
    xpad1[1:1 + H, 1:1 + W, :] = x_ref[...].astype(f32)

    # 9 accumulating lane-dense MXU matmuls (no im2col buffer).
    acc1 = jnp.zeros((HW, Cmp), f32)
    for kh in range(3):
        for kw in range(3):
            patch = xpad1[kh:kh + H, kw:kw + W, :].reshape(HW, C1p)
            acc1 = acc1 + jnp.dot(patch.astype(bf16), w1_ref[kh, kw],
                                  preferred_element_type=f32)
    y = acc1 * s1 + b1                       # BatchNorm (inference, f32)
    y = y * jax.nn.sigmoid(y)                # SiLU

    # ---- SAConv pre-context: x2 = y + pre_context(GAP(y)) ------------------
    g = jnp.mean(y, axis=0, keepdims=True)                        # (1, Cmp)
    pre = jnp.dot(g, prew_ref[...], preferred_element_type=f32) + preb
    x2 = y + pre                                                   # (HW, Cmp)
    x2_hwc = x2.reshape(H, W, Cmp)

    # ---- switch branch: 1x1 conv commuted ahead of the 5x5 reflect pool ----
    t_map = jnp.sum(x2_hwc * sww.reshape(1, 1, Cmp), axis=-1,
                    keepdims=True)                                 # (H, W, 1)
    swpad[2:2 + H, 2:2 + W, :] = t_map
    # reflect pad width 2: rows first (interior columns), then columns
    # (full height) so no uninitialized element is ever read.
    swpad[0:1, 2:2 + W, :] = swpad[4:5, 2:2 + W, :]
    swpad[1:2, 2:2 + W, :] = swpad[3:4, 2:2 + W, :]
    swpad[2 + H:3 + H, 2:2 + W, :] = swpad[H:H + 1, 2:2 + W, :]
    swpad[3 + H:4 + H, 2:2 + W, :] = swpad[H - 1:H, 2:2 + W, :]
    swpad[:, 0:1, :] = swpad[:, 4:5, :]
    swpad[:, 1:2, :] = swpad[:, 3:4, :]
    swpad[:, 2 + W:3 + W, :] = swpad[:, W:W + 1, :]
    swpad[:, 3 + W:4 + W, :] = swpad[:, W - 1:W, :]
    # separable 5x5 average (5 + 5 adds, in registers)
    rows = (swpad[:, 0:W, :] + swpad[:, 1:1 + W, :] + swpad[:, 2:2 + W, :]
            + swpad[:, 3:3 + W, :] + swpad[:, 4:4 + W, :])         # (H+4, W, 1)
    pooled = (rows[0:H] + rows[1:1 + H] + rows[2:2 + H]
              + rows[3:3 + H] + rows[4:4 + H])                     # (H, W, 1)
    switch = pooled * (1.0 / 25.0) + swb.reshape(1, 1, 1)

    # ---- dual AWS conv (shared pad-3 buffer, no col buffers) ----------------
    xpad3[0:3, :, :] = jnp.zeros((3, W + 6, Cmp), f32)
    xpad3[H + 3:H + 6, :, :] = jnp.zeros((3, W + 6, Cmp), f32)
    xpad3[:, 0:3, :] = jnp.zeros((H + 6, 3, Cmp), f32)
    xpad3[:, W + 3:W + 6, :] = jnp.zeros((H + 6, 3, Cmp), f32)
    xpad3[3:3 + H, 3:3 + W, :] = x2_hwc

    acc_s = jnp.zeros((HW, C2p), f32)      # dilation 1, padding 1
    acc_l = jnp.zeros((HW, C2p), f32)      # dilation 3, padding 3
    for kh in range(3):
        for kw in range(3):
            ps = xpad3[kh + 2:kh + 2 + H, kw + 2:kw + 2 + W, :].reshape(HW, Cmp)
            acc_s = acc_s + jnp.dot(ps.astype(bf16), ws_ref[kh, kw],
                                    preferred_element_type=f32)
            pL = xpad3[3 * kh:3 * kh + H, 3 * kw:3 * kw + W, :].reshape(HW, Cmp)
            acc_l = acc_l + jnp.dot(pL.astype(bf16), wl_ref[kh, kw],
                                    preferred_element_type=f32)

    out_s = acc_s.reshape(H, W, C2p)
    out_l = acc_l.reshape(H, W, C2p)
    out = out_l + switch * (out_s - out_l)                         # (H, W, C2p)

    # ---- post-context + BN + SiLU + optional bottleneck shortcut ------------
    g2 = jnp.mean(out, axis=(0, 1), keepdims=True)                 # (1,1,C2p)
    post = (jnp.dot(g2.reshape(1, C2p), postw_ref[...],
                    preferred_element_type=f32) + postb)
    v = (out + post.reshape(1, 1, C2p)) * s2.reshape(1, 1, C2p) + b2.reshape(1, 1, C2p)
    v = v * jax.nn.sigmoid(v)                                      # SiLU
    if add:                                  # shortcut reuses the x block
        v = v + x_ref[...].astype(f32)
    o_ref[...] = v


# ---------------------------------------------------------------------------
# Plain-JAX glue (weight standardization, BN folding, channel padding)
# ---------------------------------------------------------------------------

def get_aws_weight(w, gamma, beta):
    """ConvAWS2d._get_weight in HWIO layout. w: (KH, KW, Cin, Cout)."""
    mean = jnp.mean(w, axis=(0, 1, 2), keepdims=True)
    wc = w - mean
    n = w.shape[0] * w.shape[1] * w.shape[2]
    var = jnp.sum(wc * wc, axis=(0, 1, 2), keepdims=True) / (n - 1)  # unbiased
    std = jnp.sqrt(var + 1e-5)
    return gamma * (wc / std) + beta


def bn_scale_shift(gamma, beta, rmean, rvar, eps=1e-5):
    scale = gamma / jnp.sqrt(rvar + eps)
    shift = beta - rmean * scale
    C = gamma.shape[0]
    return scale.reshape(1, 1, 1, C), shift.reshape(1, 1, 1, C)


def _round_up(x, m):
    return (x + m - 1) // m * m


def _pad_axis(a, axis, target):
    if a.shape[axis] == target:
        return a
    cfg = [(0, 0)] * a.ndim
    cfg[axis] = (0, target - a.shape[axis])
    return jnp.pad(a, cfg)


def bottleneck_saconv_forward(x_nchw, P):
    f32, bf16 = jnp.float32, jnp.bfloat16
    x = jnp.transpose(x_nchw, (0, 2, 3, 1)).astype(f32)            # NHWC
    N, H, W, C1 = x.shape
    c_ = P["cv1_w"].shape[-1]
    C2 = P["cv2_w"].shape[-1]
    add = bool(P["add"]) and (C1 == C2)

    LANE = 128
    C1p = _round_up(C1, LANE)
    Cmp = _round_up(c_, LANE)
    C2p = _round_up(C2, LANE)
    CP = max(Cmp, C2p)

    # ---- weight preprocessing (cheap, plain JAX, once per call) ------------
    w1 = _pad_axis(_pad_axis(P["cv1_w"].astype(f32), 2, C1p), 3, Cmp)
    w_s = get_aws_weight(P["cv2_w"].astype(f32), P["weight_gamma"], P["weight_beta"])
    w_l = w_s + P["weight_diff"]
    ws = _pad_axis(_pad_axis(w_s, 2, Cmp), 3, C2p)
    wl = _pad_axis(_pad_axis(w_l, 2, Cmp), 3, C2p)

    x_in = _pad_axis(x, 3, C1p).astype(bf16)                        # bf16 input DMA
    w1 = w1.astype(bf16)
    ws = ws.astype(bf16)
    wl = wl.astype(bf16)

    prew = _pad_axis(_pad_axis(P["pre_w"].astype(f32), 0, Cmp), 1, Cmp)
    postw = _pad_axis(_pad_axis(P["post_w"].astype(f32), 0, C2p), 1, C2p)

    # pack all tiny per-channel vectors into ONE (8, CP) f32 block
    vecs = jnp.zeros((8, CP), f32)
    vecs = vecs.at[0, :c_].set(P["cv1_bn_scale"].reshape(-1))
    vecs = vecs.at[1, :c_].set(P["cv1_bn_shift"].reshape(-1))
    vecs = vecs.at[2, :c_].set(P["pre_b"].reshape(-1))
    vecs = vecs.at[3, :C2].set(P["bn2_scale"].reshape(-1))
    vecs = vecs.at[4, :C2].set(P["bn2_shift"].reshape(-1))
    vecs = vecs.at[5, :C2].set(P["post_b"].reshape(-1))
    vecs = vecs.at[6, 0].set(P["switch_b"].reshape(-1)[0])
    vecs = vecs.at[7, :c_].set(P["switch_w"].reshape(-1))

    kernel = functools.partial(_fused_kernel, H=H, W=W,
                               C1p=C1p, Cmp=Cmp, C2p=C2p, add=add)

    flops = int(N * H * W * 9 * 2 * (C1p * Cmp + 2 * Cmp * C2p)
                + N * H * W * 2 * Cmp)
    transcendentals = int(N * H * W * (Cmp + C2p))
    bytes_accessed = int(x_in.size * 2 + (w1.size + ws.size + wl.size) * 2
                         + (prew.size + postw.size + vecs.size) * 4
                         + N * H * W * C2p * 4)

    out = pl.pallas_call(
        kernel,
        out_shape=jax.ShapeDtypeStruct((N, H, W, C2p), f32),
        grid=(N,),
        in_specs=[
            pl.BlockSpec((None, H, W, C1p), lambda n: (n, 0, 0, 0)),   # x (bf16)
            pl.BlockSpec((3, 3, C1p, Cmp), lambda n: (0, 0, 0, 0)),    # cv1 weight
            pl.BlockSpec((3, 3, Cmp, C2p), lambda n: (0, 0, 0, 0)),    # AWS weight (short)
            pl.BlockSpec((3, 3, Cmp, C2p), lambda n: (0, 0, 0, 0)),    # AWS weight (long)
            pl.BlockSpec((Cmp, Cmp), lambda n: (0, 0)),                # pre-context W
            pl.BlockSpec((C2p, C2p), lambda n: (0, 0)),                # post-context W
            pl.BlockSpec((8, CP), lambda n: (0, 0)),                   # packed vectors
        ],
        out_specs=pl.BlockSpec((None, H, W, C2p), lambda n: (n, 0, 0, 0)),
        scratch_shapes=[
            pltpu.VMEM((H + 2, W + 2, C1p), f32),   # pad-1 input buffer
            pltpu.VMEM((H + 6, W + 6, Cmp), f32),   # pad-3 x2 buffer (both dilations)
            pltpu.VMEM((H + 4, W + 4, 1), f32),     # reflect-padded switch map
        ],
        compiler_params=pltpu.CompilerParams(
            dimension_semantics=("parallel",)),
        cost_estimate=pl.CostEstimate(flops=flops,
                                      transcendentals=transcendentals,
                                      bytes_accessed=bytes_accessed),
    )(x_in, w1, ws, wl, prew, postw, vecs)

    out = out[..., :C2]                                             # drop lane padding
    return jnp.transpose(out, (0, 3, 1, 2))                         # back to NCHW


# ---------------------------------------------------------------------------
# Plain-JAX/XLA reference (mirrors the PyTorch forward) for validation.
# mm_dtype=bf16 reproduces the kernel's MXU-operand rounding points so a
# tight comparison is possible; mm_dtype=f32 is the faithful module forward.
# ---------------------------------------------------------------------------

def _reference_forward(x_nchw, P, mm_dtype=jnp.float32):
    f32 = jnp.float32
    x = jnp.transpose(x_nchw, (0, 2, 3, 1)).astype(f32)
    xq = x.astype(mm_dtype).astype(f32)
    N, H, W, C1 = x.shape
    c_ = P["cv1_w"].shape[-1]
    C2 = P["cv2_w"].shape[-1]
    prec = (jax.lax.Precision.HIGHEST if mm_dtype == jnp.float32
            else jax.lax.Precision.DEFAULT)

    def conv(inp, w, pad, dil):
        return jax.lax.conv_general_dilated(
            inp.astype(mm_dtype), w.astype(mm_dtype), (1, 1),
            ((pad, pad), (pad, pad)), rhs_dilation=(dil, dil),
            dimension_numbers=("NHWC", "HWIO", "NHWC"),
            precision=prec, preferred_element_type=f32)

    # cv1 = Conv: conv3x3 + BN + SiLU
    y = conv(xq, P["cv1_w"].astype(f32), 1, 1)
    y = y * P["cv1_bn_scale"] + P["cv1_bn_shift"]
    y = y * jax.nn.sigmoid(y)

    # pre-context
    g = jnp.mean(y, axis=(1, 2))
    pre = g @ P["pre_w"] + P["pre_b"]
    x2 = y + pre.reshape(N, 1, 1, c_)

    # switch branch (full f32, like the kernel): reflect pad, 5x5 pool, 1x1
    xp = jnp.pad(x2, ((0, 0), (2, 2), (2, 2), (0, 0)), mode="reflect")
    acc = jnp.zeros_like(x2)
    for kh in range(5):
        for kw in range(5):
            acc = acc + xp[:, kh:kh + H, kw:kw + W, :]
    avg = acc / 25.0
    switch = jax.lax.conv_general_dilated(
        avg, P["switch_w"].astype(f32), (1, 1), ((0, 0), (0, 0)),
        dimension_numbers=("NHWC", "HWIO", "NHWC"),
        precision=jax.lax.Precision.HIGHEST,
        preferred_element_type=f32) + P["switch_b"].reshape(1, 1, 1, 1)

    # dual AWS conv + blend
    w_s = get_aws_weight(P["cv2_w"].astype(f32), P["weight_gamma"], P["weight_beta"])
    out_s = conv(x2, w_s, 1, 1)
    out_l = conv(x2, w_s + P["weight_diff"], 3, 3)
    out = out_l + switch * (out_s - out_l)

    # post-context + BN + SiLU + shortcut
    g2 = jnp.mean(out, axis=(1, 2))
    post = g2 @ P["post_w"] + P["post_b"]
    out = out + post.reshape(N, 1, 1, C2)
    out = out * P["bn2_scale"] + P["bn2_shift"]
    out = out * jax.nn.sigmoid(out)
    if P["add"] and C1 == C2:
        out = out + xq
    return jnp.transpose(out, (0, 3, 1, 2))


# ---------------------------------------------------------------------------
# Deterministic parameter construction (shapes per the module __init__)
# ---------------------------------------------------------------------------

def make_params(c1=4, c2=4, e=0.5, shortcut=True):
    c_ = int(c2 * e)
    key = jax.random.PRNGKey(0)
    ks = jax.random.split(key, 24)

    def rnd(k, shape, s=0.1):
        return jax.random.normal(k, shape, jnp.float32) * s

    cv1_w = rnd(ks[0], (3, 3, c1, c_), 0.3)
    cv1_g = 1.0 + rnd(ks[1], (c_,), 0.1)
    cv1_b = rnd(ks[2], (c_,), 0.1)
    cv1_rm = rnd(ks[3], (c_,), 0.05)
    cv1_rv = 0.5 + jax.random.uniform(ks[4], (c_,), jnp.float32)
    cv1_scale, cv1_shift = bn_scale_shift(cv1_g, cv1_b, cv1_rm, cv1_rv)

    cv2_w = rnd(ks[5], (3, 3, c_, c2), 0.3)
    weight_gamma = 1.0 + rnd(ks[6], (1, 1, 1, c2), 0.1)
    weight_beta = rnd(ks[7], (1, 1, 1, c2), 0.05)
    weight_diff = rnd(ks[8], (3, 3, c_, c2), 0.05)
    switch_w = rnd(ks[9], (1, 1, c_, 1), 0.1)
    switch_b = 1.0 + rnd(ks[10], (1,), 0.1)
    pre_w = rnd(ks[11], (c_, c_), 0.1)
    pre_b = rnd(ks[12], (c_,), 0.05)
    post_w = rnd(ks[13], (c2, c2), 0.1)
    post_b = rnd(ks[14], (c2,), 0.05)
    bn2_g = 1.0 + rnd(ks[15], (c2,), 0.1)
    bn2_b = rnd(ks[16], (c2,), 0.1)
    bn2_rm = rnd(ks[17], (c2,), 0.05)
    bn2_rv = 0.5 + jax.random.uniform(ks[18], (c2,), jnp.float32)
    bn2_scale, bn2_shift = bn_scale_shift(bn2_g, bn2_b, bn2_rm, bn2_rv)

    return dict(
        cv1_w=cv1_w, cv1_bn_scale=cv1_scale, cv1_bn_shift=cv1_shift,
        cv2_w=cv2_w, weight_gamma=weight_gamma, weight_beta=weight_beta,
        weight_diff=weight_diff, switch_w=switch_w, switch_b=switch_b,
        pre_w=pre_w, pre_b=pre_b, post_w=post_w, post_b=post_b,
        bn2_scale=bn2_scale, bn2_shift=bn2_shift,
        add=bool(shortcut and c1 == c2),
    ), ks[19]


if __name__ == "__main__":
    P, k_x = make_params(c1=4, c2=4, e=0.5, shortcut=True)
    x = jax.random.normal(k_x, (2, 4, 16, 16), jnp.float32)          # NCHW input

    fwd = jax.jit(lambda inp: bottleneck_saconv_forward(inp, P))
    out = fwd(x)
    jax.block_until_ready(out)

    assert out.shape == (2, 4, 16, 16), out.shape
    assert bool(jnp.all(jnp.isfinite(out)))

    # (1) tight-ish check vs a reference with the SAME bf16 MXU-operand
    #     rounding points (residual = accumulation order + rare double-
    #     rounding flips of x2 at bf16 boundaries).
    ref_bf = _reference_forward(x, P, mm_dtype=jnp.bfloat16)
    err_bf = float(jnp.max(jnp.abs(out - ref_bf)))
    assert err_bf < 1e-1, f"bf16-matched reference mismatch: {err_bf}"

    # (2) sanity check vs the faithful f32 module forward; the gap is the
    #     bf16 rounding of the MXU operands, so scale tolerance with the
    #     output magnitude.
    ref32 = _reference_forward(x, P, mm_dtype=jnp.float32)
    err32 = float(jnp.max(jnp.abs(out - ref32)))
    tol32 = 0.05 * float(jnp.max(jnp.abs(ref32))) + 0.1
    assert err32 < tol32, f"f32 reference mismatch: {err32} (tol {tol32})"

    print("KERNEL_OK")
</pallas_src>

<mosaic_0001>
module attributes {stable_mosaic.version = 11 : i64} {
  func.func @_fused_kernel(%arg0: i32, %arg1: memref<1x16x16x128xbf16, #tpu.memory_space<vmem>>, %arg2: memref<3x3x128x128xbf16, #tpu.memory_space<vmem>>, %arg3: memref<3x3x128x128xbf16, #tpu.memory_space<vmem>>, %arg4: memref<3x3x128x128xbf16, #tpu.memory_space<vmem>>, %arg5: memref<128x128xf32, #tpu.memory_space<vmem>>, %arg6: memref<128x128xf32, #tpu.memory_space<vmem>>, %arg7: memref<8x128xf32, #tpu.memory_space<vmem>>, %arg8: memref<1x16x16x128xf32, #tpu.memory_space<vmem>>, %arg9: memref<18x18x128xf32, #tpu.memory_space<vmem>>, %arg10: memref<22x22x128xf32, #tpu.memory_space<vmem>>, %arg11: memref<20x20x1xf32, #tpu.memory_space<vmem>>) attributes {dimension_semantics = [#tpu.dimension_semantics<parallel>], iteration_bounds = array<i64: 2>, scalar_prefetch = 0 : i64, scratch_operands = 3 : i64, tpu.core_type = #tpu.core_type<tc>, window_params = [{transform_indices = @transform_0, window_bounds = array<i64: 1, 16, 16, 128>}, {pipeline_mode = #tpu.pipeline_mode<synchronous>, transform_indices = @transform_1, window_bounds = array<i64: 3, 3, 128, 128>}, {pipeline_mode = #tpu.pipeline_mode<synchronous>, transform_indices = @transform_2, window_bounds = array<i64: 3, 3, 128, 128>}, {pipeline_mode = #tpu.pipeline_mode<synchronous>, transform_indices = @transform_3, window_bounds = array<i64: 3, 3, 128, 128>}, {pipeline_mode = #tpu.pipeline_mode<synchronous>, transform_indices = @transform_4, window_bounds = array<i64: 128, 128>}, {pipeline_mode = #tpu.pipeline_mode<synchronous>, transform_indices = @transform_5, window_bounds = array<i64: 128, 128>}, {pipeline_mode = #tpu.pipeline_mode<synchronous>, transform_indices = @transform_6, window_bounds = array<i64: 8, 128>}, {transform_indices = @transform_7, window_bounds = array<i64: 1, 16, 16, 128>}]} {
    %c0 = arith.constant 0 : index
    %c0_0 = arith.constant 0 : index
    %0 = vector.load %arg7[%c0, %c0_0] : memref<8x128xf32, #tpu.memory_space<vmem>>, vector<1x128xf32>
    %c1 = arith.constant 1 : index
    %c0_1 = arith.constant 0 : index
    %1 = vector.load %arg7[%c1, %c0_1] : memref<8x128xf32, #tpu.memory_space<vmem>>, vector<1x128xf32>
    %c2 = arith.constant 2 : index
    %c0_2 = arith.constant 0 : index
    %2 = vector.load %arg7[%c2, %c0_2] : memref<8x128xf32, #tpu.memory_space<vmem>>, vector<1x128xf32>
    %c3 = arith.constant 3 : index
    %c0_3 = arith.constant 0 : index
    %3 = vector.load %arg7[%c3, %c0_3] : memref<8x128xf32, #tpu.memory_space<vmem>>, vector<1x128xf32>
    %c4 = arith.constant 4 : index
    %c0_4 = arith.constant 0 : index
    %4 = vector.load %arg7[%c4, %c0_4] : memref<8x128xf32, #tpu.memory_space<vmem>>, vector<1x128xf32>
    %c5 = arith.constant 5 : index
    %c0_5 = arith.constant 0 : index
    %5 = vector.load %arg7[%c5, %c0_5] : memref<8x128xf32, #tpu.memory_space<vmem>>, vector<1x128xf32>
    %c6 = arith.constant 6 : index
    %c0_6 = arith.constant 0 : index
    %6 = vector.load %arg7[%c6, %c0_6] : memref<8x128xf32, #tpu.memory_space<vmem>>, vector<1x1xf32>
    %c7 = arith.constant 7 : index
    %c0_7 = arith.constant 0 : index
    %7 = vector.load %arg7[%c7, %c0_7] : memref<8x128xf32, #tpu.memory_space<vmem>>, vector<1x128xf32>
    %cst = arith.constant 0.000000e+00 : f32
    %8 = vector.broadcast %cst : f32 to vector<1x18x128xf32>
    %c0_8 = arith.constant 0 : index
    %c0_9 = arith.constant 0 : index
    %c0_10 = arith.constant 0 : index
    %9 = vector.load %arg9[%c0_8, %c0_9, %c0_10] : memref<18x18x128xf32, #tpu.memory_space<vmem>>, vector<1x18x128xf32>
    tpu.vector_store %arg9[%c0_8, %c0_9, %c0_10], %8 {strides = array<i32>} : memref<18x18x128xf32, #tpu.memory_space<vmem>>, vector<1x18x128xf32>,
    %cst_11 = arith.constant 0.000000e+00 : f32
    %10 = vector.broadcast %cst_11 : f32 to vector<1x18x128xf32>
    %c17 = arith.constant 17 : index
    %c0_12 = arith.constant 0 : index
    %c0_13 = arith.constant 0 : index
    %11 = vector.load %arg9[%c17, %c0_12, %c0_13] : memref<18x18x128xf32, #tpu.memory_space<vmem>>, vector<1x18x128xf32>
    tpu.vector_store %arg9[%c17, %c0_12, %c0_13], %10 {strides = array<i32>} : memref<18x18x128xf32, #tpu.memory_space<vmem>>, vector<1x18x128xf32>,
    %cst_14 = arith.constant 0.000000e+00 : f32
    %12 = vector.broadcast %cst_14 : f32 to vector<18x1x128xf32>
    %c0_15 = arith.constant 0 : index
    %c0_16 = arith.constant 0 : index
    %c0_17 = arith.constant 0 : index
    %13 = vector.load %arg9[%c0_15, %c0_16, %c0_17] : memref<18x18x128xf32, #tpu.memory_space<vmem>>, vector<18x1x128xf32>
    tpu.vector_store %arg9[%c0_15, %c0_16, %c0_17], %12 {strides = array<i32>} : memref<18x18x128xf32, #tpu.memory_space<vmem>>, vector<18x1x128xf32>,
    %cst_18 = arith.constant 0.000000e+00 : f32
    %14 = vector.broadcast %cst_18 : f32 to vector<18x1x128xf32>
    %c0_19 = arith.constant 0 : index
    %c17_20 = arith.constant 17 : index
    %c0_21 = arith.constant 0 : index
    %15 = vector.load %arg9[%c0_19, %c17_20, %c0_21] : memref<18x18x128xf32, #tpu.memory_space<vmem>>, vector<18x1x128xf32>
    tpu.vector_store %arg9[%c0_19, %c17_20, %c0_21], %14 {strides = array<i32>} : memref<18x18x128xf32, #tpu.memory_space<vmem>>, vector<18x1x128xf32>,
    %c0_22 = arith.constant 0 : index
    %c0_23 = arith.constant 0 : index
    %c0_24 = arith.constant 0 : index
    %c0_25 = arith.constant 0 : index
    %16 = vector.load %arg1[%c0_22, %c0_23, %c0_24, %c0_25] : memref<1x16x16x128xbf16, #tpu.memory_space<vmem>>, vector<1x16x16x128xbf16>
    %17 = vector.shape_cast %16 : vector<1x16x16x128xbf16> to vector<16x16x128xbf16>
    %18 = arith.extf %17 : vector<16x16x128xbf16> to vector<16x16x128xf32>
    %c1_26 = arith.constant 1 : index
    %c1_27 = arith.constant 1 : index
    %c0_28 = arith.constant 0 : index
    %19 = vector.load %arg9[%c1_26, %c1_27, %c0_28] : memref<18x18x128xf32, #tpu.memory_space<vmem>>, vector<16x16x128xf32>
    tpu.vector_store %arg9[%c1_26, %c1_27, %c0_28], %18 {strides = array<i32>} : memref<18x18x128xf32, #tpu.memory_space<vmem>>, vector<16x16x128xf32>,
    %cst_29 = arith.constant 0.000000e+00 : f32
    %20 = vector.broadcast %cst_29 : f32 to vector<256x128xf32>
    %c0_30 = arith.constant 0 : index
    %c0_31 = arith.constant 0 : index
    %c0_32 = arith.constant 0 : index
    %21 = vector.load %arg9[%c0_30, %c0_31, %c0_32] : memref<18x18x128xf32, #tpu.memory_space<vmem>>, vector<16x16x128xf32>
    %22 = vector.shape_cast %21 : vector<16x16x128xf32> to vector<256x128xf32>
    %23 = arith.truncf %22 : vector<256x128xf32> to vector<256x128xbf16>
    %c0_33 = arith.constant 0 : index
    %c0_34 = arith.constant 0 : index
    %c0_35 = arith.constant 0 : index
    %c0_36 = arith.constant 0 : index
    %24 = vector.load %arg2[%c0_33, %c0_34, %c0_35, %c0_36] : memref<3x3x128x128xbf16, #tpu.memory_space<vmem>>, vector<1x1x128x128xbf16>
    %25 = vector.shape_cast %24 : vector<1x1x128x128xbf16> to vector<128x128xbf16>
    %cst_37 = arith.constant dense<0.000000e+00> : vector<256x128xf32>
    %26 = tpu.matmul %23, %25, %cst_37 {dimension_numbers = #tpu.dot_dimension_numbers<[1], [0], [0], [1], [0, 0, 1, 1], [], []>} : vector<256x128xbf16>, vector<128x128xbf16>, vector<256x128xf32> -> vector<256x128xf32>
    %27 = arith.addf %20, %26 : vector<256x128xf32>
    %c0_38 = arith.constant 0 : index
    %c1_39 = arith.constant 1 : index
    %c0_40 = arith.constant 0 : index
    %28 = vector.load %arg9[%c0_38, %c1_39, %c0_40] : memref<18x18x128xf32, #tpu.memory_space<vmem>>, vector<16x16x128xf32>
    %29 = vector.shape_cast %28 : vector<16x16x128xf32> to vector<256x128xf32>
    %30 = arith.truncf %29 : vector<256x128xf32> to vector<256x128xbf16>
    %c0_41 = arith.constant 0 : index
    %c1_42 = arith.constant 1 : index
    %c0_43 = arith.constant 0 : index
    %c0_44 = arith.constant 0 : index
    %31 = vector.load %arg2[%c0_41, %c1_42, %c0_43, %c0_44] : memref<3x3x128x128xbf16, #tpu.memory_space<vmem>>, vector<1x1x128x128xbf16>
    %32 = vector.shape_cast %31 : vector<1x1x128x128xbf16> to vector<128x128xbf16>
    %cst_45 = arith.constant dense<0.000000e+00> : vector<256x128xf32>
    %33 = tpu.matmul %30, %32, %cst_45 {dimension_numbers = #tpu.dot_dimension_numbers<[1], [0], [0], [1], [0, 0, 1, 1], [], []>} : vector<256x128xbf16>, vector<128x128xbf16>, vector<256x128xf32> -> vector<256x128xf32>
    %34 = arith.addf %27, %33 : vector<256x128xf32>
    %c0_46 = arith.constant 0 : index
    %c2_47 = arith.constant 2 : index
    %c0_48 = arith.constant 0 : index
    %35 = vector.load %arg9[%c0_46, %c2_47, %c0_48] : memref<18x18x128xf32, #tpu.memory_space<vmem>>, vector<16x16x128xf32>
    %36 = vector.shape_cast %35 : vector<16x16x128xf32> to vector<256x128xf32>
    %37 = arith.truncf %36 : vector<256x128xf32> to vector<256x128xbf16>
    %c0_49 = arith.constant 0 : index
    %c2_50 = arith.constant 2 : index
    %c0_51 = arith.constant 0 : index
    %c0_52 = arith.constant 0 : index
    %38 = vector.load %arg2[%c0_49, %c2_50, %c0_51, %c0_52] : memref<3x3x128x128xbf16, #tpu.memory_space<vmem>>, vector<1x1x128x128xbf16>
    %39 = vector.shape_cast %38 : vector<1x1x128x128xbf16> to vector<128x128xbf16>
    %cst_53 = arith.constant dense<0.000000e+00> : vector<256x128xf32>
    %40 = tpu.matmul %37, %39, %cst_53 {dimension_numbers = #tpu.dot_dimension_numbers<[1], [0], [0], [1], [0, 0, 1, 1], [], []>} : vector<256x128xbf16>, vector<128x128xbf16>, vector<256x128xf32> -> vector<256x128xf32>
    %41 = arith.addf %34, %40 : vector<256x128xf32>
    %c1_54 = arith.constant 1 : index
    %c0_55 = arith.constant 0 : index
    %c0_56 = arith.constant 0 : index
    %42 = vector.load %arg9[%c1_54, %c0_55, %c0_56] : memref<18x18x128xf32, #tpu.memory_space<vmem>>, vector<16x16x128xf32>
    %43 = vector.shape_cast %42 : vector<16x16x128xf32> to vector<256x128xf32>
    %44 = arith.truncf %43 : vector<256x128xf32> to vector<256x128xbf16>
    %c1_57 = arith.constant 1 : index
    %c0_58 = arith.constant 0 : index
    %c0_59 = arith.constant 0 : index
    %c0_60 = arith.constant 0 : index
    %45 = vector.load %arg2[%c1_57, %c0_58, %c0_59, %c0_60] : memref<3x3x128x128xbf16, #tpu.memory_space<vmem>>, vector<1x1x128x128xbf16>
    %46 = vector.shape_cast %45 : vector<1x1x128x128xbf16> to vector<128x128xbf16>
    %cst_61 = arith.constant dense<0.000000e+00> : vector<256x128xf32>
    %47 = tpu.matmul %44, %46, %cst_61 {dimension_numbers = #tpu.dot_dimension_numbers<[1], [0], [0], [1], [0, 0, 1, 1], [], []>} : vector<256x128xbf16>, vector<128x128xbf16>, vector<256x128xf32> -> vector<256x128xf32>
    %48 = arith.addf %41, %47 : vector<256x128xf32>
    %c1_62 = arith.constant 1 : index
    %c1_63 = arith.constant 1 : index
    %c0_64 = arith.constant 0 : index
    %49 = vector.load %arg9[%c1_62, %c1_63, %c0_64] : memref<18x18x128xf32, #tpu.memory_space<vmem>>, vector<16x16x128xf32>
    %50 = vector.shape_cast %49 : vector<16x16x128xf32> to vector<256x128xf32>
    %51 = arith.truncf %50 : vector<256x128xf32> to vector<256x128xbf16>
    %c1_65 = arith.constant 1 : index
    %c1_66 = arith.constant 1 : index
    %c0_67 = arith.constant 0 : index
    %c0_68 = arith.constant 0 : index
    %52 = vector.load %arg2[%c1_65, %c1_66, %c0_67, %c0_68] : memref<3x3x128x128xbf16, #tpu.memory_space<vmem>>, vector<1x1x128x128xbf16>
    %53 = vector.shape_cast %52 : vector<1x1x128x128xbf16> to vector<128x128xbf16>
    %cst_69 = arith.constant dense<0.000000e+00> : vector<256x128xf32>
    %54 = tpu.matmul %51, %53, %cst_69 {dimension_numbers = #tpu.dot_dimension_numbers<[1], [0], [0], [1], [0, 0, 1, 1], [], []>} : vector<256x128xbf16>, vector<128x128xbf16>, vector<256x128xf32> -> vector<256x128xf32>
    %55 = arith.addf %48, %54 : vector<256x128xf32>
    %c1_70 = arith.constant 1 : index
    %c2_71 = arith.constant 2 : index
    %c0_72 = arith.constant 0 : index
    %56 = vector.load %arg9[%c1_70, %c2_71, %c0_72] : memref<18x18x128xf32, #tpu.memory_space<vmem>>, vector<16x16x128xf32>
    %57 = vector.shape_cast %56 : vector<16x16x128xf32> to vector<256x128xf32>
    %58 = arith.truncf %57 : vector<256x128xf32> to vector<256x128xbf16>
    %c1_73 = arith.constant 1 : index
    %c2_74 = arith.constant 2 : index
    %c0_75 = arith.constant 0 : index
    %c0_76 = arith.constant 0 : index
    %59 = vector.load %arg2[%c1_73, %c2_74, %c0_75, %c0_76] : memref<3x3x128x128xbf16, #tpu.memory_space<vmem>>, vector<1x1x128x128xbf16>
    %60 = vector.shape_cast %59 : vector<1x1x128x128xbf16> to vector<128x128xbf16>
    %cst_77 = arith.constant dense<0.000000e+00> : vector<256x128xf32>
    %61 = tpu.matmul %58, %60, %cst_77 {dimension_numbers = #tpu.dot_dimension_numbers<[1], [0], [0], [1], [0, 0, 1, 1], [], []>} : vector<256x128xbf16>, vector<128x128xbf16>, vector<256x128xf32> -> vector<256x128xf32>
    %62 = arith.addf %55, %61 : vector<256x128xf32>
    %c2_78 = arith.constant 2 : index
    %c0_79 = arith.constant 0 : index
    %c0_80 = arith.constant 0 : index
    %63 = vector.load %arg9[%c2_78, %c0_79, %c0_80] : memref<18x18x128xf32, #tpu.memory_space<vmem>>, vector<16x16x128xf32>
    %64 = vector.shape_cast %63 : vector<16x16x128xf32> to vector<256x128xf32>
    %65 = arith.truncf %64 : vector<256x128xf32> to vector<256x128xbf16>
    %c2_81 = arith.constant 2 : index
    %c0_82 = arith.constant 0 : index
    %c0_83 = arith.constant 0 : index
    %c0_84 = arith.constant 0 : index
    %66 = vector.load %arg2[%c2_81, %c0_82, %c0_83, %c0_84] : memref<3x3x128x128xbf16, #tpu.memory_space<vmem>>, vector<1x1x128x128xbf16>
    %67 = vector.shape_cast %66 : vector<1x1x128x128xbf16> to vector<128x128xbf16>
    %cst_85 = arith.constant dense<0.000000e+00> : vector<256x128xf32>
    %68 = tpu.matmul %65, %67, %cst_85 {dimension_numbers = #tpu.dot_dimension_numbers<[1], [0], [0], [1], [0, 0, 1, 1], [], []>} : vector<256x128xbf16>, vector<128x128xbf16>, vector<256x128xf32> -> vector<256x128xf32>
    %69 = arith.addf %62, %68 : vector<256x128xf32>
    %c2_86 = arith.constant 2 : index
    %c1_87 = arith.constant 1 : index
    %c0_88 = arith.constant 0 : index
    %70 = vector.load %arg9[%c2_86, %c1_87, %c0_88] : memref<18x18x128xf32, #tpu.memory_space<vmem>>, vector<16x16x128xf32>
    %71 = vector.shape_cast %70 : vector<16x16x128xf32> to vector<256x128xf32>
    %72 = arith.truncf %71 : vector<256x128xf32> to vector<256x128xbf16>
    %c2_89 = arith.constant 2 : index
    %c1_90 = arith.constant 1 : index
    %c0_91 = arith.constant 0 : index
    %c0_92 = arith.constant 0 : index
    %73 = vector.load %arg2[%c2_89, %c1_90, %c0_91, %c0_92] : memref<3x3x128x128xbf16, #tpu.memory_space<vmem>>, vector<1x1x128x128xbf16>
    %74 = vector.shape_cast %73 : vector<1x1x128x128xbf16> to vector<128x128xbf16>
    %cst_93 = arith.constant dense<0.000000e+00> : vector<256x128xf32>
    %75 = tpu.matmul %72, %74, %cst_93 {dimension_numbers = #tpu.dot_dimension_numbers<[1], [0], [0], [1], [0, 0, 1, 1], [], []>} : vector<256x128xbf16>, vector<128x128xbf16>, vector<256x128xf32> -> vector<256x128xf32>
    %76 = arith.addf %69, %75 : vector<256x128xf32>
    %c2_94 = arith.constant 2 : index
    %c2_95 = arith.constant 2 : index
    %c0_96 = arith.constant 0 : index
    %77 = vector.load %arg9[%c2_94, %c2_95, %c0_96] : memref<18x18x128xf32, #tpu.memory_space<vmem>>, vector<16x16x128xf32>
    %78 = vector.shape_cast %77 : vector<16x16x128xf32> to vector<256x128xf32>
    %79 = arith.truncf %78 : vector<256x128xf32> to vector<256x128xbf16>
    %c2_97 = arith.constant 2 : index
    %c2_98 = arith.constant 2 : index
    %c0_99 = arith.constant 0 : index
    %c0_100 = arith.constant 0 : index
    %80 = vector.load %arg2[%c2_97, %c2_98, %c0_99, %c0_100] : memref<3x3x128x128xbf16, #tpu.memory_space<vmem>>, vector<1x1x128x128xbf16>
    %81 = vector.shape_cast %80 : vector<1x1x128x128xbf16> to vector<128x128xbf16>
    %cst_101 = arith.constant dense<0.000000e+00> : vector<256x128xf32>
    %82 = tpu.matmul %79, %81, %cst_101 {dimension_numbers = #tpu.dot_dimension_numbers<[1], [0], [0], [1], [0, 0, 1, 1], [], []>} : vector<256x128xbf16>, vector<128x128xbf16>, vector<256x128xf32> -> vector<256x128xf32>
    %83 = arith.addf %76, %82 : vector<256x128xf32>
    %84 = vector.broadcast %0 : vector<1x128xf32> to vector<256x128xf32>
    %85 = arith.mulf %83, %84 : vector<256x128xf32>
    %86 = vector.broadcast %1 : vector<1x128xf32> to vector<256x128xf32>
    %87 = arith.addf %85, %86 : vector<256x128xf32>
    %88 = arith.negf %87 : vector<256x128xf32>
    %89 = math.exp %88 : vector<256x128xf32>
    %cst_102 = arith.constant 1.000000e+00 : f32
    %90 = vector.broadcast %cst_102 : f32 to vector<256x128xf32>
    %91 = arith.addf %90, %89 : vector<256x128xf32>
    %92 = arith.divf %90, %91 : vector<256x128xf32>
    %93 = arith.mulf %87, %92 : vector<256x128xf32>
    %cst_103 = arith.constant dense<0.000000e+00> : vector<128xf32>
    %94 = vector.multi_reduction <add>, %93, %cst_103 [0] : vector<256x128xf32> to vector<128xf32>
    %95 = vector.shape_cast %94 : vector<128xf32> to vector<1x128xf32>
    %cst_104 = arith.constant 2.560000e+02 : f32
    %96 = vector.broadcast %cst_104 : f32 to vector<1x128xf32>
    %97 = arith.divf %95, %96 : vector<1x128xf32>
    %c0_105 = arith.constant 0 : index
    %c0_106 = arith.constant 0 : index
    %98 = vector.load %arg5[%c0_105, %c0_106] : memref<128x128xf32, #tpu.memory_space<vmem>>, vector<128x128xf32>
    %cst_107 = arith.constant dense<0.000000e+00> : vector<1x128xf32>
    %99 = tpu.matmul %97, %98, %cst_107 {dimension_numbers = #tpu.dot_dimension_numbers<[1], [0], [0], [1], [0, 0, 1, 1], [], []>} : vector<1x128xf32>, vector<128x128xf32>, vector<1x128xf32> -> vector<1x128xf32>
    %100 = arith.addf %99, %2 : vector<1x128xf32>
    %101 = vector.broadcast %100 : vector<1x128xf32> to vector<256x128xf32>
    %102 = arith.addf %93, %101 : vector<256x128xf32>
    %103 = vector.shape_cast %102 : vector<256x128xf32> to vector<16x16x128xf32>
    %104 = vector.shape_cast %7 : vector<1x128xf32> to vector<1x1x128xf32>
    %105 = vector.broadcast %104 : vector<1x1x128xf32> to vector<16x16x128xf32>
    %106 = arith.mulf %103, %105 : vector<16x16x128xf32>
    %cst_108 = arith.constant dense<0.000000e+00> : vector<16x16xf32>
    %107 = vector.multi_reduction <add>, %106, %cst_108 [2] : vector<16x16x128xf32> to vector<16x16xf32>
    %108 = vector.shape_cast %107 : vector<16x16xf32> to vector<16x16x1xf32>
    %c2_109 = arith.constant 2 : index
    %c2_110 = arith.constant 2 : index
    %c0_111 = arith.constant 0 : index
    %109 = vector.load %arg11[%c2_109, %c2_110, %c0_111] : memref<20x20x1xf32, #tpu.memory_space<vmem>>, vector<16x16x1xf32>
    tpu.vector_store %arg11[%c2_109, %c2_110, %c0_111], %108 {strides = array<i32>} : memref<20x20x1xf32, #tpu.memory_space<vmem>>, vector<16x16x1xf32>,
    %c4_112 = arith.constant 4 : index
    %c2_113 = arith.constant 2 : index
    %c0_114 = arith.constant 0 : index
    %110 = vector.load %arg11[%c4_112, %c2_113, %c0_114] : memref<20x20x1xf32, #tpu.memory_space<vmem>>, vector<1x16x1xf32>
    %c0_115 = arith.constant 0 : index
    %c2_116 = arith.constant 2 : index
    %c0_117 = arith.constant 0 : index
    %111 = vector.load %arg11[%c0_115, %c2_116, %c0_117] : memref<20x20x1xf32, #tpu.memory_space<vmem>>, vector<1x16x1xf32>
    tpu.vector_store %arg11[%c0_115, %c2_116, %c0_117], %110 {strides = array<i32>} : memref<20x20x1xf32, #tpu.memory_space<vmem>>, vector<1x16x1xf32>,
    %c3_118 = arith.constant 3 : index
    %c2_119 = arith.constant 2 : index
    %c0_120 = arith.constant 0 : index
    %112 = vector.load %arg11[%c3_118, %c2_119, %c0_120] : memref<20x20x1xf32, #tpu.memory_space<vmem>>, vector<1x16x1xf32>
    %c1_121 = arith.constant 1 : index
    %c2_122 = arith.constant 2 : index
    %c0_123 = arith.constant 0 : index
    %113 = vector.load %arg11[%c1_121, %c2_122, %c0_123] : memref<20x20x1xf32, #tpu.memory_space<vmem>>, vector<1x16x1xf32>
    tpu.vector_store %arg11[%c1_121, %c2_122, %c0_123], %112 {strides = array<i32>} : memref<20x20x1xf32, #tpu.memory_space<vmem>>, vector<1x16x1xf32>,
    %c16 = arith.constant 16 : index
    %c2_124 = arith.constant 2 : index
    %c0_125 = arith.constant 0 : index
    %114 = vector.load %arg11[%c16, %c2_124, %c0_125] : memref<20x20x1xf32, #tpu.memory_space<vmem>>, vector<1x16x1xf32>
    %c18 = arith.constant 18 : index
    %c2_126 = arith.constant 2 : index
    %c0_127 = arith.constant 0 : index
    %115 = vector.load %arg11[%c18, %c2_126, %c0_127] : memref<20x20x1xf32, #tpu.memory_space<vmem>>, vector<1x16x1xf32>
    tpu.vector_store %arg11[%c18, %c2_126, %c0_127], %114 {strides = array<i32>} : memref<20x20x1xf32, #tpu.memory_space<vmem>>, vector<1x16x1xf32>,
    %c15 = arith.constant 15 : index
    %c2_128 = arith.constant 2 : index
    %c0_129 = arith.constant 0 : index
    %116 = vector.load %arg11[%c15, %c2_128, %c0_129] : memref<20x20x1xf32, #tpu.memory_space<vmem>>, vector<1x16x1xf32>
    %c19 = arith.constant 19 : index
    %c2_130 = arith.constant 2 : index
    %c0_131 = arith.constant 0 : index
    %117 = vector.load %arg11[%c19, %c2_130, %c0_131] : memref<20x20x1xf32, #tpu.memory_space<vmem>>, vector<1x16x1xf32>
    tpu.vector_store %arg11[%c19, %c2_130, %c0_131], %116 {strides = array<i32>} : memref<20x20x1xf32, #tpu.memory_space<vmem>>, vector<1x16x1xf32>,
    %c0_132 = arith.constant 0 : index
    %c4_133 = arith.constant 4 : index
    %c0_134 = arith.constant 0 : index
    %118 = vector.load %arg11[%c0_132, %c4_133, %c0_134] : memref<20x20x1xf32, #tpu.memory_space<vmem>>, vector<20x1x1xf32>
    %c0_135 = arith.constant 0 : index
    %c0_136 = arith.constant 0 : index
    %c0_137 = arith.constant 0 : index
    %119 = vector.load %arg11[%c0_135, %c0_136, %c0_137] : memref<20x20x1xf32, #tpu.memory_space<vmem>>, vector<20x1x1xf32>
    tpu.vector_store %arg11[%c0_135, %c0_136, %c0_137], %118 {strides = array<i32>} : memref<20x20x1xf32, #tpu.memory_space<vmem>>, vector<20x1x1xf32>,
    %c0_138 = arith.constant 0 : index
    %c3_139 = arith.constant 3 : index
    %c0_140 = arith.constant 0 : index
    %120 = vector.load %arg11[%c0_138, %c3_139, %c0_140] : memref<20x20x1xf32, #tpu.memory_space<vmem>>, vector<20x1x1xf32>
    %c0_141 = arith.constant 0 : index
    %c1_142 = arith.constant 1 : index
    %c0_143 = arith.constant 0 : index
    %121 = vector.load %arg11[%c0_141, %c1_142, %c0_143] : memref<20x20x1xf32, #tpu.memory_space<vmem>>, vector<20x1x1xf32>
    tpu.vector_store %arg11[%c0_141, %c1_142, %c0_143], %120 {strides = array<i32>} : memref<20x20x1xf32, #tpu.memory_space<vmem>>, vector<20x1x1xf32>,
    %c0_144 = arith.constant 0 : index
    %c16_145 = arith.constant 16 : index
    %c0_146 = arith.constant 0 : index
    %122 = vector.load %arg11[%c0_144, %c16_145, %c0_146] : memref<20x20x1xf32, #tpu.memory_space<vmem>>, vector<20x1x1xf32>
    %c0_147 = arith.constant 0 : index
    %c18_148 = arith.constant 18 : index
    %c0_149 = arith.constant 0 : index
    %123 = vector.load %arg11[%c0_147, %c18_148, %c0_149] : memref<20x20x1xf32, #tpu.memory_space<vmem>>, vector<20x1x1xf32>
    tpu.vector_store %arg11[%c0_147, %c18_148, %c0_149], %122 {strides = array<i32>} : memref<20x20x1xf32, #tpu.memory_space<vmem>>, vector<20x1x1xf32>,
    %c0_150 = arith.constant 0 : index
    %c15_151 = arith.constant 15 : index
    %c0_152 = arith.constant 0 : index
    %124 = vector.load %arg11[%c0_150, %c15_151, %c0_152] : memref<20x20x1xf32, #tpu.memory_space<vmem>>, vector<20x1x1xf32>
    %c0_153 = arith.constant 0 : index
    %c19_154 = arith.constant 19 : index
    %c0_155 = arith.constant 0 : index
    %125 = vector.load %arg11[%c0_153, %c19_154, %c0_155] : memref<20x20x1xf32, #tpu.memory_space<vmem>>, vector<20x1x1xf32>
    tpu.vector_store %arg11[%c0_153, %c19_154, %c0_155], %124 {strides = array<i32>} : memref<20x20x1xf32, #tpu.memory_space<vmem>>, vector<20x1x1xf32>,
    %c0_156 = arith.constant 0 : index
    %c0_157 = arith.constant 0 : index
    %c0_158 = arith.constant 0 : index
    %126 = vector.load %arg11[%c0_156, %c0_157, %c0_158] : memref<20x20x1xf32, #tpu.memory_space<vmem>>, vector<20x16x1xf32>
    %c0_159 = arith.constant 0 : index
    %c1_160 = arith.constant 1 : index
    %c0_161 = arith.constant 0 : index
    %127 = vector.load %arg11[%c0_159, %c1_160, %c0_161] : memref<20x20x1xf32, #tpu.memory_space<vmem>>, vector<20x16x1xf32>
    %128 = arith.addf %126, %127 : vector<20x16x1xf32>
    %c0_162 = arith.constant 0 : index
    %c2_163 = arith.constant 2 : index
    %c0_164 = arith.constant 0 : index
    %129 = vector.load %arg11[%c0_162, %c2_163, %c0_164] : memref<20x20x1xf32, #tpu.memory_space<vmem>>, vector<20x16x1xf32>
    %130 = arith.addf %128, %129 : vector<20x16x1xf32>
    %c0_165 = arith.constant 0 : index
    %c3_166 = arith.constant 3 : index
    %c0_167 = arith.constant 0 : index
    %131 = vector.load %arg11[%c0_165, %c3_166, %c0_167] : memref<20x20x1xf32, #tpu.memory_space<vmem>>, vector<20x16x1xf32>
    %132 = arith.addf %130, %131 : vector<20x16x1xf32>
    %c0_168 = arith.constant 0 : index
    %c4_169 = arith.constant 4 : index
    %c0_170 = arith.constant 0 : index
    %133 = vector.load %arg11[%c0_168, %c4_169, %c0_170] : memref<20x20x1xf32, #tpu.memory_space<vmem>>, vector<20x16x1xf32>
    %134 = arith.addf %132, %133 : vector<20x16x1xf32>
    %135 = vector.extract_strided_slice %134 {offsets = [0, 0, 0], sizes = [16, 16, 1], strides = [1, 1, 1]} : vector<20x16x1xf32> to vector<16x16x1xf32>
    %136 = vector.extract_strided_slice %134 {offsets = [1, 0, 0], sizes = [16, 16, 1], strides = [1, 1, 1]} : vector<20x16x1xf32> to vector<16x16x1xf32>
    %137 = arith.addf %135, %136 : vector<16x16x1xf32>
    %138 = vector.extract_strided_slice %134 {offsets = [2, 0, 0], sizes = [16, 16, 1], strides = [1, 1, 1]} : vector<20x16x1xf32> to vector<16x16x1xf32>
    %139 = arith.addf %137, %138 : vector<16x16x1xf32>
    %140 = vector.extract_strided_slice %134 {offsets = [3, 0, 0], sizes = [16, 16, 1], strides = [1, 1, 1]} : vector<20x16x1xf32> to vector<16x16x1xf32>
    %141 = arith.addf %139, %140 : vector<16x16x1xf32>
    %142 = vector.extract_strided_slice %134 {offsets = [4, 0, 0], sizes = [16, 16, 1], strides = [1, 1, 1]} : vector<20x16x1xf32> to vector<16x16x1xf32>
    %143 = arith.addf %141, %142 : vector<16x16x1xf32>
    %cst_171 = arith.constant 4.000000e-02 : f32
    %144 = vector.broadcast %cst_171 : f32 to vector<16x16x1xf32>
    %145 = arith.mulf %143, %144 : vector<16x16x1xf32>
    %146 = vector.shape_cast %6 : vector<1x1xf32> to vector<1x1x1xf32>
    %147 = vector.broadcast %146 : vector<1x1x1xf32> to vector<16x16x1xf32>
    %148 = arith.addf %145, %147 : vector<16x16x1xf32>
    %cst_172 = arith.constant 0.000000e+00 : f32
    %149 = vector.broadcast %cst_172 : f32 to vector<3x22x128xf32>
    %c0_173 = arith.constant 0 : index
    %c0_174 = arith.constant 0 : index
    %c0_175 = arith.constant 0 : index
    %150 = vector.load %arg10[%c0_173, %c0_174, %c0_175] : memref<22x22x128xf32, #tpu.memory_space<vmem>>, vector<3x22x128xf32>
    tpu.vector_store %arg10[%c0_173, %c0_174, %c0_175], %149 {strides = array<i32>} : memref<22x22x128xf32, #tpu.memory_space<vmem>>, vector<3x22x128xf32>,
    %cst_176 = arith.constant 0.000000e+00 : f32
    %151 = vector.broadcast %cst_176 : f32 to vector<3x22x128xf32>
    %c19_177 = arith.constant 19 : index
    %c0_178 = arith.constant 0 : index
    %c0_179 = arith.constant 0 : index
    %152 = vector.load %arg10[%c19_177, %c0_178, %c0_179] : memref<22x22x128xf32, #tpu.memory_space<vmem>>, vector<3x22x128xf32>
    tpu.vector_store %arg10[%c19_177, %c0_178, %c0_179], %151 {strides = array<i32>} : memref<22x22x128xf32, #tpu.memory_space<vmem>>, vector<3x22x128xf32>,
    %cst_180 = arith.constant 0.000000e+00 : f32
    %153 = vector.broadcast %cst_180 : f32 to vector<22x3x128xf32>
    %c0_181 = arith.constant 0 : index
    %c0_182 = arith.constant 0 : index
    %c0_183 = arith.constant 0 : index
    %154 = vector.load %arg10[%c0_181, %c0_182, %c0_183] : memref<22x22x128xf32, #tpu.memory_space<vmem>>, vector<22x3x128xf32>
    tpu.vector_store %arg10[%c0_181, %c0_182, %c0_183], %153 {strides = array<i32>} : memref<22x22x128xf32, #tpu.memory_space<vmem>>, vector<22x3x128xf32>,
    %cst_184 = arith.constant 0.000000e+00 : f32
    %155 = vector.broadcast %cst_184 : f32 to vector<22x3x128xf32>
    %c0_185 = arith.constant 0 : index
    %c19_186 = arith.constant 19 : index
    %c0_187 = arith.constant 0 : index
    %156 = vector.load %arg10[%c0_185, %c19_186, %c0_187] : memref<22x22x128xf32, #tpu.memory_space<vmem>>, vector<22x3x128xf32>
    tpu.vector_store %arg10[%c0_185, %c19_186, %c0_187], %155 {strides = array<i32>} : memref<22x22x128xf32, #tpu.memory_space<vmem>>, vector<22x3x128xf32>,
    %c3_188 = arith.constant 3 : index
    %c3_189 = arith.constant 3 : index
    %c0_190 = arith.constant 0 : index
    %157 = vector.load %arg10[%c3_188, %c3_189, %c0_190] : memref<22x22x128xf32, #tpu.memory_space<vmem>>, vector<16x16x128xf32>
    tpu.vector_store %arg10[%c3_188, %c3_189, %c0_190], %103 {strides = array<i32>} : memref<22x22x128xf32, #tpu.memory_space<vmem>>, vector<16x16x128xf32>,
    %cst_191 = arith.constant 0.000000e+00 : f32
    %158 = vector.broadcast %cst_191 : f32 to vector<256x128xf32>
    %cst_192 = arith.constant 0.000000e+00 : f32
    %159 = vector.broadcast %cst_192 : f32 to vector<256x128xf32>
    %c2_193 = arith.constant 2 : index
    %c2_194 = arith.constant 2 : index
    %c0_195 = arith.constant 0 : index
    %160 = vector.load %arg10[%c2_193, %c2_194, %c0_195] : memref<22x22x128xf32, #tpu.memory_space<vmem>>, vector<16x16x128xf32>
    %161 = vector.shape_cast %160 : vector<16x16x128xf32> to vector<256x128xf32>
    %162 = arith.truncf %161 : vector<256x128xf32> to vector<256x128xbf16>
    %c0_196 = arith.constant 0 : index
    %c0_197 = arith.constant 0 : index
    %c0_198 = arith.constant 0 : index
    %c0_199 = arith.constant 0 : index
    %163 = vector.load %arg3[%c0_196, %c0_197, %c0_198, %c0_199] : memref<3x3x128x128xbf16, #tpu.memory_space<vmem>>, vector<1x1x128x128xbf16>
    %164 = vector.shape_cast %163 : vector<1x1x128x128xbf16> to vector<128x128xbf16>
    %cst_200 = arith.constant dense<0.000000e+00> : vector<256x128xf32>
    %165 = tpu.matmul %162, %164, %cst_200 {dimension_numbers = #tpu.dot_dimension_numbers<[1], [0], [0], [1], [0, 0, 1, 1], [], []>} : vector<256x128xbf16>, vector<128x128xbf16>, vector<256x128xf32> -> vector<256x128xf32>
    %166 = arith.addf %158, %165 : vector<256x128xf32>
    %c0_201 = arith.constant 0 : index
    %c0_202 = arith.constant 0 : index
    %c0_203 = arith.constant 0 : index
    %167 = vector.load %arg10[%c0_201, %c0_202, %c0_203] : memref<22x22x128xf32, #tpu.memory_space<vmem>>, vector<16x16x128xf32>
    %168 = vector.shape_cast %167 : vector<16x16x128xf32> to vector<256x128xf32>
    %169 = arith.truncf %168 : vector<256x128xf32> to vector<256x128xbf16>
    %c0_204 = arith.constant 0 : index
    %c0_205 = arith.constant 0 : index
    %c0_206 = arith.constant 0 : index
    %c0_207 = arith.constant 0 : index
    %170 = vector.load %arg4[%c0_204, %c0_205, %c0_206, %c0_207] : memref<3x3x128x128xbf16, #tpu.memory_space<vmem>>, vector<1x1x128x128xbf16>
    %171 = vector.shape_cast %170 : vector<1x1x128x128xbf16> to vector<128x128xbf16>
    %cst_208 = arith.constant dense<0.000000e+00> : vector<256x128xf32>
    %172 = tpu.matmul %169, %171, %cst_208 {dimension_numbers = #tpu.dot_dimension_numbers<[1], [0], [0], [1], [0, 0, 1, 1], [], []>} : vector<256x128xbf16>, vector<128x128xbf16>, vector<256x128xf32> -> vector<256x128xf32>
    %173 = arith.addf %159, %172 : vector<256x128xf32>
    %c2_209 = arith.constant 2 : index
    %c3_210 = arith.constant 3 : index
    %c0_211 = arith.constant 0 : index
    %174 = vector.load %arg10[%c2_209, %c3_210, %c0_211] : memref<22x22x128xf32, #tpu.memory_space<vmem>>, vector<16x16x128xf32>
    %175 = vector.shape_cast %174 : vector<16x16x128xf32> to vector<256x128xf32>
    %176 = arith.truncf %175 : vector<256x128xf32> to vector<256x128xbf16>
    %c0_212 = arith.constant 0 : index
    %c1_213 = arith.constant 1 : index
    %c0_214 = arith.constant 0 : index
    %c0_215 = arith.constant 0 : index
    %177 = vector.load %arg3[%c0_212, %c1_213, %c0_214, %c0_215] : memref<3x3x128x128xbf16, #tpu.memory_space<vmem>>, vector<1x1x128x128xbf16>
    %178 = vector.shape_cast %177 : vector<1x1x128x128xbf16> to vector<128x128xbf16>
    %cst_216 = arith.constant dense<0.000000e+00> : vector<256x128xf32>
    %179 = tpu.matmul %176, %178, %cst_216 {dimension_numbers = #tpu.dot_dimension_numbers<[1], [0], [0], [1], [0, 0, 1, 1], [], []>} : vector<256x128xbf16>, vector<128x128xbf16>, vector<256x128xf32> -> vector<256x128xf32>
    %180 = arith.addf %166, %179 : vector<256x128xf32>
    %c0_217 = arith.constant 0 : index
    %c3_218 = arith.constant 3 : index
    %c0_219 = arith.constant 0 : index
    %181 = vector.load %arg10[%c0_217, %c3_218, %c0_219] : memref<22x22x128xf32, #tpu.memory_space<vmem>>, vector<16x16x128xf32>
    %182 = vector.shape_cast %181 : vector<16x16x128xf32> to vector<256x128xf32>
    %183 = arith.truncf %182 : vector<256x128xf32> to vector<256x128xbf16>
    %c0_220 = arith.constant 0 : index
    %c1_221 = arith.constant 1 : index
    %c0_222 = arith.constant 0 : index
    %c0_223 = arith.constant 0 : index
    %184 = vector.load %arg4[%c0_220, %c1_221, %c0_222, %c0_223] : memref<3x3x128x128xbf16, #tpu.memory_space<vmem>>, vector<1x1x128x128xbf16>
    %185 = vector.shape_cast %184 : vector<1x1x128x128xbf16> to vector<128x128xbf16>
    %cst_224 = arith.constant dense<0.000000e+00> : vector<256x128xf32>
    %186 = tpu.matmul %183, %185, %cst_224 {dimension_numbers = #tpu.dot_dimension_numbers<[1], [0], [0], [1], [0, 0, 1, 1], [], []>} : vector<256x128xbf16>, vector<128x128xbf16>, vector<256x128xf32> -> vector<256x128xf32>
    %187 = arith.addf %173, %186 : vector<256x128xf32>
    %c2_225 = arith.constant 2 : index
    %c4_226 = arith.constant 4 : index
    %c0_227 = arith.constant 0 : index
    %188 = vector.load %arg10[%c2_225, %c4_226, %c0_227] : memref<22x22x128xf32, #tpu.memory_space<vmem>>, vector<16x16x128xf32>
    %189 = vector.shape_cast %188 : vector<16x16x128xf32> to vector<256x128xf32>
    %190 = arith.truncf %189 : vector<256x128xf32> to vector<256x128xbf16>
    %c0_228 = arith.constant 0 : index
    %c2_229 = arith.constant 2 : index
    %c0_230 = arith.constant 0 : index
    %c0_231 = arith.constant 0 : index
    %191 = vector.load %arg3[%c0_228, %c2_229, %c0_230, %c0_231] : memref<3x3x128x128xbf16, #tpu.memory_space<vmem>>, vector<1x1x128x128xbf16>
    %192 = vector.shape_cast %191 : vector<1x1x128x128xbf16> to vector<128x128xbf16>
    %cst_232 = arith.constant dense<0.000000e+00> : vector<256x128xf32>
    %193 = tpu.matmul %190, %192, %cst_232 {dimension_numbers = #tpu.dot_dimension_numbers<[1], [0], [0], [1], [0, 0, 1, 1], [], []>} : vector<256x128xbf16>, vector<128x128xbf16>, vector<256x128xf32> -> vector<256x128xf32>
    %194 = arith.addf %180, %193 : vector<256x128xf32>
    %c0_233 = arith.constant 0 : index
    %c6_234 = arith.constant 6 : index
    %c0_235 = arith.constant 0 : index
    %195 = vector.load %arg10[%c0_233, %c6_234, %c0_235] : memref<22x22x128xf32, #tpu.memory_space<vmem>>, vector<16x16x128xf32>
    %196 = vector.shape_cast %195 : vector<16x16x128xf32> to vector<256x128xf32>
    %197 = arith.truncf %196 : vector<256x128xf32> to vector<256x128xbf16>
    %c0_236 = arith.constant 0 : index
    %c2_237 = arith.constant 2 : index
    %c0_238 = arith.constant 0 : index
    %c0_239 = arith.constant 0 : index
    %198 = vector.load %arg4[%c0_236, %c2_237, %c0_238, %c0_239] : memref<3x3x128x128xbf16, #tpu.memory_space<vmem>>, vector<1x1x128x128xbf16>
    %199 = vector.shape_cast %198 : vector<1x1x128x128xbf16> to vector<128x128xbf16>
    %cst_240 = arith.constant dense<0.000000e+00> : vector<256x128xf32>
    %200 = tpu.matmul %197, %199, %cst_240 {dimension_numbers = #tpu.dot_dimension_numbers<[1], [0], [0], [1], [0, 0, 1, 1], [], []>} : vector<256x128xbf16>, vector<128x128xbf16>, vector<256x128xf32> -> vector<256x128xf32>
    %201 = arith.addf %187, %200 : vector<256x128xf32>
    %c3_241 = arith.constant 3 : index
    %c2_242 = arith.constant 2 : index
    %c0_243 = arith.constant 0 : index
    %202 = vector.load %arg10[%c3_241, %c2_242, %c0_243] : memref<22x22x128xf32, #tpu.memory_space<vmem>>, vector<16x16x128xf32>
    %203 = vector.shape_cast %202 : vector<16x16x128xf32> to vector<256x128xf32>
    %204 = arith.truncf %203 : vector<256x128xf32> to vector<256x128xbf16>
    %c1_244 = arith.constant 1 : index
    %c0_245 = arith.constant 0 : index
    %c0_246 = arith.constant 0 : index
    %c0_247 = arith.constant 0 : index
    %205 = vector.load %arg3[%c1_244, %c0_245, %c0_246, %c0_247] : memref<3x3x128x128xbf16, #tpu.memory_space<vmem>>, vector<1x1x128x128xbf16>
    %206 = vector.shape_cast %205 : vector<1x1x128x128xbf16> to vector<128x128xbf16>
    %cst_248 = arith.constant dense<0.000000e+00> : vector<256x128xf32>
    %207 = tpu.matmul %204, %206, %cst_248 {dimension_numbers = #tpu.dot_dimension_numbers<[1], [0], [0], [1], [0, 0, 1, 1], [], []>} : vector<256x128xbf16>, vector<128x128xbf16>, vector<256x128xf32> -> vector<256x128xf32>
    %208 = arith.addf %194, %207 : vector<256x128xf32>
    %c3_249 = arith.constant 3 : index
    %c0_250 = arith.constant 0 : index
    %c0_251 = arith.constant 0 : index
    %209 = vector.load %arg10[%c3_249, %c0_250, %c0_251] : memref<22x22x128xf32, #tpu.memory_space<vmem>>, vector<16x16x128xf32>
    %210 = vector.shape_cast %209 : vector<16x16x128xf32> to vector<256x128xf32>
    %211 = arith.truncf %210 : vector<256x128xf32> to vector<256x128xbf16>
    %c1_252 = arith.constant 1 : index
    %c0_253 = arith.constant 0 : index
    %c0_254 = arith.constant 0 : index
    %c0_255 = arith.constant 0 : index
    %212 = vector.load %arg4[%c1_252, %c0_253, %c0_254, %c0_255] : memref<3x3x128x128xbf16, #tpu.memory_space<vmem>>, vector<1x1x128x128xbf16>
    %213 = vector.shape_cast %212 : vector<1x1x128x128xbf16> to vector<128x128xbf16>
    %cst_256 = arith.constant dense<0.000000e+00> : vector<256x128xf32>
    %214 = tpu.matmul %211, %213, %cst_256 {dimension_numbers = #tpu.dot_dimension_numbers<[1], [0], [0], [1], [0, 0, 1, 1], [], []>} : vector<256x128xbf16>, vector<128x128xbf16>, vector<256x128xf32> -> vector<256x128xf32>
    %215 = arith.addf %201, %214 : vector<256x128xf32>
    %c3_257 = arith.constant 3 : index
    %c3_258 = arith.constant 3 : index
    %c0_259 = arith.constant 0 : index
    %216 = vector.load %arg10[%c3_257, %c3_258, %c0_259] : memref<22x22x128xf32, #tpu.memory_space<vmem>>, vector<16x16x128xf32>
    %217 = vector.shape_cast %216 : vector<16x16x128xf32> to vector<256x128xf32>
    %218 = arith.truncf %217 : vector<256x128xf32> to vector<256x128xbf16>
    %c1_260 = arith.constant 1 : index
    %c1_261 = arith.constant 1 : index
    %c0_262 = arith.constant 0 : index
    %c0_263 = arith.constant 0 : index
    %219 = vector.load %arg3[%c1_260, %c1_261, %c0_262, %c0_263] : memref<3x3x128x128xbf16, #tpu.memory_space<vmem>>, vector<1x1x128x128xbf16>
    %220 = vector.shape_cast %219 : vector<1x1x128x128xbf16> to vector<128x128xbf16>
    %cst_264 = arith.constant dense<0.000000e+00> : vector<256x128xf32>
    %221 = tpu.matmul %218, %220, %cst_264 {dimension_numbers = #tpu.dot_dimension_numbers<[1], [0], [0], [1], [0, 0, 1, 1], [], []>} : vector<256x128xbf16>, vector<128x128xbf16>, vector<256x128xf32> -> vector<256x128xf32>
    %222 = arith.addf %208, %221 : vector<256x128xf32>
    %c3_265 = arith.constant 3 : index
    %c3_266 = arith.constant 3 : index
    %c0_267 = arith.constant 0 : index
    %223 = vector.load %arg10[%c3_265, %c3_266, %c0_267] : memref<22x22x128xf32, #tpu.memory_space<vmem>>, vector<16x16x128xf32>
    %224 = vector.shape_cast %223 : vector<16x16x128xf32> to vector<256x128xf32>
    %225 = arith.truncf %224 : vector<256x128xf32> to vector<256x128xbf16>
    %c1_268 = arith.constant 1 : index
    %c1_269 = arith.constant 1 : index
    %c0_270 = arith.constant 0 : index
    %c0_271 = arith.constant 0 : index
    %226 = vector.load %arg4[%c1_268, %c1_269, %c0_270, %c0_271] : memref<3x3x128x128xbf16, #tpu.memory_space<vmem>>, vector<1x1x128x128xbf16>
    %227 = vector.shape_cast %226 : vector<1x1x128x128xbf16> to vector<128x128xbf16>
    %cst_272 = arith.constant dense<0.000000e+00> : vector<256x128xf32>
    %228 = tpu.matmul %225, %227, %cst_272 {dimension_numbers = #tpu.dot_dimension_numbers<[1], [0], [0], [1], [0, 0, 1, 1], [], []>} : vector<256x128xbf16>, vector<128x128xbf16>, vector<256x128xf32> -> vector<256x128xf32>
    %229 = arith.addf %215, %228 : vector<256x128xf32>
    %c3_273 = arith.constant 3 : index
    %c4_274 = arith.constant 4 : index
    %c0_275 = arith.constant 0 : index
    %230 = vector.load %arg10[%c3_273, %c4_274, %c0_275] : memref<22x22x128xf32, #tpu.memory_space<vmem>>, vector<16x16x128xf32>
    %231 = vector.shape_cast %230 : vector<16x16x128xf32> to vector<256x128xf32>
    %232 = arith.truncf %231 : vector<256x128xf32> to vector<256x128xbf16>
    %c1_276 = arith.constant 1 : index
    %c2_277 = arith.constant 2 : index
    %c0_278 = arith.constant 0 : index
    %c0_279 = arith.constant 0 : index
    %233 = vector.load %arg3[%c1_276, %c2_277, %c0_278, %c0_279] : memref<3x3x128x128xbf16, #tpu.memory_space<vmem>>, vector<1x1x128x128xbf16>
    %234 = vector.shape_cast %233 : vector<1x1x128x128xbf16> to vector<128x128xbf16>
    %cst_280 = arith.constant dense<0.000000e+00> : vector<256x128xf32>
    %235 = tpu.matmul %232, %234, %cst_280 {dimension_numbers = #tpu.dot_dimension_numbers<[1], [0], [0], [1], [0, 0, 1, 1], [], []>} : vector<256x128xbf16>, vector<128x128xbf16>, vector<256x128xf32> -> vector<256x128xf32>
    %236 = arith.addf %222, %235 : vector<256x128xf32>
    %c3_281 = arith.constant 3 : index
    %c6_282 = arith.constant 6 : index
    %c0_283 = arith.constant 0 : index
    %237 = vector.load %arg10[%c3_281, %c6_282, %c0_283] : memref<22x22x128xf32, #tpu.memory_space<vmem>>, vector<16x16x128xf32>
    %238 = vector.shape_cast %237 : vector<16x16x128xf32> to vector<256x128xf32>
    %239 = arith.truncf %238 : vector<256x128xf32> to vector<256x128xbf16>
    %c1_284 = arith.constant 1 : index
    %c2_285 = arith.constant 2 : index
    %c0_286 = arith.constant 0 : index
    %c0_287 = arith.constant 0 : index
    %240 = vector.load %arg4[%c1_284, %c2_285, %c0_286, %c0_287] : memref<3x3x128x128xbf16, #tpu.memory_space<vmem>>, vector<1x1x128x128xbf16>
    %241 = vector.shape_cast %240 : vector<1x1x128x128xbf16> to vector<128x128xbf16>
    %cst_288 = arith.constant dense<0.000000e+00> : vector<256x128xf32>
    %242 = tpu.matmul %239, %241, %cst_288 {dimension_numbers = #tpu.dot_dimension_numbers<[1], [0], [0], [1], [0, 0, 1, 1], [], []>} : vector<256x128xbf16>, vector<128x128xbf16>, vector<256x128xf32> -> vector<256x128xf32>
    %243 = arith.addf %229, %242 : vector<256x128xf32>
    %c4_289 = arith.constant 4 : index
    %c2_290 = arith.constant 2 : index
    %c0_291 = arith.constant 0 : index
    %244 = vector.load %arg10[%c4_289, %c2_290, %c0_291] : memref<22x22x128xf32, #tpu.memory_space<vmem>>, vector<16x16x128xf32>
    %245 = vector.shape_cast %244 : vector<16x16x128xf32> to vector<256x128xf32>
    %246 = arith.truncf %245 : vector<256x128xf32> to vector<256x128xbf16>
    %c2_292 = arith.constant 2 : index
    %c0_293 = arith.constant 0 : index
    %c0_294 = arith.constant 0 : index
    %c0_295 = arith.constant 0 : index
    %247 = vector.load %arg3[%c2_292, %c0_293, %c0_294, %c0_295] : memref<3x3x128x128xbf16, #tpu.memory_space<vmem>>, vector<1x1x128x128xbf16>
    %248 = vector.shape_cast %247 : vector<1x1x128x128xbf16> to vector<128x128xbf16>
    %cst_296 = arith.constant dense<0.000000e+00> : vector<256x128xf32>
    %249 = tpu.matmul %246, %248, %cst_296 {dimension_numbers = #tpu.dot_dimension_numbers<[1], [0], [0], [1], [0, 0, 1, 1], [], []>} : vector<256x128xbf16>, vector<128x128xbf16>, vector<256x128xf32> -> vector<256x128xf32>
    %250 = arith.addf %236, %249 : vector<256x128xf32>
    %c6_297 = arith.constant 6 : index
    %c0_298 = arith.constant 0 : index
    %c0_299 = arith.constant 0 : index
    %251 = vector.load %arg10[%c6_297, %c0_298, %c0_299] : memref<22x22x128xf32, #tpu.memory_space<vmem>>, vector<16x16x128xf32>
    %252 = vector.shape_cast %251 : vector<16x16x128xf32> to vector<256x128xf32>
    %253 = arith.truncf %252 : vector<256x128xf32> to vector<256x128xbf16>
    %c2_300 = arith.constant 2 : index
    %c0_301 = arith.constant 0 : index
    %c0_302 = arith.constant 0 : index
    %c0_303 = arith.constant 0 : index
    %254 = vector.load %arg4[%c2_300, %c0_301, %c0_302, %c0_303] : memref<3x3x128x128xbf16, #tpu.memory_space<vmem>>, vector<1x1x128x128xbf16>
    %255 = vector.shape_cast %254 : vector<1x1x128x128xbf16> to vector<128x128xbf16>
    %cst_304 = arith.constant dense<0.000000e+00> : vector<256x128xf32>
    %256 = tpu.matmul %253, %255, %cst_304 {dimension_numbers = #tpu.dot_dimension_numbers<[1], [0], [0], [1], [0, 0, 1, 1], [], []>} : vector<256x128xbf16>, vector<128x128xbf16>, vector<256x128xf32> -> vector<256x128xf32>
    %257 = arith.addf %243, %256 : vector<256x128xf32>
    %c4_305 = arith.constant 4 : index
    %c3_306 = arith.constant 3 : index
    %c0_307 = arith.constant 0 : index
    %258 = vector.load %arg10[%c4_305, %c3_306, %c0_307] : memref<22x22x128xf32, #tpu.memory_space<vmem>>, vector<16x16x128xf32>
    %259 = vector.shape_cast %258 : vector<16x16x128xf32> to vector<256x128xf32>
    %260 = arith.truncf %259 : vector<256x128xf32> to vector<256x128xbf16>
    %c2_308 = arith.constant 2 : index
    %c1_309 = arith.constant 1 : index
    %c0_310 = arith.constant 0 : index
    %c0_311 = arith.constant 0 : index
    %261 = vector.load %arg3[%c2_308, %c1_309, %c0_310, %c0_311] : memref<3x3x128x128xbf16, #tpu.memory_space<vmem>>, vector<1x1x128x128xbf16>
    %262 = vector.shape_cast %261 : vector<1x1x128x128xbf16> to vector<128x128xbf16>
    %cst_312 = arith.constant dense<0.000000e+00> : vector<256x128xf32>
    %263 = tpu.matmul %260, %262, %cst_312 {dimension_numbers = #tpu.dot_dimension_numbers<[1], [0], [0], [1], [0, 0, 1, 1], [], []>} : vector<256x128xbf16>, vector<128x128xbf16>, vector<256x128xf32> -> vector<256x128xf32>
    %264 = arith.addf %250, %263 : vector<256x128xf32>
    %c6_313 = arith.constant 6 : index
    %c3_314 = arith.constant 3 : index
    %c0_315 = arith.constant 0 : index
    %265 = vector.load %arg10[%c6_313, %c3_314, %c0_315] : memref<22x22x128xf32, #tpu.memory_space<vmem>>, vector<16x16x128xf32>
    %266 = vector.shape_cast %265 : vector<16x16x128xf32> to vector<256x128xf32>
    %267 = arith.truncf %266 : vector<256x128xf32> to vector<256x128xbf16>
    %c2_316 = arith.constant 2 : index
    %c1_317 = arith.constant 1 : index
    %c0_318 = arith.constant 0 : index
    %c0_319 = arith.constant 0 : index
    %268 = vector.load %arg4[%c2_316, %c1_317, %c0_318, %c0_319] : memref<3x3x128x128xbf16, #tpu.memory_space<vmem>>, vector<1x1x128x128xbf16>
    %269 = vector.shape_cast %268 : vector<1x1x128x128xbf16> to vector<128x128xbf16>
    %cst_320 = arith.constant dense<0.000000e+00> : vector<256x128xf32>
    %270 = tpu.matmul %267, %269, %cst_320 {dimension_numbers = #tpu.dot_dimension_numbers<[1], [0], [0], [1], [0, 0, 1, 1], [], []>} : vector<256x128xbf16>, vector<128x128xbf16>, vector<256x128xf32> -> vector<256x128xf32>
    %271 = arith.addf %257, %270 : vector<256x128xf32>
    %c4_321 = arith.constant 4 : index
    %c4_322 = arith.constant 4 : index
    %c0_323 = arith.constant 0 : index
    %272 = vector.load %arg10[%c4_321, %c4_322, %c0_323] : memref<22x22x128xf32, #tpu.memory_space<vmem>>, vector<16x16x128xf32>
    %273 = vector.shape_cast %272 : vector<16x16x128xf32> to vector<256x128xf32>
    %274 = arith.truncf %273 : vector<256x128xf32> to vector<256x128xbf16>
    %c2_324 = arith.constant 2 : index
    %c2_325 = arith.constant 2 : index
    %c0_326 = arith.constant 0 : index
    %c0_327 = arith.constant 0 : index
    %275 = vector.load %arg3[%c2_324, %c2_325, %c0_326, %c0_327] : memref<3x3x128x128xbf16, #tpu.memory_space<vmem>>, vector<1x1x128x128xbf16>
    %276 = vector.shape_cast %275 : vector<1x1x128x128xbf16> to vector<128x128xbf16>
    %cst_328 = arith.constant dense<0.000000e+00> : vector<256x128xf32>
    %277 = tpu.matmul %274, %276, %cst_328 {dimension_numbers = #tpu.dot_dimension_numbers<[1], [0], [0], [1], [0, 0, 1, 1], [], []>} : vector<256x128xbf16>, vector<128x128xbf16>, vector<256x128xf32> -> vector<256x128xf32>
    %278 = arith.addf %264, %277 : vector<256x128xf32>
    %c6_329 = arith.constant 6 : index
    %c6_330 = arith.constant 6 : index
    %c0_331 = arith.constant 0 : index
    %279 = vector.load %arg10[%c6_329, %c6_330, %c0_331] : memref<22x22x128xf32, #tpu.memory_space<vmem>>, vector<16x16x128xf32>
    %280 = vector.shape_cast %279 : vector<16x16x128xf32> to vector<256x128xf32>
    %281 = arith.truncf %280 : vector<256x128xf32> to vector<256x128xbf16>
    %c2_332 = arith.constant 2 : index
    %c2_333 = arith.constant 2 : index
    %c0_334 = arith.constant 0 : index
    %c0_335 = arith.constant 0 : index
    %282 = vector.load %arg4[%c2_332, %c2_333, %c0_334, %c0_335] : memref<3x3x128x128xbf16, #tpu.memory_space<vmem>>, vector<1x1x128x128xbf16>
    %283 = vector.shape_cast %282 : vector<1x1x128x128xbf16> to vector<128x128xbf16>
    %cst_336 = arith.constant dense<0.000000e+00> : vector<256x128xf32>
    %284 = tpu.matmul %281, %283, %cst_336 {dimension_numbers = #tpu.dot_dimension_numbers<[1], [0], [0], [1], [0, 0, 1, 1], [], []>} : vector<256x128xbf16>, vector<128x128xbf16>, vector<256x128xf32> -> vector<256x128xf32>
    %285 = arith.addf %271, %284 : vector<256x128xf32>
    %286 = vector.shape_cast %278 : vector<256x128xf32> to vector<16x16x128xf32>
    %287 = vector.shape_cast %285 : vector<256x128xf32> to vector<16x16x128xf32>
    %288 = arith.subf %286, %287 : vector<16x16x128xf32>
    %289 = vector.broadcast %148 : vector<16x16x1xf32> to vector<16x16x128xf32>
    %290 = arith.mulf %289, %288 : vector<16x16x128xf32>
    %291 = arith.addf %287, %290 : vector<16x16x128xf32>
    %cst_337 = arith.constant dense<0.000000e+00> : vector<128xf32>
    %292 = vector.multi_reduction <add>, %291, %cst_337 [0, 1] : vector<16x16x128xf32> to vector<128xf32>
    %293 = vector.shape_cast %292 : vector<128xf32> to vector<1x1x128xf32>
    %cst_338 = arith.constant 2.560000e+02 : f32
    %294 = vector.broadcast %cst_338 : f32 to vector<1x1x128xf32>
    %295 = arith.divf %293, %294 : vector<1x1x128xf32>
    %296 = vector.shape_cast %295 : vector<1x1x128xf32> to vector<1x128xf32>
    %c0_339 = arith.constant 0 : index
    %c0_340 = arith.constant 0 : index
    %297 = vector.load %arg6[%c0_339, %c0_340] : memref<128x128xf32, #tpu.memory_space<vmem>>, vector<128x128xf32>
    %cst_341 = arith.constant dense<0.000000e+00> : vector<1x128xf32>
    %298 = tpu.matmul %296, %297, %cst_341 {dimension_numbers = #tpu.dot_dimension_numbers<[1], [0], [0], [1], [0, 0, 1, 1], [], []>} : vector<1x128xf32>, vector<128x128xf32>, vector<1x128xf32> -> vector<1x128xf32>
    %299 = arith.addf %298, %5 : vector<1x128xf32>
    %300 = vector.shape_cast %299 : vector<1x128xf32> to vector<1x1x128xf32>
    %301 = vector.broadcast %300 : vector<1x1x128xf32> to vector<16x16x128xf32>
    %302 = arith.addf %291, %301 : vector<16x16x128xf32>
    %303 = vector.shape_cast %3 : vector<1x128xf32> to vector<1x1x128xf32>
    %304 = vector.broadcast %303 : vector<1x1x128xf32> to vector<16x16x128xf32>
    %305 = arith.mulf %302, %304 : vector<16x16x128xf32>
    %306 = vector.shape_cast %4 : vector<1x128xf32> to vector<1x1x128xf32>
    %307 = vector.broadcast %306 : vector<1x1x128xf32> to vector<16x16x128xf32>
    %308 = arith.addf %305, %307 : vector<16x16x128xf32>
    %309 = arith.negf %308 : vector<16x16x128xf32>
    %310 = math.exp %309 : vector<16x16x128xf32>
    %cst_342 = arith.constant 1.000000e+00 : f32
    %311 = vector.broadcast %cst_342 : f32 to vector<16x16x128xf32>
    %312 = arith.addf %311, %310 : vector<16x16x128xf32>
    %313 = arith.divf %311, %312 : vector<16x16x128xf32>
    %314 = arith.mulf %308, %313 : vector<16x16x128xf32>
    %c0_343 = arith.constant 0 : index
    %c0_344 = arith.constant 0 : index
    %c0_345 = arith.constant 0 : index
    %c0_346 = arith.constant 0 : index
    %315 = vector.load %arg1[%c0_343, %c0_344, %c0_345, %c0_346] : memref<1x16x16x128xbf16, #tpu.memory_space<vmem>>, vector<1x16x16x128xbf16>
    %316 = vector.shape_cast %315 : vector<1x16x16x128xbf16> to vector<16x16x128xbf16>
    %317 = arith.extf %316 : vector<16x16x128xbf16> to vector<16x16x128xf32>
    %318 = arith.addf %314, %317 : vector<16x16x128xf32>
    %c0_347 = arith.constant 0 : index
    %c0_348 = arith.constant 0 : index
    %c0_349 = arith.constant 0 : index
    %c0_350 = arith.constant 0 : index
    %319 = vector.load %arg8[%c0_347, %c0_348, %c0_349, %c0_350] : memref<1x16x16x128xf32, #tpu.memory_space<vmem>>, vector<1x16x16x128xf32>
    %320 = vector.shape_cast %319 : vector<1x16x16x128xf32> to vector<16x16x128xf32>
    %321 = vector.shape_cast %318 : vector<16x16x128xf32> to vector<1x16x16x128xf32>
    tpu.vector_store %arg8[%c0_347, %c0_348, %c0_349, %c0_350], %321 {strides = array<i32>} : memref<1x16x16x128xf32, #tpu.memory_space<vmem>>, vector<1x16x16x128xf32>,
    return
  }
  func.func @transform_0(%arg0: i32) -> (i32, i32, i32, i32) {
    %c0_i32 = arith.constant 0 : i32
    %c0_i32_0 = arith.constant 0 : i32
    %c0_i32_1 = arith.constant 0 : i32
    %c0_i32_2 = arith.constant 0 : i32
    return %arg0, %c0_i32, %c0_i32_0, %c0_i32_1 : i32, i32, i32, i32
  }
  func.func @transform_1(%arg0: i32) -> (i32, i32, i32, i32) {
    %c0_i32 = arith.constant 0 : i32
    %c0_i32_0 = arith.constant 0 : i32
    %c0_i32_1 = arith.constant 0 : i32
    %c0_i32_2 = arith.constant 0 : i32
    %c0_i32_3 = arith.constant 0 : i32
    return %c0_i32, %c0_i32_0, %c0_i32_1, %c0_i32_2 : i32, i32, i32, i32
  }
  func.func @transform_2(%arg0: i32) -> (i32, i32, i32, i32) {
    %c0_i32 = arith.constant 0 : i32
    %c0_i32_0 = arith.constant 0 : i32
    %c0_i32_1 = arith.constant 0 : i32
    %c0_i32_2 = arith.constant 0 : i32
    %c0_i32_3 = arith.constant 0 : i32
    return %c0_i32, %c0_i32_0, %c0_i32_1, %c0_i32_2 : i32, i32, i32, i32
  }
  func.func @transform_3(%arg0: i32) -> (i32, i32, i32, i32) {
    %c0_i32 = arith.constant 0 : i32
    %c0_i32_0 = arith.constant 0 : i32
    %c0_i32_1 = arith.constant 0 : i32
    %c0_i32_2 = arith.constant 0 : i32
    %c0_i32_3 = arith.constant 0 : i32
    return %c0_i32, %c0_i32_0, %c0_i32_1, %c0_i32_2 : i32, i32, i32, i32
  }
  func.func @transform_4(%arg0: i32) -> (i32, i32) {
    %c0_i32 = arith.constant 0 : i32
    %c0_i32_0 = arith.constant 0 : i32
    %c0_i32_1 = arith.constant 0 : i32
    return %c0_i32, %c0_i32_0 : i32, i32
  }
  func.func @transform_5(%arg0: i32) -> (i32, i32) {
    %c0_i32 = arith.constant 0 : i32
    %c0_i32_0 = arith.constant 0 : i32
    %c0_i32_1 = arith.constant 0 : i32
    return %c0_i32, %c0_i32_0 : i32, i32
  }
  func.func @transform_6(%arg0: i32) -> (i32, i32) {
    %c0_i32 = arith.constant 0 : i32
    %c0_i32_0 = arith.constant 0 : i32
    %c0_i32_1 = arith.constant 0 : i32
    return %c0_i32, %c0_i32_0 : i32, i32
  }
  func.func @transform_7(%arg0: i32) -> (i32, i32, i32, i32) {
    %c0_i32 = arith.constant 0 : i32
    %c0_i32_0 = arith.constant 0 : i32
    %c0_i32_1 = arith.constant 0 : i32
    %c0_i32_2 = arith.constant 0 : i32
    return %arg0, %c0_i32, %c0_i32_0, %c0_i32_1 : i32, i32, i32, i32
  }
}

</mosaic_0001>

<bundles_post_ra>
// kernel: _lambda_.1
= control target key start
LH: loop header
LB: loop body
LE: loop exit
PB: predicated region body
PF: predicated region fallthrough
CT: control target
= control target key end

     0   :  { %12 = vsyncpa [#allocation6], 0  ;;  %s18054_s0 = inlined_call_operand.vmem [shape: bf16[2,16,16,128], index: 0, kind: input, shape index: {}]   ;;  %s18055_s1 = inlined_call_operand.hbm [shape: bf16[3,3,128,128], index: 1, kind: input, shape index: {}]   ;;  %s18056_s2 = inlined_call_operand.hbm [shape: bf16[3,3,128,128], index: 2, kind: input, shape index: {}]   ;;  %s18057_s3 = inlined_call_operand.vmem [shape: bf16[3,3,128,128], index: 3, kind: input, shape index: {}]   ;;  %s18058_s4 = inlined_call_operand.vmem [shape: f32[128,128], index: 4, kind: input, shape index: {}]   ;;  %s18059_s5 = inlined_call_operand.vmem [shape: f32[128,128], index: 5, kind: input, shape index: {}]   ;;  %s18060_s6 = inlined_call_operand.vmem [shape: f32[8,128], index: 6, kind: input, shape index: {}]   ;;  %s18061_s7 = inlined_call_operand.vmem [shape: f32[2,16,16,128], index: 7, kind: output, shape index: {}]  }
   0x1   :  { %13 = vsyncpa [#allocation8], 0  ;;  %s14966_s24 = smov 0  }
   0x2 LB: > { %s14972_s25 = sadd.s32 4294967295, %s14916_s24   ;;  %p10827_p0 = scmp.ge.s32.totalorder %s14916_s24, 1  ;;  %s14916_s24 = sphi %s14966_s24, %s19_s24  }
   0x3   : > { %p202_p1 = scmp.lt.s32.totalorder %s14916_s24, 3  ;;  %s14918_s26 = smov [#allocation5]  }
   0x4   : > { %s214_s27 = sshll.u32 %s14918_s26, 4  ;;  %p18062_p3 = scmp.eq.s32.totalorder %s14972_s25, 0  ;;  %s215_s27 = int_to_ptr.vmem [resolvable:$true] %s214_s27 }
   0x5   : > { %p14976_p2 = pnand %p10827_p0, %p202_p1  ;;  %s14919_s29 = smov [#allocation7]  }
   0x6   : > { %s227_s30 = sshll.u32 %s14919_s29, 4  ;;  %s14846_s11 = scalar_lea.hbm %s18055_s1, 9216  ;;  %s14989_s30 = int_to_ptr.vmem [resolvable:$true] %s227_s30 }
   0x7   : > { %s18081_s28 = scalar_select %p14976_p2, 1, 0 }
   0x8   : > { %p14302_p4 = pneg %p14976_p2  ;;  %p14847_p6 = scmp.ne.s32.totalorder %s18055_s1, %s14846_s11 }
   0x9   : > { %p14853_p10 = scmp.lt.u32.totalorder %s14846_s11, %s18055_s1 }
   0xa   : > { %p14985_p5 = pnand %p18062_p3, %p14302_p4 }
   0xc   : > { %p14848_p7 = pneg %p14985_p5 }
   0xe   : > { %p14849_p8 = pnand %p14848_p7, %p14847_p6 }
  0x10   : > { %p14850_p9 = pneg %p14849_p8 }
  0x12   : > { %p14855_p11 = pnand %p14853_p10, %p14850_p9 }
  0x14   : > { %14858 = shalt.err (!%p14855_p11)
}
  0x15   : > { %s14859_s16 = scalar_lea.vmem %s215_s27, 9216  ;;  %p14867_p1 = scmp.lt.s32.totalorder %s215_s27, %s215_s27 }
  0x16   : > { %p14860_p12 = scmp.ne.s32.totalorder %s215_s27, %s14859_s16  ;;  %p14868_p4 = scmp.lt.s32.totalorder %s14859_s16, %s14859_s16 }
  0x18   : > { %p14862_p13 = pnand %p14860_p12, %p14848_p7  ;;  %p14869_p3 = por %p14868_p4, %p14867_p1 }
  0x1a   : > { %p14863_p0 = pneg %p14862_p13 }
  0x1c   : > { %p14870_p2 = pnand %p14869_p3, %p14863_p0 }
  0x1e   : > { %14873 = shalt.err (!%p14870_p2)
}
  0x1f   : > { %s14920_s17 = smov 64   ;;  %s14921_s18 = smov 4  }
  0x20   : > { %14305 = dma.hbm_to_vmem [thread:$0]  (!%p14985_p5), %s18055_s1, 9216, %s215_s27, [#allocation6], %s14920_s17, %s14920_s17, %s14921_s18  }
  0x21   : > { %s14874_s23 = scalar_lea.hbm %s18056_s2, 9216 }
  0x22   : > { %p14875_p6 = scmp.ne.s32.totalorder %s18056_s2, %s14874_s23  ;;  %p14881_p8 = scmp.lt.u32.totalorder %s14874_s23, %s18056_s2 }
  0x24   : > { %p14877_p2 = pnand %p14875_p6, %p14848_p7 }
  0x26   : > { %p14878_p3 = pneg %p14877_p2 }
  0x28   : > { %p14883_p9 = pnand %p14881_p8, %p14878_p3 }
  0x2a   : > { %14886 = shalt.err (!%p14883_p9)
}
  0x2b   : > { %s14887_s27 = scalar_lea.vmem %s14989_s30, 9216  ;;  %p14895_p13 = scmp.lt.s32.totalorder %s14989_s30, %s14989_s30 }
  0x2c   : > { %p14888_p10 = scmp.ne.s32.totalorder %s14989_s30, %s14887_s27  ;;  %p14896_p0 = scmp.lt.s32.totalorder %s14887_s27, %s14887_s27 }
  0x2e   : > { %p14890_p11 = pnand %p14888_p10, %p14848_p7  ;;  %p14897_p1 = por %p14896_p0, %p14895_p13 }
  0x30   : > { %p14891_p12 = pneg %p14890_p11 }
  0x32   : > { %p14898_p4 = pnand %p14897_p1, %p14891_p12 }
  0x34   : > { %14901 = shalt.err (!%p14898_p4)
}
  0x35   : > { %14308 = dma.hbm_to_vmem [thread:$0]  (!%p14985_p5), %s18056_s2, 9216, %s14989_s30, [#allocation8], %s14920_s17, %s14920_s17, %s14921_s18  }
  0x36   : > { %p18083_p6 = scmp.ne.s32.totalorder %s18081_s28, 0 }
  0x38   : > { %263 = sbr.rel (%p18083_p6) target bundleno = 2607 (0xa2f), region = 48 }
  0x3f   : > { %p18084_p2 = scmp.eq.s32.totalorder %s14972_s25, 0 }
  0x41   : > { %14907 = dma.done.wait (%p18084_p2), [#allocation6], 9216   ;;  %p18085_p7 = pmov %p18084_p2 }
  0x42   : > { %p18086_p3 = pmov %p18084_p2 }
  0x43   : > { %14909 = vsyncadd (%p18085_p7), [#allocation6], 4294958080 }
  0x44   : > { %14911 = dma.done.wait (%p18086_p3), [#allocation8], 9216   ;;  %p18087_p8 = pmov %p18084_p2 }
  0x45   : > { %v14922_v0 = vmov 0.0   ;;  %p299_p5 = scmp.lt.s32.totalorder %s14972_s25, 1  ;;  %v14331_v1 = vld [vmem:[#allocation5 + $0x40] sm:$0xff]   ;;  %v14332_v2 = vld [vmem:[#allocation5 + $0x48] sm:$0xff]   ;;  %v14333_v3 = vld [vmem:[#allocation5 + $0x50] sm:$0xff]   ;;  %vm14924_vm0 = vmmov 0  }
  0x46   : > { %14913 = vsyncadd (%p18087_p8), [#allocation8], 4294958080  ;;  %318 = vst [vmem:[#allocation2] sm:$0xff] %v14922_v0  ;;  %12096 = vmatprep.subr.bf16.mxu0 %v14331_v1  ;;  %v14334_v4 = vld [vmem:[#allocation5 + $0x58] sm:$0xff]   ;;  %v14335_v15 = vld [vmem:[#allocation5 + $0x60] sm:$0xff]   ;;  %vm3706_vm1 = vcmask 7168  }
  0x47   : > { %319 = vst [vmem:[#allocation2 + $0x8] sm:$0xff] %v14922_v0  ;;  %320 = vst [vmem:[#allocation2 + $0x10] sm:$0x3] %v14922_v0  ;;  %s18241_s25 = smov (!%p299_p5, %s14972_s25), 1  ;;  %12097 = vmatpush3.bf16.msra.mxu0 %v14331_v1  ;;  %v14336_v26 = vld [vmem:[#allocation5 + $0x68] sm:$0xff]   ;;  %v14337_v38 = vld [vmem:[#allocation5 + $0x70] sm:$0xff]  }
  0x48   : > { %322 = vst [vmem:[#allocation2 + $0x198] sm:$0xff] %v14922_v0  ;;  %323 = vst [vmem:[#allocation2 + $0x1a0] sm:$0xff] %v14922_v0  ;;  %12098 = vmatprep.subr.bf16.mxu0 %v14332_v2  ;;  %s11254_s28 = sshll.u32 %s18241_s25, 7  ;;  %v14338_v50 = vld [vmem:[#allocation5 + $0x78] sm:$0xff]   ;;  %v14340_v57 = vld [vmem:[#allocation5] sm:$0xff]   ;;  %vm3782_vm2 = vcmask 0  }
  0x49   : > { %324 = vst [vmem:[#allocation2 + $0x1a8] sm:$0x3] %v14922_v0  ;;  %326 = vst [vmem:[#allocation2 + $0x18] sm:$0x1] %v14922_v0  ;;  %s15160_s13 = scalar_lea.vmem %s18054_s0, %s11254_s28  ;;  %v14343_v60 = vld [vmem:[#allocation5 + $0x8] sm:$0xff]   ;;  %v14346_v61 = vld [vmem:[#allocation5 + $0x10] sm:$0xff]  }
  0x4a   : > { %327 = vst [vmem:[#allocation2 + $0x30] sm:$0x1] %v14922_v0  ;;  %328 = vst [vmem:[#allocation2 + $0x48] sm:$0x1] %v14922_v0  ;;  %v11257_v7 = vld [vmem:[%s15160_s13] sm:$0xff]   ;;  %v11384_v11 = vld [vmem:[%s15160_s13 + $0x8] sm:$0xff]  }
  0x4b   : > { %329 = vst [vmem:[#allocation2 + $0x60] sm:$0x1] %v14922_v0  ;;  %330 = vst [vmem:[#allocation2 + $0x78] sm:$0x1] %v14922_v0  ;;  %12099 = vmatpush3.bf16.msra.mxu0 %v14332_v2  ;;  %v11258_v9 = vunpack.c.l.bf16 %v11257_v7  ;;  %v11259_v10 = vunpack.c.h.bf16 %v11257_v7  ;;  %v11262_v12 = vunpack.c.l.bf16 %v11384_v11  ;;  %v11263_v13 = vunpack.c.h.bf16 %v11384_v11  ;;  %v11385_v14 = vld [vmem:[%s15160_s13 + $0x10] sm:$0xff]   ;;  %v11386_v18 = vld [vmem:[%s15160_s13 + $0x18] sm:$0xff]  }
  0x4c   : > { %331 = vst [vmem:[#allocation2 + $0x90] sm:$0x1] %v14922_v0  ;;  %332 = vst [vmem:[#allocation2 + $0xa8] sm:$0x1] %v14922_v0  ;;  %12100 = vmatprep.subr.bf16.mxu0 %v14333_v3  ;;  %v11266_v16 = vunpack.c.l.bf16 %v11385_v14  ;;  %v11267_v17 = vunpack.c.h.bf16 %v11385_v14  ;;  %v11270_v19 = vunpack.c.l.bf16 %v11386_v18  ;;  %v11271_v20 = vunpack.c.h.bf16 %v11386_v18  ;;  %v11387_v21 = vld [vmem:[%s15160_s13 + $0x20] sm:$0xff]   ;;  %v11388_v24 = vld [vmem:[%s15160_s13 + $0x28] sm:$0xff]  }
  0x4d   : > { %333 = vst [vmem:[#allocation2 + $0xc0] sm:$0x1] %v14922_v0  ;;  %334 = vst [vmem:[#allocation2 + $0xd8] sm:$0x1] %v14922_v0  ;;  %v11274_v22 = vunpack.c.l.bf16 %v11387_v21  ;;  %v11275_v23 = vunpack.c.h.bf16 %v11387_v21  ;;  %v11389_v25 = vld [vmem:[%s15160_s13 + $0x30] sm:$0xff]   ;;  %v11278_v27 = vunpack.c.l.bf16 %v11388_v24  ;;  %v11279_v28 = vunpack.c.h.bf16 %v11388_v24  ;;  %v11390_v31 = vld [vmem:[%s15160_s13 + $0x38] sm:$0xff]  }
  0x4e   : > { %335 = vst [vmem:[#allocation2 + $0xf0] sm:$0x1] %v14922_v0  ;;  %336 = vst [vmem:[#allocation2 + $0x108] sm:$0x1] %v14922_v0  ;;  %v522_v5 = vld [vmem:[#allocation2 + $0x1] sm:$0xff]  ;;  %v523_v6 = vld [vmem:[#allocation2 + $0x9] sm:$0xff]  ;;  %v11282_v29 = vunpack.c.l.bf16 %v11389_v25  ;;  %v11283_v30 = vunpack.c.h.bf16 %v11389_v25  ;;  %v11286_v32 = vunpack.c.l.bf16 %v11390_v31  ;;  %v11287_v33 = vunpack.c.h.bf16 %v11390_v31 }
  0x4f   : > { %337 = vst [vmem:[#allocation2 + $0x120] sm:$0x1] %v14922_v0  ;;  %338 = vst [vmem:[#allocation2 + $0x138] sm:$0x1] %v14922_v0  ;;  %v554_v8 = vpack.c.bf16 %v523_v6, %v522_v5  ;;  %12101 = vmatpush3.bf16.msra.mxu0 %v14333_v3  ;;  %v11391_v34 = vld [vmem:[%s15160_s13 + $0x40] sm:$0xff]   ;;  %v11392_v37 = vld [vmem:[%s15160_s13 + $0x48] sm:$0xff]  }
  0x50   : > { %339 = vst [vmem:[#allocation2 + $0x150] sm:$0x1] %v14922_v0  ;;  %340 = vst [vmem:[#allocation2 + $0x168] sm:$0x1] %v14922_v0  ;;  %12102 = vmatprep.subr.bf16.mxu0 %v14334_v4  ;;  %v11290_v35 = vunpack.c.l.bf16 %v11391_v34  ;;  %v11291_v36 = vunpack.c.h.bf16 %v11391_v34  ;;  %v11294_v39 = vunpack.c.l.bf16 %v11392_v37  ;;  %v11295_v40 = vunpack.c.h.bf16 %v11392_v37  ;;  %v11393_v41 = vld [vmem:[%s15160_s13 + $0x50] sm:$0xff]   ;;  %v11394_v44 = vld [vmem:[%s15160_s13 + $0x58] sm:$0xff]  }
  0x51   : > { %341 = vst [vmem:[#allocation2 + $0x180] sm:$0x1] %v14922_v0  ;;  %344 = vst [vmem:[#allocation2 + $0x29] sm:$0x1] %v14922_v0  ;;  %12112 = vmatprep.mubr.bf16.mxu0 %v554_v8  ;;  %v11298_v42 = vunpack.c.l.bf16 %v11393_v41  ;;  %v11299_v43 = vunpack.c.h.bf16 %v11393_v41  ;;  %v11395_v45 = vld [vmem:[%s15160_s13 + $0x60] sm:$0xff]   ;;  %v11302_v46 = vunpack.c.l.bf16 %v11394_v44  ;;  %v11303_v47 = vunpack.c.h.bf16 %v11394_v44  ;;  %v11396_v51 = vld [vmem:[%s15160_s13 + $0x68] sm:$0xff]  }
  0x52   : > { %345 = vst [vmem:[#allocation2 + $0x41] sm:$0x1] %v14922_v0  ;;  %346 = vst [vmem:[#allocation2 + $0x59] sm:$0x1] %v14922_v0  ;;  %v11306_v48 = vunpack.c.l.bf16 %v11395_v45  ;;  %v11307_v49 = vunpack.c.h.bf16 %v11395_v45  ;;  %v11310_v52 = vunpack.c.l.bf16 %v11396_v51  ;;  %v11311_v53 = vunpack.c.h.bf16 %v11396_v51  ;;  %v11397_v54 = vld [vmem:[%s15160_s13 + $0x70] sm:$0xff]   ;;  %v14339_v58 = vld [vmem:[%s15160_s13] sm:$0xff] }
  0x53   : > { %347 = vst [vmem:[#allocation2 + $0x71] sm:$0x1] %v14922_v0  ;;  %348 = vst [vmem:[#allocation2 + $0x89] sm:$0x1] %v14922_v0  ;;  %12103 = vmatpush3.bf16.msra.mxu0 %v14334_v4  ;;  %v11314_v55 = vunpack.c.l.bf16 %v11397_v54  ;;  %v11315_v56 = vunpack.c.h.bf16 %v11397_v54  ;;  %v14341_v59 = vld [vmem:[%s15160_s13 + $0x8] sm:$0xff]  ;;  %v14342_v62 = vld [vmem:[%s15160_s13 + $0x10] sm:$0xff] }
  0x54   : > { %349 = vst [vmem:[#allocation2 + $0xa1] sm:$0x1] %v14922_v0  ;;  %350 = vst [vmem:[#allocation2 + $0xb9] sm:$0x1] %v14922_v0  ;;  %12104 = vmatprep.subr.bf16.mxu0 %v14335_v15  ;;  %v14344_v63 = vld [vmem:[%s15160_s13 + $0x18] sm:$0xff]  ;;  %v14352_v2 = vld [vmem:[#allocation5 + $0x20] sm:$0xff]  }
  0x55   : > { %351 = vst [vmem:[#allocation2 + $0xd1] sm:$0x1] %v14922_v0  ;;  %352 = vst [vmem:[#allocation2 + $0xe9] sm:$0x1] %v14922_v0  ;;  %v14349_v1 = vld [vmem:[#allocation5 + $0x18] sm:$0xff]   ;;  %v14345_v3 = vld [vmem:[%s15160_s13 + $0x20] sm:$0xff] }
  0x56   : > { %353 = vst [vmem:[#allocation2 + $0x101] sm:$0x1] %v14922_v0  ;;  %354 = vst [vmem:[#allocation2 + $0x119] sm:$0x1] %v14922_v0  ;;  %v14347_v4 = vld [vmem:[%s15160_s13 + $0x28] sm:$0xff]  ;;  %v14348_v6 = vld [vmem:[%s15160_s13 + $0x30] sm:$0xff] }
  0x57   : > { %355 = vst [vmem:[#allocation2 + $0x131] sm:$0x1] %v14922_v0  ;;  %356 = vst [vmem:[#allocation2 + $0x149] sm:$0x1] %v14922_v0  ;;  %12105 = vmatpush3.bf16.msra.mxu0 %v14335_v15  ;;  %v14355_v5 = vld [vmem:[#allocation5 + $0x28] sm:$0xff]   ;;  %v14358_v7 = vld [vmem:[#allocation5 + $0x30] sm:$0xff]  }
  0x58   : > { %357 = vst [vmem:[#allocation2 + $0x161] sm:$0x1] %v14922_v0  ;;  %358 = vst [vmem:[#allocation2 + $0x179] sm:$0x1] %v14922_v0  ;;  %12106 = vmatprep.subr.bf16.mxu0 %v14336_v26  ;;  %v14350_v8 = vld [vmem:[%s15160_s13 + $0x38] sm:$0xff]  ;;  %v14351_v11 = vld [vmem:[%s15160_s13 + $0x40] sm:$0xff] }
  0x59   : > { %359 = vst [vmem:[#allocation2 + $0x191] sm:$0x1] %v14922_v0  ;;  %4479 = vst [vmem:[#allocation3] sm:$0xff] %v14922_v0  ;;  %v14356_v14 = vld [vmem:[%s15160_s13 + $0x58] sm:$0xff]  ;;  %v14357_v15 = vld [vmem:[%s15160_s13 + $0x60] sm:$0xff]  ;;  %s11255_s16 = sshll.u32 %s18241_s25, 8 }
  0x5a   : > { %4480 = vst [vmem:[#allocation3 + $0x8] sm:$0xff] %v14922_v0  ;;  %4481 = vst [vmem:[#allocation3 + $0x10] sm:$0x3f] %v14922_v0  ;;  %v14360_v18 = vld [vmem:[%s15160_s13 + $0x70] sm:$0xff]  ;;  %v14363_v25 = vld [vmem:[#allocation5 + $0x88] sm:$0xff]   ;;  %s17924_s18 = scalar_lea.vmem %s18061_s7, %s11255_s16 }
  0x5b   : > { %4482 = vst [vmem:[#allocation3 + $0x18] sm:$0xff] %v14922_v0  ;;  %4483 = vst [vmem:[#allocation3 + $0x20] sm:$0xff] %v14922_v0  ;;  %12107 = vmatpush3.bf16.msra.mxu0 %v14336_v26  ;;  %v14364_v31 = vld [vmem:[#allocation5 + $0x90] sm:$0xff]   ;;  %v14370_v54 = vld [vmem:[#allocation5 + $0xc0] sm:$0xff]  }
  0x5c   : > { %4484 = vst [vmem:[#allocation3 + $0x28] sm:$0x3f] %v14922_v0  ;;  %4485 = vst [vmem:[#allocation3 + $0x30] sm:$0xff] %v14922_v0  ;;  %12108 = vmatprep.subr.bf16.mxu0 %v14337_v38 }
  0x5d   : > { %4486 = vst [vmem:[#allocation3 + $0x38] sm:$0xff] %v14922_v0  ;;  %4487 = vst [vmem:[#allocation3 + $0x40] sm:$0x3f] %v14922_v0 }
  0x5e   : > { %4489 = vst [vmem:[#allocation3 + $0x1c8] sm:$0xff] %v14922_v0  ;;  %4490 = vst [vmem:[#allocation3 + $0x1d0] sm:$0xff] %v14922_v0 }
  0x5f   : > { %4491 = vst [vmem:[#allocation3 + $0x1d8] sm:$0x3f] %v14922_v0  ;;  %4492 = vst [vmem:[#allocation3 + $0x1e0] sm:$0xff] %v14922_v0  ;;  %12109 = vmatpush3.bf16.msra.mxu0 %v14337_v38  ;;  %v14366_v38 = vld [vmem:[#allocation5 + $0xa0] sm:$0xff]  }
  0x60   : > { %4493 = vst [vmem:[#allocation3 + $0x1e8] sm:$0xff] %v14922_v0  ;;  %4494 = vst [vmem:[#allocation3 + $0x1f0] sm:$0x3f] %v14922_v0  ;;  %12110 = vmatprep.subr.bf16.mxu0 %v14338_v50 }
  0x61   : > { %4495 = vst [vmem:[#allocation3 + $0x1f8] sm:$0xff] %v14922_v0  ;;  %4496 = vst [vmem:[#allocation3 + $0x200] sm:$0xff] %v14922_v0 }
  0x62   : > { %4497 = vst [vmem:[#allocation3 + $0x208] sm:$0x3f] %v14922_v0  ;;  %4501 = vst [vmem:[#allocation3 + $0x48] sm:$0x7] %v14922_v0 }
  0x63   : > { %4502 = vst [vmem:[#allocation3 + $0x60] sm:$0x7] %v14922_v0  ;;  %4503 = vst [vmem:[#allocation3 + $0x78] sm:$0x7] %v14922_v0  ;;  %12111 = vmatpush3.bf16.msra.mxu0 %v14338_v50 }
  0x64   : > { %4504 = vst [vmem:[#allocation3 + $0x90] sm:$0x7] %v14922_v0  ;;  %4505 = vst [vmem:[#allocation3 + $0xa8] sm:$0x7] %v14922_v0  ;;  %12144 = vmatprep.subr.bf16.mxu0 %v14340_v57 }
  0x65   : > { %4506 = vst [vmem:[#allocation3 + $0xc0] sm:$0x7] %v14922_v0  ;;  %4507 = vst [vmem:[#allocation3 + $0xd8] sm:$0x7] %v14922_v0 }
  0x66   : > { %4508 = vst [vmem:[#allocation3 + $0xf0] sm:$0x7] %v14922_v0  ;;  %4509 = vst [vmem:[#allocation3 + $0x108] sm:$0x7] %v14922_v0  ;;  %12113 = vmatmul.mubr.bf16.vlgmr.msra.gmra.mrb[0].mxu0 %v14339_v58 }
  0x67   : > { %4510 = vst [vmem:[#allocation3 + $0x120] sm:$0x7] %v14922_v0  ;;  %4511 = vst [vmem:[#allocation3 + $0x138] sm:$0x7] %v14922_v0  ;;  %12145 = vmatpush3.bf16.msra.mxu0 %v14340_v57  ;;  %12116 = vmatprep.mubr.bf16.mxu0 %v14341_v59 }
  0x68   : > { %4512 = vst [vmem:[#allocation3 + $0x150] sm:$0x7] %v14922_v0  ;;  %4513 = vst [vmem:[#allocation3 + $0x168] sm:$0x7] %v14922_v0  ;;  %12146 = vmatprep.subr.bf16.mxu0 %v14343_v60 }
  0x69   : > { %4514 = vst [vmem:[#allocation3 + $0x180] sm:$0x7] %v14922_v0  ;;  %4515 = vst [vmem:[#allocation3 + $0x198] sm:$0x7] %v14922_v0 }
  0x6a   : > { %4516 = vst [vmem:[#allocation3 + $0x1b0] sm:$0x7] %v14922_v0  ;;  %4523 = vst [vmem:[#allocation3 + $0x5b] sm:$0x7] %v14922_v0 }
  0x6b   : > { %4524 = vst [vmem:[#allocation3 + $0x73] sm:$0x7] %v14922_v0  ;;  %4525 = vst [vmem:[#allocation3 + $0x8b] sm:$0x7] %v14922_v0  ;;  %12147 = vmatpush3.bf16.msra.mxu0 %v14343_v60 }
  0x6c   : > { %4526 = vst [vmem:[#allocation3 + $0xa3] sm:$0x7] %v14922_v0  ;;  %4527 = vst [vmem:[#allocation3 + $0xbb] sm:$0x7] %v14922_v0  ;;  %12148 = vmatprep.subr.bf16.mxu0 %v14346_v61 }
  0x6d   : > { %4528 = vst [vmem:[#allocation3 + $0xd3] sm:$0x7] %v14922_v0  ;;  %4529 = vst [vmem:[#allocation3 + $0xeb] sm:$0x7] %v14922_v0 }
  0x6e   : > { %4530 = vst [vmem:[#allocation3 + $0x103] sm:$0x7] %v14922_v0  ;;  %4531 = vst [vmem:[#allocation3 + $0x11b] sm:$0x7] %v14922_v0  ;;  %12117 = vmatmul.mubr.bf16.gmra.mrb[4].mxu0 %v14342_v62 }
  0x6f   : > { %4532 = vst [vmem:[#allocation3 + $0x133] sm:$0x7] %v14922_v0  ;;  %4533 = vst [vmem:[#allocation3 + $0x14b] sm:$0x7] %v14922_v0  ;;  %12120 = vmatprep.mubr.bf16.mxu0 %v14344_v63  ;;  %12149 = vmatpush3.bf16.msra.mxu0 %v14346_v61 }
  0x70   : > { %4534 = vst [vmem:[#allocation3 + $0x163] sm:$0x7] %v14922_v0  ;;  %4535 = vst [vmem:[#allocation3 + $0x17b] sm:$0x7] %v14922_v0  ;;  %12150 = vmatprep.subr.bf16.mxu0 %v14349_v1 }
  0x71   : > { %4536 = vst [vmem:[#allocation3 + $0x193] sm:$0x7] %v14922_v0  ;;  %4537 = vst [vmem:[#allocation3 + $0x1ab] sm:$0x7] %v14922_v0 }
  0x72   : > { %4538 = vst [vmem:[#allocation3 + $0x1c3] sm:$0x7] %v14922_v0  ;;  %343 = vst [vmem:[#allocation2 + $0x11] sm:$0x1] %v14922_v0 }
  0x73   : > { %325 = vst [vmem:[#allocation2] sm:$0x1] %v14922_v0  ;;  %342 = vst [vmem:[#allocation2 + $0x198] sm:$0x1] %v14922_v0  ;;  %12151 = vmatpush3.bf16.msra.mxu0 %v14349_v1 }
  0x74   : > { %360 = vst [vmem:[#allocation2 + $0x1a9] sm:$0x1] %v14922_v0  ;;  %4498 = vst [vmem:[#allocation3] sm:$0x7] %v14922_v0  ;;  %12152 = vmatprep.subr.bf16.mxu0 %v14352_v2 }
  0x75   : > { %4499 = vst [vmem:[#allocation3 + $0x18] sm:$0x7] %v14922_v0  ;;  %4500 = vst [vmem:[#allocation3 + $0x30] sm:$0x7] %v14922_v0 }
  0x76   : > { %4517 = vst [vmem:[#allocation3 + $0x1c8] sm:$0x7] %v14922_v0  ;;  %4518 = vst [vmem:[#allocation3 + $0x1e0] sm:$0x7] %v14922_v0  ;;  %12121 = vmatmul.mubr.bf16.gmra.mrb[8].mxu0 %v14345_v3 }
  0x77   : > { %4519 = vst [vmem:[#allocation3 + $0x1f8] sm:$0x7] %v14922_v0  ;;  %4520 = vst [vmem:[#allocation3 + $0x13] sm:$0x7] %v14922_v0  ;;  %12124 = vmatprep.mubr.bf16.mxu0 %v14347_v4  ;;  %12153 = vmatpush3.bf16.msra.mxu0 %v14352_v2  ;;  %v11398_v4 = vld [vmem:[%s15160_s13 + $0x78] sm:$0xff]  }
  0x78   : > { %4521 = vst [vmem:[#allocation3 + $0x2b] sm:$0x7] %v14922_v0  ;;  %4522 = vst [vmem:[#allocation3 + $0x43] sm:$0x7] %v14922_v0  ;;  %12154 = vmatprep.subr.bf16.mxu0 %v14355_v5 }
  0x79   : > { %4539 = vst [vmem:[#allocation3 + $0x1db] sm:$0x7] %v14922_v0  ;;  %4540 = vst [vmem:[#allocation3 + $0x1f3] sm:$0x7] %v14922_v0 }
  0x7a   : > { %4541 = vst [vmem:[#allocation3 + $0x20b] sm:$0x7] %v14922_v0  ;;  %426 = vst [vmem:[#allocation2 + $0x19] sm:$0xff] %v11258_v9  ;;  %v14361_v9 = vld [vmem:[#allocation5 + $0x38] sm:$0xff]  }
  0x7b   : > { %427 = vst [vmem:[#allocation2 + $0x21] sm:$0xff] %v11259_v10  ;;  %428 = vst [vmem:[#allocation2 + $0x31] sm:$0xff] %v11262_v12  ;;  %12155 = vmatpush3.bf16.msra.mxu0 %v14355_v5  ;;  %v14362_v10 = vld [vmem:[#allocation5 + $0x80] sm:$0xff]   ;;  %v14353_v12 = vld [vmem:[%s15160_s13 + $0x48] sm:$0xff] }
  0x7c   : > { %429 = vst [vmem:[#allocation2 + $0x39] sm:$0xff] %v11263_v13  ;;  %430 = vst [vmem:[#allocation2 + $0x49] sm:$0xff] %v11266_v16  ;;  %12156 = vmatprep.subr.bf16.mxu0 %v14358_v7  ;;  %v14354_v13 = vld [vmem:[%s15160_s13 + $0x50] sm:$0xff]  ;;  %v14359_v16 = vld [vmem:[%s15160_s13 + $0x68] sm:$0xff] }
  0x7d   : > { %431 = vst [vmem:[#allocation2 + $0x51] sm:$0xff] %v11267_v17  ;;  %432 = vst [vmem:[#allocation2 + $0x61] sm:$0xff] %v11270_v19  ;;  %v458_v17 = vld [vmem:[#allocation2] sm:$0xff] }
  0x7e   : > { %433 = vst [vmem:[#allocation2 + $0x69] sm:$0xff] %v11271_v20  ;;  %434 = vst [vmem:[#allocation2 + $0x79] sm:$0xff] %v11274_v22  ;;  %12125 = vmatmul.mubr.bf16.gmra.mrb[12].mxu0 %v14348_v6  ;;  %v490_v19 = vpack.c.bf16 %v14922_v0, %v458_v17  ;;  %v11318_v6 = vunpack.c.l.bf16 %v11398_v4 }
  0x7f   : > { %435 = vst [vmem:[#allocation2 + $0x81] sm:$0xff] %v11275_v23  ;;  %436 = vst [vmem:[#allocation2 + $0x91] sm:$0xff] %v11278_v27  ;;  %12128 = vmatprep.mubr.bf16.mxu0 %v14350_v8  ;;  %12157 = vmatpush3.bf16.msra.mxu0 %v14358_v7  ;;  %v11319_v7 = vunpack.c.h.bf16 %v11398_v4 }
  0x80   : > { %437 = vst [vmem:[#allocation2 + $0x99] sm:$0xff] %v11279_v28  ;;  %438 = vst [vmem:[#allocation2 + $0xa9] sm:$0xff] %v11282_v29  ;;  %12158 = vmatprep.subr.bf16.mxu0 %v14361_v9 }
  0x81   : > { %439 = vst [vmem:[#allocation2 + $0xb1] sm:$0xff] %v11283_v30  ;;  %440 = vst [vmem:[#allocation2 + $0xc1] sm:$0xff] %v11286_v32  ;;  %v460_v20 = vld [vmem:[#allocation2 + $0x18] sm:$0xff] }
  0x82   : > { %441 = vst [vmem:[#allocation2 + $0xc9] sm:$0xff] %v11287_v33  ;;  %442 = vst [vmem:[#allocation2 + $0xd9] sm:$0xff] %v11290_v35  ;;  %v461_v21 = vld [vmem:[#allocation2 + $0x20] sm:$0xff]  ;;  %v462_v22 = vld [vmem:[#allocation2 + $0x30] sm:$0xff] }
  0x83   : > { %443 = vst [vmem:[#allocation2 + $0xe1] sm:$0xff] %v11291_v36  ;;  %444 = vst [vmem:[#allocation2 + $0xf1] sm:$0xff] %v11294_v39  ;;  %12159 = vmatpush3.bf16.msra.mxu0 %v14361_v9  ;;  %v463_v23 = vld [vmem:[#allocation2 + $0x38] sm:$0xff]  ;;  %v15193_v24 = vpack.c.bf16 %v461_v21, %v460_v20  ;;  %v464_v27 = vld [vmem:[#allocation2 + $0x48] sm:$0xff] }
  0x84   : > { %445 = vst [vmem:[#allocation2 + $0xf9] sm:$0xff] %v11295_v40  ;;  %446 = vst [vmem:[#allocation2 + $0x109] sm:$0xff] %v11298_v42  ;;  %12192 = vmatprep.subr.bf16.mxu0 %v14362_v10  ;;  %v15195_v26 = vpack.c.bf16 %v463_v23, %v462_v22  ;;  %v465_v28 = vld [vmem:[#allocation2 + $0x50] sm:$0xff]  ;;  %v466_v29 = vld [vmem:[#allocation2 + $0x60] sm:$0xff] }
  0x85   : > { %447 = vst [vmem:[#allocation2 + $0x111] sm:$0xff] %v11299_v43  ;;  %448 = vst [vmem:[#allocation2 + $0x121] sm:$0xff] %v11302_v46  ;;  %v467_v30 = vld [vmem:[#allocation2 + $0x68] sm:$0xff]  ;;  %v15199_v0 = vpack.c.bf16 %v465_v28, %v464_v27  ;;  %v14365_v32 = vld [vmem:[#allocation5 + $0x98] sm:$0xff]  }
  0x86   : > { %449 = vst [vmem:[#allocation2 + $0x129] sm:$0xff] %v11303_v47  ;;  %450 = vst [vmem:[#allocation2 + $0x139] sm:$0xff] %v11306_v48  ;;  %12129 = vmatmul.mubr.bf16.gmra.mrb[16].mxu0 %v14351_v11  ;;  %v15201_v33 = vpack.c.bf16 %v467_v30, %v466_v29  ;;  %v468_v34 = vld [vmem:[#allocation2 + $0x78] sm:$0xff]  ;;  %v469_v35 = vld [vmem:[#allocation2 + $0x80] sm:$0xff] }
  0x87   : > { %451 = vst [vmem:[#allocation2 + $0x141] sm:$0xff] %v11307_v49  ;;  %452 = vst [vmem:[#allocation2 + $0x151] sm:$0xff] %v11310_v52  ;;  %12132 = vmatprep.mubr.bf16.mxu0 %v14353_v12  ;;  %v470_v36 = vld [vmem:[#allocation2 + $0x90] sm:$0xff]  ;;  %v471_v37 = vld [vmem:[#allocation2 + $0x98] sm:$0xff]  ;;  %v15205_v39 = vpack.c.bf16 %v469_v35, %v468_v34 }
  0x88   : > { %453 = vst [vmem:[#allocation2 + $0x159] sm:$0xff] %v11311_v53  ;;  %454 = vst [vmem:[#allocation2 + $0x169] sm:$0xff] %v11314_v55  ;;  %v14367_v40 = vld [vmem:[#allocation5 + $0xa8] sm:$0xff]   ;;  %v15207_v41 = vpack.c.bf16 %v471_v37, %v470_v36  ;;  %v473_v43 = vld [vmem:[#allocation2 + $0xb0] sm:$0xff] }
  0x89   : > { %455 = vst [vmem:[#allocation2 + $0x171] sm:$0xff] %v11315_v56  ;;  %v472_v42 = vld [vmem:[#allocation2 + $0xa8] sm:$0xff]  ;;  %v474_v44 = vld [vmem:[#allocation2 + $0xc0] sm:$0xff]  ;;  %v14368_v46 = vld [vmem:[#allocation5 + $0xb0] sm:$0xff]  }
  0x8a   : > { %v475_v45 = vld [vmem:[#allocation2 + $0xc8] sm:$0xff]  ;;  %v15211_v47 = vpack.c.bf16 %v473_v43, %v472_v42  ;;  %v14369_v48 = vld [vmem:[#allocation5 + $0xb8] sm:$0xff]   ;;  %v477_v51 = vld [vmem:[#allocation2 + $0xe0] sm:$0xff]  ;;  %456 = vst [vmem:[#allocation2 + $0x181] sm:$0xff] %v11318_v6 }
  0x8b   : > { %v15213_v49 = vpack.c.bf16 %v475_v45, %v474_v44  ;;  %v476_v50 = vld [vmem:[#allocation2 + $0xd8] sm:$0xff]  ;;  %v478_v52 = vld [vmem:[#allocation2 + $0xf0] sm:$0xff]  ;;  %v480_v57 = vld [vmem:[#allocation2 + $0x108] sm:$0xff]  ;;  %457 = vst [vmem:[#allocation2 + $0x189] sm:$0xff] %v11319_v7 }
  0x8c   : > { %v479_v53 = vld [vmem:[#allocation2 + $0xf8] sm:$0xff]  ;;  %v15217_v55 = vpack.c.bf16 %v477_v51, %v476_v50  ;;  %v481_v58 = vld [vmem:[#allocation2 + $0x110] sm:$0xff]  ;;  %v482_v59 = vld [vmem:[#allocation2 + $0x120] sm:$0xff] }
  0x8d   : > { %v15219_v56 = vpack.c.bf16 %v479_v53, %v478_v52  ;;  %v483_v60 = vld [vmem:[#allocation2 + $0x128] sm:$0xff]  ;;  %v15223_v61 = vpack.c.bf16 %v481_v58, %v480_v57  ;;  %v484_v63 = vld [vmem:[#allocation2 + $0x138] sm:$0xff]  ;;  %v14372_v28 = vld [vmem:[#allocation5 + $0xd0] sm:$0xff]  }
  0x8e   : > { %12133 = vmatmul.mubr.bf16.gmra.mrb[20].mxu0 %v14354_v13  ;;  %v15225_v62 = vpack.c.bf16 %v483_v60, %v482_v59  ;;  %v485_v1 = vld [vmem:[#allocation2 + $0x140] sm:$0xff]  ;;  %v486_v2 = vld [vmem:[#allocation2 + $0x150] sm:$0xff]  ;;  %v14371_v20 = vld [vmem:[#allocation5 + $0xc8] sm:$0xff]  }
  0x8f   : > { %12136 = vmatprep.mubr.bf16.mxu0 %v14356_v14  ;;  %v487_v3 = vld [vmem:[#allocation2 + $0x158] sm:$0xff]  ;;  %v15230_v5 = vpack.c.bf16 %v485_v1, %v484_v63  ;;  %v488_v9 = vld [vmem:[#allocation2 + $0x168] sm:$0xff]  ;;  %v14374_v37 = vld [vmem:[#allocation5 + $0xe0] sm:$0xff]  }
  0x90   : > { %v15232_v8 = vpack.c.bf16 %v487_v3, %v486_v2  ;;  %v1005_v11 = vld [vmem:[#allocation2 + $0x2] sm:$0xff]  ;;  %v1006_v12 = vld [vmem:[#allocation2 + $0xa] sm:$0xff]  ;;  %v1009_v17 = vld [vmem:[#allocation2 + $0x32] sm:$0xff] }
  0x91   : > { %v1037_v14 = vpack.c.bf16 %v1006_v12, %v1005_v11  ;;  %v1011_v22 = vld [vmem:[#allocation2 + $0x4a] sm:$0xff]  ;;  %v1012_v23 = vld [vmem:[#allocation2 + $0x52] sm:$0xff]  ;;  %v1016_v34 = vld [vmem:[#allocation2 + $0x82] sm:$0xff] }
  0x92   : > { %v1014_v27 = vld [vmem:[#allocation2 + $0x6a] sm:$0xff]  ;;  %v15245_v29 = vpack.c.bf16 %v1012_v23, %v1011_v22  ;;  %v14373_v30 = vld [vmem:[#allocation5 + $0xd8] sm:$0xff]   ;;  %v1021_v45 = vld [vmem:[#allocation2 + $0xc2] sm:$0xff] }
  0x93   : > { %v1017_v35 = vld [vmem:[#allocation2 + $0x92] sm:$0xff]  ;;  %v1018_v36 = vld [vmem:[#allocation2 + $0x9a] sm:$0xff]  ;;  %v1019_v43 = vld [vmem:[#allocation2 + $0xaa] sm:$0xff] }
  0x94   : > { %v15253_v42 = vpack.c.bf16 %v1018_v36, %v1017_v35  ;;  %v1020_v44 = vld [vmem:[#allocation2 + $0xb2] sm:$0xff]  ;;  %v1023_v53 = vld [vmem:[#allocation2 + $0xda] sm:$0xff]  ;;  %v1027_v1 = vld [vmem:[#allocation2 + $0x10a] sm:$0xff] }
  0x95   : > { %v15257_v50 = vpack.c.bf16 %v1020_v44, %v1019_v43  ;;  %v14377_v51 = vld [vmem:[#allocation5 + $0xf8] sm:$0xff]   ;;  %v14378_v59 = vld [vmem:[#allocation5 + $0x100] sm:$0xff]   ;;  %v1030_v4 = vld [vmem:[#allocation2 + $0x12a] sm:$0xff] }
  0x96   : > { %12137 = vmatmul.mubr.bf16.gmra.mrb[24].mxu0 %v14357_v15  ;;  %v1007_v15 = vld [vmem:[#allocation2 + $0x1a] sm:$0xff]  ;;  %v1025_v57 = vld [vmem:[#allocation2 + $0xf2] sm:$0xff]  ;;  %v1029_v3 = vld [vmem:[#allocation2 + $0x122] sm:$0xff] }
  0x97   : > { %12140 = vmatprep.mubr.bf16.mxu0 %v14359_v16  ;;  %v1008_v16 = vld [vmem:[#allocation2 + $0x22] sm:$0xff]  ;;  %v1026_v58 = vld [vmem:[#allocation2 + $0xfa] sm:$0xff]  ;;  %v1028_v2 = vld [vmem:[#allocation2 + $0x112] sm:$0xff]  ;;  %v15271_v7 = vpack.c.bf16 %v1030_v4, %v1029_v3 }
  0x98   : > { %v15265_v63 = vpack.c.bf16 %v1026_v58, %v1025_v57  ;;  %v15269_v6 = vpack.c.bf16 %v1028_v2, %v1027_v1  ;;  %v1033_v11 = vld [vmem:[#allocation2 + $0x152] sm:$0xff]  ;;  %v1034_v12 = vld [vmem:[#allocation2 + $0x15a] sm:$0xff]  ;;  %v14828_v4 = vld [vmem:[%s15160_s13 + $0x48] sm:$0xff] }
  0x99   : > { %v14380_v22 = vld [vmem:[#allocation5 + $0x110] sm:$0xff]   ;;  %v14381_v23 = vld [vmem:[#allocation5 + $0x118] sm:$0xff]   ;;  %v14819_v36 = vld [vmem:[%s15160_s13] sm:$0xff] }
  0x9a   : > { %v14821_v43 = vld [vmem:[%s15160_s13 + $0x10] sm:$0xff]  ;;  %v14826_v1 = vld [vmem:[%s15160_s13 + $0x38] sm:$0xff]  ;;  %v14827_v2 = vld [vmem:[%s15160_s13 + $0x40] sm:$0xff] }
  0x9b   : > { %v14388_v44 = vld [vmem:[#allocation5 + $0x150] sm:$0xff]   ;;  %v14395_v3 = vld [vmem:[#allocation5 + $0x180] sm:$0xff]  }
  0x9c   : > { %v14825_v57 = vld [vmem:[%s15160_s13 + $0x30] sm:$0xff] }
  0x9d   : > { %v14392_v58 = vld [vmem:[#allocation5 + $0x170] sm:$0xff]  }
  0x9e   : > { %12141 = vmatmul.mubr.bf16.gmra.mrb[28].mxu0 %v14360_v18  ;;  %v1010_v18 = vld [vmem:[#allocation2 + $0x3a] sm:$0xff] }
  0x9f   : > { %12160 = vmatprep.mubr.bf16.mxu0 %v490_v19  ;;  %v15239_v19 = vpack.c.bf16 %v1008_v16, %v1007_v15  ;;  %v15241_v21 = vpack.c.bf16 %v1010_v18, %v1009_v17  ;;  %v15277_v15 = vpack.c.bf16 %v1034_v12, %v1033_v11  ;;  %v1035_v16 = vld [vmem:[#allocation2 + $0x16a] sm:$0xff]  ;;  %v1036_v17 = vld [vmem:[#allocation2 + $0x172] sm:$0xff]  ;;  %v14831_v11 = vld [vmem:[%s15160_s13 + $0x60] sm:$0xff] }
  0xa0   : > { %v15281_v18 = vpack.c.bf16 %v1036_v17, %v1035_v16  ;;  %v14832_v12 = vld [vmem:[%s15160_s13 + $0x68] sm:$0xff]  ;;  %v14833_v16 = vld [vmem:[%s15160_s13 + $0x70] sm:$0xff]  ;;  %v15318_v17 = vld [vmem:[%s15160_s13 + $0x78] sm:$0xff] }
  0xa6   : > { %12161 = vmatmul.mubr.bf16.vlgmr.msra.gmra.mrb[0].mxu0 %v15193_v24 }
  0xa7   : > { %12193 = vmatpush3.bf16.msra.mxu0 %v14362_v10  ;;  %12164 = vmatprep.mubr.bf16.mxu0 %v15195_v26  ;;  %v489_v10 = vld [vmem:[#allocation2 + $0x170] sm:$0xff] }
  0xa8   : > { %12194 = vmatprep.subr.bf16.mxu0 %v14363_v25  ;;  %v15236_v13 = vpack.c.bf16 %v489_v10, %v488_v9  ;;  %v1031_v9 = vld [vmem:[#allocation2 + $0x13a] sm:$0xff]  ;;  %v1032_v10 = vld [vmem:[#allocation2 + $0x142] sm:$0xff] }
  0xab   : > { %12195 = vmatpush3.bf16.msra.mxu0 %v14363_v25  ;;  %v1013_v25 = vld [vmem:[#allocation2 + $0x62] sm:$0xff] }
  0xac   : > { %12196 = vmatprep.subr.bf16.mxu0 %v14364_v31 }
  0xae   : > { %12165 = vmatmul.mubr.bf16.gmra.mrb[4].mxu0 %v15199_v0 }
  0xaf   : > { %12168 = vmatprep.mubr.bf16.mxu0 %v15201_v33  ;;  %12197 = vmatpush3.bf16.msra.mxu0 %v14364_v31  ;;  %v15247_v31 = vpack.c.bf16 %v1014_v27, %v1013_v25  ;;  %v14382_v25 = vld [vmem:[#allocation5 + $0x120] sm:$0xff]   ;;  %v14384_v27 = vld [vmem:[#allocation5 + $0x130] sm:$0xff]  }
  0xb0   : > { %12198 = vmatprep.subr.bf16.mxu0 %v14365_v32 }
  0xb3   : > { %12199 = vmatpush3.bf16.msra.mxu0 %v14365_v32  ;;  %v1015_v32 = vld [vmem:[#allocation2 + $0x7a] sm:$0xff] }
  0xb4   : > { %12200 = vmatprep.subr.bf16.mxu0 %v14366_v38 }
  0xb6   : > { %12169 = vmatmul.mubr.bf16.gmra.mrb[8].mxu0 %v15205_v39 }
  0xb7   : > { %12172 = vmatprep.mubr.bf16.mxu0 %v15207_v41  ;;  %12201 = vmatpush3.bf16.msra.mxu0 %v14366_v38  ;;  %v15251_v38 = vpack.c.bf16 %v1016_v34, %v1015_v32  ;;  %v1341_v32 = vld [vmem:[#allocation2 + $0x180] sm:$0xff]  ;;  %v1342_v34 = vld [vmem:[#allocation2 + $0x188] sm:$0xff] }
  0xb8   : > { %12202 = vmatprep.subr.bf16.mxu0 %v14367_v40  ;;  %v15299_v35 = vpack.c.bf16 %v1342_v34, %v1341_v32 }
  0xbb   : > { %12203 = vmatpush3.bf16.msra.mxu0 %v14367_v40  ;;  %v14375_v40 = vld [vmem:[#allocation5 + $0xe8] sm:$0xff]  }
  0xbc   : > { %12204 = vmatprep.subr.bf16.mxu0 %v14368_v46 }
  0xbe   : > { %12173 = vmatmul.mubr.bf16.gmra.mrb[12].mxu0 %v15211_v47 }
  0xbf   : > { %12176 = vmatprep.mubr.bf16.mxu0 %v15213_v49  ;;  %12205 = vmatpush3.bf16.msra.mxu0 %v14368_v46  ;;  %v1022_v46 = vld [vmem:[#allocation2 + $0xca] sm:$0xff] }
  0xc0   : > { %12206 = vmatprep.subr.bf16.mxu0 %v14369_v48  ;;  %v15259_v52 = vpack.c.bf16 %v1022_v46, %v1021_v45  ;;  %v14389_v45 = vld [vmem:[#allocation5 + $0x158] sm:$0xff]  }
  0xc1   : > { %v14822_v46 = vld [vmem:[%s15160_s13 + $0x18] sm:$0xff] }
  0xc3   : > { %12207 = vmatpush3.bf16.msra.mxu0 %v14369_v48  ;;  %v14376_v48 = vld [vmem:[#allocation5 + $0xf0] sm:$0xff]  }
  0xc4   : > { %12240 = vmatprep.subr.bf16.mxu0 %v14370_v54 }
  0xc6   : > { %12177 = vmatmul.mubr.bf16.gmra.mrb[16].mxu0 %v15217_v55 }
  0xc7   : > { %12180 = vmatprep.mubr.bf16.mxu0 %v15219_v56 }
  0xce   : > { %12181 = vmatmul.mubr.bf16.gmra.mrb[20].mxu0 %v15223_v61 }
  0xcf   : > { %12184 = vmatprep.mubr.bf16.mxu0 %v15225_v62 }
  0xd6   : > { %12185 = vmatmul.mubr.bf16.gmra.mrb[24].mxu0 %v15230_v5 }
  0xd7   : > { %12188 = vmatprep.mubr.bf16.mxu0 %v15232_v8 }
  0xde   : > { %12189 = vmatmul.mubr.bf16.gmra.mrb[28].mxu0 %v15236_v13 }
  0xdf   : > { %12208 = vmatprep.mubr.bf16.mxu0 %v1037_v14  ;;  %v15275_v14 = vpack.c.bf16 %v1032_v10, %v1031_v9  ;;  %v14829_v9 = vld [vmem:[%s15160_s13 + $0x50] sm:$0xff]  ;;  %v14830_v10 = vld [vmem:[%s15160_s13 + $0x58] sm:$0xff] }
  0xe6   : > { %12209 = vmatmul.mubr.bf16.vlgmr.msra.gmra.mrb[0].mxu0 %v15239_v19 }
  0xe7   : > { %12241 = vmatpush3.bf16.msra.mxu0 %v14370_v54  ;;  %12212 = vmatprep.mubr.bf16.mxu0 %v15241_v21  ;;  %v1024_v54 = vld [vmem:[#allocation2 + $0xe2] sm:$0xff] }
  0xe8   : > { %12242 = vmatprep.subr.bf16.mxu0 %v14371_v20  ;;  %v15263_v60 = vpack.c.bf16 %v1024_v54, %v1023_v53  ;;  %v14391_v53 = vld [vmem:[#allocation5 + $0x168] sm:$0xff]  }
  0xe9   : > { %v14824_v54 = vld [vmem:[%s15160_s13 + $0x28] sm:$0xff] }
  0xeb   : > { %12243 = vmatpush3.bf16.msra.mxu0 %v14371_v20  ;;  %v14379_v20 = vld [vmem:[#allocation5 + $0x108] sm:$0xff]  }
  0xec   : > { %12244 = vmatprep.subr.bf16.mxu0 %v14372_v28 }
  0xee   : > { %12213 = vmatmul.mubr.bf16.gmra.mrb[4].mxu0 %v15245_v29 }
  0xef   : > { %12216 = vmatprep.mubr.bf16.mxu0 %v15247_v31  ;;  %12245 = vmatpush3.bf16.msra.mxu0 %v14372_v28  ;;  %v14385_v28 = vld [vmem:[#allocation5 + $0x138] sm:$0xff]  }
  0xf0   : > { %12246 = vmatprep.subr.bf16.mxu0 %v14373_v30 }
  0xf3   : > { %12247 = vmatpush3.bf16.msra.mxu0 %v14373_v30  ;;  %v14386_v30 = vld [vmem:[#allocation5 + $0x140] sm:$0xff]  }
  0xf4   : > { %12248 = vmatprep.subr.bf16.mxu0 %v14374_v37 }
  0xf6   : > { %12217 = vmatmul.mubr.bf16.gmra.mrb[8].mxu0 %v15251_v38 }
  0xf7   : > { %12220 = vmatprep.mubr.bf16.mxu0 %v15253_v42  ;;  %12249 = vmatpush3.bf16.msra.mxu0 %v14374_v37  ;;  %v14387_v37 = vld [vmem:[#allocation5 + $0x148] sm:$0xff]  }
  0xf8   : > { %12250 = vmatprep.subr.bf16.mxu0 %v14375_v40 }
  0xfb   : > { %12251 = vmatpush3.bf16.msra.mxu0 %v14375_v40  ;;  %v14820_v40 = vld [vmem:[%s15160_s13 + $0x8] sm:$0xff] }
  0xfc   : > { %12252 = vmatprep.subr.bf16.mxu0 %v14376_v48 }
  0xfe   : > { %12221 = vmatmul.mubr.bf16.gmra.mrb[12].mxu0 %v15257_v50 }
  0xff   : > { %12224 = vmatprep.mubr.bf16.mxu0 %v15259_v52  ;;  %12253 = vmatpush3.bf16.msra.mxu0 %v14376_v48  ;;  %v14823_v48 = vld [vmem:[%s15160_s13 + $0x20] sm:$0xff] }
 0x100   : > { %12254 = vmatprep.subr.bf16.mxu0 %v14377_v51 }
 0x103   : > { %12255 = vmatpush3.bf16.msra.mxu0 %v14377_v51  ;;  %v14390_v51 = vld [vmem:[#allocation5 + $0x160] sm:$0xff]  }
 0x104   : > { %12288 = vmatprep.subr.bf16.mxu0 %v14378_v59 }
 0x106   : > { %12225 = vmatmul.mubr.bf16.gmra.mrb[16].mxu0 %v15263_v60 }
 0x107   : > { %12228 = vmatprep.mubr.bf16.mxu0 %v15265_v63 }
 0x10e   : > { %12229 = vmatmul.mubr.bf16.gmra.mrb[20].mxu0 %v15269_v6 }
 0x10f   : > { %12232 = vmatprep.mubr.bf16.mxu0 %v15271_v7 }
 0x116   : > { %12233 = vmatmul.mubr.bf16.gmra.mrb[24].mxu0 %v15275_v14 }
 0x117   : > { %12236 = vmatprep.mubr.bf16.mxu0 %v15277_v15 }
 0x11e   : > { %12237 = vmatmul.mubr.bf16.gmra.mrb[28].mxu0 %v15281_v18 }
 0x11f   : > { %12256 = vmatprep.mubr.bf16.mxu0 %v15193_v24  ;;  %v14383_v24 = vld [vmem:[#allocation5 + $0x128] sm:$0xff]  }
 0x126   : > { %12257 = vmatmul.mubr.bf16.vlgmr.msra.gmra.mrb[0].mxu0 %v15195_v26 }
 0x127   : > { %12289 = vmatpush3.bf16.msra.mxu0 %v14378_v59  ;;  %12260 = vmatprep.mubr.bf16.mxu0 %v15199_v0  ;;  %v14394_v59 = vld [vmem:[#allocation5 + $0x178] sm:$0xff]  }
 0x128   : > { %12290 = vmatprep.subr.bf16.mxu0 %v14379_v20 }
 0x12b   : > { %12291 = vmatpush3.bf16.msra.mxu0 %v14379_v20  ;;  %v14396_v20 = vld [vmem:[#allocation5 + $0x188] sm:$0xff]  }
 0x12c   : > { %12292 = vmatprep.subr.bf16.mxu0 %v14380_v22 }
 0x12e   : > { %12261 = vmatmul.mubr.bf16.gmra.mrb[4].mxu0 %v15201_v33 }
 0x12f   : > { %12264 = vmatprep.mubr.bf16.mxu0 %v15205_v39  ;;  %12293 = vmatpush3.bf16.msra.mxu0 %v14380_v22  ;;  %v14397_v22 = vld [vmem:[#allocation5 + $0x190] sm:$0xff]  }
 0x130   : > { %12294 = vmatprep.subr.bf16.mxu0 %v14381_v23 }
 0x133   : > { %12295 = vmatpush3.bf16.msra.mxu0 %v14381_v23  ;;  %v14398_v23 = vld [vmem:[#allocation5 + $0x198] sm:$0xff]  }
 0x134   : > { %12296 = vmatprep.subr.bf16.mxu0 %v14382_v25 }
 0x136   : > { %12265 = vmatmul.mubr.bf16.gmra.mrb[8].mxu0 %v15207_v41 }
 0x137   : > { %12268 = vmatprep.mubr.bf16.mxu0 %v15211_v47  ;;  %12297 = vmatpush3.bf16.msra.mxu0 %v14382_v25  ;;  %v14399_v25 = vld [vmem:[#allocation5 + $0x1a0] sm:$0xff]  }
 0x138   : > { %12298 = vmatprep.subr.bf16.mxu0 %v14383_v24 }
 0x13b   : > { %12299 = vmatpush3.bf16.msra.mxu0 %v14383_v24  ;;  %v2543_v24 = vld [vmem:[#allocation2 + $0x81] sm:$0xff] }
 0x13c   : > { %12300 = vmatprep.subr.bf16.mxu0 %v14384_v27 }
 0x13e   : > { %12269 = vmatmul.mubr.bf16.gmra.mrb[12].mxu0 %v15213_v49 }
 0x13f   : > { %12272 = vmatprep.mubr.bf16.mxu0 %v15217_v55  ;;  %12301 = vmatpush3.bf16.msra.mxu0 %v14384_v27  ;;  %v2544_v27 = vld [vmem:[#allocation2 + $0x91] sm:$0xff] }
 0x140   : > { %12302 = vmatprep.subr.bf16.mxu0 %v14385_v28 }
 0x143   : > { %12303 = vmatpush3.bf16.msra.mxu0 %v14385_v28  ;;  %v2545_v28 = vld [vmem:[#allocation2 + $0x99] sm:$0xff] }
 0x144   : > { %12336 = vmatprep.subr.bf16.mxu0 %v14386_v30  ;;  %v2572_v34 = vpack.c.bf16 %v2545_v28, %v2544_v27  ;;  %v2857_v27 = vld [vmem:[#allocation2 + $0xe2] sm:$0xff]  ;;  %v2858_v28 = vld [vmem:[#allocation2 + $0xf2] sm:$0xff] }
 0x146   : > { %12273 = vmatmul.mubr.bf16.gmra.mrb[16].mxu0 %v15219_v56 }
 0x147   : > { %12276 = vmatprep.mubr.bf16.mxu0 %v15223_v61 }
 0x14e   : > { %12277 = vmatmul.mubr.bf16.gmra.mrb[20].mxu0 %v15225_v62 }
 0x14f   : > { %12280 = vmatprep.mubr.bf16.mxu0 %v15230_v5 }
 0x156   : > { %12281 = vmatmul.mubr.bf16.gmra.mrb[24].mxu0 %v15232_v8 }
 0x157   : > { %12284 = vmatprep.mubr.bf16.mxu0 %v15236_v13 }
 0x15e   : > { %12285 = vmatmul.mubr.bf16.gmra.mrb[28].mxu0 %v15299_v35 }
 0x15f   : > { %12304 = vmatprep.mubr.bf16.mxu0 %v14819_v36  ;;  %v2546_v36 = vld [vmem:[#allocation2 + $0xa9] sm:$0xff] }
 0x166   : > { %12305 = vmatmul.mubr.bf16.vlgmr.msra.gmra.mrb[0].mxu0 %v14820_v40  ;;  %v2548_v40 = vld [vmem:[#allocation2 + $0xc1] sm:$0xff] }
 0x167   : > { %12337 = vmatpush3.bf16.msra.mxu0 %v14386_v30  ;;  %12308 = vmatprep.mubr.bf16.mxu0 %v14821_v43  ;;  %v14413_v30 = vld [vmem:[#allocation5 + $0x210] sm:$0xff]  }
 0x168   : > { %12338 = vmatprep.subr.bf16.mxu0 %v14387_v37  ;;  %v2549_v43 = vld [vmem:[#allocation2 + $0xc9] sm:$0xff] }
 0x16b   : > { %12339 = vmatpush3.bf16.msra.mxu0 %v14387_v37  ;;  %v2547_v37 = vld [vmem:[#allocation2 + $0xb1] sm:$0xff] }
 0x16c   : > { %12340 = vmatprep.subr.bf16.mxu0 %v14388_v44 }
 0x16e   : > { %12309 = vmatmul.mubr.bf16.gmra.mrb[4].mxu0 %v14822_v46  ;;  %v2574_v46 = vpack.c.bf16 %v2549_v43, %v2548_v40  ;;  %v2863_v40 = vld [vmem:[#allocation2 + $0x12a] sm:$0xff] }
 0x16f   : > { %12312 = vmatprep.mubr.bf16.mxu0 %v14823_v48  ;;  %12341 = vmatpush3.bf16.msra.mxu0 %v14388_v44  ;;  %v14415_v44 = vld [vmem:[#allocation5 + $0x220] sm:$0xff]   ;;  %v14416_v48 = vld [vmem:[#allocation5 + $0x228] sm:$0xff]  }
 0x170   : > { %12342 = vmatprep.subr.bf16.mxu0 %v14389_v45 }
 0x173   : > { %12343 = vmatpush3.bf16.msra.mxu0 %v14389_v45  ;;  %v2573_v45 = vpack.c.bf16 %v2547_v37, %v2546_v36  ;;  %v2861_v36 = vld [vmem:[#allocation2 + $0x112] sm:$0xff]  ;;  %v2862_v37 = vld [vmem:[#allocation2 + $0x122] sm:$0xff] }
 0x174   : > { %12344 = vmatprep.subr.bf16.mxu0 %v14390_v51 }
 0x176   : > { %12313 = vmatmul.mubr.bf16.gmra.mrb[8].mxu0 %v14824_v54  ;;  %v2552_v54 = vld [vmem:[#allocation2 + $0xf1] sm:$0xff] }
 0x177   : > { %12316 = vmatprep.mubr.bf16.mxu0 %v14825_v57  ;;  %12345 = vmatpush3.bf16.msra.mxu0 %v14390_v51  ;;  %v2550_v51 = vld [vmem:[#allocation2 + $0xd9] sm:$0xff] }
 0x178   : > { %12346 = vmatprep.subr.bf16.mxu0 %v14391_v53  ;;  %v2553_v57 = vld [vmem:[#allocation2 + $0xf9] sm:$0xff] }
 0x17b   : > { %12347 = vmatpush3.bf16.msra.mxu0 %v14391_v53  ;;  %v2551_v53 = vld [vmem:[#allocation2 + $0xe1] sm:$0xff] }
 0x17c   : > { %12348 = vmatprep.subr.bf16.mxu0 %v14392_v58 }
 0x17e   : > { %12317 = vmatmul.mubr.bf16.gmra.mrb[12].mxu0 %v14826_v1  ;;  %v2576_v1 = vpack.c.bf16 %v2553_v57, %v2552_v54  ;;  %v2868_v57 = vld [vmem:[#allocation2 + $0x16a] sm:$0xff] }
 0x17f   : > { %12320 = vmatprep.mubr.bf16.mxu0 %v14827_v2  ;;  %12349 = vmatpush3.bf16.msra.mxu0 %v14392_v58  ;;  %v14417_v58 = vld [vmem:[#allocation5 + $0x230] sm:$0xff]   ;;  %v14418_v2 = vld [vmem:[#allocation5 + $0x238] sm:$0xff]  }
 0x180   : > { %12350 = vmatprep.subr.bf16.mxu0 %v14394_v59 }
 0x183   : > { %12351 = vmatpush3.bf16.msra.mxu0 %v14394_v59  ;;  %v2575_v59 = vpack.c.bf16 %v2551_v53, %v2550_v51  ;;  %v2867_v51 = vld [vmem:[#allocation2 + $0x15a] sm:$0xff] }
 0x184   : > { %12384 = vmatprep.subr.bf16.mxu0 %v14395_v3 }
 0x186   : > { %12321 = vmatmul.mubr.bf16.gmra.mrb[16].mxu0 %v14828_v4  ;;  %v2555_v4 = vld [vmem:[#allocation2 + $0x111] sm:$0xff] }
 0x187   : > { %12324 = vmatprep.mubr.bf16.mxu0 %v14829_v9  ;;  %v2556_v9 = vld [vmem:[#allocation2 + $0x121] sm:$0xff] }
 0x18e   : > { %12325 = vmatmul.mubr.bf16.gmra.mrb[20].mxu0 %v14830_v10  ;;  %v2557_v10 = vld [vmem:[#allocation2 + $0x129] sm:$0xff] }
 0x18f   : > { %12328 = vmatprep.mubr.bf16.mxu0 %v14831_v11 }
 0x196   : > { %12329 = vmatmul.mubr.bf16.gmra.mrb[24].mxu0 %v14832_v12  ;;  %v2578_v12 = vpack.c.bf16 %v2557_v10, %v2556_v9  ;;  %v3484_v9 = vld [vmem:[%s18058_s4 + $0x8] sm:$0xff] }
 0x197   : > { %12332 = vmatprep.mubr.bf16.mxu0 %v14833_v16  ;;  %v2558_v16 = vld [vmem:[#allocation2 + $0x139] sm:$0xff] }
 0x19e   : > { %12333 = vmatmul.mubr.bf16.gmra.mrb[28].mxu0 %v15318_v17 }
 0x19f   : > { %12352 = vmatprep.mubr.bf16.mxu0 %v15239_v19  ;;  %v14400_v19 = vld [vmem:[#allocation5 + $0x1a8] sm:$0xff]  }
 0x1a6   : > { %12353 = vmatmul.mubr.bf16.vlgmr.msra.gmra.mrb[0].mxu0 %v15241_v21  ;;  %v14401_v21 = vld [vmem:[#allocation5 + $0x1b0] sm:$0xff]  }
 0x1a7   : > { %12385 = vmatpush3.bf16.msra.mxu0 %v14395_v3  ;;  %12356 = vmatprep.mubr.bf16.mxu0 %v15245_v29  ;;  %v14402_v29 = vld [vmem:[#allocation5 + $0x1b8] sm:$0xff]   ;;  %v2554_v3 = vld [vmem:[#allocation2 + $0x109] sm:$0xff] }
 0x1a8   : > { %12386 = vmatprep.subr.bf16.mxu0 %v14396_v20  ;;  %v2577_v11 = vpack.c.bf16 %v2555_v4, %v2554_v3  ;;  %v3483_v4 = vld [vmem:[%s18058_s4] sm:$0xff] }
 0x1a9   : > { %v13463_v10 = vpack.c.bf16 %v3484_v9, %v3483_v4 }
 0x1ab   : > { %12387 = vmatpush3.bf16.msra.mxu0 %v14396_v20  ;;  %v2559_v20 = vld [vmem:[#allocation2 + $0x141] sm:$0xff] }
 0x1ac   : > { %12388 = vmatprep.subr.bf16.mxu0 %v14397_v22 }
 0x1ae   : > { %12357 = vmatmul.mubr.bf16.gmra.mrb[4].mxu0 %v15247_v31  ;;  %v14403_v31 = vld [vmem:[#allocation5 + $0x1c0] sm:$0xff]  }
 0x1af   : > { %12360 = vmatprep.mubr.bf16.mxu0 %v15251_v38  ;;  %12389 = vmatpush3.bf16.msra.mxu0 %v14397_v22  ;;  %v1953_v38 = vld [vmem:[#allocation2 + $0x182] sm:$0xff]  ;;  %v2560_v22 = vld [vmem:[#allocation2 + $0x151] sm:$0xff] }
 0x1b0   : > { %12390 = vmatprep.subr.bf16.mxu0 %v14398_v23 }
 0x1b3   : > { %12391 = vmatpush3.bf16.msra.mxu0 %v14398_v23  ;;  %v2561_v23 = vld [vmem:[#allocation2 + $0x159] sm:$0xff] }
 0x1b4   : > { %12392 = vmatprep.subr.bf16.mxu0 %v14399_v25 }
 0x1b6   : > { %12361 = vmatmul.mubr.bf16.gmra.mrb[8].mxu0 %v15253_v42  ;;  %v1954_v42 = vld [vmem:[#allocation2 + $0x18a] sm:$0xff] }
 0x1b7   : > { %12364 = vmatprep.mubr.bf16.mxu0 %v15257_v50  ;;  %12393 = vmatpush3.bf16.msra.mxu0 %v14399_v25  ;;  %v15336_v50 = vpack.c.bf16 %v1954_v42, %v1953_v38  ;;  %v2579_v25 = vpack.c.bf16 %v2559_v20, %v2558_v16  ;;  %v2566_v38 = vld [vmem:[#allocation2 + $0x199] sm:$0xff]  ;;  %v2567_v42 = vld [vmem:[#allocation2 + $0x1a1] sm:$0xff] }
 0x1b8   : > { %12394 = vmatprep.subr.bf16.mxu0 %v14400_v19  ;;  %v3487_v20 = vld [vmem:[%s18058_s4 + $0x20] sm:$0xff] }
 0x1bb   : > { %12395 = vmatpush3.bf16.msra.mxu0 %v14400_v19  ;;  %v2580_v19 = vpack.c.bf16 %v2561_v23, %v2560_v22  ;;  %v3488_v22 = vld [vmem:[%s18058_s4 + $0x28] sm:$0xff] }
 0x1bc   : > { %12396 = vmatprep.subr.bf16.mxu0 %v14401_v21  ;;  %v13469_v23 = vpack.c.bf16 %v3488_v22, %v3487_v20 }
 0x1be   : > { %12365 = vmatmul.mubr.bf16.gmra.mrb[12].mxu0 %v15259_v52  ;;  %v14404_v52 = vld [vmem:[#allocation5 + $0x1c8] sm:$0xff]  }
 0x1bf   : > { %12368 = vmatprep.mubr.bf16.mxu0 %v15263_v60  ;;  %12397 = vmatpush3.bf16.msra.mxu0 %v14401_v21  ;;  %v14405_v60 = vld [vmem:[#allocation5 + $0x1d0] sm:$0xff]  }
 0x1c0   : > { %12398 = vmatprep.subr.bf16.mxu0 %v14402_v29  ;;  %v2562_v21 = vld [vmem:[#allocation2 + $0x169] sm:$0xff] }
 0x1c3   : > { %12399 = vmatpush3.bf16.msra.mxu0 %v14402_v29  ;;  %v2563_v29 = vld [vmem:[#allocation2 + $0x171] sm:$0xff] }
 0x1c4   : > { %12432 = vmatprep.subr.bf16.mxu0 %v14403_v31 }
 0x1c6   : > { %12369 = vmatmul.mubr.bf16.gmra.mrb[16].mxu0 %v15265_v63  ;;  %v14406_v63 = vld [vmem:[#allocation5 + $0x1d8] sm:$0xff]  }
 0x1c7   : > { %12372 = vmatprep.mubr.bf16.mxu0 %v15269_v6  ;;  %v14407_v6 = vld [vmem:[#allocation5 + $0x1e0] sm:$0xff]  }
 0x1ce   : > { %12373 = vmatmul.mubr.bf16.gmra.mrb[20].mxu0 %v15271_v7 }
 0x1cf   : > { %12376 = vmatprep.mubr.bf16.mxu0 %v15275_v14  ;;  %v2540_v14 = vld [vmem:[#allocation2 + $0x61] sm:$0xff] }
 0x1d6   : > { %12377 = vmatmul.mubr.bf16.gmra.mrb[24].mxu0 %v15277_v15 }
 0x1d7   : > { %12380 = vmatprep.mubr.bf16.mxu0 %v15281_v18  ;;  %v14412_v18 = vld [vmem:[#allocation5 + $0x208] sm:$0xff]  }
 0x1de   : > { %12381 = vmatmul.mubr.bf16.gmra.mrb[28].mxu0 %v15336_v50 }
 0x1df   : > { %12400 = vmatprep.mubr.bf16.mxu0 %v15195_v26  ;;  %v14408_v26 = vld [vmem:[#allocation5 + $0x1e8] sm:$0xff]  }
 0x1e6   : > { %12401 = vmatmul.mubr.bf16.vlgmr.msra.gmra.mrb[0].mxu0 %v15199_v0  ;;  %v14409_v0 = vld [vmem:[#allocation5 + $0x1f0] sm:$0xff]  }
 0x1e7   : > { %12433 = vmatpush3.bf16.msra.mxu0 %v14403_v31  ;;  %12404 = vmatprep.mubr.bf16.mxu0 %v15201_v33  ;;  %v14410_v33 = vld [vmem:[#allocation5 + $0x1f8] sm:$0xff]   ;;  %v2581_v31 = vpack.c.bf16 %v2563_v29, %v2562_v21  ;;  %v3491_v29 = vld [vmem:[%s18058_s4 + $0x40] sm:$0xff] }
 0x1e8   : > { %12434 = vmatprep.subr.bf16.mxu0 %v14404_v52 }
 0x1eb   : > { %12435 = vmatpush3.bf16.msra.mxu0 %v14404_v52  ;;  %v2842_v52 = vld [vmem:[#allocation2 + $0x32] sm:$0xff] }
 0x1ec   : > { %12436 = vmatprep.subr.bf16.mxu0 %v14405_v60 }
 0x1ee   : > { %12405 = vmatmul.mubr.bf16.gmra.mrb[4].mxu0 %v15205_v39  ;;  %v14411_v39 = vld [vmem:[#allocation5 + $0x200] sm:$0xff]  }
 0x1ef   : > { %12408 = vmatprep.mubr.bf16.mxu0 %v15207_v41  ;;  %12437 = vmatpush3.bf16.msra.mxu0 %v14405_v60  ;;  %v2260_v41 = vld [vmem:[#allocation2 + $0x198] sm:$0xff] }
 0x1f0   : > { %12438 = vmatprep.subr.bf16.mxu0 %v14406_v63  ;;  %v2843_v60 = vld [vmem:[#allocation2 + $0x3a] sm:$0xff] }
 0x1f3   : > { %12439 = vmatpush3.bf16.msra.mxu0 %v14406_v63  ;;  %v2583_v63 = vpack.c.bf16 %v2567_v42, %v2566_v38  ;;  %v3493_v38 = vld [vmem:[%s18058_s4 + $0x50] sm:$0xff] }
 0x1f4   : > { %12440 = vmatprep.subr.bf16.mxu0 %v14407_v6 }
 0x1f6   : > { %12409 = vmatmul.mubr.bf16.gmra.mrb[8].mxu0 %v15211_v47  ;;  %v2536_v47 = vld [vmem:[#allocation2 + $0x31] sm:$0xff] }
 0x1f7   : > { %12412 = vmatprep.mubr.bf16.mxu0 %v15213_v49  ;;  %12441 = vmatpush3.bf16.msra.mxu0 %v14407_v6  ;;  %v2537_v49 = vld [vmem:[#allocation2 + $0x39] sm:$0xff]  ;;  %v2874_v6 = vpack.c.bf16 %v2843_v60, %v2842_v52 }
 0x1f8   : > { %12442 = vmatprep.subr.bf16.mxu0 %v14408_v26  ;;  %v2568_v7 = vpack.c.bf16 %v2537_v49, %v2536_v47  ;;  %v2848_v49 = vld [vmem:[#allocation2 + $0x7a] sm:$0xff] }
 0x1f9   : > { %v3494_v52 = vld [vmem:[%s18058_s4 + $0x58] sm:$0xff] }
 0x1fa   : > { %v13478_v60 = vpack.c.bf16 %v3494_v52, %v3493_v38 }
 0x1fb   : > { %12443 = vmatpush3.bf16.msra.mxu0 %v14408_v26  ;;  %v2844_v26 = vld [vmem:[#allocation2 + $0x4a] sm:$0xff] }
 0x1fc   : > { %12444 = vmatprep.subr.bf16.mxu0 %v14409_v0 }
 0x1fe   : > { %12413 = vmatmul.mubr.bf16.gmra.mrb[12].mxu0 %v15217_v55  ;;  %v15354_v55 = vld [vmem:[#allocation2 + $0x8] sm:$0xff] }
 0x1ff   : > { %12416 = vmatprep.mubr.bf16.mxu0 %v15219_v56  ;;  %12445 = vmatpush3.bf16.msra.mxu0 %v14409_v0  ;;  %v2277_v56 = vpack.c.bf16 %v15354_v55, %v2260_v41  ;;  %v2845_v0 = vld [vmem:[#allocation2 + $0x52] sm:$0xff] }
 0x200   : > { %12446 = vmatprep.subr.bf16.mxu0 %v14410_v33  ;;  %v2875_v41 = vpack.c.bf16 %v2845_v0, %v2844_v26  ;;  %12560 = vmatprep.mubr.msk.f32.mxu1 %vm14924_vm0, %v15354_v55  ;;  %v3497_v55 = vld [vmem:[%s18058_s4 + $0x70] sm:$0xff]  ;;  %v3498_v0 = vld [vmem:[%s18058_s4 + $0x78] sm:$0xff] }
 0x203   : > { %12447 = vmatpush3.bf16.msra.mxu0 %v14410_v33  ;;  %v2846_v33 = vld [vmem:[#allocation2 + $0x62] sm:$0xff] }
 0x204   : > { %12480 = vmatprep.subr.bf16.mxu0 %v14411_v39 }
 0x206   : > { %12417 = vmatmul.mubr.bf16.gmra.mrb[16].mxu0 %v15223_v61  ;;  %v2538_v61 = vld [vmem:[#allocation2 + $0x49] sm:$0xff] }
 0x207   : > { %12420 = vmatprep.mubr.bf16.mxu0 %v15225_v62  ;;  %v2539_v62 = vld [vmem:[#allocation2 + $0x51] sm:$0xff] }
 0x208   : > { %v2569_v15 = vpack.c.bf16 %v2539_v62, %v2538_v61 }
 0x20e   : > { %12421 = vmatmul.mubr.bf16.gmra.mrb[20].mxu0 %v15230_v5  ;;  %v2541_v5 = vld [vmem:[#allocation2 + $0x69] sm:$0xff] }
 0x20f   : > { %12424 = vmatprep.mubr.bf16.mxu0 %v15232_v8  ;;  %v2570_v8 = vpack.c.bf16 %v2541_v5, %v2540_v14  ;;  %v2852_v14 = vld [vmem:[#allocation2 + $0xaa] sm:$0xff]  ;;  %v2853_v5 = vld [vmem:[#allocation2 + $0xb2] sm:$0xff] }
 0x216   : > { %12425 = vmatmul.mubr.bf16.gmra.mrb[24].mxu0 %v15236_v13  ;;  %v2542_v13 = vld [vmem:[#allocation2 + $0x79] sm:$0xff] }
 0x217   : > { %12428 = vmatprep.mubr.bf16.mxu0 %v15299_v35  ;;  %v2571_v32 = vpack.c.bf16 %v2543_v24, %v2542_v13  ;;  %v14414_v35 = vld [vmem:[#allocation5 + $0x218] sm:$0xff]  }
 0x218   : > { %v2856_v24 = vld [vmem:[#allocation2 + $0xda] sm:$0xff] }
 0x21e   : > { %12429 = vmatmul.mubr.bf16.gmra.mrb[28].mxu0 %v2277_v56  ;;  %v2849_v56 = vld [vmem:[#allocation2 + $0x82] sm:$0xff] }
 0x21f   : > { %12448 = vmatprep.mubr.bf16.mxu0 %v2568_v7  ;;  %v2850_v7 = vld [vmem:[#allocation2 + $0x92] sm:$0xff]  ;;  %v2877_v61 = vpack.c.bf16 %v2849_v56, %v2848_v49 }
 0x220   : > { %v14423_v49 = vld [vmem:[#allocation7 + $0x50] sm:$0xff]   ;;  %v14425_v56 = vld [vmem:[#allocation7 + $0x58] sm:$0xff]  }
 0x226   : > { %12449 = vmatmul.mubr.bf16.vlgmr.msra.gmra.mrb[0].mxu0 %v2569_v15  ;;  %v2854_v15 = vld [vmem:[#allocation2 + $0xc2] sm:$0xff] }
 0x227   : > { %12481 = vmatpush3.bf16.msra.mxu0 %v14411_v39  ;;  %12452 = vmatprep.mubr.bf16.mxu0 %v2570_v8  ;;  %v2847_v39 = vld [vmem:[#allocation2 + $0x6a] sm:$0xff] }
 0x228   : > { %12482 = vmatprep.subr.bf16.mxu0 %v14412_v18  ;;  %v2876_v47 = vpack.c.bf16 %v2847_v39, %v2846_v33  ;;  %v2855_v8 = vld [vmem:[#allocation2 + $0xca] sm:$0xff]  ;;  %v13484_v33 = vpack.c.bf16 %v3498_v0, %v3497_v55  ;;  %v14419_v39 = vld [vmem:[#allocation7 + $0x40] sm:$0xff]  }
 0x229   : > { %v2880_v13 = vpack.c.bf16 %v2855_v8, %v2854_v15 }
 0x22b   : > { %12483 = vmatpush3.bf16.msra.mxu0 %v14412_v18  ;;  %v2879_v18 = vpack.c.bf16 %v2853_v5, %v2852_v14 }
 0x22c   : > { %12484 = vmatprep.subr.bf16.mxu0 %v14413_v30 }
 0x22e   : > { %12453 = vmatmul.mubr.bf16.gmra.mrb[4].mxu0 %v2571_v32  ;;  %v2881_v32 = vpack.c.bf16 %v2857_v27, %v2856_v24 }
 0x22f   : > { %12456 = vmatprep.mubr.bf16.mxu0 %v2572_v34  ;;  %12485 = vmatpush3.bf16.msra.mxu0 %v14413_v30  ;;  %v2859_v30 = vld [vmem:[#allocation2 + $0xfa] sm:$0xff] }
 0x230   : > { %12486 = vmatprep.subr.bf16.mxu0 %v14414_v35  ;;  %v2882_v34 = vpack.c.bf16 %v2859_v30, %v2858_v28 }
 0x233   : > { %12487 = vmatpush3.bf16.msra.mxu0 %v14414_v35  ;;  %v2860_v35 = vld [vmem:[#allocation2 + $0x10a] sm:$0xff] }
 0x234   : > { %12488 = vmatprep.subr.bf16.mxu0 %v14415_v44  ;;  %v2883_v43 = vpack.c.bf16 %v2861_v36, %v2860_v35 }
 0x236   : > { %12457 = vmatmul.mubr.bf16.gmra.mrb[8].mxu0 %v2573_v45  ;;  %v2864_v45 = vld [vmem:[#allocation2 + $0x13a] sm:$0xff] }
 0x237   : > { %12460 = vmatprep.mubr.bf16.mxu0 %v2574_v46  ;;  %12489 = vmatpush3.bf16.msra.mxu0 %v14415_v44  ;;  %v2884_v44 = vpack.c.bf16 %v2863_v40, %v2862_v37  ;;  %v2865_v46 = vld [vmem:[#allocation2 + $0x142] sm:$0xff] }
 0x238   : > { %12490 = vmatprep.subr.bf16.mxu0 %v14416_v48  ;;  %v2885_v53 = vpack.c.bf16 %v2865_v46, %v2864_v45 }
 0x23b   : > { %12491 = vmatpush3.bf16.msra.mxu0 %v14416_v48  ;;  %v2866_v48 = vld [vmem:[#allocation2 + $0x152] sm:$0xff] }
 0x23c   : > { %12492 = vmatprep.subr.bf16.mxu0 %v14417_v58  ;;  %v2886_v54 = vpack.c.bf16 %v2867_v51, %v2866_v48 }
 0x23e   : > { %12461 = vmatmul.mubr.bf16.gmra.mrb[12].mxu0 %v2575_v59 }
 0x23f   : > { %12464 = vmatprep.mubr.bf16.mxu0 %v2576_v1  ;;  %12493 = vmatpush3.bf16.msra.mxu0 %v14417_v58  ;;  %v2869_v58 = vld [vmem:[#allocation2 + $0x172] sm:$0xff]  ;;  %v2872_v1 = vld [vmem:[#allocation2 + $0x19a] sm:$0xff] }
 0x240   : > { %12494 = vmatprep.subr.bf16.mxu0 %v14418_v2  ;;  %v2887_v59 = vpack.c.bf16 %v2869_v58, %v2868_v57 }
 0x243   : > { %12495 = vmatpush3.bf16.msra.mxu0 %v14418_v2  ;;  %v2873_v2 = vld [vmem:[#allocation2 + $0x1a2] sm:$0xff] }
 0x244   : > { %v2889_v3 = vpack.c.bf16 %v2873_v2, %v2872_v1  ;;  %12563 = vmatprep.subr.bf16.mxu0 %v14419_v39 }
 0x246   : > { %12465 = vmatmul.mubr.bf16.gmra.mrb[16].mxu0 %v2577_v11  ;;  %v18065_v11 = vmov 0.0|0.0  }
 0x247   : > { %12468 = vmatprep.mubr.bf16.mxu0 %v2578_v12  ;;  %13462 = vmatprep.subr.bf16.mxu1 %v18065_v11  ;;  %v3486_v12 = vld [vmem:[%s18058_s4 + $0x18] sm:$0xff] }
 0x248   : > { %13464 = vmatpush3.bf16.msra.mxu1 %v13463_v10 }
 0x249   : > { %13465 = vmatprep.subr.bf16.mxu1 %v18065_v11 }
 0x24e   : > { %12469 = vmatmul.mubr.bf16.gmra.mrb[20].mxu0 %v2579_v25  ;;  %v3489_v25 = vld [vmem:[%s18058_s4 + $0x30] sm:$0xff] }
 0x24f   : > { %12472 = vmatprep.mubr.bf16.mxu0 %v2580_v19  ;;  %v3490_v19 = vld [vmem:[%s18058_s4 + $0x38] sm:$0xff] }
 0x250   : > { %v13472_v21 = vpack.c.bf16 %v3490_v19, %v3489_v25 }
 0x256   : > { %12473 = vmatmul.mubr.bf16.gmra.mrb[24].mxu0 %v2581_v31  ;;  %v3492_v31 = vld [vmem:[%s18058_s4 + $0x48] sm:$0xff] }
 0x257   : > { %12476 = vmatprep.mubr.bf16.mxu0 %v15318_v17  ;;  %v2851_v17 = vld [vmem:[#allocation2 + $0x9a] sm:$0xff]  ;;  %v13475_v42 = vpack.c.bf16 %v3492_v31, %v3491_v29 }
 0x258   : > { %v2878_v62 = vpack.c.bf16 %v2851_v17, %v2850_v7  ;;  %v15423_v7 = vld [vmem:[%s18060_s6] ss:$0 sm:$0xff]  ;;  %v15428_v17 = vld [vmem:[%s18060_s6 + $0x1] ss:$0 sm:$0xff] }
 0x25e   : > { %12477 = vmatmul.mubr.bf16.gmra.mrb[28].mxu0 %v2583_v63  ;;  %v3495_v63 = vld [vmem:[%s18058_s4 + $0x60] sm:$0xff] }
 0x25f   : > { %12496 = vmatprep.mubr.bf16.mxu0 %v2874_v6  ;;  %v3496_v6 = vld [vmem:[%s18058_s4 + $0x68] sm:$0xff] }
 0x260   : > { %v13481_v26 = vpack.c.bf16 %v3496_v6, %v3495_v63 }
 0x266   : > { %12497 = vmatmul.mubr.bf16.vlgmr.msra.gmra.mrb[0].mxu0 %v2875_v41  ;;  %v15417_v41 = vld [vmem:[#allocation7 + $0x80] sm:$0xff]  }
 0x267   : > { %12500 = vmatprep.mubr.bf16.mxu0 %v2876_v47  ;;  %v14421_v47 = vld [vmem:[#allocation7 + $0x48] sm:$0xff]   ;;  %12564 = vmatpush3.bf16.msra.mxu0 %v14419_v39 }
 0x268   : > { %12565 = vmatprep.subr.bf16.mxu0 %v14421_v47 }
 0x26b   : > { %12566 = vmatpush3.bf16.msra.mxu0 %v14421_v47 }
 0x26c   : > { %12567 = vmatprep.subr.bf16.mxu0 %v14423_v49 }
 0x26e   : > { %12501 = vmatmul.mubr.bf16.gmra.mrb[4].mxu0 %v2877_v61 }
 0x26f   : > { %12504 = vmatprep.mubr.bf16.mxu0 %v2878_v62  ;;  %12568 = vmatpush3.bf16.msra.mxu0 %v14423_v49 }
 0x270   : > { %12569 = vmatprep.subr.bf16.mxu0 %v14425_v56 }
 0x273   : > { %12570 = vmatpush3.bf16.msra.mxu0 %v14425_v56 }
 0x276   : > { %12505 = vmatmul.mubr.bf16.gmra.mrb[8].mxu0 %v2879_v18 }
 0x277   : > { %12508 = vmatprep.mubr.bf16.mxu0 %v2880_v13 }
 0x27e   : > { %12509 = vmatmul.mubr.bf16.gmra.mrb[12].mxu0 %v2881_v32 }
 0x27f   : > { %12512 = vmatprep.mubr.bf16.mxu0 %v2882_v34 }
 0x286   : > { %12513 = vmatmul.mubr.bf16.gmra.mrb[16].mxu0 %v2883_v43 }
 0x287   : > { %12516 = vmatprep.mubr.bf16.mxu0 %v2884_v44 }
 0x28e   : > { %12517 = vmatmul.mubr.bf16.gmra.mrb[20].mxu0 %v2885_v53 }
 0x28f   : > { %12520 = vmatprep.mubr.bf16.mxu0 %v2886_v54 }
 0x296   : > { %12521 = vmatmul.mubr.bf16.gmra.mrb[24].mxu0 %v2887_v59 }
 0x297   : > { %12524 = vmatprep.mubr.bf16.mxu0 %v15336_v50  ;;  %v3485_v50 = vld [vmem:[%s18058_s4 + $0x10] sm:$0xff] }
 0x298   : > { %v13466_v16 = vpack.c.bf16 %v3486_v12, %v3485_v50 }
 0x29a   : > { %13467 = vmatpush3.bf16.msra.mxu1 %v13466_v16 }
 0x29b   : > { %13468 = vmatprep.subr.bf16.mxu1 %v18065_v11 }
 0x29e   : > { %12525 = vmatmul.mubr.bf16.gmra.mrb[28].mxu0 %v2889_v3  ;;  %13470 = vmatpush3.bf16.msra.mxu1 %v13469_v23 }
 0x29f   : > { %13471 = vmatprep.subr.bf16.mxu1 %v18065_v11 }
 0x2a2   : > { %13473 = vmatpush3.bf16.msra.mxu1 %v13472_v21 }
 0x2a3   : > { %13474 = vmatprep.subr.bf16.mxu1 %v18065_v11 }
 0x2a6   : > { %13476 = vmatpush3.bf16.msra.mxu1 %v13475_v42 }
 0x2a7   : > { %13477 = vmatprep.subr.bf16.mxu1 %v18065_v11 }
 0x2aa   : > { %13479 = vmatpush3.bf16.msra.mxu1 %v13478_v60 }
 0x2ab   : > { %13480 = vmatprep.subr.bf16.mxu1 %v18065_v11 }
 0x2ae   : > { %13482 = vmatpush3.bf16.msra.mxu1 %v13481_v26 }
 0x2af   : > { %13483 = vmatprep.subr.bf16.mxu1 %v18065_v11 }
 0x2b2   : > { %13485 = vmatpush3.bf16.msra.mxu1 %v13484_v33 }
 0x2b3   : > { %12755 = vmatprep.subr.bf16.mxu1 %v15417_v41 }
 0x339   : > { %v12498_v61 = vpop.f32.mrb[0].mxu0 }
 0x33a   : > { %v3154_v62 = vmul.f32 %v12498_v61, %v15423_v7  ;;  %v2989_v14 = vpop.f32.mrb[1].mxu0 }
 0x33b   : > { %v3152_v5 = vmul.f32 %v15423_v7, %v2989_v14  ;;  %v12499_v15 = vpop.f32.mrb[2].mxu0 }
 0x33c   : > { %v15433_v8 = vadd.f32 %v15428_v17, %v3154_v62  ;;  %v3155_v18 = vmul.f32 %v12499_v15, %v15423_v7  ;;  %v2992_v13 = vpop.f32.mrb[3].mxu0 }
 0x33d   : > { %v15437_v24 = vadd.f32 %v15428_v17, %v3152_v5  ;;  %v3153_v27 = vmul.f32 %v15423_v7, %v2992_v13 }
 0x33e   : > { %v10914_v28 = vmul.f32 -1.442695, %v15433_v8  ;;  %v15442_v30 = vadd.f32 %v15428_v17, %v3155_v18 }
 0x33f   : > { %v10912_v32 = vmul.f32 -1.442695, %v15437_v24  ;;  %v15446_v34 = vadd.f32 %v15428_v17, %v3153_v27 }
 0x340   : > { %14563 = vpow2.f32 %v10914_v28  ;;  %v10915_v35 = vmul.f32 -1.442695, %v15442_v30 }
 0x341   : > { %14565 = vpow2.f32 %v10912_v32  ;;  %v10913_v36 = vmul.f32 -1.442695, %v15446_v34  ;;  %v12502_v37 = vpop.f32.mrb[4].mxu0 }
 0x342   : > { %14567 = vpow2.f32 %v10915_v35  ;;  %v3158_v40 = vmul.f32 %v12502_v37, %v15423_v7  ;;  %v3005_v43 = vpop.f32.mrb[5].mxu0 }
 0x343   : > { %14569 = vpow2.f32 %v10913_v36  ;;  %v3156_v44 = vmul.f32 %v15423_v7, %v3005_v43  ;;  %v12503_v45 = vpop.f32.mrb[6].mxu0 }
 0x344   : > { %v15453_v46 = vadd.f32 %v15428_v17, %v3158_v40  ;;  %v3159_v48 = vmul.f32 %v12503_v45, %v15423_v7  ;;  %v3008_v51 = vpop.f32.mrb[7].mxu0 }
 0x345   : > { %v15457_v53 = vadd.f32 %v15428_v17, %v3156_v44  ;;  %v3157_v54 = vmul.f32 %v15423_v7, %v3008_v51 }
 0x346   : > { %v10918_v57 = vmul.f32 -1.442695, %v15453_v46  ;;  %v15462_v58 = vadd.f32 %v15428_v17, %v3159_v48 }
 0x347   : > { %v10916_v59 = vmul.f32 -1.442695, %v15457_v53  ;;  %v15466_v1 = vadd.f32 %v15428_v17, %v3157_v54 }
 0x348   : > { %14571 = vpow2.f32 %v10918_v57  ;;  %v10919_v2 = vmul.f32 -1.442695, %v15462_v58 }
 0x349   : > { %14573 = vpow2.f32 %v10916_v59  ;;  %v10917_v3 = vmul.f32 -1.442695, %v15466_v1  ;;  %v12506_v4 = vpop.f32.mrb[8].mxu0 }
 0x34a   : > { %v14564_v9 = vpop.eup %14563  ;;  %14575 = vpow2.f32 %v10919_v2  ;;  %v3162_v10 = vmul.f32 %v12506_v4, %v15423_v7  ;;  %v3021_v50 = vpop.f32.mrb[9].mxu0 }
 0x34b   : > { %v14566_v12 = vpop.eup %14565  ;;  %v3318_v16 = vadd.f32 1.0, %v14564_v9  ;;  %14577 = vpow2.f32 %v10917_v3  ;;  %v3160_v20 = vmul.f32 %v15423_v7, %v3021_v50  ;;  %v12507_v22 = vpop.f32.mrb[10].mxu0 }
 0x34c   : > { %v14568_v23 = vpop.eup %14567  ;;  %v3316_v25 = vadd.f32 1.0, %v14566_v12  ;;  %v15473_v19 = vadd.f32 %v15428_v17, %v3162_v10  ;;  %v3163_v21 = vmul.f32 %v12507_v22, %v15423_v7  ;;  %v3024_v29 = vpop.f32.mrb[11].mxu0 }
 0x34d   : > { %v14570_v31 = vpop.eup %14569  ;;  %14579 = vrcp.f32 %v3318_v16  ;;  %v3319_v38 = vadd.f32 1.0, %v14568_v23  ;;  %v15477_v42 = vadd.f32 %v15428_v17, %v3160_v20  ;;  %v3161_v52 = vmul.f32 %v15423_v7, %v3024_v29 }
 0x34e   : > { %14581 = vrcp.f32 %v3316_v25  ;;  %v3317_v60 = vadd.f32 1.0, %v14570_v31  ;;  %v10922_v63 = vmul.f32 -1.442695, %v15473_v19  ;;  %v15482_v6 = vadd.f32 %v15428_v17, %v3163_v21 }
 0x34f   : > { %14583 = vrcp.f32 %v3319_v38  ;;  %v10920_v26 = vmul.f32 -1.442695, %v15477_v42  ;;  %v15486_v55 = vadd.f32 %v15428_v17, %v3161_v52 }
 0x350   : > { %14585 = vrcp.f32 %v3317_v60  ;;  %v10923_v0 = vmul.f32 -1.442695, %v15482_v6 }
 0x351   : > { %14587 = vpow2.f32 %v10922_v63  ;;  %v10921_v33 = vmul.f32 -1.442695, %v15486_v55  ;;  %v12510_v39 = vpop.f32.mrb[12].mxu0 }
 0x352   : > { %v14572_v47 = vpop.eup %14571  ;;  %14589 = vpow2.f32 %v10920_v26  ;;  %v3166_v49 = vmul.f32 %v12510_v39, %v15423_v7  ;;  %v3037_v56 = vpop.f32.mrb[13].mxu0 }
 0x353   : > { %v14574_v61 = vpop.eup %14573  ;;  %v3322_v62 = vadd.f32 1.0, %v14572_v47  ;;  %14591 = vpow2.f32 %v10923_v0  ;;  %v3164_v14 = vmul.f32 %v15423_v7, %v3037_v56  ;;  %v12511_v5 = vpop.f32.mrb[14].mxu0 }
 0x354   : > { %v14576_v15 = vpop.eup %14575  ;;  %v3320_v18 = vadd.f32 1.0, %v14574_v61  ;;  %14593 = vpow2.f32 %v10921_v33  ;;  %v15493_v13 = vadd.f32 %v15428_v17, %v3166_v49  ;;  %v3167_v27 = vmul.f32 %v12511_v5, %v15423_v7  ;;  %v3040_v28 = vpop.f32.mrb[15].mxu0 }
 0x355   : > { %v14578_v32 = vpop.eup %14577  ;;  %14595 = vrcp.f32 %v3322_v62  ;;  %v3323_v35 = vadd.f32 1.0, %v14576_v15  ;;  %v15497_v36 = vadd.f32 %v15428_v17, %v3164_v14  ;;  %v3165_v37 = vmul.f32 %v15423_v7, %v3040_v28 }
 0x356   : > { %14597 = vrcp.f32 %v3320_v18  ;;  %v3321_v40 = vadd.f32 1.0, %v14578_v32  ;;  %v10926_v43 = vmul.f32 -1.442695, %v15493_v13  ;;  %v15502_v44 = vadd.f32 %v15428_v17, %v3167_v27 }
 0x357   : > { %v14580_v45 = vpop.eup %14579  ;;  %14599 = vrcp.f32 %v3323_v35  ;;  %v10924_v48 = vmul.f32 -1.442695, %v15497_v36  ;;  %v15506_v51 = vadd.f32 %v15428_v17, %v3165_v37 }
 0x358   : > { %v14582_v54 = vpop.eup %14581  ;;  %14601 = vrcp.f32 %v3321_v40  ;;  %v10927_v57 = vmul.f32 -1.442695, %v15502_v44  ;;  %v15511_v9 = vmul.f32 %v14580_v45, %v15433_v8 }
 0x359   : > { %v14584_v59 = vpop.eup %14583  ;;  %14603 = vpow2.f32 %v10926_v43  ;;  %v10925_v2 = vmul.f32 -1.442695, %v15506_v51  ;;  %v12514_v3 = vpop.f32.mrb[16].mxu0  ;;  %v15514_v10 = vmul.f32 %v14582_v54, %v15437_v24 }
 0x35a   : > { %v14586_v4 = vpop.eup %14585  ;;  %14605 = vpow2.f32 %v10924_v48  ;;  %v3170_v50 = vmul.f32 %v12514_v3, %v15423_v7  ;;  %v3053_v12 = vpop.f32.mrb[17].mxu0  ;;  %v15518_v20 = vmul.f32 %v14584_v59, %v15442_v30 }
 0x35b   : > { %v14588_v16 = vpop.eup %14587  ;;  %v15521_v22 = vmul.f32 %v14586_v4, %v15446_v34  ;;  %14607 = vpow2.f32 %v10927_v57  ;;  %v3168_v23 = vmul.f32 %v15423_v7, %v3053_v12  ;;  %v12515_v25 = vpop.f32.mrb[18].mxu0 }
 0x35c   : > { %v14590_v8 = vpop.eup %14589  ;;  %v3326_v21 = vadd.f32 1.0, %v14588_v16  ;;  %14609 = vpow2.f32 %v10925_v2  ;;  %v15525_v24 = vadd.f32 %v15428_v17, %v3170_v50  ;;  %v3171_v29 = vmul.f32 %v12515_v25, %v15423_v7  ;;  %v3056_v31 = vpop.f32.mrb[19].mxu0 }
 0x35d   : > { %v14592_v38 = vpop.eup %14591  ;;  %v3444_v30 = vadd.f32 %v15521_v22, %v15514_v10  ;;  %v3324_v52 = vadd.f32 1.0, %v14590_v8  ;;  %v15531_v34 = vadd.f32 %v15428_v17, %v3168_v23  ;;  %v3169_v60 = vmul.f32 %v15423_v7, %v3056_v31 }
 0x35e   : > { %v14594_v63 = vpop.eup %14593  ;;  %14611 = vrcp.f32 %v3326_v21  ;;  %v3327_v26 = vadd.f32 1.0, %v14592_v38  ;;  %v10930_v0 = vmul.f32 -1.442695, %v15525_v24  ;;  %v15536_v33 = vadd.f32 %v15428_v17, %v3171_v29 }
 0x35f   : > { %v14596_v39 = vpop.eup %14595  ;;  %v3445_v47 = vadd.f32 %v3444_v30, %v15511_v9  ;;  %14613 = vrcp.f32 %v3324_v52  ;;  %v3325_v49 = vadd.f32 1.0, %v14594_v63  ;;  %v10928_v56 = vmul.f32 -1.442695, %v15531_v34 }
 0x360   : > { %v14598_v61 = vpop.eup %14597  ;;  %14615 = vrcp.f32 %v3327_v26  ;;  %v10931_v62 = vmul.f32 -1.442695, %v15536_v33  ;;  %v15542_v14 = vadd.f32 %v15428_v17, %v3169_v60  ;;  %v15545_v15 = vmul.f32 %v14596_v39, %v15453_v46 }
 0x361   : > { %v14600_v5 = vpop.eup %14599  ;;  %v15548_v18 = vmul.f32 %v14598_v61, %v15457_v53  ;;  %v3446_v27 = vadd.f32 %v3445_v47, %v15518_v20  ;;  %14617 = vrcp.f32 %v3325_v49  ;;  %v12518_v28 = vpop.f32.mrb[20].mxu0 }
 0x362   : > { %v14602_v32 = vpop.eup %14601  ;;  %v15552_v35 = vmul.f32 %v14600_v5, %v15462_v58  ;;  %14619 = vpow2.f32 %v10930_v0  ;;  %v10929_v37 = vmul.f32 -1.442695, %v15542_v14  ;;  %v3174_v40 = vmul.f32 %v12518_v28, %v15423_v7  ;;  %v3069_v43 = vpop.f32.mrb[21].mxu0 }
 0x363   : > { %v14604_v45 = vpop.eup %14603  ;;  %v3447_v46 = vadd.f32 %v3446_v27, %v15548_v18  ;;  %v15558_v53 = vmul.f32 %v14602_v32, %v15466_v1  ;;  %14621 = vpow2.f32 %v10928_v56  ;;  %v3172_v48 = vmul.f32 %v15423_v7, %v3069_v43  ;;  %v12519_v54 = vpop.f32.mrb[22].mxu0 }
 0x364   : > { %v14606_v57 = vpop.eup %14605  ;;  %v3330_v59 = vadd.f32 1.0, %v14604_v45  ;;  %14623 = vpow2.f32 %v10931_v62  ;;  %v15562_v58 = vadd.f32 %v15428_v17, %v3174_v40  ;;  %v3175_v2 = vmul.f32 %v12519_v54, %v15423_v7  ;;  %v3072_v3 = vpop.f32.mrb[23].mxu0 }
 0x365   : > { %v14608_v4 = vpop.eup %14607  ;;  %v3448_v50 = vadd.f32 %v3447_v46, %v15558_v53  ;;  %v3328_v12 = vadd.f32 1.0, %v14606_v57  ;;  %14625 = vpow2.f32 %v10929_v37  ;;  %v15567_v1 = vadd.f32 %v15428_v17, %v3172_v48 }
 0x366   : > { %v14610_v16 = vpop.eup %14609  ;;  %14627 = vrcp.f32 %v3330_v59  ;;  %v3331_v23 = vadd.f32 1.0, %v14608_v4  ;;  %v10934_v25 = vmul.f32 -1.442695, %v15562_v58  ;;  %v15571_v8 = vadd.f32 %v15428_v17, %v3175_v2 }
 0x367   : > { %v3449_v21 = vadd.f32 %v3448_v50, %v15545_v15  ;;  %14629 = vrcp.f32 %v3328_v12  ;;  %v3329_v29 = vadd.f32 1.0, %v14610_v16  ;;  %v10932_v31 = vmul.f32 -1.442695, %v15567_v1 }
 0x368   : > { %v14612_v38 = vpop.eup %14611  ;;  %14631 = vrcp.f32 %v3331_v23  ;;  %v10935_v30 = vmul.f32 -1.442695, %v15571_v8  ;;  %v3173_v52 = vmul.f32 %v15423_v7, %v3072_v3 }
 0x369   : > { %v14614_v60 = vpop.eup %14613  ;;  %v3450_v63 = vadd.f32 %v3449_v21, %v15552_v35  ;;  %14633 = vrcp.f32 %v3329_v29  ;;  %v12522_v26 = vpop.f32.mrb[24].mxu0  ;;  %v15586_v62 = vmul.f32 %v14612_v38, %v15473_v19 }
 0x36a   : > { %v14616_v0 = vpop.eup %14615  ;;  %v15579_v39 = vmul.f32 %v14614_v60, %v15477_v42  ;;  %14635 = vpow2.f32 %v10934_v25  ;;  %v15582_v47 = vadd.f32 %v15428_v17, %v3173_v52  ;;  %v3178_v49 = vmul.f32 %v12522_v26, %v15423_v7  ;;  %v3085_v56 = vpop.f32.mrb[25].mxu0 }
 0x36b   : > { %v14618_v61 = vpop.eup %14617  ;;  %v15589_v5 = vmul.f32 %v14616_v0, %v15482_v6  ;;  %14637 = vpow2.f32 %v10932_v31  ;;  %v3176_v27 = vmul.f32 %v15423_v7, %v3085_v56  ;;  %v12523_v28 = vpop.f32.mrb[26].mxu0 }
 0x36c   : > { %v14620_v42 = vpop.eup %14619  ;;  %v3451_v32 = vadd.f32 %v3450_v63, %v15579_v39  ;;  %v15594_v37 = vmul.f32 %v14618_v61, %v15486_v55  ;;  %14639 = vpow2.f32 %v10935_v30  ;;  %v10933_v40 = vmul.f32 -1.442695, %v15582_v47  ;;  %v3088_v43 = vpop.f32.mrb[27].mxu0 }
 0x36d   : > { %v14622_v45 = vpop.eup %14621  ;;  %v3334_v19 = vadd.f32 1.0, %v14620_v42  ;;  %v15598_v46 = vadd.f32 %v15428_v17, %v3178_v49  ;;  %v15601_v6 = vadd.f32 %v15428_v17, %v3176_v27  ;;  %v3179_v48 = vmul.f32 %v12523_v28, %v15423_v7 }
 0x36e   : > { %v14624_v54 = vpop.eup %14623  ;;  %v3452_v57 = vadd.f32 %v3451_v32, %v15594_v37  ;;  %v3332_v59 = vadd.f32 1.0, %v14622_v45  ;;  %14641 = vpow2.f32 %v10933_v40  ;;  %v3177_v55 = vmul.f32 %v15423_v7, %v3088_v43 }
 0x36f   : > { %v14626_v2 = vpop.eup %14625  ;;  %14643 = vrcp.f32 %v3334_v19  ;;  %v3335_v3 = vadd.f32 1.0, %v14624_v54  ;;  %v10938_v4 = vmul.f32 -1.442695, %v15598_v46  ;;  %v10936_v50 = vmul.f32 -1.442695, %v15601_v6 }
 0x370   : > { %v14628_v12 = vpop.eup %14627  ;;  %v3453_v16 = vadd.f32 %v3452_v57, %v15586_v62  ;;  %14645 = vrcp.f32 %v3332_v59  ;;  %v3333_v23 = vadd.f32 1.0, %v14626_v2  ;;  %v15610_v25 = vadd.f32 %v15428_v17, %v3179_v48 }
 0x371   : > { %v14630_v21 = vpop.eup %14629  ;;  %v15613_v29 = vmul.f32 %v14628_v12, %v15493_v13  ;;  %14647 = vrcp.f32 %v3335_v3  ;;  %v15616_v31 = vadd.f32 %v15428_v17, %v3177_v55  ;;  %v12526_v38 = vpop.f32.mrb[28].mxu0 }
 0x372   : > { %v14632_v30 = vpop.eup %14631  ;;  %v15619_v52 = vmul.f32 %v14630_v21, %v15497_v36  ;;  %v3454_v60 = vadd.f32 %v3453_v16, %v15589_v5  ;;  %14649 = vrcp.f32 %v3333_v23  ;;  %v10939_v63 = vmul.f32 -1.442695, %v15610_v25  ;;  %v3101_v26 = vpop.f32.mrb[29].mxu0 }
 0x373   : > { %v14634_v0 = vpop.eup %14633  ;;  %v15624_v49 = vmul.f32 %v14632_v30, %v15502_v44  ;;  %14651 = vpow2.f32 %v10938_v4  ;;  %v10937_v13 = vmul.f32 -1.442695, %v15616_v31  ;;  %v3182_v56 = vmul.f32 %v12526_v38, %v15423_v7  ;;  %v12527_v61 = vpop.f32.mrb[30].mxu0 }
 0x374   : > { %v14636_v27 = vpop.eup %14635  ;;  %v3455_v36 = vadd.f32 %v3454_v60, %v15619_v52  ;;  %v15630_v28 = vmul.f32 %v14634_v0, %v15506_v51  ;;  %14653 = vpow2.f32 %v10936_v50  ;;  %v3180_v42 = vmul.f32 %v15423_v7, %v3101_v26  ;;  %v3104_v32 = vpop.f32.mrb[31].mxu0 }
 0x375   : > { %v14638_v40 = vpop.eup %14637  ;;  %v3338_v43 = vadd.f32 1.0, %v14636_v27  ;;  %14655 = vpow2.f32 %v10939_v63  ;;  %v15634_v44 = vadd.f32 %v15428_v17, %v3182_v56  ;;  %v3183_v45 = vmul.f32 %v12527_v61, %v15423_v7 }
 0x376   : > { %v14640_v19 = vpop.eup %14639  ;;  %v3456_v48 = vadd.f32 %v3455_v36, %v15630_v28  ;;  %v3336_v54 = vadd.f32 1.0, %v14638_v40  ;;  %14657 = vpow2.f32 %v10937_v13  ;;  %v15639_v51 = vadd.f32 %v15428_v17, %v3180_v42 }
 0x377   : > { %14659 = vrcp.f32 %v3338_v43  ;;  %v3339_v57 = vadd.f32 1.0, %v14640_v19  ;;  %v10942_v59 = vmul.f32 -1.442695, %v15634_v44  ;;  %v15643_v55 = vadd.f32 %v15428_v17, %v3183_v45 }
 0x378   : > { %v14642_v2 = vpop.eup %14641  ;;  %v3457_v3 = vadd.f32 %v3456_v48, %v15613_v29  ;;  %14661 = vrcp.f32 %v3336_v54  ;;  %v10940_v4 = vmul.f32 -1.442695, %v15639_v51  ;;  %v3181_v50 = vmul.f32 %v15423_v7, %v3104_v32 }
 0x379   : > { %v14644_v12 = vpop.eup %14643  ;;  %14663 = vrcp.f32 %v3339_v57  ;;  %v3337_v16 = vadd.f32 1.0, %v14642_v2  ;;  %v10943_v23 = vmul.f32 -1.442695, %v15643_v55 }
 0x37a   : > { %v14646_v21 = vpop.eup %14645  ;;  %v3458_v38 = vadd.f32 %v3457_v3, %v15624_v49  ;;  %14665 = vpow2.f32 %v10942_v59  ;;  %v15651_v30 = vadd.f32 %v15428_v17, %v3181_v50  ;;  %v15662_v36 = vmul.f32 %v14644_v12, %v15525_v24 }
 0x37b   : > { %v14648_v60 = vpop.eup %14647  ;;  %v15654_v63 = vmul.f32 %v14646_v21, %v15531_v34  ;;  %14667 = vrcp.f32 %v3337_v16 }
 0x37c   : > { %v14650_v26 = vpop.eup %14649  ;;  %14669 = vpow2.f32 %v10940_v4  ;;  %v10941_v7 = vmul.f32 -1.442695, %v15651_v30  ;;  %v15666_v40 = vmul.f32 %v14648_v60, %v15536_v33 }
 0x37d   : > { %v14652_v0 = vpop.eup %14651  ;;  %v3459_v13 = vadd.f32 %v3458_v38, %v15654_v63  ;;  %v15659_v56 = vmul.f32 %v14650_v26, %v15542_v14  ;;  %14671 = vpow2.f32 %v10943_v23 }
 0x37e   : > { %v14654_v61 = vpop.eup %14653  ;;  %v3342_v27 = vadd.f32 1.0, %v14652_v0  ;;  %14673 = vpow2.f32 %v10941_v7 }
 0x37f   : > { %v14656_v17 = vpop.eup %14655  ;;  %v3460_v34 = vadd.f32 %v3459_v13, %v15659_v56  ;;  %v3340_v42 = vadd.f32 1.0, %v14654_v61 }
 0x380   : > { %v14658_v32 = vpop.eup %14657  ;;  %v3343_v14 = vadd.f32 1.0, %v14656_v17 }
 0x381   : > { %v14660_v43 = vpop.eup %14659  ;;  %v3461_v45 = vadd.f32 %v3460_v34, %v15662_v36  ;;  %14675 = vrcp.f32 %v3340_v42  ;;  %v3341_v19 = vadd.f32 1.0, %v14658_v32 }
 0x382   : > { %v14662_v48 = vpop.eup %14661  ;;  %14677 = vrcp.f32 %v3342_v27  ;;  %v15678_v21 = vmul.f32 %v14660_v43, %v15562_v58 }
 0x383   : > { %v14664_v54 = vpop.eup %14663  ;;  %v15670_v57 = vmul.f32 %v14662_v48, %v15567_v1  ;;  %v3462_v24 = vadd.f32 %v3461_v45, %v15666_v40  ;;  %14679 = vrcp.f32 %v3341_v19 }
 0x384   : > { %v14666_v59 = vpop.eup %14665  ;;  %14681 = vrcp.f32 %v3343_v14  ;;  %v15682_v26 = vmul.f32 %v14664_v54, %v15571_v8 }
 0x385   : > { %v14668_v2 = vpop.eup %14667  ;;  %v3463_v33 = vadd.f32 %v3462_v24, %v15670_v57  ;;  %v3346_v50 = vadd.f32 1.0, %v14666_v59 }
 0x386   : > { %v14670_v3 = vpop.eup %14669  ;;  %v15675_v4 = vmul.f32 %v14668_v2, %v15582_v47 }
 0x387   : > { %v14672_v12 = vpop.eup %14671  ;;  %v3344_v16 = vadd.f32 1.0, %v14670_v3 }
 0x388   : > { %v14674_v23 = vpop.eup %14673  ;;  %v3464_v1 = vadd.f32 %v3463_v33, %v15675_v4  ;;  %v3347_v38 = vadd.f32 1.0, %v14672_v12 }
 0x389   : > { %14683 = vrcp.f32 %v3344_v16  ;;  %v3345_v60 = vadd.f32 1.0, %v14674_v23 }
 0x38a   : > { %v3465_v7 = vadd.f32 %v3464_v1, %v15678_v21  ;;  %14685 = vrcp.f32 %v3346_v50  ;;  %v14422_v1 = vld [vmem:[#allocation7 + $0x88] sm:$0xff]  }
 0x38b   : > { %v14676_v47 = vpop.eup %14675  ;;  %14687 = vrcp.f32 %v3345_v60  ;;  %v14429_v60 = vld [vmem:[#allocation7 + $0x68] sm:$0xff]  }
 0x38c   : > { %v14678_v0 = vpop.eup %14677  ;;  %v15686_v13 = vmul.f32 %v14676_v47, %v15601_v6  ;;  %v3466_v58 = vadd.f32 %v3465_v7, %v15682_v26  ;;  %14689 = vrcp.f32 %v3347_v38  ;;  %v14427_v38 = vld [vmem:[#allocation7 + $0x60] sm:$0xff]   ;;  %v14431_v47 = vld [vmem:[#allocation7 + $0x70] sm:$0xff]  }
 0x38d   : > { %v14680_v61 = vpop.eup %14679  ;;  %v15694_v34 = vmul.f32 %v14678_v0, %v15598_v46  ;;  %12571 = vmatprep.subr.bf16.mxu0 %v14427_v38  ;;  %v14428_v7 = vld [vmem:[#allocation7 + $0xa0] sm:$0xff]   ;;  %v14433_v0 = vld [vmem:[#allocation7 + $0x78] sm:$0xff]  }
 0x38e   : > { %v3467_v27 = vadd.f32 %v3466_v58, %v15686_v13  ;;  %v15691_v17 = vmul.f32 %v14680_v61, %v15616_v31  ;;  %v14682_v8 = vpop.eup %14681  ;;  %12572 = vmatpush3.bf16.msra.mxu0 %v14427_v38  ;;  %v4704_v58 = vld [vmem:[#allocation3 + $0x33] sm:$0xff]  ;;  %v4705_v61 = vld [vmem:[#allocation3 + $0x3b] sm:$0xff] }
 0x38f   : > { %v15698_v32 = vmul.f32 %v14682_v8, %v15610_v25  ;;  %12573 = vmatprep.subr.bf16.mxu0 %v14429_v60  ;;  %v4736_v8 = vpack.c.bf16 %v4705_v61, %v4704_v58 }
 0x390   : > { %v3468_v42 = vadd.f32 %v3467_v27, %v15691_v17  ;;  %v14432_v27 = vld [vmem:[#allocation7 + $0xb0] sm:$0xff]  }
 0x391   : > { %12579 = vmatprep.mubr.bf16.mxu0 %v4736_v8 }
 0x392   : > { %v3469_v6 = vadd.f32 %v3468_v42, %v15694_v34  ;;  %12574 = vmatpush3.bf16.msra.mxu0 %v14429_v60  ;;  %v14434_v42 = vld [vmem:[#allocation7 + $0xb8] sm:$0xff]  }
 0x393   : > { %v14684_v43 = vpop.eup %14683  ;;  %12575 = vmatprep.subr.bf16.mxu0 %v14431_v47 }
 0x394   : > { %v14686_v45 = vpop.eup %14685  ;;  %v15702_v14 = vmul.f32 %v14684_v43, %v15639_v51  ;;  %v3470_v19 = vadd.f32 %v3469_v6, %v15698_v32  ;;  %v5670_v6 = vld [vmem:[#allocation3 + $0x34] sm:$0xff]  ;;  %v5671_v43 = vld [vmem:[#allocation3 + $0x3c] sm:$0xff] }
 0x395   : > { %v14688_v31 = vpop.eup %14687  ;;  %v15710_v24 = vmul.f32 %v14686_v45, %v15634_v44  ;;  %v14424_v44 = vld [vmem:[#allocation7 + $0x90] sm:$0xff]   ;;  %v15722_v45 = vld [vmem:[%s18057_s3 + $0x80] sm:$0xff]  }
 0x396   : > { %v3471_v48 = vadd.f32 %v3470_v19, %v15702_v14  ;;  %v15707_v46 = vmul.f32 %v14688_v31, %v15651_v30  ;;  %v14690_v54 = vpop.eup %14689  ;;  %12576 = vmatpush3.bf16.msra.mxu0 %v14431_v47  ;;  %v5702_v19 = vpack.c.bf16 %v5671_v43, %v5670_v6  ;;  %v14439_v31 = vld [vmem:[#allocation7] sm:$0xff]   ;;  %v14441_v47 = vld [vmem:[#allocation7 + $0x8] sm:$0xff]  }
 0x397   : > { %v15714_v59 = vmul.f32 %v14690_v54, %v15643_v55  ;;  %v14426_v55 = vld [vmem:[#allocation7 + $0x98] sm:$0xff]   ;;  %12577 = vmatprep.subr.bf16.mxu0 %v14433_v0 }
 0x398   : > { %v3472_v25 = vadd.f32 %v3471_v48, %v15707_v46  ;;  %v3569_v48 = vlaneseq }
 0x39a   : > { %v3473_v51 = vadd.f32 %v3472_v25, %v15710_v24  ;;  %12578 = vmatpush3.bf16.msra.mxu0 %v14433_v0  ;;  %v15725_v54 = vshrl.u32 %v3569_v48, 7  ;;  %v312_v25 = vld [vmem:[%s18060_s6 + $0x2] sm:$0x1] }
 0x39b   : > { %12611 = vmatprep.subr.bf16.mxu0 %v14439_v31 }
 0x39c   : > { %v3474_v2 = vadd.f32 %v3473_v51, %v15714_v59  ;;  %18088 = vst [vmem:[#allocation11_spill] sm:$0xff] %v15725_v54  ;;  %v18064_v51 = vsub.s32 0, %v15725_v54 }
 0x39e   : > { %v3475_v33 = vrot.slane %v3474_v2, 4 }
 0x3a0   : > { %v3476_v3 = vadd.f32 %v3475_v33, %v3474_v2 }
 0x3a2   : > { %v3477_v50 = vrot.slane %v3476_v3, 2 }
 0x3a4   : > { %v3478_v12 = vadd.f32 %v3477_v50, %v3476_v3 }
 0x3a6   : > { %v3479_v16 = vrot.slane %v3478_v12, 1 }
 0x3a8   : > { %v3480_v30 = vadd.f32 %v3479_v16, %v3478_v12  ;;  %v15738_v12 = vld [vmem:[%s18060_s6 + $0x7] ss:$0 sm:$0xff] }
 0x3aa   : > { %v3482_v23 = vmul.f32 0.00390625, %v3480_v30 }
 0x3ac   : > { %12561 = vmatmul.mubr.f32.vlgmr.msra.gmra.mrb[0].mxu1 %v3482_v23 }
 0x3ad   : > { %12756 = vmatpush3.bf16.msra.mxu1 %v15417_v41  ;;  %v14430_v41 = vld [vmem:[#allocation7 + $0xa8] sm:$0xff]   ;;  %12771 = vmatprep.mubr.bf16.mxu1 %v5702_v19 }
 0x3ae   : > { %12757 = vmatprep.subr.bf16.mxu1 %v14422_v1  ;;  %v14436_v19 = vld [vmem:[%s18057_s3 + $0x88] sm:$0xff]  }
 0x3b1   : > { %12758 = vmatpush3.bf16.msra.mxu1 %v14422_v1 }
 0x3b2   : > { %12759 = vmatprep.subr.bf16.mxu1 %v14424_v44 }
 0x3b5   : > { %12760 = vmatpush3.bf16.msra.mxu1 %v14424_v44 }
 0x3b6   : > { %12761 = vmatprep.subr.bf16.mxu1 %v14426_v55 }
 0x3b9   : > { %12762 = vmatpush3.bf16.msra.mxu1 %v14426_v55 }
 0x3ba   : > { %12763 = vmatprep.subr.bf16.mxu1 %v14428_v7 }
 0x3bd   : > { %12764 = vmatpush3.bf16.msra.mxu1 %v14428_v7 }
 0x3be   : > { %12765 = vmatprep.subr.bf16.mxu1 %v14430_v41 }
 0x3c1   : > { %12766 = vmatpush3.bf16.msra.mxu1 %v14430_v41 }
 0x3c2   : > { %12767 = vmatprep.subr.bf16.mxu1 %v14432_v27 }
 0x3c5   : > { %12768 = vmatpush3.bf16.msra.mxu1 %v14432_v27 }
 0x3c6   : > { %12769 = vmatprep.subr.bf16.mxu1 %v14434_v42 }
 0x3c9   : > { %12770 = vmatpush3.bf16.msra.mxu1 %v14434_v42 }
 0x3ca   : > { %12803 = vmatprep.subr.bf16.mxu1 %v15722_v45 }
 0x47f   : > { %v3565_v2 = vpop.f32.mrb[0].mxu1 }
 0x480   : > { %v3566_v33 = vadd.f32 %v3565_v2, %v312_v25  ;;  %v12562_v3 = vpop.f32.mrb[1].mxu1 }
 0x482   : > { %v15733_v50 = vrot.slane %v3566_v33, %v18064_v51  ;;  %v14444_v33 = vld [vmem:[#allocation7 + $0x18] sm:$0xff]  }
 0x484   : > { %v3573_v16 = vadd.f32 %v15733_v50, %v15514_v10  ;;  %v3576_v30 = vadd.f32 %v15733_v50, %v15518_v20  ;;  %v3575_v23 = vadd.f32 %v15733_v50, %v15511_v9  ;;  %v15748_v1 = vadd.f32 %v15733_v50, %v15558_v53 }
 0x485   : > { %v15752_v44 = vadd.f32 %v15733_v50, %v15548_v18  ;;  %v3574_v55 = vadd.f32 %v15733_v50, %v15521_v22  ;;  %v15758_v10 = vadd.f32 %v15733_v50, %v15579_v39  ;;  %v15762_v20 = vadd.f32 %v15733_v50, %v15545_v15 }
 0x486   : > { %4543 = vst [vmem:[#allocation3 + $0x4b] sm:$0xff] %v3573_v16  ;;  %v3612_v9 = vmul.f32 %v15738_v12, %v3576_v30  ;;  %4546 = vst [vmem:[#allocation3 + $0x6b] sm:$0xff] %v3576_v30  ;;  %v3611_v53 = vmul.f32 %v15738_v12, %v3575_v23  ;;  %v4738_v18 = vpack.c.bf16 %v3576_v30, %v3575_v23 }
 0x487   : > { %4545 = vst [vmem:[#allocation3 + $0x63] sm:$0xff] %v3575_v23  ;;  %4548 = vst [vmem:[#allocation3 + $0x83] sm:$0xff] %v15748_v1  ;;  %v4737_v22 = vpack.c.bf16 %v3574_v55, %v3573_v16  ;;  %v15772_v15 = vadd.f32 %v15733_v50, %v15586_v62  ;;  %v3614_v39 = vmul.f32 %v15738_v12, %v15748_v1 }
 0x488   : > { %4547 = vst [vmem:[#allocation3 + $0x7b] sm:$0xff] %v15752_v44  ;;  %4544 = vst [vmem:[#allocation3 + $0x53] sm:$0xff] %v3574_v55  ;;  %3647 = vadd.xlane.f32.xlu1 %v3612_v9  ;;  %3645 = vadd.xlane.f32.xlu0 %v3611_v53  ;;  %v15778_v38 = vadd.f32 %v15733_v50, %v15552_v35  ;;  %v15782_v60 = vadd.f32 %v15733_v50, %v15619_v52 }
 0x489   : > { %4551 = vst [vmem:[#allocation3 + $0xab] sm:$0xff] %v15758_v10  ;;  %4549 = vst [vmem:[#allocation3 + $0x93] sm:$0xff] %v15762_v20  ;;  %12580 = vmatmul.mubr.bf16.vlgmr.msra.gmra.mrb[32].mxu0 %v4737_v22  ;;  %v15786_v7 = vadd.f32 %v15733_v50, %v15594_v37  ;;  %v3613_v62 = vmul.f32 %v15738_v12, %v15752_v44  ;;  %v15793_v41 = vadd.f32 %v15733_v50, %v15613_v29 }
 0x48a   : > { %12583 = vmatprep.mubr.bf16.mxu0 %v4738_v18  ;;  %4553 = vst [vmem:[#allocation3 + $0xc3] sm:$0xff] %v15772_v15  ;;  %v15797_v35 = vadd.f32 %v15733_v50, %v15589_v5  ;;  %v15801_v52 = vadd.f32 %v15733_v50, %v15654_v63  ;;  %4550 = vst [vmem:[#allocation3 + $0x9b] sm:$0xff] %v15778_v38  ;;  %12612 = vmatpush3.bf16.msra.mxu0 %v14439_v31  ;;  %v14442_v31 = vld [vmem:[#allocation7 + $0x10] sm:$0xff]  }
 0x48b   : > { %4555 = vst [vmem:[#allocation3 + $0xdb] sm:$0xff] %v15782_v60  ;;  %4552 = vst [vmem:[#allocation3 + $0xb3] sm:$0xff] %v15786_v7  ;;  %v3610_v5 = vmul.f32 %v15738_v12, %v3574_v55  ;;  %v3609_v37 = vmul.f32 %v15738_v12, %v3573_v16  ;;  %v15813_v0 = vadd.f32 %v15733_v50, %v15630_v28  ;;  %12613 = vmatprep.subr.bf16.mxu0 %v14441_v47 }
 0x48c   : > { %3651 = vadd.xlane.f32.xlu1 %v3614_v39  ;;  %3649 = vadd.xlane.f32.xlu0 %v3613_v62  ;;  %4557 = vst [vmem:[#allocation3 + $0xf3] sm:$0xff] %v15793_v41  ;;  %4554 = vst [vmem:[#allocation3 + $0xcb] sm:$0xff] %v15797_v35  ;;  %v15817_v58 = vadd.f32 %v15733_v50, %v15662_v36  ;;  %v15821_v42 = vadd.f32 %v15733_v50, %v15624_v49  ;;  %v14440_v62 = vld [vmem:[%s18057_s3 + $0xa0] sm:$0xff]  }
 0x48d   : > { %4559 = vst [vmem:[#allocation3 + $0x10b] sm:$0xff] %v15801_v52  ;;  %v5675_v63 = vld [vmem:[#allocation3 + $0x6c] sm:$0xff]  ;;  %v15825_v6 = vadd.f32 %v15733_v50, %v15670_v57  ;;  %v15829_v28 = vadd.f32 %v15733_v50, %v15659_v56  ;;  %v4739_v36 = vpack.c.bf16 %v15748_v1, %v15752_v44  ;;  %4556 = vst [vmem:[#allocation3 + $0xe3] sm:$0xff] %v15813_v0 }
 0x48e   : > { %v5674_v29 = vld [vmem:[#allocation3 + $0x64] sm:$0xff]  ;;  %4561 = vst [vmem:[#allocation3 + $0x123] sm:$0xff] %v15817_v58  ;;  %12614 = vmatpush3.bf16.msra.mxu0 %v14441_v47  ;;  %4558 = vst [vmem:[#allocation3 + $0xfb] sm:$0xff] %v15821_v42  ;;  %v3617_v49 = vmul.f32 %v15738_v12, %v15758_v10  ;;  %v4740_v56 = vpack.c.bf16 %v15778_v38, %v15762_v20  ;;  %v15847_v57 = vadd.f32 %v15733_v50, %v15678_v21 }
 0x48f   : > { %v5672_v61 = vld [vmem:[#allocation3 + $0x4c] sm:$0xff]  ;;  %v5673_v27 = vld [vmem:[#allocation3 + $0x54] sm:$0xff]  ;;  %v5704_v8 = vpack.c.bf16 %v5675_v63, %v5674_v29  ;;  %4563 = vst [vmem:[#allocation3 + $0x13b] sm:$0xff] %v15825_v6  ;;  %4560 = vst [vmem:[#allocation3 + $0x113] sm:$0xff] %v15829_v28  ;;  %v3615_v48 = vmul.f32 %v15738_v12, %v15762_v20  ;;  %v15854_v25 = vadd.f32 %v15733_v50, %v15666_v40  ;;  %12615 = vmatprep.subr.bf16.mxu0 %v14442_v31 }
 0x490   : > { %v5703_v43 = vpack.c.bf16 %v5673_v27, %v5672_v61  ;;  %3643 = vadd.xlane.f32.xlu1 %v3610_v5  ;;  %3641 = vadd.xlane.f32.xlu0 %v3609_v37  ;;  %v15858_v2 = vadd.f32 %v15733_v50, %v15686_v13  ;;  %v14437_v21 = vld [vmem:[%s18057_s3 + $0x90] sm:$0xff]   ;;  %4565 = vst [vmem:[#allocation3 + $0x153] sm:$0xff] %v15847_v57  ;;  %v14447_v5 = vld [vmem:[#allocation7 + $0x28] sm:$0xff]  }
 0x491   : > { %12584 = vmatmul.mubr.bf16.gmra.mrb[36].mxu0 %v4739_v36  ;;  %v5676_v40 = vld [vmem:[#allocation3 + $0x7c] sm:$0xff]  ;;  %v5677_v3 = vld [vmem:[#allocation3 + $0x84] sm:$0xff]  ;;  %4562 = vst [vmem:[#allocation3 + $0x12b] sm:$0xff] %v15854_v25  ;;  %v3619_v13 = vmul.f32 %v15738_v12, %v15772_v15  ;;  %v5678_v16 = vld [vmem:[#allocation3 + $0x94] sm:$0xff]  ;;  %v3616_v23 = vmul.f32 %v15738_v12, %v15778_v38  ;;  %v15881_v1 = vadd.f32 %v15733_v50, %v15682_v26 }
 0x492   : > { %12772 = vmatmul.mubr.bf16.vlgmr.msra.gmra.mrb[4].mxu1 %v5703_v43  ;;  %12587 = vmatprep.mubr.bf16.mxu0 %v4740_v56  ;;  %4567 = vst [vmem:[#allocation3 + $0x16b] sm:$0xff] %v15858_v2  ;;  %v5679_v30 = vld [vmem:[#allocation3 + $0x9c] sm:$0xff]  ;;  %v15885_v44 = vadd.f32 %v15733_v50, %v15702_v14  ;;  %v5705_v55 = vpack.c.bf16 %v5677_v3, %v5676_v40  ;;  %v5680_v38 = vld [vmem:[#allocation3 + $0xac] sm:$0xff] }
 0x493   : > { %12775 = vmatprep.mubr.bf16.mxu1 %v5704_v8  ;;  %12804 = vmatpush3.bf16.msra.mxu1 %v15722_v45  ;;  %v15866_v45 = vadd.f32 %v15733_v50, %v15675_v4  ;;  %v15875_v4 = vadd.f32 %v15733_v50, %v15694_v34  ;;  %v4741_v20 = vpack.c.bf16 %v15786_v7, %v15758_v10  ;;  %v14445_v10 = vld [vmem:[#allocation7 + $0x20] sm:$0xff]   ;;  %v14443_v63 = vld [vmem:[%s18057_s3 + $0xa8] sm:$0xff]   ;;  %v14448_v61 = vld [vmem:[#allocation7 + $0x30] sm:$0xff]  }
 0x494   : > { %12805 = vmatprep.subr.bf16.mxu1 %v14436_v19  ;;  %3657 = vadd.xlane.f32.xlu1 %v3617_v49  ;;  %v15892_v34 = vadd.f32 %v15733_v50, %v15691_v17  ;;  %v5706_v26 = vpack.c.bf16 %v5679_v30, %v5678_v16  ;;  %v4742_v9 = vpack.c.bf16 %v15797_v35, %v15772_v15  ;;  %v14438_v17 = vld [vmem:[%s18057_s3 + $0x98] sm:$0xff]  }
 0x495   : > { %3653 = vadd.xlane.f32.xlu0 %v3615_v48  ;;  %4564 = vst [vmem:[#allocation3 + $0x143] sm:$0xff] %v15866_v45  ;;  %12616 = vmatpush3.bf16.msra.mxu0 %v14442_v31  ;;  %4569 = vst [vmem:[#allocation3 + $0x183] sm:$0xff] %v15875_v4  ;;  %v3621_v14 = vmul.f32 %v15738_v12, %v15782_v60  ;;  %v3618_v53 = vmul.f32 %v15738_v12, %v15786_v7  ;;  %v5681_v7 = vld [vmem:[#allocation3 + $0xb4] sm:$0xff]  ;;  %v5685_v27 = vld [vmem:[#allocation3 + $0xe4] sm:$0xff] }
 0x496   : > { %12617 = vmatprep.subr.bf16.mxu0 %v14444_v33  ;;  %4566 = vst [vmem:[#allocation3 + $0x15b] sm:$0xff] %v15881_v1  ;;  %4571 = vst [vmem:[#allocation3 + $0x19b] sm:$0xff] %v15885_v44  ;;  %v15908_v22 = vadd.f32 %v15733_v50, %v15710_v24  ;;  %v15912_v18 = vadd.f32 %v15733_v50, %v15698_v32  ;;  %v15916_v15 = vadd.f32 %v15733_v50, %v15714_v59  ;;  %v5682_v32 = vld [vmem:[#allocation3 + $0xc4] sm:$0xff]  ;;  %v5683_v24 = vld [vmem:[#allocation3 + $0xcc] sm:$0xff] }
 0x497   : > { %12806 = vmatpush3.bf16.msra.mxu1 %v14436_v19  ;;  %4568 = vst [vmem:[#allocation3 + $0x173] sm:$0xff] %v15892_v34  ;;  %v15920_v39 = vadd.f32 %v15733_v50, %v15707_v46  ;;  %v3623_v46 = vmul.f32 %v15738_v12, %v15793_v41  ;;  %v3620_v59 = vmul.f32 %v15738_v12, %v15797_v35  ;;  %v5686_v8 = vld [vmem:[#allocation3 + $0xf4] sm:$0xff]  ;;  %v5687_v43 = vld [vmem:[#allocation3 + $0xfc] sm:$0xff] }
 0x498   : > { %12807 = vmatprep.subr.bf16.mxu1 %v14437_v21  ;;  %3661 = vadd.xlane.f32.xlu1 %v3619_v13  ;;  %4573 = vst [vmem:[#allocation3 + $0x1b3] sm:$0xff] %v15908_v22  ;;  %4570 = vst [vmem:[#allocation3 + $0x18b] sm:$0xff] %v15912_v18  ;;  %v5707_v50 = vpack.c.bf16 %v5681_v7, %v5680_v38  ;;  %v4743_v47 = vpack.c.bf16 %v15813_v0, %v15782_v60  ;;  %v14446_v48 = vld [vmem:[%s18057_s3 + $0xb0] sm:$0xff]   ;;  %v5691_v3 = vld [vmem:[#allocation3 + $0x12c] sm:$0xff] }
 0x499   : > { %3655 = vadd.xlane.f32.xlu0 %v3616_v23  ;;  %12588 = vmatmul.mubr.bf16.gmra.mrb[40].mxu0 %v4741_v20  ;;  %4574 = vst [vmem:[#allocation3 + $0x1bb] sm:$0xff] %v15916_v15  ;;  %4572 = vst [vmem:[#allocation3 + $0x1a3] sm:$0xff] %v15920_v39  ;;  %v5708_v37 = vpack.c.bf16 %v5683_v24, %v5682_v32  ;;  %v4744_v29 = vpack.c.bf16 %v15821_v42, %v15793_v41  ;;  %v5684_v41 = vld [vmem:[#allocation3 + $0xdc] sm:$0xff]  ;;  %v5690_v40 = vld [vmem:[#allocation3 + $0x124] sm:$0xff] }
 0x49a   : > { %12776 = vmatmul.mubr.bf16.gmra.mrb[8].mxu1 %v5705_v55  ;;  %12591 = vmatprep.mubr.bf16.mxu0 %v4742_v9  ;;  %v3625_v35 = vmul.f32 %v15738_v12, %v15801_v52  ;;  %v3622_v60 = vmul.f32 %v15738_v12, %v15813_v0  ;;  %v3627_v36 = vmul.f32 %v15738_v12, %v15817_v58  ;;  %v14449_v23 = vld [vmem:[%s18057_s3 + $0xb8] sm:$0xff]   ;;  %v15971_v55 = vld [vmem:[%s18057_s3 + $0x40] sm:$0xff]  }
 0x49b   : > { %12779 = vmatprep.mubr.bf16.mxu1 %v5706_v26  ;;  %12808 = vmatpush3.bf16.msra.mxu1 %v14437_v21  ;;  %v3624_v0 = vmul.f32 %v15738_v12, %v15821_v42  ;;  %v5709_v19 = vpack.c.bf16 %v5685_v27, %v5684_v41  ;;  %v4745_v49 = vpack.c.bf16 %v15829_v28, %v15801_v52  ;;  %v14450_v21 = vld [vmem:[#allocation7 + $0x38] sm:$0xff]   ;;  %v15979_v9 = vld [vmem:[#allocation7 + $0xc0] sm:$0xff]  }
 0x49c   : > { %12618 = vmatpush3.bf16.msra.mxu0 %v14444_v33  ;;  %3665 = vadd.xlane.f32.xlu1 %v3621_v14  ;;  %v5710_v56 = vpack.c.bf16 %v5687_v43, %v5686_v8  ;;  %v4746_v31 = vpack.c.bf16 %v15854_v25, %v15817_v58  ;;  %v3629_v42 = vmul.f32 %v15738_v12, %v15825_v6  ;;  %v5688_v58 = vld [vmem:[#allocation3 + $0x10c] sm:$0xff]  ;;  %v5689_v33 = vld [vmem:[#allocation3 + $0x114] sm:$0xff]  ;;  %v5692_v14 = vld [vmem:[#allocation3 + $0x13c] sm:$0xff] }
 0x49d   : > { %3659 = vadd.xlane.f32.xlu0 %v3618_v53  ;;  %12809 = vmatprep.subr.bf16.mxu1 %v14438_v17  ;;  %v3626_v52 = vmul.f32 %v15738_v12, %v15829_v28  ;;  %v3631_v13 = vmul.f32 %v15738_v12, %v15847_v57  ;;  %v3628_v16 = vmul.f32 %v15738_v12, %v15854_v25  ;;  %v4578_v41 = vld [vmem:[#allocation3 + $0x4a] sm:$0xff]  ;;  %v4579_v8 = vld [vmem:[#allocation3 + $0x52] sm:$0xff]  ;;  %v4580_v43 = vld [vmem:[#allocation3 + $0x62] sm:$0xff] }
 0x49e   : > { %12619 = vmatprep.subr.bf16.mxu0 %v14445_v10  ;;  %v5711_v30 = vpack.c.bf16 %v5689_v33, %v5688_v58  ;;  %v4747_v28 = vpack.c.bf16 %v15866_v45, %v15825_v6  ;;  %v5712_v20 = vpack.c.bf16 %v5691_v3, %v5690_v40  ;;  %v4748_v25 = vpack.c.bf16 %v15881_v1, %v15847_v57  ;;  %v5694_v57 = vld [vmem:[#allocation3 + $0x154] sm:$0xff]  ;;  %v14458_v58 = vld [vmem:[%s18057_s3 + $0x50] sm:$0xff]  }
 0x49f   : > { %12810 = vmatpush3.bf16.msra.mxu1 %v14438_v17  ;;  %v3633_v6 = vmul.f32 %v15738_v12, %v15858_v2  ;;  %v3630_v26 = vmul.f32 %v15738_v12, %v15866_v45  ;;  %v5693_v17 = vld [vmem:[#allocation3 + $0x144] sm:$0xff]  ;;  %v3635_v53 = vmul.f32 %v15738_v12, %v15875_v4  ;;  %v3632_v38 = vmul.f32 %v15738_v12, %v15881_v1  ;;  %v4584_v3 = vld [vmem:[#allocation3 + $0x92] sm:$0xff] }
 0x4a0   : > { %12620 = vmatpush3.bf16.msra.mxu0 %v14445_v10  ;;  %3669 = vadd.xlane.f32.xlu1 %v3623_v46  ;;  %v5695_v10 = vld [vmem:[#allocation3 + $0x15c] sm:$0xff]  ;;  %v5713_v45 = vpack.c.bf16 %v5693_v17, %v5692_v14  ;;  %v4749_v7 = vpack.c.bf16 %v15892_v34, %v15858_v2  ;;  %v4750_v24 = vpack.c.bf16 %v15912_v18, %v15875_v4  ;;  %v5696_v2 = vld [vmem:[#allocation3 + $0x16c] sm:$0xff] }
 0x4a1   : > { %3663 = vadd.xlane.f32.xlu0 %v3620_v59  ;;  %12592 = vmatmul.mubr.bf16.gmra.mrb[44].mxu0 %v4743_v47  ;;  %v5714_v32 = vpack.c.bf16 %v5695_v10, %v5694_v57  ;;  %v3637_v46 = vmul.f32 %v15738_v12, %v15885_v44  ;;  %v3634_v1 = vmul.f32 %v15738_v12, %v15892_v34  ;;  %v4576_v59 = vld [vmem:[#allocation3 + $0x32] sm:$0xff]  ;;  %v5700_v27 = vld [vmem:[#allocation3 + $0x19c] sm:$0xff]  ;;  %v4589_v10 = vld [vmem:[#allocation3 + $0xca] sm:$0xff] }
 0x4a2   : > { %12780 = vmatmul.mubr.bf16.gmra.mrb[12].mxu1 %v5707_v50  ;;  %12595 = vmatprep.mubr.bf16.mxu0 %v4744_v29  ;;  %v4577_v50 = vld [vmem:[#allocation3 + $0x3a] sm:$0xff]  ;;  %v3639_v4 = vmul.f32 %v15738_v12, %v15908_v22  ;;  %v4751_v34 = vpack.c.bf16 %v15920_v39, %v15885_v44  ;;  %v3638_v22 = vmul.f32 %v15738_v12, %v15920_v39  ;;  %v5701_v44 = vld [vmem:[#allocation3 + $0x1a4] sm:$0xff]  ;;  %v4587_v14 = vld [vmem:[#allocation3 + $0xb2] sm:$0xff] }
 0x4a3   : > { %12783 = vmatprep.mubr.bf16.mxu1 %v5708_v37  ;;  %12811 = vmatprep.subr.bf16.mxu1 %v14440_v62  ;;  %v5697_v47 = vld [vmem:[#allocation3 + $0x174] sm:$0xff]  ;;  %v3636_v37 = vmul.f32 %v15738_v12, %v15912_v18  ;;  %v4608_v29 = vpack.c.bf16 %v4577_v50, %v4576_v59  ;;  %v5978_v39 = vld [vmem:[#allocation3 + $0x1e] sm:$0xff] }
 0x4a4   : > { %12621 = vmatprep.subr.bf16.mxu0 %v14447_v5  ;;  %3673 = vadd.xlane.f32.xlu1 %v3625_v35  ;;  %v5715_v35 = vpack.c.bf16 %v5697_v47, %v5696_v2  ;;  %v5977_v18 = vld [vmem:[#allocation3 + $0xe] sm:$0xff]  ;;  %v4588_v57 = vld [vmem:[#allocation3 + $0xc2] sm:$0xff]  ;;  %v5988_v50 = vld [vmem:[#allocation3 + $0x96] sm:$0xff] }
 0x4a5   : > { %3667 = vadd.xlane.f32.xlu0 %v3622_v60  ;;  %12812 = vmatpush3.bf16.msra.mxu1 %v14440_v62  ;;  %v5698_v62 = vld [vmem:[#allocation3 + $0x184] sm:$0xff]  ;;  %v5985_v17 = vld [vmem:[#allocation3 + $0x6e] sm:$0xff]  ;;  %v4590_v2 = vld [vmem:[#allocation3 + $0xda] sm:$0xff] }
 0x4a6   : > { %12622 = vmatpush3.bf16.msra.mxu0 %v14447_v5  ;;  %12813 = vmatprep.subr.bf16.mxu1 %v14443_v63  ;;  %v5699_v5 = vld [vmem:[#allocation3 + $0x18c] sm:$0xff]  ;;  %v4591_v47 = vld [vmem:[#allocation3 + $0xe2] sm:$0xff] }
 0x4a7   : > { %12623 = vmatprep.subr.bf16.mxu0 %v14448_v61  ;;  %v5716_v60 = vpack.c.bf16 %v5699_v5, %v5698_v62  ;;  %v14456_v59 = vld [vmem:[#allocation7 + $0xe0] sm:$0xff]   ;;  %v5989_v62 = vld [vmem:[#allocation3 + $0x9e] sm:$0xff] }
 0x4a8   : > { %3677 = vadd.xlane.f32.xlu1 %v3627_v36  ;;  %v4581_v36 = vld [vmem:[#allocation3 + $0x6a] sm:$0xff]  ;;  %v4592_v5 = vld [vmem:[#allocation3 + $0xf2] sm:$0xff]  ;;  %v6609_v54 = vld [vmem:[#allocation3 + $0x140] sm:$0xff] }
 0x4a9   : > { %3671 = vadd.xlane.f32.xlu0 %v3624_v0  ;;  %12596 = vmatmul.mubr.bf16.gmra.mrb[48].mxu0 %v4745_v49  ;;  %v16005_v49 = vpack.c.bf16 %v4579_v8, %v4578_v41  ;;  %v14462_v41 = vld [vmem:[#allocation7 + $0xf0] sm:$0xff]   ;;  %v4595_v8 = vld [vmem:[#allocation3 + $0x112] sm:$0xff] }
 0x4aa   : > { %12784 = vmatmul.mubr.bf16.gmra.mrb[16].mxu1 %v5709_v19  ;;  %12599 = vmatprep.mubr.bf16.mxu0 %v4746_v31  ;;  %v5717_v19 = vpack.c.bf16 %v5701_v44, %v5700_v27  ;;  %v5979_v31 = vld [vmem:[#allocation3 + $0x26] sm:$0xff] }
 0x4ab   : > { %12787 = vmatprep.mubr.bf16.mxu1 %v5710_v56  ;;  %12814 = vmatpush3.bf16.msra.mxu1 %v14443_v63  ;;  %v3640_v63 = vmul.f32 %v15738_v12, %v15916_v15  ;;  %v16007_v56 = vpack.c.bf16 %v4581_v36, %v4580_v43  ;;  %v14457_v12 = vld [vmem:[%s18057_s3 + $0x48] sm:$0xff]   ;;  %v14925_v15 = vmov 0   ;;  %v6009_v33 = vpack.c.bf16 %v5979_v31, %v5978_v39  ;;  %v5992_v27 = vld [vmem:[#allocation3 + $0xc6] sm:$0xff]  ;;  %v5993_v43 = vld [vmem:[#allocation3 + $0xce] sm:$0xff] }
 0x4ac   : > { %12624 = vmatpush3.bf16.msra.mxu0 %v14448_v61  ;;  %3681 = vadd.xlane.f32.xlu1 %v3629_v42  ;;  %v5976_v61 = vld [vmem:[#allocation3 + $0x6] sm:$0xff]  ;;  %v4582_v42 = vld [vmem:[#allocation3 + $0x7a] sm:$0xff]  ;;  %v6016_v39 = vpack.c.bf16 %v5993_v43, %v5992_v27  ;;  %v6006_v27 = vld [vmem:[#allocation3 + $0x16e] sm:$0xff] }
 0x4ad   : > { %3675 = vadd.xlane.f32.xlu0 %v3626_v52  ;;  %12815 = vmatprep.subr.bf16.mxu1 %v14446_v48  ;;  %v6008_v0 = vpack.c.bf16 %v5977_v18, %v5976_v61  ;;  %v4583_v52 = vld [vmem:[#allocation3 + $0x82] sm:$0xff]  ;;  %v5990_v61 = vld [vmem:[#allocation3 + $0xae] sm:$0xff]  ;;  %v5991_v18 = vld [vmem:[#allocation3 + $0xb6] sm:$0xff] }
 0x4ae   : > { %12625 = vmatprep.subr.bf16.mxu0 %v14450_v21  ;;  %14330 = vset.pattern.permute.xlu1 %v14925_v15  ;;  %v4594_v44 = vld [vmem:[#allocation3 + $0x10a] sm:$0xff]  ;;  %v4596_v36 = vld [vmem:[#allocation3 + $0x122] sm:$0xff] }
 0x4af   : > { %12816 = vmatpush3.bf16.msra.mxu1 %v14446_v48  ;;  %14329 = vset.pattern.permute.xlu0 %v14925_v15  ;;  %v5980_v48 = vld [vmem:[#allocation3 + $0x36] sm:$0xff] }
 0x4b0   : > { %12626 = vmatpush3.bf16.msra.mxu0 %v14450_v21  ;;  %3685 = vadd.xlane.f32.xlu1 %v3631_v13  ;;  %v5981_v21 = vld [vmem:[#allocation3 + $0x3e] sm:$0xff]  ;;  %v16057_v15 = vld [vmem:[%s18057_s3] sm:$0xff]  }
 0x4b1   : > { %3679 = vadd.xlane.f32.xlu0 %v3628_v16  ;;  %12600 = vmatmul.mubr.bf16.gmra.mrb[52].mxu0 %v4747_v28  ;;  %v6010_v40 = vpack.c.bf16 %v5981_v21, %v5980_v48  ;;  %v4585_v13 = vld [vmem:[#allocation3 + $0x9a] sm:$0xff]  ;;  %v16018_v16 = vpack.c.bf16 %v4583_v52, %v4582_v42  ;;  %v14465_v48 = vld [vmem:[#allocation7 + $0xf8] sm:$0xff]  }
 0x4b2   : > { %12788 = vmatmul.mubr.bf16.gmra.mrb[20].mxu1 %v5711_v30  ;;  %12603 = vmatprep.mubr.bf16.mxu0 %v4748_v25  ;;  %v14452_v30 = vld [vmem:[#allocation7 + $0xc8] sm:$0xff]   ;;  %v16021_v28 = vpack.c.bf16 %v4585_v13, %v4584_v3  ;;  %v14453_v25 = vld [vmem:[#allocation7 + $0xd0] sm:$0xff]  }
 0x4b3   : > { %12791 = vmatprep.mubr.bf16.mxu1 %v5712_v20  ;;  %12817 = vmatprep.subr.bf16.mxu1 %v14449_v23  ;;  %v5983_v20 = vld [vmem:[#allocation3 + $0x56] sm:$0xff]  ;;  %v5994_v21 = vld [vmem:[#allocation3 + $0xde] sm:$0xff]  ;;  %v5995_v42 = vld [vmem:[#allocation3 + $0xe6] sm:$0xff] }
 0x4b4   : > { %12659 = vmatprep.subr.bf16.mxu0 %v15971_v55  ;;  %3689 = vadd.xlane.f32.xlu1 %v3633_v6  ;;  %v5984_v6 = vld [vmem:[#allocation3 + $0x66] sm:$0xff]  ;;  %v5996_v52 = vld [vmem:[#allocation3 + $0xf6] sm:$0xff]  ;;  %v5997_v3 = vld [vmem:[#allocation3 + $0xfe] sm:$0xff] }
 0x4b5   : > { %3683 = vadd.xlane.f32.xlu0 %v3630_v26  ;;  %12818 = vmatpush3.bf16.msra.mxu1 %v14449_v23  ;;  %v14460_v23 = vld [vmem:[%s18057_s3 + $0x58] sm:$0xff]   ;;  %v4600_v13 = vld [vmem:[#allocation3 + $0x152] sm:$0xff] }
 0x4b6   : > { %12851 = vmatprep.subr.bf16.mxu1 %v15979_v9  ;;  %v4586_v26 = vld [vmem:[#allocation3 + $0xaa] sm:$0xff] }
 0x4b8   : > { %3693 = vadd.xlane.f32.xlu1 %v3635_v53 }
 0x4b9   : > { %3687 = vadd.xlane.f32.xlu0 %v3632_v38  ;;  %12604 = vmatmul.mubr.bf16.gmra.mrb[56].mxu0 %v4749_v7  ;;  %v16028_v38 = vpack.c.bf16 %v4587_v14, %v4586_v26  ;;  %v16033_v7 = vpack.c.bf16 %v4589_v10, %v4588_v57  ;;  %v5999_v26 = vld [vmem:[#allocation3 + $0x116] sm:$0xff]  ;;  %v6000_v14 = vld [vmem:[#allocation3 + $0x126] sm:$0xff]  ;;  %v6001_v10 = vld [vmem:[#allocation3 + $0x12e] sm:$0xff] }
 0x4ba   : > { %12792 = vmatmul.mubr.bf16.gmra.mrb[24].mxu1 %v5713_v45  ;;  %12607 = vmatprep.mubr.bf16.mxu0 %v4750_v24  ;;  %v6012_v45 = vpack.c.bf16 %v5985_v17, %v5984_v6  ;;  %v14463_v24 = vld [vmem:[%s18057_s3 + $0x68] sm:$0xff]   ;;  %v5998_v6 = vld [vmem:[#allocation3 + $0x10e] sm:$0xff] }
 0x4bb   : > { %12795 = vmatprep.mubr.bf16.mxu1 %v5714_v32  ;;  %v14454_v32 = vld [vmem:[#allocation7 + $0xd8] sm:$0xff]   ;;  %v4603_v57 = vld [vmem:[#allocation3 + $0x172] sm:$0xff] }
 0x4bc   : > { %3697 = vadd.xlane.f32.xlu1 %v3637_v46  ;;  %v5986_v46 = vld [vmem:[#allocation3 + $0x7e] sm:$0xff]  ;;  %v4602_v17 = vld [vmem:[#allocation3 + $0x16a] sm:$0xff] }
 0x4bd   : > { %3691 = vadd.xlane.f32.xlu0 %v3634_v1  ;;  %v5987_v1 = vld [vmem:[#allocation3 + $0x86] sm:$0xff] }
 0x4c0   : > { %3701 = vadd.xlane.f32.xlu1 %v3639_v4  ;;  %v4593_v4 = vld [vmem:[#allocation3 + $0xfa] sm:$0xff] }
 0x4c1   : > { %3695 = vadd.xlane.f32.xlu0 %v3636_v37  ;;  %12608 = vmatmul.mubr.bf16.gmra.mrb[60].mxu0 %v4751_v34  ;;  %v6013_v37 = vpack.c.bf16 %v5987_v1, %v5986_v46  ;;  %v6014_v34 = vpack.c.bf16 %v5989_v62, %v5988_v50  ;;  %v6002_v1 = vld [vmem:[#allocation3 + $0x13e] sm:$0xff]  ;;  %v5188_v50 = vld [vmem:[#allocation3 + $0xb] sm:$0xff] }
 0x4c2   : > { %12796 = vmatmul.mubr.bf16.gmra.mrb[28].mxu1 %v5715_v35  ;;  %12627 = vmatprep.mubr.bf16.mxu0 %v4608_v29  ;;  %v16040_v29 = vpack.c.bf16 %v4591_v47, %v4590_v2  ;;  %v14464_v35 = vld [vmem:[%s18057_s3 + $0x70] sm:$0xff]  }
 0x4c3   : > { %12799 = vmatprep.mubr.bf16.mxu1 %v5716_v60  ;;  %v16045_v60 = vpack.c.bf16 %v4593_v4, %v4592_v5  ;;  %v6003_v2 = vld [vmem:[#allocation3 + $0x146] sm:$0xff]  ;;  %v4606_v47 = vld [vmem:[#allocation3 + $0x19a] sm:$0xff] }
 0x4c4   : > { %3703 = vadd.xlane.f32.xlu1 %v3640_v63  ;;  %v14459_v63 = vld [vmem:[#allocation7 + $0xe8] sm:$0xff]   ;;  %v4607_v62 = vld [vmem:[#allocation3 + $0x1a2] sm:$0xff] }
 0x4c5   : > { %3699 = vadd.xlane.f32.xlu0 %v3638_v22  ;;  %v14466_v22 = vld [vmem:[%s18057_s3 + $0x78] sm:$0xff]   ;;  %v6004_v5 = vld [vmem:[#allocation3 + $0x156] sm:$0xff]  ;;  %v6005_v4 = vld [vmem:[#allocation3 + $0x15e] sm:$0xff] }
 0x4c9   : > { %12628 = vmatmul.mubr.bf16.vlgmr.msra.gmra.mrb[32].mxu0 %v16005_v49 }
 0x4ca   : > { %12800 = vmatmul.mubr.bf16.gmra.mrb[32].mxu1 %v5717_v19  ;;  %12631 = vmatprep.mubr.bf16.mxu0 %v16007_v56  ;;  %v6015_v19 = vpack.c.bf16 %v5991_v18, %v5990_v61  ;;  %v5190_v61 = vld [vmem:[#allocation3 + $0x23] sm:$0xff]  ;;  %v5191_v18 = vld [vmem:[#allocation3 + $0x33] sm:$0xff] }
 0x4cb   : > { %12819 = vmatprep.mubr.bf16.mxu1 %v6008_v0  ;;  %12660 = vmatpush3.bf16.msra.mxu0 %v15971_v55  ;;  %v5982_v55 = vld [vmem:[#allocation3 + $0x4e] sm:$0xff] }
 0x4cc   : > { %12661 = vmatprep.subr.bf16.mxu0 %v14457_v12  ;;  %v6011_v53 = vpack.c.bf16 %v5983_v20, %v5982_v55  ;;  %v4597_v0 = vld [vmem:[#allocation3 + $0x12a] sm:$0xff]  ;;  %v6018_v20 = vpack.c.bf16 %v5997_v3, %v5996_v52  ;;  %v5197_v3 = vld [vmem:[#allocation3 + $0x7b] sm:$0xff] }
 0x4cd   : > { %v16059_v31 = vpack.c.bf16 %v4597_v0, %v4596_v36  ;;  %v14473_v0 = vld [vmem:[%s18057_s3 + $0x8] sm:$0xff]  }
 0x4cf   : > { %12662 = vmatpush3.bf16.msra.mxu0 %v14457_v12  ;;  %v16052_v12 = vpack.c.bf16 %v4595_v8, %v4594_v44  ;;  %v6007_v44 = vld [vmem:[#allocation3 + $0x176] sm:$0xff] }
 0x4d0   : > { %12663 = vmatprep.subr.bf16.mxu0 %v14458_v58  ;;  %v6023_v36 = vpack.c.bf16 %v6007_v44, %v6006_v27 }
 0x4d1   : > { %12632 = vmatmul.mubr.bf16.gmra.mrb[36].mxu0 %v16018_v16 }
 0x4d2   : > { %12820 = vmatmul.mubr.bf16.vlgmr.msra.gmra.mrb[36].mxu1 %v6009_v33  ;;  %12635 = vmatprep.mubr.bf16.mxu0 %v16021_v28  ;;  %v4599_v33 = vld [vmem:[#allocation3 + $0x142] sm:$0xff] }
 0x4d3   : > { %12852 = vmatpush3.bf16.msra.mxu1 %v15979_v9  ;;  %12823 = vmatprep.mubr.bf16.mxu1 %v6010_v40  ;;  %v14461_v9 = vld [vmem:[%s18057_s3 + $0x60] sm:$0xff]  }
 0x4d4   : > { %12853 = vmatprep.subr.bf16.mxu1 %v14452_v30  ;;  %12664 = vmatpush3.bf16.msra.mxu0 %v14458_v58  ;;  %v4598_v58 = vld [vmem:[#allocation3 + $0x13a] sm:$0xff]  ;;  %v16067_v40 = vld [vmem:[%s18057_s3 + $0xc0] sm:$0xff]  }
 0x4d5   : > { %12665 = vmatprep.subr.bf16.mxu0 %v14460_v23  ;;  %v16069_v55 = vpack.c.bf16 %v4599_v33, %v4598_v58  ;;  %v14468_v58 = vld [vmem:[%s18057_s3 + $0xc8] sm:$0xff]   ;;  %v14469_v33 = vld [vmem:[%s18057_s3 + $0xd0] sm:$0xff]  }
 0x4d7   : > { %12854 = vmatpush3.bf16.msra.mxu1 %v14452_v30  ;;  %v4601_v30 = vld [vmem:[#allocation3 + $0x15a] sm:$0xff] }
 0x4d8   : > { %12855 = vmatprep.subr.bf16.mxu1 %v14453_v25  ;;  %12666 = vmatpush3.bf16.msra.mxu0 %v14460_v23  ;;  %v6017_v23 = vpack.c.bf16 %v5995_v42, %v5994_v21  ;;  %v5195_v21 = vld [vmem:[#allocation3 + $0x63] sm:$0xff]  ;;  %v5196_v42 = vld [vmem:[#allocation3 + $0x6b] sm:$0xff] }
 0x4d9   : > { %12636 = vmatmul.mubr.bf16.gmra.mrb[40].mxu0 %v16028_v38  ;;  %12667 = vmatprep.subr.bf16.mxu0 %v14461_v9 }
 0x4da   : > { %12824 = vmatmul.mubr.bf16.gmra.mrb[40].mxu1 %v6011_v53  ;;  %12639 = vmatprep.mubr.bf16.mxu0 %v16033_v7  ;;  %v4604_v53 = vld [vmem:[#allocation3 + $0x182] sm:$0xff] }
 0x4db   : > { %12827 = vmatprep.mubr.bf16.mxu1 %v6012_v45  ;;  %12856 = vmatpush3.bf16.msra.mxu1 %v14453_v25  ;;  %v16071_v25 = vpack.c.bf16 %v4601_v30, %v4600_v13  ;;  %v6019_v45 = vpack.c.bf16 %v5999_v26, %v5998_v6  ;;  %v5198_v13 = vld [vmem:[#allocation3 + $0x83] sm:$0xff] }
 0x4dc   : > { %12857 = vmatprep.subr.bf16.mxu1 %v14454_v32  ;;  %12668 = vmatpush3.bf16.msra.mxu0 %v14461_v9  ;;  %v4605_v9 = vld [vmem:[#allocation3 + $0x18a] sm:$0xff] }
 0x4dd   : > { %12669 = vmatprep.subr.bf16.mxu0 %v14463_v24  ;;  %v16078_v46 = vpack.c.bf16 %v4605_v9, %v4604_v53  ;;  %v14470_v26 = vld [vmem:[%s18057_s3 + $0xd8] sm:$0xff]   ;;  %v5202_v53 = vld [vmem:[#allocation3 + $0xb3] sm:$0xff] }
 0x4de   : > { %v5204_v9 = vld [vmem:[#allocation3 + $0xcb] sm:$0xff] }
 0x4df   : > { %12858 = vmatpush3.bf16.msra.mxu1 %v14454_v32  ;;  %v16076_v32 = vpack.c.bf16 %v4603_v57, %v4602_v17  ;;  %v14479_v57 = vld [vmem:[%s18057_s3 + $0x28] sm:$0xff]  }
 0x4e0   : > { %12859 = vmatprep.subr.bf16.mxu1 %v14456_v59  ;;  %12670 = vmatpush3.bf16.msra.mxu0 %v14463_v24  ;;  %v6020_v24 = vpack.c.bf16 %v6001_v10, %v6000_v14  ;;  %v5201_v10 = vld [vmem:[#allocation3 + $0xab] sm:$0xff] }
 0x4e1   : > { %12640 = vmatmul.mubr.bf16.gmra.mrb[44].mxu0 %v16040_v29  ;;  %12671 = vmatprep.subr.bf16.mxu0 %v14464_v35 }
 0x4e2   : > { %12828 = vmatmul.mubr.bf16.gmra.mrb[44].mxu1 %v6013_v37  ;;  %12643 = vmatprep.mubr.bf16.mxu0 %v16045_v60 }
 0x4e3   : > { %12831 = vmatprep.mubr.bf16.mxu1 %v6014_v34  ;;  %12860 = vmatpush3.bf16.msra.mxu1 %v14456_v59  ;;  %v5187_v59 = vld [vmem:[#allocation3 + $0x3] sm:$0xff]  ;;  %v16082_v34 = vpack.c.bf16 %v4607_v62, %v4606_v47 }
 0x4e4   : > { %12861 = vmatprep.subr.bf16.mxu1 %v14459_v63  ;;  %12672 = vmatpush3.bf16.msra.mxu0 %v14464_v35  ;;  %v5219_v37 = vpack.c.bf16 %v5188_v50, %v5187_v59  ;;  %v6021_v35 = vpack.c.bf16 %v6003_v2, %v6002_v1 }
 0x4e5   : > { %12673 = vmatprep.subr.bf16.mxu0 %v14466_v22 }
 0x4e7   : > { %12862 = vmatpush3.bf16.msra.mxu1 %v14459_v63  ;;  %v6022_v63 = vpack.c.bf16 %v6005_v4, %v6004_v5  ;;  %v5226_v5 = vpack.c.bf16 %v5202_v53, %v5201_v10  ;;  %v14480_v4 = vld [vmem:[%s18057_s3 + $0x30] sm:$0xff]   ;;  %v16186_v10 = vld [vmem:[#allocation3 + $0x113] sm:$0xff] }
 0x4e8   : > { %12863 = vmatprep.subr.bf16.mxu1 %v14462_v41  ;;  %12674 = vmatpush3.bf16.msra.mxu0 %v14466_v22  ;;  %v5189_v22 = vld [vmem:[#allocation3 + $0x1b] sm:$0xff]  ;;  %v16188_v53 = vld [vmem:[#allocation3 + $0x123] sm:$0xff] }
 0x4e9   : > { %12644 = vmatmul.mubr.bf16.gmra.mrb[48].mxu0 %v16052_v12  ;;  %12707 = vmatprep.subr.bf16.mxu0 %v16057_v15  ;;  %v5220_v8 = vpack.c.bf16 %v5190_v61, %v5189_v22 }
 0x4ea   : > { %12832 = vmatmul.mubr.bf16.gmra.mrb[48].mxu1 %v6015_v19  ;;  %12647 = vmatprep.mubr.bf16.mxu0 %v16059_v31  ;;  %v5193_v19 = vld [vmem:[#allocation3 + $0x4b] sm:$0xff] }
 0x4eb   : > { %12835 = vmatprep.mubr.bf16.mxu1 %v6016_v39  ;;  %12864 = vmatpush3.bf16.msra.mxu1 %v14462_v41  ;;  %v5192_v41 = vld [vmem:[#allocation3 + $0x3b] sm:$0xff]  ;;  %v5194_v39 = vld [vmem:[#allocation3 + $0x53] sm:$0xff] }
 0x4ec   : > { %12865 = vmatprep.subr.bf16.mxu1 %v14465_v48  ;;  %v5221_v43 = vpack.c.bf16 %v5192_v41, %v5191_v18  ;;  %v5222_v52 = vpack.c.bf16 %v5194_v39, %v5193_v19  ;;  %v5208_v19 = vld [vmem:[#allocation3 + $0xfb] sm:$0xff] }
 0x4ef   : > { %12866 = vmatpush3.bf16.msra.mxu1 %v14465_v48  ;;  %v14474_v48 = vld [vmem:[%s18057_s3 + $0x10] sm:$0xff]  }
 0x4f0   : > { %12899 = vmatprep.subr.bf16.mxu1 %v16067_v40 }
 0x4f1   : > { %12648 = vmatmul.mubr.bf16.gmra.mrb[52].mxu0 %v16069_v55 }
 0x4f2   : > { %12836 = vmatmul.mubr.bf16.gmra.mrb[52].mxu1 %v6017_v23  ;;  %12651 = vmatprep.mubr.bf16.mxu0 %v16071_v25  ;;  %v5199_v23 = vld [vmem:[#allocation3 + $0x93] sm:$0xff] }
 0x4f3   : > { %12839 = vmatprep.mubr.bf16.mxu1 %v6018_v20  ;;  %v5200_v20 = vld [vmem:[#allocation3 + $0x9b] sm:$0xff] }
 0x4f4   : > { %v5225_v6 = vpack.c.bf16 %v5200_v20, %v5199_v23 }
 0x4f9   : > { %12652 = vmatmul.mubr.bf16.gmra.mrb[56].mxu0 %v16076_v32 }
 0x4fa   : > { %12840 = vmatmul.mubr.bf16.gmra.mrb[56].mxu1 %v6019_v45  ;;  %12655 = vmatprep.mubr.bf16.mxu0 %v16078_v46  ;;  %v14472_v45 = vld [vmem:[%s18057_s3 + $0xe0] sm:$0xff]  }
 0x4fb   : > { %12843 = vmatprep.mubr.bf16.mxu1 %v6020_v24 }
 0x501   : > { %12656 = vmatmul.mubr.bf16.gmra.mrb[60].mxu0 %v16082_v34 }
 0x502   : > { %12844 = vmatmul.mubr.bf16.gmra.mrb[60].mxu1 %v6021_v35  ;;  %12675 = vmatprep.mubr.bf16.mxu0 %v5219_v37  ;;  %v14475_v35 = vld [vmem:[%s18057_s3 + $0xe8] sm:$0xff]  }
 0x503   : > { %12847 = vmatprep.mubr.bf16.mxu1 %v6022_v63  ;;  %v14482_v63 = vld [vmem:[%s18057_s3 + $0x38] sm:$0xff]  }
 0x509   : > { %12676 = vmatmul.mubr.bf16.vlgmr.msra.gmra.mrb[64].mxu0 %v5220_v8 }
 0x50a   : > { %12848 = vmatmul.mubr.bf16.gmra.mrb[64].mxu1 %v6023_v36  ;;  %12679 = vmatprep.mubr.bf16.mxu0 %v5221_v43  ;;  %v5206_v36 = vld [vmem:[#allocation3 + $0xe3] sm:$0xff] }
 0x50b   : > { %12867 = vmatprep.mubr.bf16.mxu1 %v16005_v49  ;;  %12708 = vmatpush3.bf16.msra.mxu0 %v16057_v15  ;;  %v5223_v49 = vpack.c.bf16 %v5196_v42, %v5195_v21  ;;  %v14476_v15 = vld [vmem:[%s18057_s3 + $0x18] sm:$0xff]  }
 0x50c   : > { %12709 = vmatprep.subr.bf16.mxu0 %v14473_v0 }
 0x50f   : > { %12710 = vmatpush3.bf16.msra.mxu0 %v14473_v0  ;;  %v5207_v0 = vld [vmem:[#allocation3 + $0xf3] sm:$0xff] }
 0x510   : > { %12711 = vmatprep.subr.bf16.mxu0 %v14474_v48 }
 0x511   : > { %12680 = vmatmul.mubr.bf16.gmra.mrb[68].mxu0 %v5222_v52 }
 0x512   : > { %12868 = vmatmul.mubr.bf16.vlgmr.msra.gmra.mrb[4].mxu1 %v16007_v56  ;;  %12683 = vmatprep.mubr.bf16.mxu0 %v5223_v49 }
 0x513   : > { %12871 = vmatprep.mubr.bf16.mxu1 %v16018_v16  ;;  %12900 = vmatpush3.bf16.msra.mxu1 %v16067_v40  ;;  %v5224_v16 = vpack.c.bf16 %v5198_v13, %v5197_v3  ;;  %v14477_v40 = vld [vmem:[%s18057_s3 + $0x20] sm:$0xff]   ;;  %v16176_v13 = vld [vmem:[%s18057_s3 + $0xf8] sm:$0xff]  }
 0x514   : > { %12901 = vmatprep.subr.bf16.mxu1 %v14468_v58  ;;  %12712 = vmatpush3.bf16.msra.mxu0 %v14474_v48 }
 0x515   : > { %v3648_v56 = vpop.xlane.xlu1 %3647  ;;  %v3646_v30 = vpop.xlane.xlu0 %3645  ;;  %12713 = vmatprep.subr.bf16.mxu0 %v14476_v15 }
 0x516   : > { %3710 = vst.msk [vmem:[#allocation4 + $0x52] sm:$0xff] %vm3706_vm1, %v3648_v56  ;;  %3709 = vst.msk [vmem:[#allocation4 + $0x4a] sm:$0xff] %vm3706_vm1, %v3646_v30  ;;  %v16181_v56 = vld [vmem:[%s18057_s3 + $0x200] sm:$0xff]   ;;  %v5229_v30 = vpack.c.bf16 %v5208_v19, %v5207_v0 }
 0x517   : > { %12902 = vmatpush3.bf16.msra.mxu1 %v14468_v58 }
 0x518   : > { %12903 = vmatprep.subr.bf16.mxu1 %v14469_v33  ;;  %12714 = vmatpush3.bf16.msra.mxu0 %v14476_v15 }
 0x519   : > { %v3652_v14 = vpop.xlane.xlu1 %3651  ;;  %v3650_v17 = vpop.xlane.xlu0 %3649  ;;  %12684 = vmatmul.mubr.bf16.gmra.mrb[72].mxu0 %v5224_v16  ;;  %12715 = vmatprep.subr.bf16.mxu0 %v14477_v40 }
 0x51a   : > { %12872 = vmatmul.mubr.bf16.gmra.mrb[8].mxu1 %v16021_v28  ;;  %3712 = vst.msk [vmem:[#allocation4 + $0x6a] sm:$0xff] %vm3706_vm1, %v3652_v14  ;;  %3711 = vst.msk [vmem:[#allocation4 + $0x62] sm:$0xff] %vm3706_vm1, %v3650_v17  ;;  %12687 = vmatprep.mubr.bf16.mxu0 %v5225_v6  ;;  %v5203_v28 = vld [vmem:[#allocation3 + $0xc3] sm:$0xff] }
 0x51b   : > { %12875 = vmatprep.mubr.bf16.mxu1 %v16028_v38  ;;  %12904 = vmatpush3.bf16.msra.mxu1 %v14469_v33  ;;  %v5227_v37 = vpack.c.bf16 %v5204_v9, %v5203_v28  ;;  %v16190_v28 = vld [vmem:[#allocation3 + $0x12b] sm:$0xff] }
 0x51c   : > { %12905 = vmatprep.subr.bf16.mxu1 %v14470_v26  ;;  %12716 = vmatpush3.bf16.msra.mxu0 %v14477_v40 }
 0x51d   : > { %v16123_v24 = vld [vmem:[#allocation4 + $0x52] sm:$0xff]  ;;  %v3644_v50 = vpop.xlane.xlu1 %3643  ;;  %v3642_v38 = vpop.xlane.xlu0 %3641  ;;  %12717 = vmatprep.subr.bf16.mxu0 %v14479_v57  ;;  %v16129_v2 = vld [vmem:[#allocation4 + $0x4a] sm:$0xff] }
 0x51e   : > { %v3846_v1 = vld [vmem:[#allocation4 + $0x58] sm:$0x1]  ;;  %v3886_v59 = vld [vmem:[#allocation4 + $0x57] sm:$0x1]  ;;  %3749 = vst.msk [vmem:[#allocation4 + $0x22] sm:$0xff] %vm3706_vm1, %v16123_v24  ;;  %3708 = vst.msk [vmem:[#allocation4 + $0x3a] sm:$0xff] %vm3706_vm1, %v3644_v50 }
 0x51f   : > { %3866 = vst.msk [vmem:[#allocation4 + $0x5a] sm:$0x1] %vm3782_vm2, %v3846_v1  ;;  %3906 = vst.msk [vmem:[#allocation4 + $0x5b] sm:$0x1] %vm3782_vm2, %v3886_v59  ;;  %v3765_v47 = vld [vmem:[#allocation4 + $0x4c] sm:$0x1]  ;;  %12906 = vmatpush3.bf16.msra.mxu1 %v14470_v26 }
 0x520   : > { %v3806_v62 = vld [vmem:[#allocation4 + $0x4b] sm:$0x1]  ;;  %3707 = vst.msk [vmem:[#allocation4 + $0x32] sm:$0xff] %vm3706_vm1, %v3642_v38  ;;  %3748 = vst.msk [vmem:[#allocation4 + $0x1a] sm:$0xff] %vm3706_vm1, %v16129_v2  ;;  %12907 = vmatprep.subr.bf16.mxu1 %v14472_v45  ;;  %12718 = vmatpush3.bf16.msra.mxu0 %v14479_v57  ;;  %v16184_v57 = vld [vmem:[#allocation3 + $0x10b] sm:$0xff] }
 0x521   : > { %3786 = vst.msk [vmem:[#allocation4 + $0x48] sm:$0x1] %vm3782_vm2, %v3765_v47  ;;  %3826 = vst.msk [vmem:[#allocation4 + $0x49] sm:$0x1] %vm3782_vm2, %v3806_v62  ;;  %v16146_v22 = vld [vmem:[#allocation4 + $0x6a] sm:$0xff]  ;;  %v3658_v41 = vpop.xlane.xlu1 %3657  ;;  %12688 = vmatmul.mubr.bf16.gmra.mrb[76].mxu0 %v5226_v5  ;;  %v16153_v44 = vld [vmem:[#allocation4 + $0x62] sm:$0xff]  ;;  %12719 = vmatprep.subr.bf16.mxu0 %v14480_v4 }
 0x522   : > { %v3847_v61 = vld [vmem:[#allocation4 + $0x70] sm:$0x1]  ;;  %v3887_v18 = vld [vmem:[#allocation4 + $0x6f] sm:$0x1]  ;;  %12876 = vmatmul.mubr.bf16.gmra.mrb[12].mxu1 %v16033_v7  ;;  %v3654_v27 = vpop.xlane.xlu0 %3653  ;;  %3743 = vst.msk [vmem:[#allocation4 + $0xa] sm:$0xff] %vm3706_vm1, %v16146_v22  ;;  %3715 = vst.msk [vmem:[#allocation4 + $0x92] sm:$0xff] %vm3706_vm1, %v3658_v41  ;;  %12691 = vmatprep.mubr.bf16.mxu0 %v5227_v37 }
 0x523   : > { %3867 = vst.msk [vmem:[#allocation4 + $0x72] sm:$0x1] %vm3782_vm2, %v3847_v61  ;;  %3907 = vst.msk [vmem:[#allocation4 + $0x73] sm:$0x1] %vm3782_vm2, %v3887_v18  ;;  %v3766_v8 = vld [vmem:[#allocation4 + $0x64] sm:$0x1]  ;;  %12879 = vmatprep.mubr.bf16.mxu1 %v16040_v29  ;;  %12908 = vmatpush3.bf16.msra.mxu1 %v14472_v45 }
 0x524   : > { %v3807_v43 = vld [vmem:[#allocation4 + $0x63] sm:$0x1]  ;;  %3713 = vst.msk [vmem:[#allocation4 + $0x7a] sm:$0xff] %vm3706_vm1, %v3654_v27  ;;  %3742 = vst.msk [vmem:[#allocation4 + $0x2] sm:$0xff] %vm3706_vm1, %v16153_v44  ;;  %v5205_v7 = vld [vmem:[#allocation3 + $0xdb] sm:$0xff]  ;;  %12909 = vmatprep.subr.bf16.mxu1 %v14475_v35  ;;  %12720 = vmatpush3.bf16.msra.mxu0 %v14480_v4 }
 0x525   : > { %3787 = vst.msk [vmem:[#allocation4 + $0x60] sm:$0x1] %vm3782_vm2, %v3766_v8  ;;  %3827 = vst.msk [vmem:[#allocation4 + $0x61] sm:$0x1] %vm3782_vm2, %v3807_v43  ;;  %v14478_v29 = vld [vmem:[%s18057_s3 + $0xf0] sm:$0xff]   ;;  %v3662_v42 = vpop.xlane.xlu1 %3661  ;;  %12721 = vmatprep.subr.bf16.mxu0 %v14482_v63  ;;  %v5228_v33 = vpack.c.bf16 %v5206_v36, %v5205_v7  ;;  %v16202_v59 = vld [vmem:[#allocation3 + $0x153] sm:$0xff] }
 0x526   : > { %v3845_v39 = vld [vmem:[#allocation4 + $0x40] sm:$0x1]  ;;  %v3885_v48 = vld [vmem:[#allocation4 + $0x3f] sm:$0x1]  ;;  %v3656_v52 = vpop.xlane.xlu0 %3655  ;;  %3717 = vst.msk [vmem:[#allocation4 + $0xaa] sm:$0xff] %vm3706_vm1, %v3662_v42  ;;  %v3930_v9 = vld [vmem:[#allocation4 + $0x50] sm:$0xff] }
 0x527   : > { %v3764_v21 = vld [vmem:[#allocation4 + $0x34] sm:$0x1]  ;;  %3865 = vst.msk [vmem:[#allocation4 + $0x42] sm:$0x1] %vm3782_vm2, %v3845_v39  ;;  %3905 = vst.msk [vmem:[#allocation4 + $0x43] sm:$0x1] %vm3782_vm2, %v3885_v48  ;;  %12910 = vmatpush3.bf16.msra.mxu1 %v14475_v35 }
 0x528   : > { %3785 = vst.msk [vmem:[#allocation4 + $0x30] sm:$0x1] %vm3782_vm2, %v3764_v21  ;;  %v3805_v58 = vld [vmem:[#allocation4 + $0x33] sm:$0x1]  ;;  %v3844_v49 = vld [vmem:[#allocation4 + $0x28] sm:$0x1]  ;;  %12911 = vmatprep.subr.bf16.mxu1 %v14478_v29  ;;  %12722 = vmatpush3.bf16.msra.mxu0 %v14482_v63 }
 0x529   : > { %3714 = vst.msk [vmem:[#allocation4 + $0x82] sm:$0xff] %vm3706_vm1, %v3656_v52  ;;  %v3884_v15 = vld [vmem:[#allocation4 + $0x27] sm:$0x1]  ;;  %v3928_v23 = vld [vmem:[#allocation4 + $0x38] sm:$0xff]  ;;  %v3768_v40 = vld [vmem:[#allocation4 + $0x94] sm:$0x1]  ;;  %v3666_v14 = vpop.xlane.xlu1 %3665  ;;  %12692 = vmatmul.mubr.bf16.gmra.mrb[80].mxu0 %v5228_v33  ;;  %13379 = vmatprep.subr.bf16.mxu0 %v16181_v56 }
 0x52a   : > { %3825 = vst.msk [vmem:[#allocation4 + $0x31] sm:$0x1] %vm3782_vm2, %v3805_v58  ;;  %3864 = vst.msk [vmem:[#allocation4 + $0x2a] sm:$0x1] %vm3782_vm2, %v3844_v49  ;;  %v3926_v3 = vld [vmem:[#allocation4 + $0x20] sm:$0xff]  ;;  %12880 = vmatmul.mubr.bf16.gmra.mrb[16].mxu1 %v16045_v60  ;;  %v3660_v17 = vpop.xlane.xlu0 %3659  ;;  %12695 = vmatprep.mubr.bf16.mxu0 %v5229_v30  ;;  %v16198_v60 = vld [vmem:[#allocation3 + $0x13b] sm:$0xff]  ;;  %v5230_v30 = vpack.c.bf16 %v16186_v10, %v16184_v57 }
 0x52b   : > { %3904 = vst.msk [vmem:[#allocation4 + $0x2b] sm:$0x1] %vm3782_vm2, %v3884_v15  ;;  %v3966_v20 = vld [vmem:[#allocation4 + $0x21] sm:$0xff]  ;;  %v3968_v16 = vld [vmem:[#allocation4 + $0x39] sm:$0xff]  ;;  %v3809_v6 = vld [vmem:[#allocation4 + $0x93] sm:$0x1]  ;;  %12883 = vmatprep.mubr.bf16.mxu1 %v16052_v12  ;;  %12912 = vmatpush3.bf16.msra.mxu1 %v14478_v29 }
 0x52c   : > { %v3767_v26 = vld [vmem:[#allocation4 + $0x7c] sm:$0x1]  ;;  %3789 = vst.msk [vmem:[#allocation4 + $0x90] sm:$0x1] %vm3782_vm2, %v3768_v40  ;;  %3829 = vst.msk [vmem:[#allocation4 + $0x91] sm:$0x1] %vm3782_vm2, %v3809_v6  ;;  %v4006_v63 = vadd.f32 %v3966_v20, %v3926_v3  ;;  %12913 = vmatprep.subr.bf16.mxu1 %v16176_v13  ;;  %v4008_v52 = vadd.f32 %v3968_v16, %v3928_v23  ;;  %v5231_v23 = vpack.c.bf16 %v16190_v28, %v16188_v53 }
 0x52d   : > { %3788 = vst.msk [vmem:[#allocation4 + $0x78] sm:$0x1] %vm3782_vm2, %v3767_v26  ;;  %v3808_v45 = vld [vmem:[#allocation4 + $0x7b] sm:$0x1]  ;;  %v16200_v1 = vld [vmem:[#allocation3 + $0x143] sm:$0xff]  ;;  %v16204_v50 = vld [vmem:[#allocation3 + $0x15b] sm:$0xff]  ;;  %v3670_v48 = vpop.xlane.xlu1 %3669 }
 0x52e   : > { %3719 = vst.msk [vmem:[#allocation4 + $0xc2] sm:$0xff] %vm3706_vm1, %v3666_v14  ;;  %3716 = vst.msk [vmem:[#allocation4 + $0x9a] sm:$0xff] %vm3706_vm1, %v3660_v17  ;;  %v3843_v38 = vld [vmem:[#allocation4 + $0x10] sm:$0x1]  ;;  %v3883_v47 = vld [vmem:[#allocation4 + $0xf] sm:$0x1]  ;;  %v3664_v21 = vpop.xlane.xlu0 %3663 }
 0x52f   : > { %v16206_v62 = vld [vmem:[#allocation3 + $0x16b] sm:$0xff]  ;;  %v16208_v5 = vld [vmem:[#allocation3 + $0x173] sm:$0xff]  ;;  %3828 = vst.msk [vmem:[#allocation4 + $0x79] sm:$0x1] %vm3782_vm2, %v3808_v45  ;;  %3863 = vst.msk [vmem:[#allocation4 + $0x12] sm:$0x1] %vm3782_vm2, %v3843_v38  ;;  %12914 = vmatpush3.bf16.msra.mxu1 %v16176_v13 }
 0x530   : > { %v16210_v4 = vld [vmem:[#allocation7 + $0x100] sm:$0xff]   ;;  %3903 = vst.msk [vmem:[#allocation4 + $0x13] sm:$0x1] %vm3782_vm2, %v3883_v47  ;;  %v3924_v12 = vld [vmem:[#allocation4 + $0x8] sm:$0xff]  ;;  %v3970_v35 = vld [vmem:[#allocation4 + $0x51] sm:$0xff] }
 0x531   : > { %v3964_v37 = vld [vmem:[#allocation4 + $0x9] sm:$0xff]  ;;  %v6588_v41 = vld [vmem:[#allocation3 + $0x48] sm:$0xff]  ;;  %v6589_v27 = vld [vmem:[#allocation3 + $0x50] sm:$0xff]  ;;  %3721 = vst.msk [vmem:[#allocation4 + $0xda] sm:$0xff] %vm3706_vm1, %v3670_v48  ;;  %v4010_v20 = vadd.f32 %v3970_v35, %v3930_v9  ;;  %12947 = vmatprep.subr.bf16.mxu1 %v16210_v4  ;;  %v3674_v11 = vpop.xlane.xlu1 %3673  ;;  %12696 = vmatmul.mubr.bf16.gmra.mrb[84].mxu0 %v5230_v30 }
 0x532   : > { %v16215_v61 = vld [vmem:[#allocation3 + $0x1b2] sm:$0xff]  ;;  %v16217_v18 = vld [vmem:[#allocation3 + $0x1ba] sm:$0xff]  ;;  %v6591_v43 = vld [vmem:[#allocation3 + $0x68] sm:$0xff]  ;;  %v4004_v42 = vadd.f32 %v3964_v37, %v3924_v12  ;;  %3718 = vst.msk [vmem:[#allocation4 + $0xb2] sm:$0xff] %vm3706_vm1, %v3664_v21  ;;  %v16266_v48 = vpack.c.bf16 %v6589_v27, %v6588_v41  ;;  %12884 = vmatmul.mubr.bf16.gmra.mrb[20].mxu1 %v16059_v31  ;;  %v3668_v38 = vpop.xlane.xlu0 %3667  ;;  %12699 = vmatprep.mubr.bf16.mxu0 %v5231_v23 }
 0x533   : > { %v6590_v8 = vld [vmem:[#allocation3 + $0x60] sm:$0xff]  ;;  %v3932_v7 = vld [vmem:[#allocation4 + $0x68] sm:$0xff]  ;;  %v16225_v15 = vld [vmem:[#allocation3 + $0x90] sm:$0xff]  ;;  %3723 = vst.msk [vmem:[#allocation4 + $0xf2] sm:$0xff] %vm3706_vm1, %v3674_v11  ;;  %12887 = vmatprep.mubr.bf16.mxu1 %v16069_v55 }
 0x534   : > { %v3972_v36 = vld [vmem:[#allocation4 + $0x69] sm:$0xff]  ;;  %v3848_v39 = vld [vmem:[#allocation4 + $0x88] sm:$0x1]  ;;  %v3888_v3 = vld [vmem:[#allocation4 + $0x87] sm:$0x1]  ;;  %v16268_v21 = vpack.c.bf16 %v6591_v43, %v6590_v8  ;;  %3720 = vst.msk [vmem:[#allocation4 + $0xca] sm:$0xff] %vm3706_vm1, %v3668_v38 }
 0x535   : > { %v4046_v0 = vld [vmem:[#allocation4 + $0x22] sm:$0xff]  ;;  %v3769_v19 = vld [vmem:[#allocation4 + $0xac] sm:$0x1]  ;;  %v3810_v29 = vld [vmem:[#allocation4 + $0xab] sm:$0x1] }
 0x536   : > { %v16221_v58 = vld [vmem:[#allocation3 + $0x78] sm:$0xff]  ;;  %v16223_v49 = vld [vmem:[#allocation3 + $0x80] sm:$0xff]  ;;  %3790 = vst.msk [vmem:[#allocation4 + $0xa8] sm:$0x1] %vm3782_vm2, %v3769_v19  ;;  %3830 = vst.msk [vmem:[#allocation4 + $0xa9] sm:$0x1] %vm3782_vm2, %v3810_v29  ;;  %v4086_v53 = vadd.f32 %v4046_v0, %v4006_v63  ;;  %v4012_v19 = vadd.f32 %v3972_v36, %v3932_v7 }
 0x537   : > { %v16227_v33 = vld [vmem:[#allocation3 + $0x98] sm:$0xff]  ;;  %3868 = vst.msk [vmem:[#allocation4 + $0x8a] sm:$0x1] %vm3782_vm2, %v3848_v39  ;;  %v4048_v16 = vld [vmem:[#allocation4 + $0x3a] sm:$0xff]  ;;  %v16242_v14 = vld [vmem:[#allocation3 + $0xc0] sm:$0xff] }
 0x538   : > { %v4126_v40 = vld [vmem:[#allocation4 + $0x23] sm:$0xff]  ;;  %v16238_v6 = vld [vmem:[#allocation3 + $0xa8] sm:$0xff]  ;;  %3908 = vst.msk [vmem:[#allocation4 + $0x8b] sm:$0x1] %vm3782_vm2, %v3888_v3  ;;  %v16258_v12 = vld [vmem:[#allocation3 + $0xe0] sm:$0xff]  ;;  %v4088_v36 = vadd.f32 %v4048_v16, %v4008_v52 }
 0x539   : > { %v16240_v26 = vld [vmem:[#allocation3 + $0xb0] sm:$0xff]  ;;  %v16244_v17 = vld [vmem:[#allocation3 + $0xc8] sm:$0xff]  ;;  %v4044_v10 = vld [vmem:[#allocation4 + $0xa] sm:$0xff]  ;;  %v4166_v45 = vadd.f32 %v4126_v40, %v4086_v53  ;;  %v16284_v40 = vpack.c.bf16 %v16223_v49, %v16221_v58 }
 0x53a   : > { %v4128_v28 = vld [vmem:[#allocation4 + $0x3b] sm:$0xff]  ;;  %v16251_v9 = vld [vmem:[#allocation4 + $0x53] sm:$0xff]  ;;  %v16256_v47 = vld [vmem:[#allocation3 + $0xd8] sm:$0xff]  ;;  %v4084_v7 = vadd.f32 %v4044_v10, %v4004_v42  ;;  %v4090_v42 = vadd.f32 %v4010_v20, %v16123_v24  ;;  %v16293_v24 = vpack.c.bf16 %v16240_v26, %v16238_v6  ;;  %v16297_v20 = vpack.c.bf16 %v16244_v17, %v16242_v14  ;;  %12888 = vmatmul.mubr.bf16.gmra.mrb[24].mxu1 %v16071_v25 }
 0x53b   : > { %v16260_v37 = vld [vmem:[#allocation3 + $0xf0] sm:$0xff]  ;;  %v16262_v35 = vld [vmem:[#allocation3 + $0xf8] sm:$0xff]  ;;  %v3763_v39 = vld [vmem:[#allocation4 + $0x1c] sm:$0x1]  ;;  %v4168_v55 = vadd.f32 %v4128_v28, %v4088_v36  ;;  %v4092_v28 = vadd.f32 %v4012_v19, %v16146_v22  ;;  %v16308_v14 = vpack.c.bf16 %v16258_v12, %v16256_v47  ;;  %v3678_v36 = vpop.xlane.xlu1 %3677  ;;  %v3672_v22 = vpop.xlane.xlu0 %3671  ;;  %12891 = vmatprep.mubr.bf16.mxu1 %v16076_v32  ;;  %v18092_v25 = vpack.c.bf16 %v16204_v50, %v16202_v59 }
 0x53c   : > { %v3762_v29 = vld [vmem:[#allocation4 + $0x4] sm:$0x1]  ;;  %v3803_v63 = vld [vmem:[#allocation4 + $0x3] sm:$0x1]  ;;  %v3849_v51 = vld [vmem:[#allocation4 + $0xa0] sm:$0x1]  ;;  %v16312_v17 = vpack.c.bf16 %v16262_v35, %v16260_v37 }
 0x53d   : > { %v3770_v13 = vld [vmem:[#allocation4 + $0xc4] sm:$0x1]  ;;  %v3811_v3 = vld [vmem:[#allocation4 + $0xc3] sm:$0x1]  ;;  %v4132_v57 = vld [vmem:[#allocation4 + $0x6b] sm:$0xff]  ;;  %3725 = vst.msk [vmem:[#allocation4 + $0x10a] sm:$0xff] %vm3706_vm1, %v3678_v36 }
 0x53e   : > { %3783 = vst.msk [vmem:[#allocation4] sm:$0x1] %vm3782_vm2, %v3762_v29  ;;  %3784 = vst.msk [vmem:[#allocation4 + $0x18] sm:$0x1] %vm3782_vm2, %v3763_v39  ;;  %v6604_v41 = vld [vmem:[#allocation3 + $0x108] sm:$0xff]  ;;  %v6605_v27 = vld [vmem:[#allocation3 + $0x110] sm:$0xff]  ;;  %v4170_v39 = vadd.f32 %v16251_v9, %v4090_v42  ;;  %v4172_v12 = vadd.f32 %v4132_v57, %v4092_v28 }
 0x53f   : > { %3823 = vst.msk [vmem:[#allocation4 + $0x1] sm:$0x1] %vm3782_vm2, %v3803_v63  ;;  %v6606_v8 = vld [vmem:[#allocation3 + $0x120] sm:$0xff]  ;;  %v6607_v43 = vld [vmem:[#allocation3 + $0x128] sm:$0xff]  ;;  %v6608_v0 = vld [vmem:[#allocation3 + $0x138] sm:$0xff] }
 0x540   : > { %3791 = vst.msk [vmem:[#allocation4 + $0xc0] sm:$0x1] %vm3782_vm2, %v3770_v13  ;;  %3831 = vst.msk [vmem:[#allocation4 + $0xc1] sm:$0x1] %vm3782_vm2, %v3811_v3  ;;  %v3889_v31 = vld [vmem:[#allocation4 + $0x9f] sm:$0x1] }
 0x541   : > { %3869 = vst.msk [vmem:[#allocation4 + $0xa2] sm:$0x1] %vm3782_vm2, %v3849_v51  ;;  %v4124_v52 = vld [vmem:[#allocation4 + $0xb] sm:$0xff]  ;;  %v16288_v51 = vpack.c.bf16 %v16227_v33, %v16225_v15  ;;  %3909 = vst.msk [vmem:[#allocation4 + $0xa3] sm:$0x1] %vm3782_vm2, %v3889_v31  ;;  %v6610_v58 = vld [vmem:[#allocation3 + $0x150] sm:$0xff] }
 0x542   : > { %v4204_v30 = vld [vmem:[#allocation4 + $0xc] sm:$0xff]  ;;  %v4206_v16 = vld [vmem:[#allocation4 + $0x24] sm:$0xff]  ;;  %v4164_v11 = vadd.f32 %v4124_v52, %v4084_v7  ;;  %v3804_v10 = vld [vmem:[#allocation4 + $0x1b] sm:$0x1]  ;;  %3722 = vst.msk [vmem:[#allocation4 + $0xe2] sm:$0xff] %vm3706_vm1, %v3672_v22  ;;  %v16321_v52 = vpack.c.bf16 %v6605_v27, %v6604_v41  ;;  %12892 = vmatmul.mubr.bf16.gmra.mrb[28].mxu1 %v16078_v46 }
 0x543   : > { %v3927_v53 = vld [vmem:[#allocation4 + $0x30] sm:$0xff]  ;;  %v3929_v23 = vld [vmem:[#allocation4 + $0x48] sm:$0xff]  ;;  %v6612_v38 = vld [vmem:[#allocation3 + $0x168] sm:$0xff]  ;;  %3824 = vst.msk [vmem:[#allocation4 + $0x19] sm:$0x1] %vm3782_vm2, %v3804_v10  ;;  %v16314_v9 = vadd.f32 %v4206_v16, %v4166_v45  ;;  %v16323_v45 = vpack.c.bf16 %v6607_v43, %v6606_v8  ;;  %12895 = vmatprep.mubr.bf16.mxu1 %v16082_v34 }
 0x544   : > { %v6611_v49 = vld [vmem:[#allocation3 + $0x158] sm:$0xff]  ;;  %v6613_v15 = vld [vmem:[#allocation3 + $0x170] sm:$0xff]  ;;  %v16299_v33 = vld [vmem:[#allocation3 + $0x180] sm:$0xff]  ;;  %v4244_v19 = vadd.f32 %v4204_v30, %v4164_v11  ;;  %v16325_v30 = vpack.c.bf16 %v6609_v54, %v6608_v0 }
 0x545   : > { %v16301_v29 = vld [vmem:[#allocation3 + $0x188] sm:$0xff]  ;;  %v3931_v6 = vld [vmem:[#allocation4 + $0x60] sm:$0xff]  ;;  %v3969_v63 = vld [vmem:[#allocation4 + $0x49] sm:$0xff] }
 0x546   : > { %v3967_v26 = vld [vmem:[#allocation4 + $0x31] sm:$0xff]  ;;  %v3771_v13 = vld [vmem:[#allocation4 + $0xdc] sm:$0x1]  ;;  %v3812_v3 = vld [vmem:[#allocation4 + $0xdb] sm:$0x1]  ;;  %v4009_v42 = vadd.f32 %v3969_v63, %v3929_v23  ;;  %v4284_v10 = vadd.f32 %v16314_v9, %v4244_v19 }
 0x547   : > { %v3850_v7 = vld [vmem:[#allocation4 + $0xb8] sm:$0x1]  ;;  %v4007_v31 = vadd.f32 %v3967_v26, %v3927_v53  ;;  %3792 = vst.msk [vmem:[#allocation4 + $0xd8] sm:$0x1] %vm3782_vm2, %v3771_v13  ;;  %3832 = vst.msk [vmem:[#allocation4 + $0xd9] sm:$0x1] %vm3782_vm2, %v3812_v3 }
 0x548   : > { %3870 = vst.msk [vmem:[#allocation4 + $0xba] sm:$0x1] %vm3782_vm2, %v3850_v7  ;;  %v3890_v47 = vld [vmem:[#allocation4 + $0xb7] sm:$0x1]  ;;  %v4208_v37 = vld [vmem:[#allocation4 + $0x3c] sm:$0xff]  ;;  %v4089_v26 = vadd.f32 %v4009_v42, %v16129_v2  ;;  %v4129_v57 = vld [vmem:[#allocation4 + $0x4b] sm:$0xff]  ;;  %v16344_v2 = vpack.c.bf16 %v6613_v15, %v6612_v38  ;;  %v3682_v42 = vpop.xlane.xlu1 %3681 }
 0x549   : > { %v3971_v35 = vld [vmem:[#allocation4 + $0x61] sm:$0xff]  ;;  %3910 = vst.msk [vmem:[#allocation4 + $0xbb] sm:$0x1] %vm3782_vm2, %v3890_v47  ;;  %v4210_v16 = vld [vmem:[#allocation4 + $0x54] sm:$0xff]  ;;  %v16328_v11 = vadd.f32 %v4208_v37, %v4168_v55  ;;  %v4212_v43 = vld [vmem:[#allocation4 + $0x6c] sm:$0xff]  ;;  %v3676_v47 = vpop.xlane.xlu0 %3675  ;;  %v18091_v37 = vpack.c.bf16 %v16200_v1, %v16198_v60 }
 0x54a   : > { %v4011_v53 = vadd.f32 %v3971_v35, %v3931_v6  ;;  %v4047_v23 = vld [vmem:[#allocation4 + $0x32] sm:$0xff]  ;;  %v16332_v28 = vld [vmem:[#allocation3 + $0x198] sm:$0xff]  ;;  %v16336_v27 = vld [vmem:[#allocation3 + $0x1b0] sm:$0xff]  ;;  %v16342_v6 = vpack.c.bf16 %v6611_v49, %v6610_v58  ;;  %3727 = vst.msk [vmem:[#allocation4 + $0x122] sm:$0xff] %vm3706_vm1, %v3682_v42  ;;  %v16364_v60 = vadd.f32 %v4212_v43, %v4172_v12  ;;  %v4169_v35 = vadd.f32 %v4129_v57, %v4089_v26 }
 0x54b   : > { %v16334_v41 = vld [vmem:[#allocation3 + $0x1a0] sm:$0xff]  ;;  %18089 = vst [vmem:[#allocation12_spill] sm:$0xff] %v16336_v27  ;;  %v16338_v54 = vld [vmem:[#allocation3 + $0x1b8] sm:$0xff]  ;;  %v6894_v0 = vld [vmem:[#allocation3 + $0x4b] sm:$0xff]  ;;  %v4087_v13 = vadd.f32 %v4047_v23, %v4007_v31  ;;  %12700 = vmatmul.mubr.bf16.gmra.mrb[88].mxu0 %v18091_v37  ;;  %v16352_v31 = vadd.f32 %v4210_v16, %v4170_v39  ;;  %v4316_v58 = vadd.f32 %v4284_v10, %v16328_v11 }
 0x54c   : > { %18090 = vst [vmem:[#allocation13_spill] sm:$0xff] %v16338_v54  ;;  %v6895_v8 = vld [vmem:[#allocation3 + $0x53] sm:$0xff]  ;;  %v16340_v3 = vld [vmem:[#allocation3] sm:$0xff]  ;;  %v3891_v38 = vld [vmem:[#allocation4 + $0xcf] sm:$0x1]  ;;  %12703 = vmatprep.mubr.bf16.mxu0 %v18092_v25  ;;  %v4091_v15 = vadd.f32 %v4011_v53, %v16153_v44  ;;  %v4286_v43 = vadd.f32 %v16328_v11, %v16314_v9 }
 0x54d   : > { %v3923_v55 = vld [vmem:[#allocation4] sm:$0xff]  ;;  %v3772_v36 = vld [vmem:[#allocation4 + $0xf4] sm:$0x1]  ;;  %v3813_v22 = vld [vmem:[#allocation4 + $0xf3] sm:$0x1]  ;;  %3724 = vst.msk [vmem:[#allocation4 + $0xfa] sm:$0xff] %vm3706_vm1, %v3676_v47  ;;  %v4348_v23 = vadd.f32 %v4316_v58, %v16352_v31  ;;  %v16375_v47 = vpack.c.bf16 %v6895_v8, %v6894_v0 }
 0x54e   : > { %v3963_v63 = vld [vmem:[#allocation4 + $0x1] sm:$0xff]  ;;  %v3851_v19 = vld [vmem:[#allocation4 + $0xd0] sm:$0x1]  ;;  %3793 = vst.msk [vmem:[#allocation4 + $0xf0] sm:$0x1] %vm3782_vm2, %v3772_v36  ;;  %v4127_v39 = vld [vmem:[#allocation4 + $0x33] sm:$0xff]  ;;  %v4318_v42 = vadd.f32 %v4286_v43, %v16352_v31 }
 0x54f   : > { %v4003_v49 = vadd.f32 %v3963_v63, %v3923_v55  ;;  %3833 = vst.msk [vmem:[#allocation4 + $0xf1] sm:$0x1] %vm3782_vm2, %v3813_v22  ;;  %3871 = vst.msk [vmem:[#allocation4 + $0xd2] sm:$0x1] %vm3782_vm2, %v3851_v19  ;;  %v4043_v1 = vld [vmem:[#allocation4 + $0x2] sm:$0xff]  ;;  %v9603_v10 = vld [vmem:[#allocation3 + $0x9e] sm:$0xff]  ;;  %v4167_v50 = vadd.f32 %v4127_v39, %v4087_v13  ;;  %v3686_v13 = vpop.xlane.xlu1 %3685  ;;  %v4380_v25 = vadd.f32 %v4348_v23, %v16364_v60 }
 0x550   : > { %v9602_v16 = vld [vmem:[#allocation3 + $0x96] sm:$0xff]  ;;  %3911 = vst.msk [vmem:[#allocation4 + $0xd3] sm:$0x1] %vm3782_vm2, %v3891_v38  ;;  %v3925_v32 = vld [vmem:[#allocation4 + $0x18] sm:$0xff]  ;;  %18093 = vst [vmem:[#allocation14_spill] sm:$0xff] %v16375_v47  ;;  %v3680_v38 = vpop.xlane.xlu0 %3679 }
 0x551   : > { %v3965_v55 = vld [vmem:[#allocation4 + $0x19] sm:$0xff]  ;;  %v4083_v36 = vadd.f32 %v4043_v1, %v4003_v49  ;;  %v4123_v22 = vld [vmem:[#allocation4 + $0x3] sm:$0xff]  ;;  %v4209_v12 = vld [vmem:[#allocation4 + $0x4c] sm:$0xff]  ;;  %3729 = vst.msk [vmem:[#allocation4 + $0x13a] sm:$0xff] %vm3706_vm1, %v3686_v13 }
 0x552   : > { %v4045_v63 = vld [vmem:[#allocation4 + $0x1a] sm:$0xff]  ;;  %v4131_v59 = vld [vmem:[#allocation4 + $0x63] sm:$0xff]  ;;  %v4005_v44 = vadd.f32 %v3965_v55, %v3925_v32  ;;  %v3773_v37 = vld [vmem:[#allocation4 + $0x10c] sm:$0x1]  ;;  %3726 = vst.msk [vmem:[#allocation4 + $0x112] sm:$0xff] %vm3706_vm1, %v3680_v38 }
 0x553   : > { %v4207_v53 = vld [vmem:[#allocation4 + $0x34] sm:$0xff]  ;;  %v3934_v26 = vld [vmem:[#allocation4 + $0x80] sm:$0xff]  ;;  %v3814_v58 = vld [vmem:[#allocation4 + $0x10b] sm:$0x1]  ;;  %v4163_v1 = vadd.f32 %v4123_v22, %v4083_v36  ;;  %3794 = vst.msk [vmem:[#allocation4 + $0x108] sm:$0x1] %vm3782_vm2, %v3773_v37  ;;  %v4171_v36 = vadd.f32 %v4131_v59, %v4091_v15  ;;  %v16404_v15 = vadd.f32 %v16352_v31, %v16328_v11  ;;  %v3690_v27 = vpop.xlane.xlu1 %3689 }
 0x554   : > { %v3974_v57 = vld [vmem:[#allocation4 + $0x81] sm:$0xff]  ;;  %v16378_v39 = vadd.f32 %v4207_v53, %v4167_v50  ;;  %3834 = vst.msk [vmem:[#allocation4 + $0x109] sm:$0x1] %vm3782_vm2, %v3814_v58  ;;  %v4085_v23 = vadd.f32 %v4045_v63, %v4005_v44  ;;  %v3933_v19 = vld [vmem:[#allocation4 + $0x78] sm:$0xff]  ;;  %v3935_v7 = vld [vmem:[#allocation4 + $0x90] sm:$0xff]  ;;  %v3684_v54 = vpop.xlane.xlu0 %3683 }
 0x555   : > { %v3852_v49 = vld [vmem:[#allocation4 + $0xe8] sm:$0x1]  ;;  %v4125_v9 = vld [vmem:[#allocation4 + $0x1b] sm:$0xff]  ;;  %v3892_v0 = vld [vmem:[#allocation4 + $0xe7] sm:$0x1]  ;;  %v4014_v50 = vadd.f32 %v3974_v57, %v3934_v26  ;;  %3731 = vst.msk [vmem:[#allocation4 + $0x152] sm:$0xff] %vm3706_vm1, %v3690_v27 }
 0x556   : > { %v16380_v32 = vld [vmem:[#allocation2 + $0x8] sm:$0xff]  ;;  %3872 = vst.msk [vmem:[#allocation4 + $0xea] sm:$0x1] %vm3782_vm2, %v3852_v49  ;;  %v16392_v8 = vld [vmem:[%s18060_s6 + $0x6] ss:$0 sm:$0xff]  ;;  %v4165_v63 = vadd.f32 %v4125_v9, %v4085_v23  ;;  %v4205_v59 = vld [vmem:[#allocation4 + $0x1c] sm:$0xff] }
 0x557   : > { %v4672_v55 = vpack.c.bf16 %v16380_v32, %v16340_v3  ;;  %v4203_v22 = vld [vmem:[#allocation4 + $0x4] sm:$0xff]  ;;  %v16394_v3 = vadd.f32 %v4209_v12, %v4169_v35  ;;  %3912 = vst.msk [vmem:[#allocation4 + $0xeb] sm:$0x1] %vm3782_vm2, %v3892_v0  ;;  %v4412_v49 = vmul.f32 0.04, %v4380_v25  ;;  %v16406_v35 = vpack.c.bf16 %v9603_v10, %v9602_v16  ;;  %v3973_v26 = vld [vmem:[#allocation4 + $0x79] sm:$0xff] }
 0x558   : > { %v4054_v53 = vld [vmem:[#allocation4 + $0x82] sm:$0xff]  ;;  %v4243_v12 = vadd.f32 %v4203_v22, %v4163_v1  ;;  %v3975_v57 = vld [vmem:[#allocation4 + $0x91] sm:$0xff]  ;;  %v3853_v43 = vld [vmem:[#allocation4 + $0x100] sm:$0x1]  ;;  %v18094_v16 = vpack.c.bf16 %v16208_v5, %v16206_v62  ;;  %v4013_v10 = vadd.f32 %v3973_v26, %v3933_v19  ;;  %3728 = vst.msk [vmem:[#allocation4 + $0x12a] sm:$0xff] %vm3706_vm1, %v3684_v54  ;;  %v4245_v46 = vadd.f32 %v4205_v59, %v4165_v63 }
 0x559   : > { %v16396_v37 = vld [vmem:[#allocation3 + $0x18] sm:$0xff]  ;;  %v16398_v58 = vld [vmem:[#allocation3 + $0x30] sm:$0xff]  ;;  %v4094_v44 = vadd.f32 %v4054_v53, %v4014_v50  ;;  %v4287_v25 = vadd.f32 %v16394_v3, %v16378_v39  ;;  %v4448_v11 = vadd.f32 %v16392_v8, %v4412_v49  ;;  %v4015_v9 = vadd.f32 %v3975_v57, %v3935_v7  ;;  %3873 = vst.msk [vmem:[#allocation4 + $0x102] sm:$0x1] %vm3782_vm2, %v3853_v43  ;;  %v3893_v1 = vld [vmem:[#allocation4 + $0xff] sm:$0x1]  ;;  %v3694_v43 = vpop.xlane.xlu1 %3693 }
 0x55a   : > { %v4211_v13 = vld [vmem:[#allocation4 + $0x64] sm:$0xff]  ;;  %v3815_v47 = vld [vmem:[#allocation4 + $0x123] sm:$0x1]  ;;  %12704 = vmatmul.mubr.bf16.gmra.mrb[92].mxu0 %v18094_v16  ;;  %v4053_v5 = vld [vmem:[#allocation4 + $0x7a] sm:$0xff]  ;;  %3913 = vst.msk [vmem:[#allocation4 + $0x103] sm:$0x1] %vm3782_vm2, %v3893_v1  ;;  %v4673_v34 = vpack.c.bf16 %v16380_v32, %v16396_v37  ;;  %v4674_v27 = vpack.c.bf16 %v16380_v32, %v16398_v58  ;;  %v4283_v54 = vadd.f32 %v4245_v46, %v4243_v12  ;;  %v3688_v37 = vpop.xlane.xlu0 %3687 }
 0x55b   : > { %v4134_v38 = vld [vmem:[#allocation4 + $0x83] sm:$0xff]  ;;  %3835 = vst.msk [vmem:[#allocation4 + $0x121] sm:$0x1] %vm3782_vm2, %v3815_v47  ;;  %v16421_v23 = vadd.f32 %v4211_v13, %v4171_v36  ;;  %v4055_v19 = vld [vmem:[#allocation4 + $0x92] sm:$0xff]  ;;  %12723 = vmatprep.mubr.bf16.mxu0 %v4672_v55  ;;  %9947 = vperm.xlu1 %14330, %v4448_v11   ;;  %v4093_v47 = vadd.f32 %v4053_v5, %v4013_v10  ;;  %v4133_v50 = vld [vmem:[#allocation4 + $0x7b] sm:$0xff] }
 0x55c   : > { %v3774_v0 = vld [vmem:[#allocation4 + $0x124] sm:$0x1]  ;;  %v4174_v62 = vadd.f32 %v4134_v38, %v4094_v44  ;;  %v4095_v22 = vadd.f32 %v4055_v19, %v4015_v9  ;;  %v4135_v53 = vld [vmem:[#allocation4 + $0x93] sm:$0xff]  ;;  %v4350_v49 = vadd.f32 %v4318_v42, %v16364_v60  ;;  %v4213_v55 = vld [vmem:[#allocation4 + $0x7c] sm:$0xff]  ;;  %v4285_v44 = vadd.f32 %v16378_v39, %v4245_v46  ;;  %3733 = vst.msk [vmem:[#allocation4 + $0x16a] sm:$0xff] %vm3706_vm1, %v3694_v43 }
 0x55d   : > { %3795 = vst.msk [vmem:[#allocation4 + $0x120] sm:$0x1] %vm3782_vm2, %v3774_v0  ;;  %v4214_v7 = vld [vmem:[#allocation4 + $0x84] sm:$0xff]  ;;  %v4215_v13 = vld [vmem:[#allocation4 + $0x94] sm:$0xff]  ;;  %v3775_v26 = vld [vmem:[#allocation4 + $0x13c] sm:$0x1]  ;;  %v4173_v11 = vadd.f32 %v4133_v50, %v4093_v47  ;;  %v4319_v12 = vadd.f32 %v4287_v25, %v16421_v23  ;;  %v16435_v10 = vadd.f32 %v16364_v60, %v16352_v31  ;;  %v4315_v9 = vadd.f32 %v4283_v54, %v16378_v39 }
 0x55e   : > { %v16428_v36 = vadd.f32 %v4214_v7, %v4174_v62  ;;  %v3936_v38 = vld [vmem:[#allocation4 + $0x98] sm:$0xff]  ;;  %v3938_v63 = vld [vmem:[#allocation4 + $0xb0] sm:$0xff]  ;;  %v3940_v59 = vld [vmem:[#allocation4 + $0xc8] sm:$0xff]  ;;  %v4175_v16 = vadd.f32 %v4135_v53, %v4095_v22  ;;  %3796 = vst.msk [vmem:[#allocation4 + $0x138] sm:$0x1] %vm3782_vm2, %v3775_v26  ;;  %v4320_v31 = vadd.f32 %v16404_v15, %v16364_v60  ;;  %v16448_v62 = vadd.f32 %v16421_v23, %v16394_v3 }
 0x55f   : > { %v3816_v57 = vld [vmem:[#allocation4 + $0x13b] sm:$0x1]  ;;  %v3854_v0 = vld [vmem:[#allocation4 + $0x118] sm:$0x1]  ;;  %v3894_v42 = vld [vmem:[#allocation4 + $0x117] sm:$0x1]  ;;  %v16451_v5 = vadd.f32 %v4213_v55, %v4173_v11  ;;  %v4347_v15 = vadd.f32 %v4315_v9, %v16394_v3  ;;  %v3692_v11 = vpop.xlane.xlu0 %3691 }
 0x560   : > { %3836 = vst.msk [vmem:[#allocation4 + $0x139] sm:$0x1] %vm3782_vm2, %v3816_v57  ;;  %3874 = vst.msk [vmem:[#allocation4 + $0x11a] sm:$0x1] %vm3782_vm2, %v3854_v0  ;;  %v4382_v1 = vadd.f32 %v4350_v49, %v16428_v36  ;;  %v3976_v25 = vld [vmem:[#allocation4 + $0x99] sm:$0xff]  ;;  %v3978_v46 = vld [vmem:[#allocation4 + $0xb1] sm:$0xff]  ;;  %v16453_v19 = vadd.f32 %v4215_v13, %v4175_v16  ;;  %v4317_v13 = vadd.f32 %v4285_v44, %v16394_v3 }
 0x561   : > { %3730 = vst.msk [vmem:[#allocation4 + $0x142] sm:$0xff] %vm3706_vm1, %v3688_v37  ;;  %v3980_v7 = vld [vmem:[#allocation4 + $0xc9] sm:$0xff]  ;;  %v4016_v47 = vadd.f32 %v3976_v25, %v3936_v38  ;;  %v4018_v39 = vadd.f32 %v3978_v46, %v3938_v63  ;;  %v4056_v22 = vld [vmem:[#allocation4 + $0x9a] sm:$0xff]  ;;  %v4058_v50 = vld [vmem:[#allocation4 + $0xb2] sm:$0xff]  ;;  %v18095_v63 = vpack.c.bf16 %v16217_v18, %v16215_v61  ;;  %v3698_v37 = vpop.xlane.xlu1 %3697  ;;  %v4351_v16 = vadd.f32 %v4319_v12, %v16451_v5 }
 0x562   : > { %3914 = vst.msk [vmem:[#allocation4 + $0x11b] sm:$0x1] %vm3782_vm2, %v3894_v42  ;;  %v16458_v53 = vld [vmem:[%s18057_s3 + $0x208] sm:$0xff]   ;;  %v4414_v54 = vmul.f32 0.04, %v4382_v1  ;;  %v4020_v49 = vadd.f32 %v3980_v7, %v3940_v59  ;;  %v4136_v57 = vld [vmem:[#allocation4 + $0x9b] sm:$0xff]  ;;  %12724 = vmatmul.mubr.bf16.vlgmr.msra.gmra.mrb[64].mxu0 %v4673_v34  ;;  %v4379_v59 = vadd.f32 %v4347_v15, %v16421_v23  ;;  %v4349_v12 = vadd.f32 %v4317_v13, %v16421_v23 }
 0x563   : > { %v4060_v26 = vld [vmem:[#allocation4 + $0xca] sm:$0xff]  ;;  %v4138_v55 = vld [vmem:[#allocation4 + $0xb3] sm:$0xff]  ;;  %12896 = vmatmul.mubr.bf16.gmra.mrb[32].mxu1 %v18095_v63  ;;  %v4096_v42 = vadd.f32 %v4056_v22, %v4016_v47  ;;  %v4098_v9 = vadd.f32 %v4058_v50, %v4018_v39  ;;  %3735 = vst.msk [vmem:[#allocation4 + $0x182] sm:$0xff] %vm3706_vm1, %v3698_v37  ;;  %3732 = vst.msk [vmem:[#allocation4 + $0x15a] sm:$0xff] %vm3706_vm1, %v3692_v11  ;;  %v4383_v1 = vadd.f32 %v4351_v16, %v16453_v19  ;;  %v3696_v58 = vpop.xlane.xlu0 %3695 }
 0x564   : > { %v3776_v0 = vld [vmem:[#allocation4 + $0x154] sm:$0x1]  ;;  %v3817_v43 = vld [vmem:[#allocation4 + $0x153] sm:$0x1]  ;;  %v3855_v38 = vld [vmem:[#allocation4 + $0x130] sm:$0x1]  ;;  %v4450_v44 = vadd.f32 %v16392_v8, %v4414_v54  ;;  %12915 = vmatprep.mubr.bf16.mxu1 %v16266_v48  ;;  %v4100_v61 = vadd.f32 %v4060_v26, %v4020_v49  ;;  %v4292_v39 = vadd.f32 %v16428_v36, %v16364_v60  ;;  %12727 = vmatprep.mubr.bf16.mxu0 %v4674_v27 }
 0x565   : > { %3797 = vst.msk [vmem:[#allocation4 + $0x150] sm:$0x1] %vm3782_vm2, %v3776_v0  ;;  %3837 = vst.msk [vmem:[#allocation4 + $0x151] sm:$0x1] %vm3782_vm2, %v3817_v43  ;;  %v3895_v3 = vld [vmem:[#allocation4 + $0x12f] sm:$0x1]  ;;  %v4176_v25 = vadd.f32 %v4136_v57, %v4096_v42  ;;  %v4178_v46 = vadd.f32 %v4138_v55, %v4098_v9  ;;  %v4352_v54 = vadd.f32 %v4320_v31, %v16428_v36  ;;  %13380 = vmatpush3.bf16.msra.mxu0 %v16181_v56  ;;  %v3702_v32 = vpop.xlane.xlu1 %3701 }
 0x566   : > { %3875 = vst.msk [vmem:[#allocation4 + $0x132] sm:$0x1] %vm3782_vm2, %v3855_v38  ;;  %v4140_v18 = vld [vmem:[#allocation4 + $0xcb] sm:$0xff]  ;;  %v4216_v34 = vld [vmem:[#allocation4 + $0x9c] sm:$0xff]  ;;  %3915 = vst.msk [vmem:[#allocation4 + $0x133] sm:$0x1] %vm3782_vm2, %v3895_v3  ;;  %9957 = vperm.xlu1 %14330, %v4450_v44   ;;  %v4381_v57 = vadd.f32 %v4349_v12, %v16451_v5  ;;  %v16491_v31 = vadd.f32 %v16448_v62, %v16451_v5  ;;  %13381 = vmatprep.subr.bf16.mxu0 %v16458_v53 }
 0x567   : > { %v4218_v7 = vld [vmem:[#allocation4 + $0xb4] sm:$0xff]  ;;  %v4220_v47 = vld [vmem:[#allocation4 + $0xcc] sm:$0xff]  ;;  %v3942_v22 = vld [vmem:[#allocation4 + $0xe0] sm:$0xff]  ;;  %v4411_v50 = vmul.f32 0.04, %v4379_v59  ;;  %v4180_v15 = vadd.f32 %v4140_v18, %v4100_v61  ;;  %v16485_v43 = vadd.f32 %v4216_v34, %v4176_v25  ;;  %3737 = vst.msk [vmem:[#allocation4 + $0x19a] sm:$0xff] %vm3706_vm1, %v3702_v32  ;;  %v16506_v42 = vadd.f32 %v16435_v10, %v16428_v36 }
 0x568   : > { %v3982_v49 = vld [vmem:[#allocation4 + $0xe1] sm:$0xff]  ;;  %v3757_v55 = vld [vmem:[#allocation4 + $0x16a] sm:$0xff]  ;;  %v16487_v38 = vadd.f32 %v4218_v7, %v4178_v46  ;;  %v4415_v11 = vmul.f32 0.04, %v4383_v1  ;;  %3734 = vst.msk [vmem:[#allocation4 + $0x172] sm:$0xff] %vm3706_vm1, %v3696_v58  ;;  %v3944_v61 = vld [vmem:[#allocation4 + $0xf8] sm:$0xff] }
 0x569   : > { %v4062_v26 = vld [vmem:[#allocation4 + $0xe2] sm:$0xff]  ;;  %v3777_v0 = vld [vmem:[#allocation4 + $0x16c] sm:$0x1]  ;;  %v3818_v60 = vld [vmem:[#allocation4 + $0x16b] sm:$0x1]  ;;  %v4022_v27 = vadd.f32 %v3982_v49, %v3942_v22  ;;  %3760 = vst.msk [vmem:[#allocation4 + $0x1ca] sm:$0xff] %vm3706_vm1, %v3757_v55  ;;  %v4447_v37 = vadd.f32 %v16392_v8, %v4411_v50  ;;  %v16498_v16 = vadd.f32 %v4220_v47, %v4180_v15  ;;  %v4324_v9 = vadd.f32 %v4292_v39, %v16485_v43  ;;  %v3704_v49 = vpop.xlane.xlu1 %3703 }
 0x56a   : > { %v4142_v13 = vld [vmem:[#allocation4 + $0xe3] sm:$0xff]  ;;  %3798 = vst.msk [vmem:[#allocation4 + $0x168] sm:$0x1] %vm3782_vm2, %v3777_v0  ;;  %3838 = vst.msk [vmem:[#allocation4 + $0x169] sm:$0x1] %vm3782_vm2, %v3818_v60  ;;  %v4384_v3 = vadd.f32 %v4352_v54, %v16485_v43  ;;  %v4294_v44 = vadd.f32 %v16485_v43, %v16428_v36  ;;  %v3984_v18 = vld [vmem:[#allocation4 + $0xf9] sm:$0xff]  ;;  %v4451_v10 = vadd.f32 %v16392_v8, %v4415_v11  ;;  %13382 = vmatpush3.bf16.msra.mxu0 %v16458_v53 }
 0x56b   : > { %v3856_v56 = vld [vmem:[#allocation4 + $0x148] sm:$0x1]  ;;  %v3896_v63 = vld [vmem:[#allocation4 + $0x147] sm:$0x1]  ;;  %v4102_v59 = vadd.f32 %v4062_v26, %v4022_v27  ;;  %v16517_v34 = vld [vmem:[%s18057_s3 + $0x210] sm:$0xff]   ;;  %9942 = vperm.xlu0 %14329, %v4447_v37   ;;  %v4024_v25 = vadd.f32 %v3984_v18, %v3944_v61  ;;  %v4296_v47 = vadd.f32 %v16487_v38, %v16485_v43  ;;  %v4356_v50 = vadd.f32 %v4324_v9, %v16487_v38  ;;  %v3700_v26 = vpop.xlane.xlu0 %3699 }
 0x56c   : > { %v16502_v62 = vld [vmem:[#allocation7 + $0x108] sm:$0xff]   ;;  %3876 = vst.msk [vmem:[#allocation4 + $0x14a] sm:$0x1] %vm3782_vm2, %v3856_v56  ;;  %3916 = vst.msk [vmem:[#allocation4 + $0x14b] sm:$0x1] %vm3782_vm2, %v3896_v63  ;;  %v4064_v46 = vld [vmem:[#allocation4 + $0xfa] sm:$0xff]  ;;  %12916 = vmatmul.mubr.bf16.vlgmr.msra.gmra.mrb[36].mxu1 %v16268_v21  ;;  %v4326_v54 = vadd.f32 %v4294_v44, %v16487_v38  ;;  %12728 = vmatmul.mubr.bf16.gmra.mrb[68].mxu0 %v16266_v48  ;;  %v4291_v48 = vadd.f32 %v16451_v5, %v16421_v23 }
 0x56d   : > { %v4222_v12 = vld [vmem:[#allocation4 + $0xe4] sm:$0xff]  ;;  %v4413_v1 = vmul.f32 0.04, %v4381_v57  ;;  %v4144_v7 = vld [vmem:[#allocation4 + $0xfb] sm:$0xff]  ;;  %v3819_v22 = vld [vmem:[#allocation4 + $0x183] sm:$0x1]  ;;  %v4182_v15 = vadd.f32 %v4142_v13, %v4102_v59  ;;  %9962 = vperm.xlu1 %14330, %v4451_v10   ;;  %12919 = vmatprep.mubr.bf16.mxu1 %v16284_v40  ;;  %v4104_v13 = vadd.f32 %v4064_v46, %v4024_v25  ;;  %v4328_v0 = vadd.f32 %v4296_v47, %v16498_v16 }
 0x56e   : > { %v3751_v36 = vld [vmem:[#allocation4 + $0x182] sm:$0xff]  ;;  %3839 = vst.msk [vmem:[#allocation4 + $0x181] sm:$0x1] %vm3782_vm2, %v3819_v22  ;;  %v3857_v53 = vld [vmem:[#allocation4 + $0x160] sm:$0x1]  ;;  %v4388_v60 = vadd.f32 %v4356_v50, %v16498_v16  ;;  %v4358_v58 = vadd.f32 %v4326_v54, %v16498_v16  ;;  %12948 = vmatpush3.bf16.msra.mxu1 %v16210_v4  ;;  %v4298_v63 = vadd.f32 %v16498_v16, %v16487_v38  ;;  %v16545_v37 = vld [vmem:[#allocation7 + $0x110] sm:$0xff]  }
 0x56f   : > { %v3778_v39 = vld [vmem:[#allocation4 + $0x184] sm:$0x1]  ;;  %3754 = vst.msk [vmem:[#allocation4 + $0x1b2] sm:$0xff] %vm3706_vm1, %v3751_v36  ;;  %v3897_v57 = vld [vmem:[#allocation4 + $0x15f] sm:$0x1]  ;;  %3738 = vst.msk [vmem:[#allocation4 + $0x1a2] sm:$0xff] %vm3706_vm1, %v3704_v49  ;;  %v16539_v32 = vadd.f32 %v4222_v12, %v4182_v15  ;;  %v4184_v11 = vadd.f32 %v4144_v7, %v4104_v13  ;;  %12949 = vmatprep.subr.bf16.mxu1 %v16502_v62  ;;  %12731 = vmatprep.mubr.bf16.mxu0 %v16268_v21 }
 0x570   : > { %3799 = vst.msk [vmem:[#allocation4 + $0x180] sm:$0x1] %vm3782_vm2, %v3778_v39  ;;  %v4416_v55 = vmul.f32 0.04, %v4384_v3  ;;  %3877 = vst.msk [vmem:[#allocation4 + $0x162] sm:$0x1] %vm3782_vm2, %v3857_v53  ;;  %v4449_v12 = vadd.f32 %v16392_v8, %v4413_v1  ;;  %v16554_v46 = vadd.f32 %v16491_v31, %v16453_v19  ;;  %13383 = vmatprep.subr.bf16.mxu0 %v16517_v34 }
 0x571   : > { %3736 = vst.msk [vmem:[#allocation4 + $0x18a] sm:$0xff] %vm3706_vm1, %v3700_v26  ;;  %v3937_v27 = vld [vmem:[#allocation4 + $0xa8] sm:$0xff]  ;;  %v4224_v9 = vld [vmem:[#allocation4 + $0xfc] sm:$0xff]  ;;  %v3946_v44 = vld [vmem:[#allocation4 + $0x110] sm:$0xff]  ;;  %v4420_v61 = vmul.f32 0.04, %v4388_v60  ;;  %v4390_v10 = vadd.f32 %v4358_v58, %v16539_v32  ;;  %v4360_v1 = vadd.f32 %v4328_v0, %v16539_v32  ;;  %v4330_v31 = vadd.f32 %v4298_v63, %v16539_v32  ;;  %13384 = vmatpush3.bf16.msra.mxu0 %v16517_v34 }
 0x572   : > { %3917 = vst.msk [vmem:[#allocation4 + $0x163] sm:$0x1] %vm3782_vm2, %v3897_v57  ;;  %v3977_v56 = vld [vmem:[#allocation4 + $0xa9] sm:$0xff]  ;;  %v4452_v23 = vadd.f32 %v16392_v8, %v4416_v55  ;;  %v3779_v4 = vld [vmem:[#allocation4 + $0x19c] sm:$0x1]  ;;  %v9604_v7 = vld [vmem:[#allocation3 + $0xae] sm:$0xff]  ;;  %v16561_v22 = vadd.f32 %v4224_v9, %v4184_v11  ;;  %12950 = vmatpush3.bf16.msra.mxu1 %v16502_v62  ;;  %v4354_v57 = vadd.f32 %v16506_v42, %v16485_v43 }
 0x573   : > { %v4017_v3 = vadd.f32 %v3977_v56, %v3937_v27  ;;  %v4057_v59 = vld [vmem:[#allocation4 + $0xaa] sm:$0xff]  ;;  %v3820_v18 = vld [vmem:[#allocation4 + $0x19b] sm:$0x1]  ;;  %3800 = vst.msk [vmem:[#allocation4 + $0x198] sm:$0x1] %vm3782_vm2, %v3779_v4  ;;  %v16559_v21 = vld [vmem:[#allocation4 + $0x172] sm:$0xff]  ;;  %v4456_v15 = vadd.f32 %v16392_v8, %v4420_v61  ;;  %v4300_v55 = vadd.f32 %v16539_v32, %v16498_v16  ;;  %v4323_v63 = vadd.f32 %v4291_v48, %v16453_v19 }
 0x574   : > { %v4137_v25 = vld [vmem:[#allocation4 + $0xab] sm:$0xff]  ;;  %3840 = vst.msk [vmem:[#allocation4 + $0x199] sm:$0x1] %vm3782_vm2, %v3820_v18  ;;  %v3858_v36 = vld [vmem:[#allocation4 + $0x178] sm:$0x1]  ;;  %9967 = vperm.xlu1 %14330, %v4452_v23   ;;  %v4392_v13 = vadd.f32 %v4360_v1, %v16561_v22  ;;  %12951 = vmatprep.subr.bf16.mxu1 %v16545_v37  ;;  %v4386_v11 = vadd.f32 %v4354_v57, %v16487_v38  ;;  %v3939_v1 = vld [vmem:[#allocation4 + $0xc0] sm:$0xff] }
 0x575   : > { %v9605_v47 = vld [vmem:[#allocation3 + $0xb6] sm:$0xff]  ;;  %v3898_v39 = vld [vmem:[#allocation4 + $0x177] sm:$0x1]  ;;  %v4097_v50 = vadd.f32 %v4057_v59, %v4017_v3  ;;  %3761 = vst.msk [vmem:[#allocation4 + $0x1d2] sm:$0xff] %vm3706_vm1, %v16559_v21  ;;  %v4422_v54 = vmul.f32 0.04, %v4390_v10  ;;  %9987 = vperm.xlu0 %14329, %v4456_v15   ;;  %12920 = vmatmul.mubr.bf16.gmra.mrb[40].mxu1 %v16288_v51  ;;  %v4362_v38 = vadd.f32 %v4330_v31, %v16561_v22 }
 0x576   : > { %3878 = vst.msk [vmem:[#allocation4 + $0x17a] sm:$0x1] %vm3782_vm2, %v3858_v36  ;;  %3918 = vst.msk [vmem:[#allocation4 + $0x17b] sm:$0x1] %vm3782_vm2, %v3898_v39  ;;  %v4217_v49 = vld [vmem:[#allocation4 + $0xac] sm:$0xff]  ;;  %v14486_v62 = vld [vmem:[#allocation7 + $0x118] sm:$0xff]   ;;  %12923 = vmatprep.mubr.bf16.mxu1 %v16293_v24  ;;  %v16594_v4 = vpack.c.bf16 %v9605_v47, %v9604_v7  ;;  %v4332_v36 = vadd.f32 %v4300_v55, %v16561_v22  ;;  %12732 = vmatmul.mubr.bf16.gmra.mrb[72].mxu0 %v16284_v40 }
 0x577   : > { %v3986_v26 = vld [vmem:[#allocation4 + $0x111] sm:$0xff]  ;;  %v4177_v0 = vadd.f32 %v4137_v25, %v4097_v50  ;;  %v3948_v27 = vld [vmem:[#allocation4 + $0x128] sm:$0xff]  ;;  %v4458_v16 = vadd.f32 %v16392_v8, %v4422_v54  ;;  %v3900_v34 = vld [vmem:[#allocation4 + $0x1a7] sm:$0x1]  ;;  %v4424_v59 = vmul.f32 0.04, %v4392_v13  ;;  %12952 = vmatpush3.bf16.msra.mxu1 %v16545_v37  ;;  %v4302_v31 = vadd.f32 %v16561_v22, %v16539_v32  ;;  %12735 = vmatprep.mubr.bf16.mxu0 %v16288_v51 }
 0x578   : > { %v4066_v53 = vld [vmem:[#allocation4 + $0x112] sm:$0xff]  ;;  %v4026_v60 = vadd.f32 %v3986_v26, %v3946_v44  ;;  %v3988_v56 = vld [vmem:[#allocation4 + $0x129] sm:$0xff]  ;;  %v3860_v42 = vld [vmem:[#allocation4 + $0x1a8] sm:$0x1]  ;;  %3920 = vst.msk [vmem:[#allocation4 + $0x1ab] sm:$0x1] %vm3782_vm2, %v3900_v34  ;;  %9952 = vperm.xlu1 %14330, %v4449_v12   ;;  %v4293_v12 = vadd.f32 %v16453_v19, %v16451_v5  ;;  %12953 = vmatprep.subr.bf16.mxu1 %v14486_v62 }
 0x579   : > { %v4146_v58 = vld [vmem:[#allocation4 + $0x113] sm:$0xff]  ;;  %v16583_v23 = vld [vmem:[#allocation4 + $0x18a] sm:$0xff]  ;;  %v4028_v9 = vadd.f32 %v3988_v56, %v3948_v27  ;;  %3880 = vst.msk [vmem:[#allocation4 + $0x1aa] sm:$0x1] %vm3782_vm2, %v3860_v42  ;;  %v16591_v44 = vadd.f32 %v4217_v49, %v4177_v0  ;;  %v4418_v18 = vmul.f32 0.04, %v4386_v11  ;;  %9997 = vperm.xlu0 %14329, %v4458_v16   ;;  %v4460_v40 = vadd.f32 %v16392_v8, %v4424_v59 }
 0x57a   : > { %v14492_v43 = vld [vmem:[%s18057_s3 + $0x218] sm:$0xff]   ;;  %3755 = vst.msk [vmem:[#allocation4 + $0x1ba] sm:$0xff] %vm3706_vm1, %v16583_v23  ;;  %v3859_v48 = vld [vmem:[#allocation4 + $0x190] sm:$0x1]  ;;  %v3899_v3 = vld [vmem:[#allocation4 + $0x18f] sm:$0x1]  ;;  %v4106_v61 = vadd.f32 %v4066_v53, %v4026_v60 }
 0x57b   : > { %3879 = vst.msk [vmem:[#allocation4 + $0x192] sm:$0x1] %vm3782_vm2, %v3859_v48  ;;  %3919 = vst.msk [vmem:[#allocation4 + $0x193] sm:$0x1] %vm3782_vm2, %v3899_v3  ;;  %v4068_v10 = vld [vmem:[#allocation4 + $0x12a] sm:$0xff]  ;;  %v4385_v7 = vadd.f32 %v16554_v46, %v16591_v44  ;;  %v3979_v50 = vld [vmem:[#allocation4 + $0xc1] sm:$0xff]  ;;  %v16613_v5 = vadd.f32 %v16392_v8, %v4418_v18  ;;  %v4355_v46 = vadd.f32 %v4323_v63, %v16591_v44  ;;  %13385 = vmatprep.subr.bf16.mxu0 %v14492_v43 }
 0x57c   : > { %v4148_v25 = vld [vmem:[#allocation4 + $0x12b] sm:$0xff]  ;;  %v4186_v47 = vadd.f32 %v4146_v58, %v4106_v61  ;;  %v4108_v39 = vadd.f32 %v4068_v10, %v4028_v9  ;;  %v16609_v15 = vld [vmem:[#allocation7 + $0x120] sm:$0xff]   ;;  %v4226_v37 = vld [vmem:[#allocation4 + $0x114] sm:$0xff]  ;;  %v4019_v54 = vadd.f32 %v3979_v50, %v3939_v1  ;;  %v4325_v51 = vadd.f32 %v4293_v12, %v16591_v44  ;;  %12954 = vmatpush3.bf16.msra.mxu1 %v14486_v62 }
 0x57d   : > { %v3950_v49 = vld [vmem:[#allocation4 + $0x140] sm:$0xff]  ;;  %v4417_v26 = vmul.f32 0.04, %v4385_v7  ;;  %v4228_v13 = vld [vmem:[#allocation4 + $0x12c] sm:$0xff]  ;;  %v3941_v58 = vld [vmem:[#allocation4 + $0xd8] sm:$0xff]  ;;  %v16621_v56 = vadd.f32 %v16591_v44, %v16453_v19  ;;  %13386 = vmatpush3.bf16.msra.mxu0 %v14492_v43  ;;  %12955 = vmatprep.subr.bf16.mxu1 %v16609_v15 }
 0x57e   : > { %v16616_v53 = vadd.f32 %v4226_v37, %v4186_v47  ;;  %v4188_v57 = vadd.f32 %v4148_v25, %v4108_v39  ;;  %v4059_v32 = vld [vmem:[#allocation4 + $0xc2] sm:$0xff]  ;;  %v3981_v27 = vld [vmem:[#allocation4 + $0xd9] sm:$0xff]  ;;  %10007 = vperm.xlu0 %14329, %v4460_v40   ;;  %12924 = vmatmul.mubr.bf16.gmra.mrb[44].mxu1 %v16297_v20  ;;  %v16644_v37 = vld [vmem:[#allocation7 + $0x130] sm:$0xff]  }
 0x57f   : > { %v3990_v55 = vld [vmem:[#allocation4 + $0x141] sm:$0xff]  ;;  %v4099_v0 = vadd.f32 %v4059_v32, %v4019_v54  ;;  %v4453_v63 = vadd.f32 %v16392_v8, %v4417_v26  ;;  %v3952_v43 = vld [vmem:[#allocation4 + $0x158] sm:$0xff]  ;;  %12927 = vmatprep.mubr.bf16.mxu1 %v16308_v14  ;;  %v4021_v25 = vadd.f32 %v3981_v27, %v3941_v58  ;;  %12736 = vmatmul.mubr.bf16.gmra.mrb[76].mxu0 %v16293_v24  ;;  %v3954_v27 = vld [vmem:[#allocation4 + $0x170] sm:$0xff] }
 0x580   : > { %v4030_v60 = vadd.f32 %v3990_v55, %v3950_v49  ;;  %v4394_v16 = vadd.f32 %v4362_v38, %v16616_v53  ;;  %v16625_v42 = vadd.f32 %v4228_v13, %v4188_v57  ;;  %v4364_v34 = vadd.f32 %v4332_v36, %v16616_v53  ;;  %v4139_v11 = vld [vmem:[#allocation4 + $0xc3] sm:$0xff]  ;;  %v3992_v59 = vld [vmem:[#allocation4 + $0x159] sm:$0xff]  ;;  %v3943_v55 = vld [vmem:[#allocation4 + $0xf0] sm:$0xff]  ;;  %12739 = vmatprep.mubr.bf16.mxu0 %v16297_v20 }
 0x581   : > { %v4070_v9 = vld [vmem:[#allocation4 + $0x142] sm:$0xff]  ;;  %v4179_v3 = vadd.f32 %v4139_v11, %v4099_v0  ;;  %v4334_v62 = vadd.f32 %v4302_v31, %v16616_v53  ;;  %9972 = vperm.xlu1 %14330, %v4453_v63   ;;  %v4032_v36 = vadd.f32 %v3992_v59, %v3952_v43  ;;  %v4061_v1 = vld [vmem:[#allocation4 + $0xda] sm:$0xff]  ;;  %v4304_v40 = vadd.f32 %v16616_v53, %v16561_v22  ;;  %v3983_v13 = vld [vmem:[#allocation4 + $0xf1] sm:$0xff] }
 0x582   : > { %v4150_v48 = vld [vmem:[#allocation4 + $0x143] sm:$0xff]  ;;  %v4110_v19 = vadd.f32 %v4070_v9, %v4030_v60  ;;  %v4426_v38 = vmul.f32 0.04, %v4394_v16  ;;  %v4396_v18 = vadd.f32 %v4364_v34, %v16625_v42  ;;  %v4072_v50 = vld [vmem:[#allocation4 + $0x15a] sm:$0xff]  ;;  %v4101_v57 = vadd.f32 %v4061_v1, %v4021_v25  ;;  %12956 = vmatpush3.bf16.msra.mxu1 %v16609_v15  ;;  %v3994_v63 = vld [vmem:[#allocation4 + $0x171] sm:$0xff] }
 0x583   : > { %v14490_v61 = vld [vmem:[#allocation7 + $0x128] sm:$0xff]   ;;  %v16636_v12 = vld [vmem:[%s18057_s3 + $0x220] sm:$0xff]   ;;  %v4366_v39 = vadd.f32 %v4334_v62, %v16625_v42  ;;  %v4112_v32 = vadd.f32 %v4072_v50, %v4032_v36  ;;  %v4336_v58 = vadd.f32 %v4304_v40, %v16625_v42  ;;  %v4063_v62 = vld [vmem:[#allocation4 + $0xf2] sm:$0xff]  ;;  %v4034_v43 = vadd.f32 %v3994_v63, %v3954_v27 }
 0x584   : > { %v4219_v10 = vld [vmem:[#allocation4 + $0xc4] sm:$0xff]  ;;  %v4190_v47 = vadd.f32 %v4150_v48, %v4110_v19  ;;  %v4152_v31 = vld [vmem:[#allocation4 + $0x15b] sm:$0xff]  ;;  %v4462_v54 = vadd.f32 %v16392_v8, %v4426_v38  ;;  %v4428_v49 = vmul.f32 0.04, %v4396_v18  ;;  %12957 = vmatprep.subr.bf16.mxu1 %v14490_v61  ;;  %13387 = vmatprep.subr.bf16.mxu0 %v16636_v12  ;;  %v4306_v25 = vadd.f32 %v16625_v42, %v16616_v53 }
 0x585   : > { %v16638_v7 = vadd.f32 %v4219_v10, %v4179_v3  ;;  %v4230_v26 = vld [vmem:[#allocation4 + $0x144] sm:$0xff]  ;;  %v4141_v22 = vld [vmem:[#allocation4 + $0xdb] sm:$0xff]  ;;  %9977 = vperm.xlu1 %14330, %v16613_v5   ;;  %v4192_v34 = vadd.f32 %v4152_v31, %v4112_v32  ;;  %v4154_v10 = vld [vmem:[#allocation4 + $0x173] sm:$0xff]  ;;  %v4114_v50 = vadd.f32 %v4034_v43, %v16559_v21  ;;  %13388 = vmatpush3.bf16.msra.mxu0 %v16636_v12 }
 0x586   : > { %v16650_v60 = vadd.f32 %v4230_v26, %v4190_v47  ;;  %10017 = vperm.xlu0 %14329, %v4462_v54   ;;  %v4464_v16 = vadd.f32 %v16392_v8, %v4428_v49  ;;  %v4181_v20 = vadd.f32 %v4141_v22, %v4101_v57  ;;  %v4221_v11 = vld [vmem:[#allocation4 + $0xdc] sm:$0xff]  ;;  %12958 = vmatpush3.bf16.msra.mxu1 %v14490_v61  ;;  %v3945_v36 = vld [vmem:[#allocation4 + $0x108] sm:$0xff]  ;;  %v4143_v61 = vld [vmem:[#allocation4 + $0xf3] sm:$0xff] }
 0x587   : > { %v4387_v0 = vadd.f32 %v4355_v46, %v16638_v7  ;;  %v4357_v24 = vadd.f32 %v4325_v51, %v16638_v7  ;;  %v4232_v9 = vld [vmem:[#allocation4 + $0x15c] sm:$0xff]  ;;  %v4023_v51 = vadd.f32 %v3983_v13, %v3943_v55  ;;  %v4327_v5 = vadd.f32 %v16621_v56, %v16638_v7  ;;  %12928 = vmatmul.mubr.bf16.gmra.mrb[48].mxu1 %v16312_v17  ;;  %v3985_v47 = vld [vmem:[#allocation4 + $0x109] sm:$0xff]  ;;  %v4223_v55 = vld [vmem:[#allocation4 + $0xf4] sm:$0xff] }
 0x588   : > { %v4398_v46 = vadd.f32 %v4366_v39, %v16650_v60  ;;  %v4368_v48 = vadd.f32 %v4336_v58, %v16650_v60  ;;  %v16659_v3 = vadd.f32 %v4221_v11, %v4181_v20  ;;  %v16661_v19 = vadd.f32 %v4232_v9, %v4192_v34  ;;  %12959 = vmatprep.subr.bf16.mxu1 %v16644_v37  ;;  %v3956_v31 = vld [vmem:[#allocation4 + $0x188] sm:$0xff]  ;;  %v4234_v21 = vld [vmem:[#allocation4 + $0x174] sm:$0xff]  ;;  %v3861_v11 = vld [vmem:[#allocation4 + $0x1c0] sm:$0x1] }
 0x589   : > { %v4419_v15 = vmul.f32 0.04, %v4387_v0  ;;  %v4103_v18 = vadd.f32 %v4063_v62, %v4023_v51  ;;  %v3996_v40 = vld [vmem:[#allocation4 + $0x189] sm:$0xff]  ;;  %v4338_v49 = vadd.f32 %v4306_v25, %v16650_v60  ;;  %12931 = vmatprep.mubr.bf16.mxu1 %v16321_v52  ;;  %v4194_v13 = vadd.f32 %v4154_v10, %v4114_v50  ;;  %12740 = vmatmul.mubr.bf16.gmra.mrb[80].mxu0 %v16308_v14  ;;  %v3987_v20 = vld [vmem:[#allocation4 + $0x121] sm:$0xff]  ;;  %v3901_v9 = vld [vmem:[#allocation4 + $0x1bf] sm:$0x1] }
 0x58a   : > { %v4430_v38 = vmul.f32 0.04, %v4398_v46  ;;  %10027 = vperm.xlu0 %14329, %v4464_v16   ;;  %v4389_v39 = vadd.f32 %v4357_v24, %v16659_v3  ;;  %v4400_v56 = vadd.f32 %v4368_v48, %v16661_v19  ;;  %v4359_v1 = vadd.f32 %v4327_v5, %v16659_v3  ;;  %v16680_v26 = vld [vmem:[%s18057_s3 + $0x228] sm:$0xff]   ;;  %12960 = vmatpush3.bf16.msra.mxu1 %v16644_v37  ;;  %v3947_v16 = vld [vmem:[#allocation4 + $0x120] sm:$0xff]  ;;  %v3862_v12 = vld [vmem:[#allocation4 + $0x1d8] sm:$0x1] }
 0x58b   : > { %v4455_v59 = vadd.f32 %v16392_v8, %v4419_v15  ;;  %v4183_v53 = vadd.f32 %v4143_v61, %v4103_v18  ;;  %v4025_v0 = vadd.f32 %v3985_v47, %v3945_v36  ;;  %v4370_v24 = vadd.f32 %v4338_v49, %v16661_v19  ;;  %v4065_v58 = vld [vmem:[#allocation4 + $0x10a] sm:$0xff]  ;;  %12743 = vmatprep.mubr.bf16.mxu0 %v16312_v17  ;;  %v3958_v10 = vld [vmem:[#allocation4 + $0x1a0] sm:$0xff]  ;;  %v14496_v61 = vld [vmem:[#allocation7 + $0x138] sm:$0xff]  }
 0x58c   : > { %v4466_v54 = vadd.f32 %v16392_v8, %v4430_v38  ;;  %v4421_v57 = vmul.f32 0.04, %v4389_v39  ;;  %v4432_v32 = vmul.f32 0.04, %v4400_v56  ;;  %v4297_v27 = vadd.f32 %v16638_v7, %v16591_v44  ;;  %v4156_v46 = vld [vmem:[#allocation4 + $0x18b] sm:$0xff]  ;;  %v4067_v56 = vld [vmem:[#allocation4 + $0x122] sm:$0xff]  ;;  %13389 = vmatprep.subr.bf16.mxu0 %v16680_v26  ;;  %12961 = vmatprep.subr.bf16.mxu1 %v14496_v61 }
 0x58d   : > { %9982 = vperm.xlu1 %14330, %v4455_v59   ;;  %v16684_v22 = vadd.f32 %v4223_v55, %v4183_v53  ;;  %v4036_v63 = vadd.f32 %v3996_v40, %v3956_v31  ;;  %v16692_v15 = vadd.f32 %v4234_v21, %v4194_v13  ;;  %v4105_v37 = vadd.f32 %v4065_v58, %v4025_v0  ;;  %v4145_v51 = vld [vmem:[#allocation4 + $0x10b] sm:$0xff]  ;;  %v3989_v53 = vld [vmem:[#allocation4 + $0x139] sm:$0xff]  ;;  %v3902_v49 = vld [vmem:[#allocation4 + $0x1d7] sm:$0x1] }
 0x58e   : > { %10037 = vperm.xlu0 %14329, %v4466_v54   ;;  %v4457_v34 = vadd.f32 %v16392_v8, %v4421_v57  ;;  %v4468_v14 = vadd.f32 %v16392_v8, %v4432_v32  ;;  %v4329_v44 = vadd.f32 %v4297_v27, %v16659_v3  ;;  %v4308_v17 = vadd.f32 %v16650_v60, %v16625_v42  ;;  %v4225_v59 = vld [vmem:[#allocation4 + $0x10c] sm:$0xff]  ;;  %v3949_v54 = vld [vmem:[#allocation4 + $0x138] sm:$0xff]  ;;  %v4147_v13 = vld [vmem:[#allocation4 + $0x123] sm:$0xff] }
 0x58f   : > { %v4391_v48 = vadd.f32 %v4359_v1, %v16684_v22  ;;  %v4116_v62 = vadd.f32 %v4036_v63, %v16583_v23  ;;  %3881 = vst.msk [vmem:[#allocation4 + $0x1c2] sm:$0x1] %vm3782_vm2, %v3861_v11  ;;  %3921 = vst.msk [vmem:[#allocation4 + $0x1c3] sm:$0x1] %vm3782_vm2, %v3901_v9  ;;  %v4402_v5 = vadd.f32 %v4370_v24, %v16692_v15  ;;  %v3998_v23 = vld [vmem:[#allocation4 + $0x1a1] sm:$0xff]  ;;  %v4236_v47 = vld [vmem:[#allocation4 + $0x18c] sm:$0xff]  ;;  %12932 = vmatmul.mubr.bf16.gmra.mrb[52].mxu1 %v16323_v45 }
 0x590   : > { %v4185_v43 = vadd.f32 %v4145_v51, %v4105_v37  ;;  %v4027_v38 = vadd.f32 %v3987_v20, %v3947_v16  ;;  %v4299_v18 = vadd.f32 %v16659_v3, %v16638_v7  ;;  %v4361_v42 = vadd.f32 %v4329_v44, %v16684_v22  ;;  %v16712_v7 = vld [vmem:[%s18057_s3 + $0x230] sm:$0xff]   ;;  %12935 = vmatprep.mubr.bf16.mxu1 %v16325_v30  ;;  %v3960_v0 = vld [vmem:[#allocation4 + $0x1b8] sm:$0xff]  ;;  %v4078_v20 = vld [vmem:[#allocation4 + $0x1a2] sm:$0xff] }
 0x591   : > { %9992 = vperm.xlu1 %14330, %v4457_v34   ;;  %v4423_v25 = vmul.f32 0.04, %v4391_v48  ;;  %v4196_v36 = vadd.f32 %v4156_v46, %v4116_v62  ;;  %v4340_v39 = vadd.f32 %v4308_v17, %v16661_v19  ;;  %v4434_v1 = vmul.f32 0.04, %v4402_v5  ;;  %3882 = vst.msk [vmem:[#allocation4 + $0x1da] sm:$0x1] %vm3782_vm2, %v3862_v12  ;;  %13390 = vmatpush3.bf16.msra.mxu0 %v16680_v26 }
 0x592   : > { %10047 = vperm.xlu0 %14329, %v4468_v14   ;;  %v16714_v50 = vadd.f32 %v4225_v59, %v4185_v43  ;;  %v4107_v31 = vadd.f32 %v4067_v56, %v4027_v38  ;;  %v4331_v40 = vadd.f32 %v4299_v18, %v16684_v22  ;;  %v4038_v21 = vadd.f32 %v3998_v23, %v3958_v10  ;;  %v4000_v24 = vld [vmem:[#allocation4 + $0x1b9] sm:$0xff]  ;;  %v4158_v34 = vld [vmem:[#allocation4 + $0x1a3] sm:$0xff] }
 0x593   : > { %v4459_v57 = vadd.f32 %v16392_v8, %v4423_v25  ;;  %v16720_v32 = vadd.f32 %v4236_v47, %v4196_v36  ;;  %v4372_v55 = vadd.f32 %v4340_v39, %v16692_v15  ;;  %3922 = vst.msk [vmem:[#allocation4 + $0x1db] sm:$0x1] %vm3782_vm2, %v3902_v49  ;;  %v4470_v58 = vadd.f32 %v16392_v8, %v4434_v1  ;;  %v4227_v37 = vld [vmem:[#allocation4 + $0x124] sm:$0xff]  ;;  %v4069_v51 = vld [vmem:[#allocation4 + $0x13a] sm:$0xff]  ;;  %v3951_v25 = vld [vmem:[#allocation4 + $0x150] sm:$0xff] }
 0x594   : > { %v4393_v27 = vadd.f32 %v4361_v42, %v16714_v50  ;;  %v4187_v63 = vadd.f32 %v4147_v13, %v4107_v31  ;;  %v4363_v16 = vadd.f32 %v4331_v40, %v16714_v50  ;;  %12744 = vmatmul.mubr.bf16.gmra.mrb[84].mxu0 %v16321_v52  ;;  %v4118_v46 = vadd.f32 %v4078_v20, %v4038_v21  ;;  %v4238_v48 = vld [vmem:[#allocation4 + $0x1a4] sm:$0xff]  ;;  %v4149_v59 = vld [vmem:[#allocation4 + $0x13b] sm:$0xff]  ;;  %v3991_v42 = vld [vmem:[#allocation4 + $0x151] sm:$0xff] }
 0x595   : > { %10002 = vperm.xlu1 %14330, %v4459_v57   ;;  %v4404_v14 = vadd.f32 %v4372_v55, %v16720_v32  ;;  %v4310_v11 = vadd.f32 %v16661_v19, %v16650_v60  ;;  %v4029_v26 = vadd.f32 %v3989_v53, %v3949_v54  ;;  %v4301_v44 = vadd.f32 %v16684_v22, %v16659_v3  ;;  %v4080_v60 = vld [vmem:[#allocation4 + $0x1ba] sm:$0xff]  ;;  %v16742_v18 = vld [vmem:[%s18060_s6 + $0x6] ss:$0 sm:$0xff]  ;;  %v3780_v36 = vld [vmem:[#allocation4 + $0x1b4] sm:$0x1] }
 0x596   : > { %10057 = vperm.xlu0 %14329, %v4470_v58   ;;  %v4425_v8 = vmul.f32 0.04, %v4393_v27  ;;  %v16732_v9 = vadd.f32 %v4227_v37, %v4187_v63  ;;  %v4040_v62 = vadd.f32 %v4000_v24, %v3960_v0  ;;  %12747 = vmatprep.mubr.bf16.mxu0 %v16323_v45  ;;  %v4198_v17 = vadd.f32 %v4158_v34, %v4118_v46  ;;  %v4160_v38 = vld [vmem:[#allocation4 + $0x1bb] sm:$0xff]  ;;  %v3962_v1 = vld [vmem:[#allocation4 + $0x1d0] sm:$0xff]  ;;  %v3953_v21 = vld [vmem:[#allocation4 + $0x168] sm:$0xff] }
 0x597   : > { %v4436_v52 = vmul.f32 0.04, %v4404_v14  ;;  %v4342_v5 = vadd.f32 %v4310_v11, %v16692_v15  ;;  %v4109_v43 = vadd.f32 %v4069_v51, %v4029_v26  ;;  %13391 = vmatprep.subr.bf16.mxu0 %v16712_v7  ;;  %v4333_v10 = vadd.f32 %v4301_v44, %v16714_v50  ;;  %12962 = vmatpush3.bf16.msra.mxu1 %v14496_v61  ;;  %v4002_v31 = vld [vmem:[#allocation4 + $0x1d1] sm:$0xff]  ;;  %v16759_v61 = vld [vmem:[%s18057_s3 + $0x100] sm:$0xff]   ;;  %v3993_v0 = vld [vmem:[#allocation4 + $0x169] sm:$0xff] }
 0x598   : > { %v4461_v3 = vadd.f32 %v16742_v18, %v4425_v8  ;;  %v4395_v45 = vadd.f32 %v4363_v16, %v16732_v9  ;;  %v4120_v23 = vadd.f32 %v4080_v60, %v4040_v62  ;;  %v4278_v39 = vadd.f32 %v4238_v48, %v4198_v17  ;;  %12936 = vmatmul.mubr.bf16.gmra.mrb[56].mxu1 %v16342_v6  ;;  %v3821_v40 = vld [vmem:[#allocation4 + $0x1b3] sm:$0x1]  ;;  %v16754_v54 = vld [vmem:[%s18057_s3 + $0x238] sm:$0xff]   ;;  %v3781_v20 = vld [vmem:[#allocation4 + $0x1cc] sm:$0x1] }
 0x599   : > { %v4472_v47 = vadd.f32 %v16742_v18, %v4436_v52  ;;  %v4374_v56 = vadd.f32 %v4342_v5, %v16720_v32  ;;  %v4189_v12 = vadd.f32 %v4149_v59, %v4109_v43  ;;  %3801 = vst.msk [vmem:[#allocation4 + $0x1b0] sm:$0x1] %vm3782_vm2, %v3780_v36  ;;  %v4229_v49 = vld [vmem:[#allocation4 + $0x13c] sm:$0xff]  ;;  %v4365_v57 = vadd.f32 %v4333_v10, %v16732_v9  ;;  %v3822_v34 = vld [vmem:[#allocation4 + $0x1cb] sm:$0x1]  ;;  %v4071_v46 = vld [vmem:[#allocation4 + $0x152] sm:$0xff] }
 0x59a   : > { %10012 = vperm.xlu1 %14330, %v4461_v3   ;;  %v4427_v53 = vmul.f32 0.04, %v4395_v45  ;;  %v4200_v55 = vadd.f32 %v4160_v38, %v4120_v23  ;;  %v4312_v13 = vadd.f32 %v16692_v15, %v16661_v19  ;;  %12939 = vmatprep.mubr.bf16.mxu1 %v16344_v2  ;;  %3841 = vst.msk [vmem:[#allocation4 + $0x1b1] sm:$0x1] %vm3782_vm2, %v3821_v40  ;;  %v4240_v27 = vld [vmem:[#allocation4 + $0x1bc] sm:$0xff]  ;;  %v4082_v51 = vld [vmem:[#allocation4 + $0x1d2] sm:$0xff] }
 0x59b   : > { %10067 = vperm.xlu0 %14329, %v4472_v47   ;;  %v4406_v24 = vadd.f32 %v4374_v56, %v4278_v39  ;;  %v16766_v58 = vadd.f32 %v4229_v49, %v4189_v12  ;;  %v4031_v63 = vadd.f32 %v3991_v42, %v3951_v25  ;;  %v4303_v16 = vadd.f32 %v16714_v50, %v16684_v22  ;;  %v4162_v44 = vld [vmem:[#allocation4 + $0x1d3] sm:$0xff]  ;;  %v3955_v43 = vld [vmem:[#allocation4 + $0x180] sm:$0xff]  ;;  %v4073_v10 = vld [vmem:[#allocation4 + $0x16a] sm:$0xff] }
 0x59c   : > { %v4463_v14 = vadd.f32 %v16742_v18, %v4427_v53  ;;  %v4280_v19 = vadd.f32 %v4240_v27, %v4200_v55  ;;  %v4344_v37 = vadd.f32 %v4312_v13, %v16720_v32  ;;  %v4042_v11 = vadd.f32 %v4002_v31, %v3962_v1  ;;  %12748 = vmatmul.mubr.bf16.gmra.mrb[88].mxu0 %v16325_v30  ;;  %v4151_v52 = vld [vmem:[#allocation4 + $0x153] sm:$0xff]  ;;  %v3995_v59 = vld [vmem:[#allocation4 + $0x181] sm:$0xff] }
 0x59d   : > { %3802 = vst.msk [vmem:[#allocation4 + $0x1c8] sm:$0x1] %vm3782_vm2, %v3781_v20  ;;  %3842 = vst.msk [vmem:[#allocation4 + $0x1c9] sm:$0x1] %vm3782_vm2, %v3822_v34  ;;  %v4438_v26 = vmul.f32 0.04, %v4406_v24  ;;  %v4397_v8 = vadd.f32 %v4365_v57, %v16766_v58  ;;  %v4111_v48 = vadd.f32 %v4071_v46, %v4031_v63  ;;  %v4335_v22 = vadd.f32 %v4303_v16, %v16732_v9 }
 0x59e   : > { %12751 = vmatprep.mubr.bf16.mxu0 %v16342_v6  ;;  %13392 = vmatpush3.bf16.msra.mxu0 %v16712_v7  ;;  %v4376_v62 = vadd.f32 %v4344_v37, %v4278_v39  ;;  %v4122_v30 = vadd.f32 %v4082_v51, %v4042_v11  ;;  %v4314_v17 = vadd.f32 %v16720_v32, %v16692_v15  ;;  %v4231_v7 = vld [vmem:[#allocation4 + $0x154] sm:$0xff]  ;;  %v4153_v15 = vld [vmem:[#allocation4 + $0x16b] sm:$0xff]  ;;  %v4075_v55 = vld [vmem:[#allocation4 + $0x182] sm:$0xff] }
 0x59f   : > { %10022 = vperm.xlu1 %14330, %v4463_v14   ;;  %v4033_v5 = vadd.f32 %v3993_v0, %v3953_v21  ;;  %v4474_v60 = vadd.f32 %v16742_v18, %v4438_v26  ;;  %v4429_v38 = vmul.f32 0.04, %v4397_v8  ;;  %v4191_v3 = vadd.f32 %v4151_v52, %v4111_v48  ;;  %13393 = vmatprep.subr.bf16.mxu0 %v16754_v54  ;;  %v4242_v47 = vld [vmem:[#allocation4 + $0x1d4] sm:$0xff]  ;;  %v4233_v21 = vld [vmem:[#allocation4 + $0x16c] sm:$0xff]  ;;  %v4155_v14 = vld [vmem:[#allocation4 + $0x183] sm:$0xff] }
 0x5a0   : > { %v4367_v45 = vadd.f32 %v4335_v22, %v16766_v58  ;;  %12995 = vmatprep.subr.bf16.mxu1 %v16759_v61  ;;  %v4408_v6 = vadd.f32 %v4376_v62, %v4280_v19  ;;  %v4202_v23 = vadd.f32 %v4162_v44, %v4122_v30  ;;  %v4346_v25 = vadd.f32 %v4314_v17, %v4278_v39  ;;  %v3957_v1 = vld [vmem:[#allocation4 + $0x198] sm:$0xff]  ;;  %v4235_v8 = vld [vmem:[#allocation4 + $0x184] sm:$0xff] }
 0x5a1   : > { %v4113_v42 = vadd.f32 %v4073_v10, %v4033_v5  ;;  %10077 = vperm.xlu0 %14329, %v4474_v60   ;;  %v4465_v32 = vadd.f32 %v16742_v18, %v4429_v38  ;;  %v4271_v36 = vadd.f32 %v4231_v7, %v4191_v3  ;;  %v4305_v56 = vadd.f32 %v16732_v9, %v16714_v50  ;;  %v3997_v31 = vld [vmem:[#allocation4 + $0x199] sm:$0xff]  ;;  %v3959_v27 = vld [vmem:[#allocation4 + $0x1b0] sm:$0xff] }
 0x5a2   : > { %v4035_v12 = vadd.f32 %v3995_v59, %v3955_v43  ;;  %v4440_v40 = vmul.f32 0.04, %v4408_v6  ;;  %v4282_v53 = vadd.f32 %v4242_v47, %v4202_v23  ;;  %v4378_v49 = vadd.f32 %v4346_v25, %v4280_v19  ;;  %13394 = vmatpush3.bf16.msra.mxu0 %v16754_v54  ;;  %v3999_v63 = vld [vmem:[#allocation4 + $0x1b1] sm:$0xff]  ;;  %v4077_v11 = vld [vmem:[#allocation4 + $0x19a] sm:$0xff]  ;;  %v18100_v47 = vld [vmem:[#allocation12_spill] sm:$0xff] }
 0x5a3   : > { %v4193_v57 = vadd.f32 %v4153_v15, %v4113_v42  ;;  %v18096_v39 = vpack.c.bf16 %v16301_v29, %v16299_v33  ;;  %10032 = vperm.xlu1 %14330, %v4465_v32   ;;  %v4399_v13 = vadd.f32 %v4367_v45, %v4271_v36  ;;  %v4337_v0 = vadd.f32 %v4305_v56, %v16766_v58  ;;  %v4157_v17 = vld [vmem:[#allocation4 + $0x19b] sm:$0xff]  ;;  %v4159_v10 = vld [vmem:[#allocation4 + $0x1b3] sm:$0xff] }
 0x5a4   : > { %v4115_v50 = vadd.f32 %v4075_v55, %v4035_v12  ;;  %v4307_v24 = vadd.f32 %v16766_v58, %v16732_v9  ;;  %v4476_v16 = vadd.f32 %v16742_v18, %v4440_v40  ;;  %v4410_v20 = vadd.f32 %v4378_v49, %v4282_v53  ;;  %12752 = vmatmul.mubr.bf16.gmra.mrb[92].mxu0 %v16344_v2  ;;  %v4079_v2 = vld [vmem:[#allocation4 + $0x1b2] sm:$0xff]  ;;  %v4237_v45 = vld [vmem:[#allocation4 + $0x19c] sm:$0xff]  ;;  %v4081_v12 = vld [vmem:[#allocation4 + $0x1ca] sm:$0xff] }
 0x5a5   : > { %12940 = vmatmul.mubr.bf16.gmra.mrb[60].mxu1 %v18096_v39  ;;  %v4273_v34 = vadd.f32 %v4233_v21, %v4193_v57  ;;  %v18097_v33 = vpack.c.bf16 %v16334_v41, %v16332_v28  ;;  %v4037_v29 = vadd.f32 %v3997_v31, %v3957_v1  ;;  %v4431_v54 = vmul.f32 0.04, %v4399_v13  ;;  %13395 = vmatprep.mubr.bf16.mxu0 %v16406_v35  ;;  %v3961_v28 = vld [vmem:[#allocation4 + $0x1c8] sm:$0xff]  ;;  %v9606_v38 = vld [vmem:[#allocation3 + $0xc6] sm:$0xff]  ;;  %v9607_v23 = vld [vmem:[#allocation3 + $0xce] sm:$0xff] }
 0x5a6   : > { %v4369_v19 = vadd.f32 %v4337_v0, %v4271_v36  ;;  %v4195_v37 = vadd.f32 %v4155_v14, %v4115_v50  ;;  %v4339_v46 = vadd.f32 %v4307_v24, %v4271_v36  ;;  %v18098_v9 = vmov 0.0|0.0   ;;  %10087 = vperm.xlu0 %14329, %v4476_v16   ;;  %v4001_v41 = vld [vmem:[#allocation4 + $0x1c9] sm:$0xff]  ;;  %v4239_v40 = vld [vmem:[#allocation4 + $0x1b4] sm:$0xff] }
 0x5a7   : > { %12943 = vmatprep.mubr.bf16.mxu1 %v18097_v33  ;;  %13486 = vmatprep.subr.bf16.mxu0 %v18098_v9  ;;  %v4442_v26 = vmul.f32 0.04, %v4410_v20  ;;  %v4117_v48 = vadd.f32 %v4077_v11, %v4037_v29  ;;  %v4309_v22 = vadd.f32 %v4271_v36, %v16766_v58  ;;  %v4039_v51 = vadd.f32 %v3999_v63, %v3959_v27  ;;  %v18099_v32 = vld [vmem:[#allocation13_spill] sm:$0xff]  ;;  %v18102_v49 = vld [vmem:[#allocation14_spill] sm:$0xff] }
 0x5a8   : > { %v4467_v44 = vadd.f32 %v16742_v18, %v4431_v54  ;;  %v4401_v62 = vadd.f32 %v4369_v19, %v4273_v34  ;;  %v4275_v52 = vadd.f32 %v4235_v8, %v4195_v37  ;;  %v4371_v30 = vadd.f32 %v4339_v46, %v4273_v34  ;;  %v4161_v39 = vld [vmem:[#allocation4 + $0x1cb] sm:$0xff]  ;;  %v6896_v24 = vld [vmem:[#allocation3 + $0x63] sm:$0xff]  ;;  %v6897_v27 = vld [vmem:[#allocation3 + $0x6b] sm:$0xff] }
 0x5a9   : > { %v4478_v5 = vadd.f32 %v16742_v18, %v4442_v26  ;;  %v4197_v43 = vadd.f32 %v4157_v17, %v4117_v48  ;;  %v4341_v59 = vadd.f32 %v4309_v22, %v4273_v34  ;;  %v4119_v60 = vadd.f32 %v4079_v2, %v4039_v51  ;;  %v6898_v16 = vld [vmem:[#allocation3 + $0x7b] sm:$0xff]  ;;  %v6899_v20 = vld [vmem:[#allocation3 + $0x83] sm:$0xff]  ;;  %v6902_v2 = vld [vmem:[#allocation3 + $0xab] sm:$0xff] }
 0x5aa   : > { %10042 = vperm.xlu1 %14330, %v4467_v44   ;;  %v4433_v58 = vmul.f32 0.04, %v4401_v62  ;;  %v4403_v3 = vadd.f32 %v4371_v30, %v4275_v52  ;;  %v4311_v6 = vadd.f32 %v4273_v34, %v4271_v36  ;;  %v4041_v7 = vadd.f32 %v4001_v41, %v3961_v28  ;;  %v9608_v54 = vld [vmem:[#allocation3 + $0xde] sm:$0xff]  ;;  %v9609_v11 = vld [vmem:[#allocation3 + $0xe6] sm:$0xff]  ;;  %v9610_v48 = vld [vmem:[#allocation3 + $0xf6] sm:$0xff] }
 0x5ab   : > { %10097 = vperm.xlu0 %14329, %v4478_v5   ;;  %v4277_v25 = vadd.f32 %v4237_v45, %v4197_v43  ;;  %v4373_v42 = vadd.f32 %v4341_v59, %v4275_v52  ;;  %v4199_v15 = vadd.f32 %v4159_v10, %v4119_v60  ;;  %v18101_v56 = vpack.c.bf16 %v18099_v32, %v18100_v47  ;;  %v14500_v46 = vld [vmem:[%s18057_s3 + $0x108] sm:$0xff]   ;;  %v9612_v60 = vld [vmem:[#allocation3 + $0x10e] sm:$0xff]  ;;  %v9614_v45 = vld [vmem:[#allocation3 + $0x126] sm:$0xff] }
 0x5ac   : > { %v4469_v1 = vadd.f32 %v16742_v18, %v4433_v58  ;;  %v4435_v31 = vmul.f32 0.04, %v4403_v3  ;;  %v4343_v53 = vadd.f32 %v4311_v6, %v4275_v52  ;;  %v4121_v57 = vadd.f32 %v4081_v12, %v4041_v7  ;;  %13396 = vmatmul.mubr.bf16.vlgmr.msra.gmra.mrb[96].mxu0 %v16594_v4  ;;  %v9611_v22 = vld [vmem:[#allocation3 + $0xfe] sm:$0xff]  ;;  %v6900_v30 = vld [vmem:[#allocation3 + $0x93] sm:$0xff]  ;;  %v14502_v58 = vld [vmem:[%s18057_s3 + $0x118] sm:$0xff]  }
 0x5ad   : > { %12944 = vmatmul.mubr.bf16.gmra.mrb[64].mxu1 %v18101_v56  ;;  %v4405_v36 = vadd.f32 %v4373_v42, %v4277_v25  ;;  %v4279_v55 = vadd.f32 %v4239_v40, %v4199_v15  ;;  %v4313_v13 = vadd.f32 %v4275_v52, %v4273_v34  ;;  %v16810_v21 = vpack.c.bf16 %v9607_v23, %v9606_v38  ;;  %v4241_v34 = vld [vmem:[#allocation4 + $0x1cc] sm:$0xff]  ;;  %v6903_v5 = vld [vmem:[#allocation3 + $0xb3] sm:$0xff]  ;;  %v6905_v32 = vld [vmem:[#allocation3 + $0xcb] sm:$0xff] }
 0x5ae   : > { %12963 = vmatprep.mubr.bf16.mxu1 %v18102_v49  ;;  %10052 = vperm.xlu1 %14330, %v4469_v1   ;;  %v4375_v0 = vadd.f32 %v4343_v53, %v4277_v25  ;;  %v4201_v50 = vadd.f32 %v4161_v39, %v4121_v57  ;;  %v4471_v14 = vadd.f32 %v16742_v18, %v4435_v31  ;;  %v14501_v52 = vld [vmem:[%s18057_s3 + $0x110] sm:$0xff]   ;;  %v9613_v38 = vld [vmem:[#allocation3 + $0x116] sm:$0xff]  ;;  %v9615_v10 = vld [vmem:[#allocation3 + $0x12e] sm:$0xff] }
 0x5af   : > { %v4345_v63 = vadd.f32 %v4313_v13, %v4277_v25  ;;  %13399 = vmatprep.mubr.bf16.mxu0 %v16810_v21  ;;  %v4437_v33 = vmul.f32 0.04, %v4405_v36  ;;  %v16815_v37 = vpack.c.bf16 %v6897_v27, %v6896_v24  ;;  %v16820_v8 = vpack.c.bf16 %v6899_v20, %v6898_v16  ;;  %v6901_v17 = vld [vmem:[#allocation3 + $0x9b] sm:$0xff]  ;;  %v16850_v25 = vpop.f32.mrb[32].mxu0  ;;  %v14503_v42 = vld [vmem:[%s18057_s3 + $0x120] sm:$0xff]   ;;  %v6904_v15 = vld [vmem:[#allocation3 + $0xc3] sm:$0xff] }
 0x5b0   : > { %v4407_v29 = vadd.f32 %v4375_v0, %v4279_v55  ;;  %v4281_v26 = vadd.f32 %v4241_v34, %v4201_v50  ;;  %v16826_v44 = vpack.c.bf16 %v9609_v11, %v9608_v54  ;;  %v16828_v62 = vpack.c.bf16 %v9611_v22, %v9610_v48  ;;  %18103 = vst [vmem:[#allocation13_spill] sm:$0xff] %v16850_v25  ;;  %v6906_v47 = vld [vmem:[#allocation3 + $0xdb] sm:$0xff]  ;;  %v6907_v56 = vld [vmem:[#allocation3 + $0xe3] sm:$0xff]  ;;  %v6908_v27 = vld [vmem:[#allocation3 + $0xf3] sm:$0xff] }
 0x5b1   : > { %v4377_v19 = vadd.f32 %v4345_v63, %v4279_v55  ;;  %v4473_v51 = vadd.f32 %v16742_v18, %v4437_v33  ;;  %v16836_v59 = vpack.c.bf16 %v6901_v17, %v6900_v30  ;;  %v16841_v3 = vpack.c.bf16 %v6903_v5, %v6902_v2  ;;  %v9616_v40 = vld [vmem:[#allocation3 + $0x13e] sm:$0xff]  ;;  %v9617_v53 = vld [vmem:[#allocation3 + $0x146] sm:$0xff]  ;;  %v9618_v55 = vld [vmem:[#allocation3 + $0x156] sm:$0xff] }
 0x5b2   : > { %10062 = vperm.xlu1 %14330, %v4471_v14   ;;  %v4439_v28 = vmul.f32 0.04, %v4407_v29  ;;  %v16846_v7 = vpack.c.bf16 %v9613_v38, %v9612_v60  ;;  %v16848_v23 = vpack.c.bf16 %v9615_v10, %v9614_v45  ;;  %v16863_v31 = vpack.c.bf16 %v6905_v32, %v6904_v15  ;;  %v14504_v57 = vld [vmem:[%s18057_s3 + $0x128] sm:$0xff]   ;;  %v14505_v24 = vld [vmem:[%s18057_s3 + $0x130] sm:$0xff]   ;;  %v6910_v20 = vld [vmem:[#allocation3 + $0x10b] sm:$0xff] }
 0x5b3   : > { %v4409_v41 = vadd.f32 %v4377_v19, %v4281_v26  ;;  %v16868_v36 = vpack.c.bf16 %v6907_v56, %v6906_v47  ;;  %v9619_v39 = vld [vmem:[#allocation3 + $0x15e] sm:$0xff]  ;;  %v16872_v13 = vpack.c.bf16 %v9617_v53, %v9616_v40  ;;  %v6911_v14 = vld [vmem:[#allocation3 + $0x113] sm:$0xff]  ;;  %v6918_v10 = vld [vmem:[#allocation3 + $0x16b] sm:$0xff] }
 0x5b4   : > { %13400 = vmatmul.mubr.bf16.gmra.mrb[100].mxu0 %v16826_v44  ;;  %v16874_v0 = vpack.c.bf16 %v9619_v39, %v9618_v55  ;;  %v6909_v63 = vld [vmem:[#allocation3 + $0xfb] sm:$0xff]  ;;  %v9620_v34 = vld [vmem:[#allocation3 + $0x16e] sm:$0xff]  ;;  %v16894_v11 = vpack.c.bf16 %v6911_v14, %v6910_v20  ;;  %v6915_v30 = vld [vmem:[#allocation3 + $0x143] sm:$0xff] }
 0x5b5   : > { %12964 = vmatmul.mubr.bf16.vlgmr.msra.gmra.mrb[4].mxu1 %v16815_v37  ;;  %13403 = vmatprep.mubr.bf16.mxu0 %v16828_v62  ;;  %v4441_v43 = vmul.f32 0.04, %v4409_v41  ;;  %v16889_v54 = vpack.c.bf16 %v6909_v63, %v6908_v27  ;;  %v9621_v19 = vld [vmem:[#allocation3 + $0x176] sm:$0xff]  ;;  %v6920_v40 = vld [vmem:[#allocation3 + $0x183] sm:$0xff]  ;;  %v6921_v53 = vld [vmem:[#allocation3 + $0x18b] sm:$0xff] }
 0x5b6   : > { %12967 = vmatprep.mubr.bf16.mxu1 %v16820_v8  ;;  %12996 = vmatpush3.bf16.msra.mxu1 %v16759_v61  ;;  %v4475_v61 = vadd.f32 %v16742_v18, %v4439_v28  ;;  %v16898_v26 = vpack.c.bf16 %v9621_v19, %v9620_v34  ;;  %v14507_v22 = vld [vmem:[#allocation7 + $0x140] sm:$0xff]   ;;  %v16907_v2 = vld [vmem:[#allocation2 + $0x8] sm:$0xff]  ;;  %v6923_v39 = vld [vmem:[#allocation3 + $0x1a3] sm:$0xff]  ;;  %v6939_v63 = vpack.c.bf16 %v6921_v53, %v6920_v40 }
 0x5b7   : > { %12997 = vmatprep.subr.bf16.mxu1 %v14500_v46  ;;  %10072 = vperm.xlu1 %14330, %v4473_v51   ;;  %v4477_v6 = vadd.f32 %v16742_v18, %v4441_v43  ;;  %v16856_v18 = vpop.f32.mrb[33].mxu0  ;;  %v6912_v51 = vld [vmem:[#allocation3 + $0x123] sm:$0xff]  ;;  %v6913_v28 = vld [vmem:[#allocation3 + $0x12b] sm:$0xff]  ;;  %v6916_v38 = vld [vmem:[#allocation3 + $0x153] sm:$0xff] }
 0x5b8   : > { %18104 = vst [vmem:[#allocation12_spill] sm:$0xff] %v16856_v18  ;;  %v16859_v12 = vpop.f32.mrb[34].mxu0  ;;  %v6922_v55 = vld [vmem:[#allocation3 + $0x19b] sm:$0xff]  ;;  %v6924_v34 = vld [vmem:[#allocation3 + $0x1b3] sm:$0xff]  ;;  %v8709_v18 = vld [vmem:[#allocation3 + $0x18b] sm:$0xff] }
 0x5b9   : > { %18105 = vst [vmem:[#allocation14_spill] sm:$0xff] %v16859_v12  ;;  %v16861_v1 = vpop.f32.mrb[35].mxu0  ;;  %v6940_v20 = vpack.c.bf16 %v6923_v39, %v6922_v55  ;;  %v6925_v19 = vld [vmem:[#allocation3 + $0x1bb] sm:$0xff]  ;;  %v8711_v25 = vld [vmem:[#allocation3 + $0x1a3] sm:$0xff] }
 0x5ba   : > { %12998 = vmatpush3.bf16.msra.mxu1 %v14500_v46  ;;  %18106 = vst [vmem:[#allocation15_spill] sm:$0xff] %v16861_v1  ;;  %v16876_v50 = vpop.f32.mrb[36].mxu0  ;;  %v14506_v46 = vld [vmem:[%s18057_s3 + $0x138] sm:$0xff]   ;;  %v14509_v53 = vld [vmem:[#allocation7 + $0x150] sm:$0xff]  }
 0x5bb   : > { %12999 = vmatprep.subr.bf16.mxu1 %v14501_v52  ;;  %10082 = vperm.xlu1 %14330, %v4475_v61   ;;  %18107 = vst [vmem:[#allocation16_spill] sm:$0xff] %v16876_v50  ;;  %v16882_v16 = vpop.f32.mrb[37].mxu0  ;;  %v16913_v61 = vpack.c.bf16 %v6913_v28, %v6912_v51  ;;  %v8100_v50 = vld [vmem:[#allocation3 + $0x1ba] sm:$0xff] }
 0x5bc   : > { %13404 = vmatmul.mubr.bf16.gmra.mrb[104].mxu0 %v16846_v7  ;;  %18108 = vst [vmem:[#allocation17_spill] sm:$0xff] %v16882_v16  ;;  %v16885_v33 = vpop.f32.mrb[38].mxu0  ;;  %v8096_v16 = vld [vmem:[#allocation3 + $0x18a] sm:$0xff] }
 0x5bd   : > { %12968 = vmatmul.mubr.bf16.gmra.mrb[8].mxu1 %v16836_v59  ;;  %13407 = vmatprep.mubr.bf16.mxu0 %v16848_v23  ;;  %18109 = vst [vmem:[#allocation18_spill] sm:$0xff] %v16885_v33  ;;  %v16887_v29 = vpop.f32.mrb[39].mxu0  ;;  %v8095_v33 = vld [vmem:[#allocation3 + $0x182] sm:$0xff] }
 0x5be   : > { %12971 = vmatprep.mubr.bf16.mxu1 %v16841_v3  ;;  %13000 = vmatpush3.bf16.msra.mxu1 %v14501_v52  ;;  %18110 = vst [vmem:[#allocation19_spill] sm:$0xff] %v16887_v29  ;;  %v16900_v48 = vpop.f32.mrb[40].mxu0  ;;  %v6914_v52 = vld [vmem:[#allocation3 + $0x13b] sm:$0xff] }
 0x5bf   : > { %13001 = vmatprep.subr.bf16.mxu1 %v14502_v58  ;;  %10092 = vperm.xlu1 %14330, %v4477_v6   ;;  %18111 = vst [vmem:[#allocation20_spill] sm:$0xff] %v16900_v48  ;;  %v16903_v41 = vpop.f32.mrb[41].mxu0  ;;  %v16915_v43 = vpack.c.bf16 %v6915_v30, %v6914_v52  ;;  %v6919_v6 = vld [vmem:[#allocation3 + $0x173] sm:$0xff]  ;;  %v6941_v52 = vpack.c.bf16 %v6925_v19, %v6924_v34  ;;  %v14510_v34 = vld [vmem:[#allocation7 + $0x158] sm:$0xff]  }
 0x5c0   : > { %18112 = vst [vmem:[#allocation21_spill] sm:$0xff] %v16903_v41  ;;  %v16905_v17 = vpop.f32.mrb[42].mxu0  ;;  %v16929_v47 = vpack.c.bf16 %v6919_v6, %v6918_v10  ;;  %v14508_v6 = vld [vmem:[#allocation7 + $0x148] sm:$0xff]   ;;  %v14514_v19 = vld [vmem:[#allocation7 + $0x178] sm:$0xff]  }
 0x5c1   : > { %18113 = vst [vmem:[#allocation22_spill] sm:$0xff] %v16905_v17  ;;  %v16911_v5 = vpop.f32.mrb[43].mxu0  ;;  %v8075_v48 = vld [vmem:[#allocation3 + $0x92] sm:$0xff] }
 0x5c2   : > { %13002 = vmatpush3.bf16.msra.mxu1 %v14502_v58  ;;  %18114 = vst [vmem:[#allocation23_spill] sm:$0xff] %v16911_v5  ;;  %v16919_v60 = vpop.f32.mrb[44].mxu0  ;;  %v6917_v58 = vld [vmem:[#allocation3 + $0x15b] sm:$0xff]  ;;  %v8072_v5 = vld [vmem:[#allocation3 + $0x6a] sm:$0xff] }
 0x5c3   : > { %13003 = vmatprep.subr.bf16.mxu1 %v14503_v42  ;;  %18115 = vst [vmem:[#allocation24_spill] sm:$0xff] %v16919_v60  ;;  %v16921_v45 = vpop.f32.mrb[45].mxu0  ;;  %v16927_v32 = vpack.c.bf16 %v6917_v58, %v6916_v38  ;;  %v8071_v60 = vld [vmem:[#allocation3 + $0x62] sm:$0xff] }
 0x5c4   : > { %13408 = vmatmul.mubr.bf16.gmra.mrb[108].mxu0 %v16872_v13  ;;  %18116 = vst [vmem:[#allocation25_spill] sm:$0xff] %v16921_v45  ;;  %v7794_v45 = vld [vmem:[#allocation3 + $0x1b6] sm:$0xff]  ;;  %v8103_v41 = vpack.c.bf16 %v8072_v5, %v8071_v60  ;;  %v14533_v5 = vld [vmem:[%s18057_s3 + $0x190] sm:$0xff]  }
 0x5c5   : > { %12972 = vmatmul.mubr.bf16.gmra.mrb[12].mxu1 %v16863_v31  ;;  %13411 = vmatprep.mubr.bf16.mxu0 %v16874_v0  ;;  %v8079_v60 = vld [vmem:[#allocation3 + $0xc2] sm:$0xff] }
 0x5c6   : > { %12975 = vmatprep.mubr.bf16.mxu1 %v16868_v36  ;;  %13004 = vmatpush3.bf16.msra.mxu1 %v14503_v42  ;;  %v16923_v42 = vpop.f32.mrb[46].mxu0 }
 0x5c7   : > { %13005 = vmatprep.subr.bf16.mxu1 %v14504_v57  ;;  %18117 = vst [vmem:[#allocation26_spill] sm:$0xff] %v16923_v42  ;;  %v16925_v15 = vpop.f32.mrb[47].mxu0 }
 0x5c8   : > { %18118 = vst [vmem:[#allocation27_spill] sm:$0xff] %v16925_v15  ;;  %v16933_v56 = vpop.f32.mrb[48].mxu0 }
 0x5c9   : > { %18119 = vst [vmem:[#allocation28_spill] sm:$0xff] %v16933_v56 }
 0x5ca   : > { %13006 = vmatpush3.bf16.msra.mxu1 %v14504_v57  ;;  %v16935_v57 = vpop.f32.mrb[49].mxu0 }
 0x5cb   : > { %13007 = vmatprep.subr.bf16.mxu1 %v14505_v24  ;;  %18120 = vst [vmem:[#allocation29_spill] sm:$0xff] %v16935_v57 }
 0x5cc   : > { %13412 = vmatmul.mubr.bf16.gmra.mrb[112].mxu0 %v16898_v26 }
 0x5cd   : > { %12976 = vmatmul.mubr.bf16.gmra.mrb[16].mxu1 %v16889_v54  ;;  %13459 = vmatprep.mubr.msk.f32.mxu0 %vm14924_vm0, %v16907_v2 }
 0x5ce   : > { %12979 = vmatprep.mubr.bf16.mxu1 %v16894_v11  ;;  %13008 = vmatpush3.bf16.msra.mxu1 %v14505_v24  ;;  %v16937_v24 = vpop.f32.mrb[50].mxu0 }
 0x5cf   : > { %13009 = vmatprep.subr.bf16.mxu1 %v14506_v46  ;;  %18121 = vst [vmem:[#allocation30_spill] sm:$0xff] %v16937_v24  ;;  %v16939_v27 = vpop.f32.mrb[51].mxu0 }
 0x5d0   : > { %18122 = vst [vmem:[#allocation31_spill] sm:$0xff] %v16939_v27  ;;  %v16941_v14 = vpop.f32.mrb[52].mxu0 }
 0x5d1   : > { %18123 = vst [vmem:[#allocation32_spill] sm:$0xff] %v16941_v14 }
 0x5d2   : > { %13010 = vmatpush3.bf16.msra.mxu1 %v14506_v46  ;;  %v16943_v46 = vpop.f32.mrb[53].mxu0 }
 0x5d3   : > { %13043 = vmatprep.subr.bf16.mxu1 %v14507_v22  ;;  %18124 = vst [vmem:[#allocation33_spill] sm:$0xff] %v16943_v46  ;;  %v16945_v51 = vpop.f32.mrb[54].mxu0 }
 0x5d4   : > { %18125 = vst [vmem:[#allocation34_spill] sm:$0xff] %v16945_v51  ;;  %v16947_v28 = vpop.f32.mrb[55].mxu0 }
 0x5d5   : > { %12980 = vmatmul.mubr.bf16.gmra.mrb[20].mxu1 %v16913_v61  ;;  %18126 = vst [vmem:[#allocation35_spill] sm:$0xff] %v16947_v28  ;;  %v16950_v30 = vpop.f32.mrb[56].mxu0 }
 0x5d6   : > { %12983 = vmatprep.mubr.bf16.mxu1 %v16915_v43  ;;  %18127 = vst [vmem:[#allocation36_spill] sm:$0xff] %v16950_v30  ;;  %v16952_v38 = vpop.f32.mrb[57].mxu0 }
 0x5d7   : > { %18128 = vst [vmem:[#allocation37_spill] sm:$0xff] %v16952_v38  ;;  %v16954_v58 = vpop.f32.mrb[58].mxu0 }
 0x5d8   : > { %18129 = vst [vmem:[#allocation38_spill] sm:$0xff] %v16954_v58  ;;  %v16956_v10 = vpop.f32.mrb[59].mxu0 }
 0x5d9   : > { %18130 = vst [vmem:[#allocation39_spill] sm:$0xff] %v16956_v10  ;;  %v16960_v40 = vpop.f32.mrb[60].mxu0 }
 0x5da   : > { %18131 = vst [vmem:[#allocation40_spill] sm:$0xff] %v16960_v40  ;;  %v16962_v55 = vpop.f32.mrb[61].mxu0  ;;  %v7483_v40 = vld [vmem:[#allocation3 + $0x174] sm:$0xff] }
 0x5db   : > { %18132 = vst [vmem:[#allocation41_spill] sm:$0xff] %v16962_v55 }
 0x5dd   : > { %12984 = vmatmul.mubr.bf16.gmra.mrb[24].mxu1 %v16927_v32 }
 0x5de   : > { %12987 = vmatprep.mubr.bf16.mxu1 %v16929_v47 }
 0x5e5   : > { %12988 = vmatmul.mubr.bf16.gmra.mrb[28].mxu1 %v6939_v63 }
 0x5e6   : > { %12991 = vmatprep.mubr.bf16.mxu1 %v6940_v20 }
 0x5ed   : > { %12992 = vmatmul.mubr.bf16.gmra.mrb[32].mxu1 %v6941_v52 }
 0x5ee   : > { %13011 = vmatprep.mubr.bf16.mxu1 %v18102_v49  ;;  %v16964_v49 = vpop.f32.mrb[62].mxu0 }
 0x5ef   : > { %18133 = vst [vmem:[#allocation42_spill] sm:$0xff] %v16964_v49  ;;  %v16966_v39 = vpop.f32.mrb[63].mxu0  ;;  %v7479_v49 = vld [vmem:[#allocation3 + $0x144] sm:$0xff] }
 0x5f0   : > { %18134 = vst [vmem:[#allocation43_spill] sm:$0xff] %v16966_v39  ;;  %v7478_v39 = vld [vmem:[#allocation3 + $0x13c] sm:$0xff] }
 0x5f5   : > { %13012 = vmatmul.mubr.bf16.vlgmr.msra.gmra.mrb[36].mxu1 %v16815_v37  ;;  %v14511_v37 = vld [vmem:[#allocation7 + $0x160] sm:$0xff]  }
 0x5f6   : > { %13015 = vmatprep.mubr.bf16.mxu1 %v16820_v8  ;;  %13044 = vmatpush3.bf16.msra.mxu1 %v14507_v22  ;;  %v14512_v8 = vld [vmem:[#allocation7 + $0x168] sm:$0xff]   ;;  %v14513_v22 = vld [vmem:[#allocation7 + $0x170] sm:$0xff]  }
 0x5f7   : > { %13045 = vmatprep.subr.bf16.mxu1 %v14508_v6 }
 0x5fa   : > { %13046 = vmatpush3.bf16.msra.mxu1 %v14508_v6  ;;  %v7462_v6 = vld [vmem:[#allocation3 + $0x7c] sm:$0xff] }
 0x5fb   : > { %13047 = vmatprep.subr.bf16.mxu1 %v14509_v53 }
 0x5fd   : > { %13016 = vmatmul.mubr.bf16.gmra.mrb[40].mxu1 %v16836_v59  ;;  %v14515_v59 = vld [vmem:[%s18057_s3 + $0x140] sm:$0xff]  }
 0x5fe   : > { %13019 = vmatprep.mubr.bf16.mxu1 %v16841_v3  ;;  %13048 = vmatpush3.bf16.msra.mxu1 %v14509_v53  ;;  %v7458_v3 = vld [vmem:[#allocation3 + $0x4c] sm:$0xff]  ;;  %v7463_v53 = vld [vmem:[#allocation3 + $0x84] sm:$0xff] }
 0x5ff   : > { %13049 = vmatprep.subr.bf16.mxu1 %v14510_v34 }
 0x602   : > { %13050 = vmatpush3.bf16.msra.mxu1 %v14510_v34 }
 0x603   : > { %13051 = vmatprep.subr.bf16.mxu1 %v14511_v37 }
 0x605   : > { %13020 = vmatmul.mubr.bf16.gmra.mrb[44].mxu1 %v16863_v31  ;;  %v7459_v31 = vld [vmem:[#allocation3 + $0x54] sm:$0xff] }
 0x606   : > { %13023 = vmatprep.mubr.bf16.mxu1 %v16868_v36  ;;  %13052 = vmatpush3.bf16.msra.mxu1 %v14511_v37  ;;  %v7490_v36 = vpack.c.bf16 %v7459_v31, %v7458_v3  ;;  %v7468_v3 = vld [vmem:[#allocation3 + $0xc4] sm:$0xff]  ;;  %v7469_v31 = vld [vmem:[#allocation3 + $0xcc] sm:$0xff] }
 0x607   : > { %13053 = vmatprep.subr.bf16.mxu1 %v14512_v8 }
 0x60a   : > { %13054 = vmatpush3.bf16.msra.mxu1 %v14512_v8  ;;  %v14518_v8 = vld [vmem:[%s18057_s3 + $0x158] sm:$0xff]  }
 0x60b   : > { %13055 = vmatprep.subr.bf16.mxu1 %v14513_v22 }
 0x60d   : > { %13024 = vmatmul.mubr.bf16.gmra.mrb[48].mxu1 %v16889_v54  ;;  %v7460_v54 = vld [vmem:[#allocation3 + $0x64] sm:$0xff] }
 0x60e   : > { %13027 = vmatprep.mubr.bf16.mxu1 %v16894_v11  ;;  %13056 = vmatpush3.bf16.msra.mxu1 %v14513_v22  ;;  %v7461_v11 = vld [vmem:[#allocation3 + $0x6c] sm:$0xff] }
 0x60f   : > { %13057 = vmatprep.subr.bf16.mxu1 %v14514_v19  ;;  %v7491_v34 = vpack.c.bf16 %v7461_v11, %v7460_v54  ;;  %v7470_v54 = vld [vmem:[#allocation3 + $0xdc] sm:$0xff]  ;;  %v7471_v11 = vld [vmem:[#allocation3 + $0xe4] sm:$0xff] }
 0x612   : > { %13058 = vmatpush3.bf16.msra.mxu1 %v14514_v19 }
 0x613   : > { %13091 = vmatprep.subr.bf16.mxu1 %v14515_v59 }
 0x615   : > { %13028 = vmatmul.mubr.bf16.gmra.mrb[52].mxu1 %v16913_v61  ;;  %v14516_v61 = vld [vmem:[%s18057_s3 + $0x148] sm:$0xff]  }
 0x616   : > { %13031 = vmatprep.mubr.bf16.mxu1 %v16915_v43  ;;  %v7492_v43 = vpack.c.bf16 %v7463_v53, %v7462_v6 }
 0x61d   : > { %13032 = vmatmul.mubr.bf16.gmra.mrb[56].mxu1 %v16927_v32  ;;  %v14517_v32 = vld [vmem:[%s18057_s3 + $0x150] sm:$0xff]  }
 0x61e   : > { %13035 = vmatprep.mubr.bf16.mxu1 %v16929_v47  ;;  %v7464_v47 = vld [vmem:[#allocation3 + $0x94] sm:$0xff] }
 0x625   : > { %13036 = vmatmul.mubr.bf16.gmra.mrb[60].mxu1 %v6939_v63  ;;  %v7465_v63 = vld [vmem:[#allocation3 + $0x9c] sm:$0xff] }
 0x626   : > { %13039 = vmatprep.mubr.bf16.mxu1 %v6940_v20  ;;  %v7466_v20 = vld [vmem:[#allocation3 + $0xac] sm:$0xff]  ;;  %v7493_v37 = vpack.c.bf16 %v7465_v63, %v7464_v47  ;;  %v14521_v47 = vld [vmem:[%s18057_s3 + $0x170] sm:$0xff]   ;;  %v7472_v63 = vld [vmem:[#allocation3 + $0xf4] sm:$0xff] }
 0x62d   : > { %13040 = vmatmul.mubr.bf16.gmra.mrb[64].mxu1 %v6941_v52  ;;  %v7467_v52 = vld [vmem:[#allocation3 + $0xb4] sm:$0xff] }
 0x62e   : > { %13059 = vmatprep.mubr.bf16.mxu1 %v7490_v36  ;;  %v7494_v22 = vpack.c.bf16 %v7467_v52, %v7466_v20  ;;  %v7473_v20 = vld [vmem:[#allocation3 + $0xfc] sm:$0xff] }
 0x635   : > { %13060 = vmatmul.mubr.bf16.vlgmr.msra.gmra.mrb[4].mxu1 %v7491_v34  ;;  %v16990_v19 = vpop.f32.mrb[64].mxu0  ;;  %v7495_v34 = vpack.c.bf16 %v7469_v31, %v7468_v3  ;;  %v7497_v31 = vpack.c.bf16 %v7473_v20, %v7472_v63 }
 0x636   : > { %13063 = vmatprep.mubr.bf16.mxu1 %v7492_v43  ;;  %13092 = vmatpush3.bf16.msra.mxu1 %v14515_v59  ;;  %v14519_v59 = vld [vmem:[%s18057_s3 + $0x160] sm:$0xff]   ;;  %v16995_v36 = vpop.f32.mrb[65].mxu0  ;;  %v7496_v43 = vpack.c.bf16 %v7471_v11, %v7470_v54 }
 0x637   : > { %13093 = vmatprep.subr.bf16.mxu1 %v14516_v61  ;;  %v16997_v6 = vpop.f32.mrb[66].mxu0  ;;  %v17018_v11 = vld [vmem:[#allocation7 + $0x180] sm:$0xff]  }
 0x638   : > { %v16999_v53 = vpop.f32.mrb[67].mxu0 }
 0x63a   : > { %13094 = vmatpush3.bf16.msra.mxu1 %v14516_v61  ;;  %v14520_v61 = vld [vmem:[%s18057_s3 + $0x168] sm:$0xff]  }
 0x63b   : > { %13095 = vmatprep.subr.bf16.mxu1 %v14517_v32 }
 0x63d   : > { %13064 = vmatmul.mubr.bf16.gmra.mrb[8].mxu1 %v7493_v37  ;;  %v7474_v37 = vld [vmem:[#allocation3 + $0x10c] sm:$0xff] }
 0x63e   : > { %13067 = vmatprep.mubr.bf16.mxu1 %v7494_v22  ;;  %13096 = vmatpush3.bf16.msra.mxu1 %v14517_v32 }
 0x63f   : > { %13097 = vmatprep.subr.bf16.mxu1 %v14518_v8  ;;  %v17004_v32 = vpop.f32.mrb[68].mxu0 }
 0x640   : > { %v17009_v52 = vpop.f32.mrb[69].mxu0 }
 0x641   : > { %v17011_v22 = vpop.f32.mrb[70].mxu0 }
 0x642   : > { %13098 = vmatpush3.bf16.msra.mxu1 %v14518_v8  ;;  %v7475_v8 = vld [vmem:[#allocation3 + $0x114] sm:$0xff]  ;;  %v17013_v3 = vpop.f32.mrb[71].mxu0 }
 0x643   : > { %13099 = vmatprep.subr.bf16.mxu1 %v14519_v59  ;;  %v7498_v54 = vpack.c.bf16 %v7475_v8, %v7474_v37  ;;  %v7500_v37 = vpack.c.bf16 %v7479_v49, %v7478_v39  ;;  %v7484_v49 = vld [vmem:[#allocation3 + $0x184] sm:$0xff]  ;;  %v7485_v39 = vld [vmem:[#allocation3 + $0x18c] sm:$0xff] }
 0x644   : > { %v7503_v28 = vpack.c.bf16 %v7485_v39, %v7484_v49 }
 0x645   : > { %13068 = vmatmul.mubr.bf16.gmra.mrb[12].mxu1 %v7495_v34  ;;  %v7476_v34 = vld [vmem:[#allocation3 + $0x124] sm:$0xff] }
 0x646   : > { %13071 = vmatprep.mubr.bf16.mxu1 %v7496_v43  ;;  %13100 = vmatpush3.bf16.msra.mxu1 %v14519_v59  ;;  %v14522_v59 = vld [vmem:[%s18057_s3 + $0x178] sm:$0xff]  }
 0x647   : > { %13101 = vmatprep.subr.bf16.mxu1 %v14520_v61  ;;  %v7477_v43 = vld [vmem:[#allocation3 + $0x12c] sm:$0xff] }
 0x648   : > { %v7499_v63 = vpack.c.bf16 %v7477_v43, %v7476_v34 }
 0x649   : > { %v17020_v55 = vpop.f32.mrb[72].mxu0 }
 0x64a   : > { %13102 = vmatpush3.bf16.msra.mxu1 %v14520_v61  ;;  %v17022_v61 = vpop.f32.mrb[73].mxu0 }
 0x64b   : > { %13103 = vmatprep.subr.bf16.mxu1 %v14521_v47  ;;  %v17024_v20 = vpop.f32.mrb[74].mxu0 }
 0x64c   : > { %v17027_v8 = vpop.f32.mrb[75].mxu0 }
 0x64d   : > { %13072 = vmatmul.mubr.bf16.gmra.mrb[16].mxu1 %v7497_v31  ;;  %v7481_v31 = vld [vmem:[#allocation3 + $0x15c] sm:$0xff] }
 0x64e   : > { %13075 = vmatprep.mubr.bf16.mxu1 %v7498_v54  ;;  %13104 = vmatpush3.bf16.msra.mxu1 %v14521_v47  ;;  %v7480_v47 = vld [vmem:[#allocation3 + $0x154] sm:$0xff]  ;;  %v7482_v54 = vld [vmem:[#allocation3 + $0x16c] sm:$0xff] }
 0x64f   : > { %13105 = vmatprep.subr.bf16.mxu1 %v14522_v59  ;;  %v7501_v38 = vpack.c.bf16 %v7481_v31, %v7480_v47  ;;  %v7502_v34 = vpack.c.bf16 %v7483_v40, %v7482_v54  ;;  %v7488_v40 = vld [vmem:[#allocation3 + $0x1b4] sm:$0xff]  ;;  %v7489_v31 = vld [vmem:[#allocation3 + $0x1bc] sm:$0xff] }
 0x650   : > { %v7765_v54 = vld [vmem:[#allocation3 + $0x56] sm:$0xff]  ;;  %v7505_v27 = vpack.c.bf16 %v7489_v31, %v7488_v40 }
 0x652   : > { %13106 = vmatpush3.bf16.msra.mxu1 %v14522_v59  ;;  %v17029_v10 = vpop.f32.mrb[76].mxu0 }
 0x653   : > { %13139 = vmatprep.subr.bf16.mxu1 %v17018_v11  ;;  %v17031_v58 = vpop.f32.mrb[77].mxu0 }
 0x654   : > { %v17033_v59 = vpop.f32.mrb[78].mxu0 }
 0x655   : > { %13076 = vmatmul.mubr.bf16.gmra.mrb[20].mxu1 %v7499_v63  ;;  %v17035_v43 = vpop.f32.mrb[79].mxu0  ;;  %v7486_v63 = vld [vmem:[#allocation3 + $0x19c] sm:$0xff] }
 0x656   : > { %13079 = vmatprep.mubr.bf16.mxu1 %v7500_v37  ;;  %v7487_v37 = vld [vmem:[#allocation3 + $0x1a4] sm:$0xff] }
 0x657   : > { %v7504_v46 = vpack.c.bf16 %v7487_v37, %v7486_v63  ;;  %v7767_v63 = vld [vmem:[#allocation3 + $0x6e] sm:$0xff]  ;;  %v7768_v37 = vld [vmem:[#allocation3 + $0x7e] sm:$0xff] }
 0x65c   : > { %v17037_v30 = vpop.f32.mrb[80].mxu0 }
 0x65d   : > { %13080 = vmatmul.mubr.bf16.gmra.mrb[24].mxu1 %v7501_v38  ;;  %v17039_v51 = vpop.f32.mrb[81].mxu0  ;;  %v7764_v38 = vld [vmem:[#allocation3 + $0x4e] sm:$0xff] }
 0x65e   : > { %13083 = vmatprep.mubr.bf16.mxu1 %v7502_v34  ;;  %v17041_v14 = vpop.f32.mrb[82].mxu0  ;;  %v7796_v57 = vpack.c.bf16 %v7765_v54, %v7764_v38  ;;  %v14526_v54 = vld [vmem:[#allocation7 + $0x198] sm:$0xff]  }
 0x65f   : > { %v17043_v47 = vpop.f32.mrb[83].mxu0 }
 0x660   : > { %18135 = vst [vmem:[#allocation44_spill] sm:$0xff] %v17043_v47 }
 0x665   : > { %13084 = vmatmul.mubr.bf16.gmra.mrb[28].mxu1 %v7503_v28  ;;  %v7766_v28 = vld [vmem:[#allocation3 + $0x66] sm:$0xff] }
 0x666   : > { %13087 = vmatprep.mubr.bf16.mxu1 %v7504_v46  ;;  %v7769_v46 = vld [vmem:[#allocation3 + $0x86] sm:$0xff]  ;;  %v7797_v15 = vpack.c.bf16 %v7767_v63, %v7766_v28 }
 0x667   : > { %v17045_v34 = vpop.f32.mrb[84].mxu0  ;;  %v7798_v40 = vpack.c.bf16 %v7769_v46, %v7768_v37 }
 0x668   : > { %18136 = vst [vmem:[#allocation45_spill] sm:$0xff] %v17045_v34  ;;  %v17047_v24 = vpop.f32.mrb[85].mxu0  ;;  %v14524_v34 = vld [vmem:[#allocation7 + $0x188] sm:$0xff]  }
 0x669   : > { %18137 = vst [vmem:[#allocation46_spill] sm:$0xff] %v17047_v24  ;;  %v17049_v49 = vpop.f32.mrb[86].mxu0 }
 0x66a   : > { %18138 = vst [vmem:[#allocation47_spill] sm:$0xff] %v17049_v49  ;;  %v17051_v39 = vpop.f32.mrb[87].mxu0 }
 0x66b   : > { %18139 = vst [vmem:[#allocation48_spill] sm:$0xff] %v17051_v39 }
 0x66d   : > { %13088 = vmatmul.mubr.bf16.gmra.mrb[32].mxu1 %v7505_v27 }
 0x66e   : > { %13107 = vmatprep.mubr.bf16.mxu1 %v7796_v57  ;;  %v14525_v57 = vld [vmem:[#allocation7 + $0x190] sm:$0xff]  }
 0x66f   : > { %v17053_v56 = vpop.f32.mrb[88].mxu0 }
 0x670   : > { %18140 = vst [vmem:[#allocation49_spill] sm:$0xff] %v17053_v56  ;;  %v17055_v42 = vpop.f32.mrb[89].mxu0 }
 0x671   : > { %18141 = vst [vmem:[#allocation50_spill] sm:$0xff] %v17055_v42  ;;  %v17057_v31 = vpop.f32.mrb[90].mxu0  ;;  %v7793_v42 = vld [vmem:[#allocation3 + $0x1a6] sm:$0xff] }
 0x672   : > { %18142 = vst [vmem:[#allocation51_spill] sm:$0xff] %v17057_v31  ;;  %v17059_v38 = vpop.f32.mrb[91].mxu0  ;;  %v7792_v31 = vld [vmem:[#allocation3 + $0x19e] sm:$0xff] }
 0x673   : > { %18143 = vst [vmem:[#allocation52_spill] sm:$0xff] %v17059_v38  ;;  %v7790_v38 = vld [vmem:[#allocation3 + $0x186] sm:$0xff]  ;;  %v7810_v39 = vpack.c.bf16 %v7793_v42, %v7792_v31  ;;  %v8076_v42 = vld [vmem:[#allocation3 + $0x9a] sm:$0xff] }
 0x675   : > { %13108 = vmatmul.mubr.bf16.vlgmr.msra.gmra.mrb[36].mxu1 %v7797_v15 }
 0x676   : > { %13111 = vmatprep.mubr.bf16.mxu1 %v7798_v40  ;;  %13140 = vmatpush3.bf16.msra.mxu1 %v17018_v11  ;;  %v14527_v11 = vld [vmem:[#allocation7 + $0x1a0] sm:$0xff]  }
 0x677   : > { %13141 = vmatprep.subr.bf16.mxu1 %v14524_v34  ;;  %v17062_v27 = vpop.f32.mrb[92].mxu0 }
 0x678   : > { %18144 = vst [vmem:[#allocation53_spill] sm:$0xff] %v17062_v27  ;;  %v17064_v28 = vpop.f32.mrb[93].mxu0 }
 0x679   : > { %18145 = vst [vmem:[#allocation54_spill] sm:$0xff] %v17064_v28  ;;  %v17067_v63 = vpop.f32.mrb[94].mxu0 }
 0x67a   : > { %13142 = vmatpush3.bf16.msra.mxu1 %v14524_v34  ;;  %18146 = vst [vmem:[#allocation55_spill] sm:$0xff] %v17067_v63  ;;  %v17070_v15 = vpop.f32.mrb[95].mxu0  ;;  %v14528_v34 = vld [vmem:[#allocation7 + $0x1a8] sm:$0xff]  }
 0x67b   : > { %13143 = vmatprep.subr.bf16.mxu1 %v14525_v57  ;;  %18147 = vst [vmem:[#allocation56_spill] sm:$0xff] %v17070_v15 }
 0x67d   : > { %13112 = vmatmul.mubr.bf16.gmra.mrb[40].mxu1 %v16406_v35 }
 0x67e   : > { %13115 = vmatprep.mubr.bf16.mxu1 %v16594_v4  ;;  %13144 = vmatpush3.bf16.msra.mxu1 %v14525_v57  ;;  %v14529_v4 = vld [vmem:[#allocation7 + $0x1b0] sm:$0xff]  }
 0x67f   : > { %13145 = vmatprep.subr.bf16.mxu1 %v14526_v54  ;;  %v17072_v37 = vpop.f32.mrb[96].mxu0 }
 0x680   : > { %v17074_v46 = vpop.f32.mrb[97].mxu0 }
 0x681   : > { %v17077_v40 = vpop.f32.mrb[98].mxu0 }
 0x682   : > { %13146 = vmatpush3.bf16.msra.mxu1 %v14526_v54  ;;  %v17080_v35 = vpop.f32.mrb[99].mxu0  ;;  %v14530_v54 = vld [vmem:[#allocation7 + $0x1b8] sm:$0xff]  }
 0x683   : > { %13147 = vmatprep.subr.bf16.mxu1 %v14527_v11 }
 0x685   : > { %13116 = vmatmul.mubr.bf16.gmra.mrb[44].mxu1 %v16810_v21 }
 0x686   : > { %13119 = vmatprep.mubr.bf16.mxu1 %v16826_v44  ;;  %13148 = vmatpush3.bf16.msra.mxu1 %v14527_v11  ;;  %v14531_v44 = vld [vmem:[%s18057_s3 + $0x180] sm:$0xff]  }
 0x687   : > { %13149 = vmatprep.subr.bf16.mxu1 %v14528_v34  ;;  %v17082_v57 = vpop.f32.mrb[100].mxu0 }
 0x688   : > { %v17084_v15 = vpop.f32.mrb[101].mxu0 }
 0x689   : > { %v17087_v63 = vpop.f32.mrb[102].mxu0 }
 0x68a   : > { %13150 = vmatpush3.bf16.msra.mxu1 %v14528_v34  ;;  %v17090_v21 = vpop.f32.mrb[103].mxu0 }
 0x68b   : > { %13151 = vmatprep.subr.bf16.mxu1 %v14529_v4 }
 0x68d   : > { %13120 = vmatmul.mubr.bf16.gmra.mrb[48].mxu1 %v16828_v62 }
 0x68e   : > { %13123 = vmatprep.mubr.bf16.mxu1 %v16846_v7  ;;  %13152 = vmatpush3.bf16.msra.mxu1 %v14529_v4 }
 0x68f   : > { %13153 = vmatprep.subr.bf16.mxu1 %v14530_v54  ;;  %v17095_v11 = vpop.f32.mrb[104].mxu0 }
 0x690   : > { %v17097_v34 = vpop.f32.mrb[105].mxu0 }
 0x691   : > { %v17100_v62 = vpop.f32.mrb[106].mxu0 }
 0x692   : > { %13154 = vmatpush3.bf16.msra.mxu1 %v14530_v54  ;;  %v17103_v7 = vpop.f32.mrb[107].mxu0 }
 0x693   : > { %13187 = vmatprep.subr.bf16.mxu1 %v14531_v44 }
 0x695   : > { %13124 = vmatmul.mubr.bf16.gmra.mrb[52].mxu1 %v16848_v23  ;;  %v7791_v23 = vld [vmem:[#allocation3 + $0x18e] sm:$0xff] }
 0x696   : > { %13127 = vmatprep.mubr.bf16.mxu1 %v16872_v13  ;;  %v7809_v56 = vpack.c.bf16 %v7791_v23, %v7790_v38  ;;  %v8073_v38 = vld [vmem:[#allocation3 + $0x7a] sm:$0xff]  ;;  %v8074_v23 = vld [vmem:[#allocation3 + $0x82] sm:$0xff] }
 0x697   : > { %v17105_v4 = vpop.f32.mrb[108].mxu0  ;;  %v8104_v31 = vpack.c.bf16 %v8074_v23, %v8073_v38  ;;  %v14534_v38 = vld [vmem:[%s18057_s3 + $0x198] sm:$0xff]   ;;  %v8081_v23 = vld [vmem:[#allocation3 + $0xda] sm:$0xff] }
 0x698   : > { %v17107_v28 = vpop.f32.mrb[109].mxu0 }
 0x699   : > { %v17110_v54 = vpop.f32.mrb[110].mxu0 }
 0x69a   : > { %v17113_v27 = vpop.f32.mrb[111].mxu0 }
 0x69d   : > { %13128 = vmatmul.mubr.bf16.gmra.mrb[56].mxu1 %v16874_v0 }
 0x69e   : > { %13131 = vmatprep.mubr.bf16.mxu1 %v16898_v26  ;;  %v7795_v26 = vld [vmem:[#allocation3 + $0x1be] sm:$0xff] }
 0x69f   : > { %v17115_v13 = vpop.f32.mrb[112].mxu0  ;;  %v7811_v17 = vpack.c.bf16 %v7795_v26, %v7794_v45  ;;  %v8080_v45 = vld [vmem:[#allocation3 + $0xca] sm:$0xff] }
 0x6a0   : > { %v17117_v49 = vpop.f32.mrb[113].mxu0 }
 0x6a1   : > { %18148 = vst [vmem:[#allocation57_spill] sm:$0xff] %v17117_v49  ;;  %v17119_v24 = vpop.f32.mrb[114].mxu0 }
 0x6a2   : > { %18149 = vst [vmem:[#allocation58_spill] sm:$0xff] %v17119_v24  ;;  %v17121_v0 = vpop.f32.mrb[115].mxu0  ;;  %v8713_v24 = vld [vmem:[#allocation3 + $0x1bb] sm:$0xff] }
 0x6a3   : > { %18150 = vst [vmem:[#allocation59_spill] sm:$0xff] %v17121_v0  ;;  %v8712_v0 = vld [vmem:[#allocation3 + $0x1b3] sm:$0xff] }
 0x6a4   : > { %v8730_v49 = vpack.c.bf16 %v8713_v24, %v8712_v0  ;;  %v14559_v24 = vld [vmem:[#allocation7 + $0x220] sm:$0xff]   ;;  %v14560_v0 = vld [vmem:[#allocation7 + $0x228] sm:$0xff]  }
 0x6a5   : > { %13132 = vmatmul.mubr.bf16.gmra.mrb[60].mxu1 %v7809_v56  ;;  %v14532_v56 = vld [vmem:[%s18057_s3 + $0x188] sm:$0xff]  }
 0x6a6   : > { %13135 = vmatprep.mubr.bf16.mxu1 %v7810_v39  ;;  %v8105_v39 = vpack.c.bf16 %v8076_v42, %v8075_v48  ;;  %v8107_v48 = vpack.c.bf16 %v8080_v45, %v8079_v60  ;;  %v8082_v42 = vld [vmem:[#allocation3 + $0xe2] sm:$0xff]  ;;  %v8085_v60 = vld [vmem:[#allocation3 + $0x10a] sm:$0xff]  ;;  %v8086_v45 = vld [vmem:[#allocation3 + $0x112] sm:$0xff] }
 0x6ad   : > { %13136 = vmatmul.mubr.bf16.gmra.mrb[64].mxu1 %v7811_v17  ;;  %v8077_v17 = vld [vmem:[#allocation3 + $0xaa] sm:$0xff] }
 0x6ae   : > { %13155 = vmatprep.mubr.bf16.mxu1 %v8103_v41  ;;  %v8078_v41 = vld [vmem:[#allocation3 + $0xb2] sm:$0xff] }
 0x6af   : > { %v8106_v26 = vpack.c.bf16 %v8078_v41, %v8077_v17  ;;  %v14536_v17 = vld [vmem:[%s18057_s3 + $0x1a8] sm:$0xff]  }
 0x6b5   : > { %13156 = vmatmul.mubr.bf16.vlgmr.msra.gmra.mrb[4].mxu1 %v8104_v31  ;;  %v8083_v31 = vld [vmem:[#allocation3 + $0xf2] sm:$0xff] }
 0x6b6   : > { %13159 = vmatprep.mubr.bf16.mxu1 %v8105_v39  ;;  %13188 = vmatpush3.bf16.msra.mxu1 %v14531_v44  ;;  %v14535_v44 = vld [vmem:[%s18057_s3 + $0x1a0] sm:$0xff]   ;;  %v8084_v39 = vld [vmem:[#allocation3 + $0xfa] sm:$0xff] }
 0x6b7   : > { %13189 = vmatprep.subr.bf16.mxu1 %v14532_v56  ;;  %v8109_v41 = vpack.c.bf16 %v8084_v39, %v8083_v31  ;;  %v8089_v31 = vld [vmem:[#allocation3 + $0x13a] sm:$0xff]  ;;  %v8090_v39 = vld [vmem:[#allocation3 + $0x142] sm:$0xff] }
 0x6b8   : > { %v8112_v29 = vpack.c.bf16 %v8090_v39, %v8089_v31  ;;  %v8102_v31 = vld [vmem:[#allocation3 + $0x1d2] sm:$0xff] }
 0x6b9   : > { %v8378_v39 = vld [vmem:[#allocation3 + $0x90] sm:$0xff] }
 0x6ba   : > { %13190 = vmatpush3.bf16.msra.mxu1 %v14532_v56  ;;  %v8108_v56 = vpack.c.bf16 %v8082_v42, %v8081_v23  ;;  %v14538_v23 = vld [vmem:[%s18057_s3 + $0x1b8] sm:$0xff]  }
 0x6bb   : > { %13191 = vmatprep.subr.bf16.mxu1 %v14533_v5 }
 0x6bd   : > { %13160 = vmatmul.mubr.bf16.gmra.mrb[8].mxu1 %v8106_v26  ;;  %v8087_v26 = vld [vmem:[#allocation3 + $0x122] sm:$0xff] }
 0x6be   : > { %13163 = vmatprep.mubr.bf16.mxu1 %v8107_v48  ;;  %13192 = vmatpush3.bf16.msra.mxu1 %v14533_v5  ;;  %v14537_v5 = vld [vmem:[%s18057_s3 + $0x1b0] sm:$0xff]   ;;  %v8088_v48 = vld [vmem:[#allocation3 + $0x12a] sm:$0xff] }
 0x6bf   : > { %13193 = vmatprep.subr.bf16.mxu1 %v14534_v38  ;;  %v8111_v42 = vpack.c.bf16 %v8088_v48, %v8087_v26  ;;  %v8115_v48 = vpack.c.bf16 %v8096_v16, %v8095_v33  ;;  %v8381_v16 = vld [vmem:[#allocation3 + $0xb0] sm:$0xff]  ;;  %v8382_v33 = vld [vmem:[#allocation3 + $0xc0] sm:$0xff] }
 0x6c2   : > { %13194 = vmatpush3.bf16.msra.mxu1 %v14534_v38  ;;  %v8110_v38 = vpack.c.bf16 %v8086_v45, %v8085_v60  ;;  %v8093_v60 = vld [vmem:[#allocation3 + $0x16a] sm:$0xff]  ;;  %v8094_v45 = vld [vmem:[#allocation3 + $0x172] sm:$0xff] }
 0x6c3   : > { %13195 = vmatprep.subr.bf16.mxu1 %v14535_v44  ;;  %v8114_v26 = vpack.c.bf16 %v8094_v45, %v8093_v60  ;;  %v8383_v60 = vld [vmem:[#allocation3 + $0xc8] sm:$0xff] }
 0x6c5   : > { %13164 = vmatmul.mubr.bf16.gmra.mrb[12].mxu1 %v8108_v56  ;;  %v8091_v56 = vld [vmem:[#allocation3 + $0x152] sm:$0xff] }
 0x6c6   : > { %13167 = vmatprep.mubr.bf16.mxu1 %v8109_v41  ;;  %13196 = vmatpush3.bf16.msra.mxu1 %v14535_v44  ;;  %v14539_v44 = vld [vmem:[#allocation7 + $0x1c0] sm:$0xff]   ;;  %v8092_v41 = vld [vmem:[#allocation3 + $0x15a] sm:$0xff] }
 0x6c7   : > { %13197 = vmatprep.subr.bf16.mxu1 %v14536_v17 }
 0x6ca   : > { %13198 = vmatpush3.bf16.msra.mxu1 %v14536_v17  ;;  %v8113_v17 = vpack.c.bf16 %v8092_v41, %v8091_v56  ;;  %v8379_v56 = vld [vmem:[#allocation3 + $0x98] sm:$0xff] }
 0x6cb   : > { %13199 = vmatprep.subr.bf16.mxu1 %v14537_v5  ;;  %v8410_v41 = vpack.c.bf16 %v8379_v56, %v8378_v39  ;;  %v8388_v39 = vld [vmem:[#allocation3 + $0x108] sm:$0xff]  ;;  %v8389_v56 = vld [vmem:[#allocation3 + $0x110] sm:$0xff] }
 0x6cd   : > { %13168 = vmatmul.mubr.bf16.gmra.mrb[16].mxu1 %v8110_v38  ;;  %v8098_v38 = vld [vmem:[#allocation3 + $0x1a2] sm:$0xff] }
 0x6ce   : > { %13171 = vmatprep.mubr.bf16.mxu1 %v8111_v42  ;;  %13200 = vmatpush3.bf16.msra.mxu1 %v14537_v5  ;;  %v8097_v5 = vld [vmem:[#allocation3 + $0x19a] sm:$0xff]  ;;  %v8099_v42 = vld [vmem:[#allocation3 + $0x1b2] sm:$0xff] }
 0x6cf   : > { %13201 = vmatprep.subr.bf16.mxu1 %v14538_v23  ;;  %v8116_v1 = vpack.c.bf16 %v8098_v38, %v8097_v5  ;;  %v8117_v12 = vpack.c.bf16 %v8100_v50, %v8099_v42  ;;  %v8385_v50 = vld [vmem:[#allocation3 + $0xe0] sm:$0xff]  ;;  %v8386_v5 = vld [vmem:[#allocation3 + $0xf0] sm:$0xff]  ;;  %v8387_v38 = vld [vmem:[#allocation3 + $0xf8] sm:$0xff] }
 0x6d2   : > { %13202 = vmatpush3.bf16.msra.mxu1 %v14538_v23  ;;  %v8101_v23 = vld [vmem:[#allocation3 + $0x1ca] sm:$0xff] }
 0x6d3   : > { %13235 = vmatprep.subr.bf16.mxu1 %v14539_v44 }
 0x6d5   : > { %13172 = vmatmul.mubr.bf16.gmra.mrb[20].mxu1 %v8112_v29  ;;  %v8118_v29 = vpack.c.bf16 %v8102_v31, %v8101_v23  ;;  %v14542_v23 = vld [vmem:[#allocation7 + $0x1d8] sm:$0xff]   ;;  %v8414_v31 = vpack.c.bf16 %v8387_v38, %v8386_v5  ;;  %v14547_v38 = vld [vmem:[%s18057_s3 + $0x1c0] sm:$0xff]  }
 0x6d6   : > { %13175 = vmatprep.mubr.bf16.mxu1 %v8113_v17  ;;  %v8380_v17 = vld [vmem:[#allocation3 + $0xa8] sm:$0xff] }
 0x6d7   : > { %v8411_v45 = vpack.c.bf16 %v8381_v16, %v8380_v17  ;;  %v8415_v17 = vpack.c.bf16 %v8389_v56, %v8388_v39  ;;  %v14544_v16 = vld [vmem:[#allocation7 + $0x1e8] sm:$0xff]  }
 0x6dd   : > { %13176 = vmatmul.mubr.bf16.gmra.mrb[24].mxu1 %v8114_v26  ;;  %v14540_v26 = vld [vmem:[#allocation7 + $0x1c8] sm:$0xff]  }
 0x6de   : > { %13179 = vmatprep.mubr.bf16.mxu1 %v8115_v48  ;;  %v8412_v48 = vpack.c.bf16 %v8383_v60, %v8382_v33  ;;  %v14545_v60 = vld [vmem:[#allocation7 + $0x1f0] sm:$0xff]  }
 0x6e5   : > { %13180 = vmatmul.mubr.bf16.gmra.mrb[28].mxu1 %v8116_v1  ;;  %v8384_v1 = vld [vmem:[#allocation3 + $0xd8] sm:$0xff] }
 0x6e6   : > { %13183 = vmatprep.mubr.bf16.mxu1 %v8117_v12  ;;  %v14541_v12 = vld [vmem:[#allocation7 + $0x1d0] sm:$0xff]   ;;  %v8413_v42 = vpack.c.bf16 %v8385_v50, %v8384_v1  ;;  %v14546_v50 = vld [vmem:[#allocation7 + $0x1f8] sm:$0xff]  }
 0x6ed   : > { %13184 = vmatmul.mubr.bf16.gmra.mrb[32].mxu1 %v8118_v29  ;;  %v14543_v29 = vld [vmem:[#allocation7 + $0x1e0] sm:$0xff]  }
 0x6ee   : > { %13203 = vmatprep.mubr.bf16.mxu1 %v8410_v41  ;;  %v8390_v41 = vld [vmem:[#allocation3 + $0x120] sm:$0xff] }
 0x6f5   : > { %13204 = vmatmul.mubr.bf16.vlgmr.msra.gmra.mrb[36].mxu1 %v8411_v45  ;;  %v8392_v45 = vld [vmem:[#allocation3 + $0x138] sm:$0xff] }
 0x6f6   : > { %13207 = vmatprep.mubr.bf16.mxu1 %v8412_v48  ;;  %13236 = vmatpush3.bf16.msra.mxu1 %v14539_v44  ;;  %v8391_v44 = vld [vmem:[#allocation3 + $0x128] sm:$0xff]  ;;  %v8394_v48 = vld [vmem:[#allocation3 + $0x150] sm:$0xff] }
 0x6f7   : > { %13237 = vmatprep.subr.bf16.mxu1 %v14540_v26  ;;  %v8416_v33 = vpack.c.bf16 %v8391_v44, %v8390_v41  ;;  %v8400_v41 = vld [vmem:[#allocation3 + $0x198] sm:$0xff]  ;;  %v8401_v44 = vld [vmem:[#allocation3 + $0x1a0] sm:$0xff] }
 0x6fa   : > { %13238 = vmatpush3.bf16.msra.mxu1 %v14540_v26  ;;  %v8393_v26 = vld [vmem:[#allocation3 + $0x140] sm:$0xff] }
 0x6fb   : > { %13239 = vmatprep.subr.bf16.mxu1 %v14541_v12  ;;  %v8417_v1 = vpack.c.bf16 %v8393_v26, %v8392_v45  ;;  %v8404_v45 = vld [vmem:[#allocation3 + $0x1c8] sm:$0xff]  ;;  %v8406_v26 = vld [vmem:[#allocation3 + $0x1e0] sm:$0xff] }
 0x6fd   : > { %13208 = vmatmul.mubr.bf16.gmra.mrb[40].mxu1 %v8413_v42  ;;  %v8396_v42 = vld [vmem:[#allocation3 + $0x168] sm:$0xff] }
 0x6fe   : > { %13211 = vmatprep.mubr.bf16.mxu1 %v8414_v31  ;;  %13240 = vmatpush3.bf16.msra.mxu1 %v14541_v12  ;;  %v8395_v12 = vld [vmem:[#allocation3 + $0x158] sm:$0xff]  ;;  %v8398_v31 = vld [vmem:[#allocation3 + $0x180] sm:$0xff] }
 0x6ff   : > { %13241 = vmatprep.subr.bf16.mxu1 %v14542_v23  ;;  %v8418_v5 = vpack.c.bf16 %v8395_v12, %v8394_v48  ;;  %v8423_v48 = vpack.c.bf16 %v16907_v2, %v8404_v45  ;;  %v8424_v12 = vpack.c.bf16 %v16907_v2, %v8406_v26  ;;  %v8693_v45 = vld [vmem:[#allocation3 + $0xcb] sm:$0xff] }
 0x702   : > { %13242 = vmatpush3.bf16.msra.mxu1 %v14542_v23  ;;  %v8397_v23 = vld [vmem:[#allocation3 + $0x170] sm:$0xff] }
 0x703   : > { %13243 = vmatprep.subr.bf16.mxu1 %v14543_v29  ;;  %v8419_v39 = vpack.c.bf16 %v8397_v23, %v8396_v42  ;;  %v8685_v42 = vld [vmem:[#allocation3 + $0x6b] sm:$0xff] }
 0x705   : > { %13212 = vmatmul.mubr.bf16.gmra.mrb[44].mxu1 %v8415_v17  ;;  %v8402_v17 = vld [vmem:[#allocation3 + $0x1b0] sm:$0xff] }
 0x706   : > { %13215 = vmatprep.mubr.bf16.mxu1 %v8416_v33  ;;  %13244 = vmatpush3.bf16.msra.mxu1 %v14543_v29  ;;  %v8399_v29 = vld [vmem:[#allocation3 + $0x188] sm:$0xff]  ;;  %v8421_v33 = vpack.c.bf16 %v8401_v44, %v8400_v41  ;;  %v14548_v44 = vld [vmem:[%s18057_s3 + $0x1c8] sm:$0xff]  }
 0x707   : > { %13245 = vmatprep.subr.bf16.mxu1 %v14544_v16  ;;  %v8420_v56 = vpack.c.bf16 %v8399_v29, %v8398_v31  ;;  %v8686_v31 = vld [vmem:[#allocation3 + $0x7b] sm:$0xff]  ;;  %v8687_v29 = vld [vmem:[#allocation3 + $0x83] sm:$0xff] }
 0x708   : > { %v8717_v41 = vpack.c.bf16 %v8687_v29, %v8686_v31  ;;  %v14552_v31 = vld [vmem:[%s18057_s3 + $0x1e8] sm:$0xff]  }
 0x70a   : > { %13246 = vmatpush3.bf16.msra.mxu1 %v14544_v16  ;;  %v8403_v16 = vld [vmem:[#allocation3 + $0x1b8] sm:$0xff] }
 0x70b   : > { %13247 = vmatprep.subr.bf16.mxu1 %v14545_v60 }
 0x70d   : > { %13216 = vmatmul.mubr.bf16.gmra.mrb[48].mxu1 %v8417_v1  ;;  %v8408_v1 = vld [vmem:[#allocation3 + $0x1f8] sm:$0xff] }
 0x70e   : > { %13219 = vmatprep.mubr.bf16.mxu1 %v8418_v5  ;;  %13248 = vmatpush3.bf16.msra.mxu1 %v14545_v60  ;;  %v8422_v60 = vpack.c.bf16 %v8403_v16, %v8402_v17  ;;  %v8684_v5 = vld [vmem:[#allocation3 + $0x63] sm:$0xff]  ;;  %v8690_v16 = vld [vmem:[#allocation3 + $0xab] sm:$0xff] }
 0x70f   : > { %13249 = vmatprep.subr.bf16.mxu1 %v14546_v50  ;;  %v8716_v23 = vpack.c.bf16 %v8685_v42, %v8684_v5  ;;  %v8696_v5 = vld [vmem:[#allocation3 + $0xf3] sm:$0xff]  ;;  %v8697_v42 = vld [vmem:[#allocation3 + $0xfb] sm:$0xff] }
 0x710   : > { %v8722_v29 = vpack.c.bf16 %v8697_v42, %v8696_v5 }
 0x712   : > { %13250 = vmatpush3.bf16.msra.mxu1 %v14546_v50  ;;  %v8425_v50 = vpack.c.bf16 %v16907_v2, %v8408_v1  ;;  %v14549_v2 = vld [vmem:[%s18057_s3 + $0x1d0] sm:$0xff]  }
 0x713   : > { %13283 = vmatprep.subr.bf16.mxu1 %v14547_v38  ;;  %v8694_v1 = vld [vmem:[#allocation3 + $0xdb] sm:$0xff] }
 0x715   : > { %13220 = vmatmul.mubr.bf16.gmra.mrb[52].mxu1 %v8419_v39  ;;  %v8688_v39 = vld [vmem:[#allocation3 + $0x93] sm:$0xff] }
 0x716   : > { %13223 = vmatprep.mubr.bf16.mxu1 %v8420_v56  ;;  %v8689_v56 = vld [vmem:[#allocation3 + $0x9b] sm:$0xff] }
 0x717   : > { %v17153_v17 = vpack.c.bf16 %v8689_v56, %v8688_v39  ;;  %v14553_v39 = vld [vmem:[%s18057_s3 + $0x1f0] sm:$0xff]   ;;  %v8698_v56 = vld [vmem:[#allocation3 + $0x10b] sm:$0xff] }
 0x71d   : > { %13224 = vmatmul.mubr.bf16.gmra.mrb[56].mxu1 %v8421_v33  ;;  %v8691_v33 = vld [vmem:[#allocation3 + $0xb3] sm:$0xff] }
 0x71e   : > { %13227 = vmatprep.mubr.bf16.mxu1 %v8422_v60  ;;  %v8692_v60 = vld [vmem:[#allocation3 + $0xc3] sm:$0xff]  ;;  %v17159_v26 = vpack.c.bf16 %v8691_v33, %v8690_v16 }
 0x71f   : > { %v14554_v33 = vld [vmem:[%s18057_s3 + $0x1f8] sm:$0xff]  }
 0x725   : > { %13228 = vmatmul.mubr.bf16.gmra.mrb[60].mxu1 %v8423_v48  ;;  %v14550_v48 = vld [vmem:[%s18057_s3 + $0x1d8] sm:$0xff]  }
 0x726   : > { %13231 = vmatprep.mubr.bf16.mxu1 %v8424_v12  ;;  %v17164_v12 = vpack.c.bf16 %v8693_v45, %v8692_v60  ;;  %v14555_v45 = vld [vmem:[#allocation7 + $0x200] sm:$0xff]  }
 0x72d   : > { %13232 = vmatmul.mubr.bf16.gmra.mrb[64].mxu1 %v8425_v50  ;;  %v8695_v50 = vld [vmem:[#allocation3 + $0xe3] sm:$0xff] }
 0x72e   : > { %13251 = vmatprep.mubr.bf16.mxu1 %v8716_v23  ;;  %v8721_v23 = vpack.c.bf16 %v8695_v50, %v8694_v1  ;;  %v8704_v1 = vld [vmem:[#allocation3 + $0x153] sm:$0xff]  ;;  %v8705_v50 = vld [vmem:[#allocation3 + $0x15b] sm:$0xff] }
 0x72f   : > { %v8726_v42 = vpack.c.bf16 %v8705_v50, %v8704_v1  ;;  %v14556_v1 = vld [vmem:[#allocation7 + $0x208] sm:$0xff]  }
 0x735   : > { %13252 = vmatmul.mubr.bf16.vlgmr.msra.gmra.mrb[4].mxu1 %v8717_v41  ;;  %v8699_v41 = vld [vmem:[#allocation3 + $0x113] sm:$0xff] }
 0x736   : > { %13255 = vmatprep.mubr.bf16.mxu1 %v17153_v17  ;;  %13284 = vmatpush3.bf16.msra.mxu1 %v14547_v38  ;;  %v14551_v38 = vld [vmem:[%s18057_s3 + $0x1e0] sm:$0xff]   ;;  %v8723_v16 = vpack.c.bf16 %v8699_v41, %v8698_v56  ;;  %v8708_v41 = vld [vmem:[#allocation3 + $0x183] sm:$0xff] }
 0x737   : > { %13285 = vmatprep.subr.bf16.mxu1 %v14548_v44  ;;  %v8707_v56 = vld [vmem:[#allocation3 + $0x173] sm:$0xff] }
 0x73a   : > { %13286 = vmatpush3.bf16.msra.mxu1 %v14548_v44  ;;  %v8700_v44 = vld [vmem:[#allocation3 + $0x123] sm:$0xff] }
 0x73b   : > { %13287 = vmatprep.subr.bf16.mxu1 %v14549_v2 }
 0x73d   : > { %13256 = vmatmul.mubr.bf16.gmra.mrb[8].mxu1 %v17159_v26 }
 0x73e   : > { %13259 = vmatprep.mubr.bf16.mxu1 %v17164_v12  ;;  %13288 = vmatpush3.bf16.msra.mxu1 %v14549_v2  ;;  %v8701_v2 = vld [vmem:[#allocation3 + $0x12b] sm:$0xff] }
 0x73f   : > { %13289 = vmatprep.subr.bf16.mxu1 %v14550_v48  ;;  %v8724_v60 = vpack.c.bf16 %v8701_v2, %v8700_v44  ;;  %v8728_v2 = vpack.c.bf16 %v8709_v18, %v8708_v41  ;;  %v14557_v18 = vld [vmem:[#allocation7 + $0x210] sm:$0xff]  }
 0x740   : > { %v9299_v41 = vld [vmem:[#allocation3 + $0x84] sm:$0xff] }
 0x742   : > { %13290 = vmatpush3.bf16.msra.mxu1 %v14550_v48  ;;  %v8702_v48 = vld [vmem:[#allocation3 + $0x13b] sm:$0xff] }
 0x743   : > { %13291 = vmatprep.subr.bf16.mxu1 %v14551_v38 }
 0x745   : > { %13260 = vmatmul.mubr.bf16.gmra.mrb[12].mxu1 %v8721_v23 }
 0x746   : > { %13263 = vmatprep.mubr.bf16.mxu1 %v8722_v29  ;;  %13292 = vmatpush3.bf16.msra.mxu1 %v14551_v38  ;;  %v8703_v38 = vld [vmem:[#allocation3 + $0x143] sm:$0xff] }
 0x747   : > { %13293 = vmatprep.subr.bf16.mxu1 %v14552_v31  ;;  %v8725_v5 = vpack.c.bf16 %v8703_v38, %v8702_v48  ;;  %v8715_v48 = vld [vmem:[#allocation3 + $0x1d3] sm:$0xff] }
 0x74a   : > { %13294 = vmatpush3.bf16.msra.mxu1 %v14552_v31  ;;  %v8706_v31 = vld [vmem:[#allocation3 + $0x16b] sm:$0xff] }
 0x74b   : > { %13295 = vmatprep.subr.bf16.mxu1 %v14553_v39  ;;  %v8727_v44 = vpack.c.bf16 %v8707_v56, %v8706_v31  ;;  %v9298_v56 = vld [vmem:[#allocation3 + $0x7c] sm:$0xff] }
 0x74d   : > { %13264 = vmatmul.mubr.bf16.gmra.mrb[16].mxu1 %v8723_v16 }
 0x74e   : > { %13267 = vmatprep.mubr.bf16.mxu1 %v8724_v60  ;;  %13296 = vmatpush3.bf16.msra.mxu1 %v14553_v39  ;;  %v8710_v39 = vld [vmem:[#allocation3 + $0x19b] sm:$0xff] }
 0x74f   : > { %13297 = vmatprep.subr.bf16.mxu1 %v14554_v33  ;;  %v8729_v47 = vpack.c.bf16 %v8711_v25, %v8710_v39  ;;  %v14558_v25 = vld [vmem:[#allocation7 + $0x218] sm:$0xff]   ;;  %v9300_v39 = vld [vmem:[#allocation3 + $0x94] sm:$0xff] }
 0x752   : > { %13298 = vmatpush3.bf16.msra.mxu1 %v14554_v33  ;;  %v8714_v33 = vld [vmem:[#allocation3 + $0x1cb] sm:$0xff] }
 0x753   : > { %13331 = vmatprep.subr.bf16.mxu1 %v14555_v45  ;;  %v8731_v38 = vpack.c.bf16 %v8715_v48, %v8714_v33  ;;  %v9302_v33 = vld [vmem:[#allocation3 + $0xac] sm:$0xff]  ;;  %v9303_v48 = vld [vmem:[#allocation3 + $0xb4] sm:$0xff] }
 0x755   : > { %13268 = vmatmul.mubr.bf16.gmra.mrb[20].mxu1 %v8725_v5 }
 0x756   : > { %13271 = vmatprep.mubr.bf16.mxu1 %v8726_v42 }
 0x75d   : > { %13272 = vmatmul.mubr.bf16.gmra.mrb[24].mxu1 %v8727_v44 }
 0x75e   : > { %13275 = vmatprep.mubr.bf16.mxu1 %v8728_v2 }
 0x765   : > { %13276 = vmatmul.mubr.bf16.gmra.mrb[28].mxu1 %v8729_v47 }
 0x766   : > { %13279 = vmatprep.mubr.bf16.mxu1 %v8730_v49 }
 0x76d   : > { %13280 = vmatmul.mubr.bf16.gmra.mrb[32].mxu1 %v8731_v38 }
 0x76e   : > { %13299 = vmatprep.mubr.bf16.mxu1 %v17153_v17  ;;  %v14561_v17 = vld [vmem:[#allocation7 + $0x230] sm:$0xff]  }
 0x775   : > { %13300 = vmatmul.mubr.bf16.vlgmr.msra.gmra.mrb[36].mxu1 %v17159_v26  ;;  %v14562_v26 = vld [vmem:[#allocation7 + $0x238] sm:$0xff]  }
 0x776   : > { %13303 = vmatprep.mubr.bf16.mxu1 %v17164_v12  ;;  %13332 = vmatpush3.bf16.msra.mxu1 %v14555_v45  ;;  %v14838_v12 = vld [vmem:[%s18057_s3 + $0x200] sm:$0xff]   ;;  %v9021_v45 = vld [vmem:[#allocation3 + $0x203] sm:$0xff] }
 0x777   : > { %13333 = vmatprep.subr.bf16.mxu1 %v14556_v1 }
 0x77a   : > { %13334 = vmatpush3.bf16.msra.mxu1 %v14556_v1  ;;  %v9305_v1 = vld [vmem:[#allocation3 + $0xcc] sm:$0xff] }
 0x77b   : > { %13335 = vmatprep.subr.bf16.mxu1 %v14557_v18 }
 0x77d   : > { %13304 = vmatmul.mubr.bf16.gmra.mrb[40].mxu1 %v8721_v23  ;;  %v9018_v23 = vld [vmem:[#allocation3 + $0x1e3] sm:$0xff] }
 0x77e   : > { %13307 = vmatprep.mubr.bf16.mxu1 %v8722_v29  ;;  %13336 = vmatpush3.bf16.msra.mxu1 %v14557_v18  ;;  %v9019_v29 = vld [vmem:[#allocation3 + $0x1eb] sm:$0xff]  ;;  %v9331_v18 = vpack.c.bf16 %v9303_v48, %v9302_v33  ;;  %v9317_v33 = vld [vmem:[#allocation3 + $0x15c] sm:$0xff] }
 0x77f   : > { %13337 = vmatprep.subr.bf16.mxu1 %v14558_v25 }
 0x782   : > { %13338 = vmatpush3.bf16.msra.mxu1 %v14558_v25  ;;  %v14840_v25 = vld [vmem:[%s18057_s3 + $0x210] sm:$0xff]  }
 0x783   : > { %13339 = vmatprep.subr.bf16.mxu1 %v14559_v24 }
 0x785   : > { %13308 = vmatmul.mubr.bf16.gmra.mrb[44].mxu1 %v8723_v16  ;;  %v9036_v16 = vpack.c.bf16 %v9019_v29, %v9018_v23  ;;  %v9309_v23 = vld [vmem:[#allocation3 + $0xfc] sm:$0xff] }
 0x786   : > { %13311 = vmatprep.mubr.bf16.mxu1 %v8724_v60  ;;  %13340 = vmatpush3.bf16.msra.mxu1 %v14559_v24  ;;  %v9020_v60 = vld [vmem:[#allocation3 + $0x1fb] sm:$0xff] }
 0x787   : > { %13341 = vmatprep.subr.bf16.mxu1 %v14560_v0  ;;  %v9037_v50 = vpack.c.bf16 %v9021_v45, %v9020_v60  ;;  %v14843_v45 = vld [vmem:[%s18057_s3 + $0x228] sm:$0xff]  }
 0x78a   : > { %13342 = vmatpush3.bf16.msra.mxu1 %v14560_v0  ;;  %v14841_v0 = vld [vmem:[%s18057_s3 + $0x218] sm:$0xff]  }
 0x78b   : > { %13343 = vmatprep.subr.bf16.mxu1 %v14561_v17 }
 0x78d   : > { %13312 = vmatmul.mubr.bf16.gmra.mrb[48].mxu1 %v8725_v5  ;;  %v9296_v5 = vld [vmem:[#allocation3 + $0x64] sm:$0xff] }
 0x78e   : > { %13315 = vmatprep.mubr.bf16.mxu1 %v8726_v42  ;;  %13344 = vmatpush3.bf16.msra.mxu1 %v14561_v17  ;;  %v9297_v42 = vld [vmem:[#allocation3 + $0x6c] sm:$0xff]  ;;  %v9306_v17 = vld [vmem:[#allocation3 + $0xdc] sm:$0xff] }
 0x78f   : > { %13345 = vmatprep.subr.bf16.mxu1 %v14562_v26  ;;  %v9328_v31 = vpack.c.bf16 %v9297_v42, %v9296_v5  ;;  %v9311_v5 = vld [vmem:[#allocation3 + $0x114] sm:$0xff]  ;;  %v9312_v42 = vld [vmem:[#allocation3 + $0x124] sm:$0xff] }
 0x792   : > { %13346 = vmatpush3.bf16.msra.mxu1 %v14562_v26  ;;  %v9307_v26 = vld [vmem:[#allocation3 + $0xe4] sm:$0xff] }
 0x793   : > { %13510 = vmatprep.subr.bf16.mxu1 %v14838_v12  ;;  %v9333_v29 = vpack.c.bf16 %v9307_v26, %v9306_v17  ;;  %v9322_v26 = vld [vmem:[#allocation3 + $0x19c] sm:$0xff] }
 0x795   : > { %13316 = vmatmul.mubr.bf16.gmra.mrb[52].mxu1 %v8727_v44  ;;  %v9301_v44 = vld [vmem:[#allocation3 + $0x9c] sm:$0xff] }
 0x796   : > { %13319 = vmatprep.mubr.bf16.mxu1 %v8728_v2  ;;  %v9329_v2 = vpack.c.bf16 %v9299_v41, %v9298_v56  ;;  %v14844_v41 = vld [vmem:[%s18057_s3 + $0x230] sm:$0xff]  }
 0x79d   : > { %13320 = vmatmul.mubr.bf16.gmra.mrb[56].mxu1 %v8729_v47  ;;  %v9330_v47 = vpack.c.bf16 %v9301_v44, %v9300_v39  ;;  %v14845_v44 = vld [vmem:[%s18057_s3 + $0x238] sm:$0xff]  }
 0x79e   : > { %13323 = vmatprep.mubr.bf16.mxu1 %v8730_v49  ;;  %v14839_v49 = vld [vmem:[%s18057_s3 + $0x208] sm:$0xff]  }
 0x7a5   : > { %13324 = vmatmul.mubr.bf16.gmra.mrb[60].mxu1 %v8731_v38  ;;  %v9304_v38 = vld [vmem:[#allocation3 + $0xc4] sm:$0xff] }
 0x7a6   : > { %13327 = vmatprep.mubr.bf16.mxu1 %v9036_v16  ;;  %v9332_v24 = vpack.c.bf16 %v9305_v1, %v9304_v38  ;;  %v14842_v16 = vld [vmem:[%s18057_s3 + $0x220] sm:$0xff]  }
 0x7a7   : > { %v9318_v1 = vld [vmem:[#allocation3 + $0x16c] sm:$0xff] }
 0x7ad   : > { %13328 = vmatmul.mubr.bf16.gmra.mrb[64].mxu1 %v9037_v50  ;;  %v9310_v50 = vld [vmem:[#allocation3 + $0x10c] sm:$0xff] }
 0x7ae   : > { %13347 = vmatprep.mubr.bf16.mxu1 %v9328_v31  ;;  %v9313_v31 = vld [vmem:[#allocation3 + $0x12c] sm:$0xff]  ;;  %v9335_v56 = vpack.c.bf16 %v9311_v5, %v9310_v50  ;;  %v9327_v50 = vld [vmem:[#allocation3 + $0x1d4] sm:$0xff] }
 0x7af   : > { %v9336_v39 = vpack.c.bf16 %v9313_v31, %v9312_v42  ;;  %v9622_v42 = vld [vmem:[#allocation3 + $0x186] sm:$0xff]  ;;  %v9623_v31 = vld [vmem:[#allocation3 + $0x18e] sm:$0xff] }
 0x7b5   : > { %13348 = vmatmul.mubr.bf16.vlgmr.msra.gmra.mrb[4].mxu1 %v9329_v2  ;;  %v9314_v2 = vld [vmem:[#allocation3 + $0x13c] sm:$0xff] }
 0x7b6   : > { %13351 = vmatprep.mubr.bf16.mxu1 %v9330_v47  ;;  %13518 = vmatpush3.bf16.msra.mxu1 %v14838_v12  ;;  %v9308_v12 = vld [vmem:[#allocation3 + $0xf4] sm:$0xff]  ;;  %v9315_v47 = vld [vmem:[#allocation3 + $0x144] sm:$0xff] }
 0x7b7   : > { %13511 = vmatprep.subr.bf16.mxu1 %v14839_v49  ;;  %v9334_v60 = vpack.c.bf16 %v9309_v23, %v9308_v12  ;;  %v9337_v48 = vpack.c.bf16 %v9315_v47, %v9314_v2  ;;  %v9323_v12 = vld [vmem:[#allocation3 + $0x1a4] sm:$0xff]  ;;  %v9324_v23 = vld [vmem:[#allocation3 + $0x1b4] sm:$0xff] }
 0x7b8   : > { %v9627_v2 = vld [vmem:[#allocation3 + $0x1be] sm:$0xff] }
 0x7ba   : > { %13519 = vmatpush3.bf16.msra.mxu1 %v14839_v49  ;;  %v9316_v49 = vld [vmem:[#allocation3 + $0x154] sm:$0xff] }
 0x7bb   : > { %13512 = vmatprep.subr.bf16.mxu1 %v14840_v25  ;;  %v9338_v38 = vpack.c.bf16 %v9317_v33, %v9316_v49  ;;  %v9628_v33 = vld [vmem:[#allocation3 + $0x1ce] sm:$0xff] }
 0x7bd   : > { %13352 = vmatmul.mubr.bf16.gmra.mrb[8].mxu1 %v9331_v18  ;;  %v9319_v18 = vld [vmem:[#allocation3 + $0x174] sm:$0xff] }
 0x7be   : > { %13355 = vmatprep.mubr.bf16.mxu1 %v9332_v24  ;;  %13520 = vmatpush3.bf16.msra.mxu1 %v14840_v25  ;;  %v9320_v25 = vld [vmem:[#allocation3 + $0x184] sm:$0xff]  ;;  %v9321_v24 = vld [vmem:[#allocation3 + $0x18c] sm:$0xff] }
 0x7bf   : > { %13513 = vmatprep.subr.bf16.mxu1 %v14841_v0  ;;  %v9340_v17 = vpack.c.bf16 %v9321_v24, %v9320_v25  ;;  %v9632_v24 = vld [vmem:[#allocation3 + $0x1fe] sm:$0xff] }
 0x7c2   : > { %13521 = vmatpush3.bf16.msra.mxu1 %v14841_v0  ;;  %v9339_v0 = vpack.c.bf16 %v9319_v18, %v9318_v1  ;;  %v9631_v1 = vld [vmem:[#allocation3 + $0x1ee] sm:$0xff] }
 0x7c3   : > { %13514 = vmatprep.subr.bf16.mxu1 %v14842_v16 }
 0x7c5   : > { %13356 = vmatmul.mubr.bf16.gmra.mrb[12].mxu1 %v9333_v29  ;;  %v9325_v29 = vld [vmem:[#allocation3 + $0x1bc] sm:$0xff] }
 0x7c6   : > { %13359 = vmatprep.mubr.bf16.mxu1 %v9334_v60  ;;  %13522 = vmatpush3.bf16.msra.mxu1 %v14842_v16  ;;  %v9341_v16 = vpack.c.bf16 %v9323_v12, %v9322_v26  ;;  %v9342_v60 = vpack.c.bf16 %v9325_v29, %v9324_v23 }
 0x7c7   : > { %13515 = vmatprep.subr.bf16.mxu1 %v14843_v45 }
 0x7ca   : > { %13523 = vmatpush3.bf16.msra.mxu1 %v14843_v45  ;;  %v9326_v45 = vld [vmem:[#allocation3 + $0x1cc] sm:$0xff] }
 0x7cb   : > { %13516 = vmatprep.subr.bf16.mxu1 %v14844_v41  ;;  %v9343_v5 = vpack.c.bf16 %v9327_v50, %v9326_v45 }
 0x7cd   : > { %13360 = vmatmul.mubr.bf16.gmra.mrb[16].mxu1 %v9335_v56  ;;  %v9644_v56 = vpack.c.bf16 %v9623_v31, %v9622_v42 }
 0x7ce   : > { %13363 = vmatprep.mubr.bf16.mxu1 %v9336_v39  ;;  %13524 = vmatpush3.bf16.msra.mxu1 %v14844_v41  ;;  %v9624_v41 = vld [vmem:[#allocation3 + $0x19e] sm:$0xff]  ;;  %v9625_v39 = vld [vmem:[#allocation3 + $0x1a6] sm:$0xff] }
 0x7cf   : > { %13517 = vmatprep.subr.bf16.mxu1 %v14845_v44  ;;  %v9645_v47 = vpack.c.bf16 %v9625_v39, %v9624_v41 }
 0x7d2   : > { %13525 = vmatpush3.bf16.msra.mxu1 %v14845_v44  ;;  %v9626_v44 = vld [vmem:[#allocation3 + $0x1b6] sm:$0xff] }
 0x7d3   : > { %v9646_v49 = vpack.c.bf16 %v9627_v2, %v9626_v44 }
 0x7d5   : > { %13364 = vmatmul.mubr.bf16.gmra.mrb[20].mxu1 %v9337_v48  ;;  %v9629_v48 = vld [vmem:[#allocation3 + $0x1d6] sm:$0xff] }
 0x7d6   : > { %13367 = vmatprep.mubr.bf16.mxu1 %v9338_v38  ;;  %v9630_v38 = vld [vmem:[#allocation3 + $0x1e6] sm:$0xff]  ;;  %v9647_v18 = vpack.c.bf16 %v9629_v48, %v9628_v33 }
 0x7d7   : > { %v9648_v25 = vpack.c.bf16 %v9631_v1, %v9630_v38 }
 0x7dd   : > { %13368 = vmatmul.mubr.bf16.gmra.mrb[24].mxu1 %v9339_v0  ;;  %v9633_v0 = vld [vmem:[#allocation3 + $0x206] sm:$0xff] }
 0x7de   : > { %13371 = vmatprep.mubr.bf16.mxu1 %v9340_v17  ;;  %v9649_v17 = vpack.c.bf16 %v9633_v0, %v9632_v24 }
 0x7e5   : > { %13372 = vmatmul.mubr.bf16.gmra.mrb[28].mxu1 %v9341_v16 }
 0x7e6   : > { %13375 = vmatprep.mubr.bf16.mxu1 %v9342_v60 }
 0x7ed   : > { %13376 = vmatmul.mubr.bf16.gmra.mrb[32].mxu1 %v9343_v5 }
 0x7ee   : > { %13415 = vmatprep.mubr.bf16.mxu1 %v9644_v56 }
 0x7f5   : > { %13416 = vmatmul.mubr.bf16.vlgmr.msra.gmra.mrb[56].mxu1 %v9645_v47 }
 0x7f6   : > { %13419 = vmatprep.mubr.bf16.mxu1 %v9646_v49 }
 0x7fd   : > { %13420 = vmatmul.mubr.bf16.gmra.mrb[60].mxu1 %v9647_v18 }
 0x7fe   : > { %13423 = vmatprep.mubr.bf16.mxu1 %v9648_v25 }
 0x805   : > { %13424 = vmatmul.mubr.bf16.gmra.mrb[64].mxu1 %v9649_v17  ;;  %v17275_v17 = vpop.permute.xlu1 %9947 }
 0x848   : > { %v13301_v26 = vpop.f32.mrb[36].mxu1 }
 0x849   : > { %v13558_v12 = vadd.f32 %v13301_v26, %v16990_v19  ;;  %v9137_v23 = vpop.f32.mrb[37].mxu1 }
 0x84a   : > { %v13560_v29 = vadd.f32 %v9137_v23, %v16995_v36  ;;  %v13302_v16 = vpop.f32.mrb[38].mxu1 }
 0x84b   : > { %v17210_v60 = vadd.f32 %v13558_v12, %v17072_v37  ;;  %v13562_v45 = vadd.f32 %v13302_v16, %v16997_v6  ;;  %v9140_v50 = vpop.f32.mrb[39].mxu1  ;;  %v9958_v16 = vpop.permute.xlu1 %9957 }
 0x84c   : > { %v17214_v5 = vadd.f32 %v13560_v29, %v17074_v46  ;;  %v13564_v42 = vadd.f32 %v9140_v50, %v16999_v53 }
 0x84d   : > { %v17218_v31 = vadd.f32 %v13562_v45, %v17077_v40 }
 0x84e   : > { %v17221_v19 = vadd.f32 %v13564_v42, %v17080_v35  ;;  %v18151_v42 = vld [vmem:[#allocation57_spill] sm:$0xff] }
 0x850   : > { %v13305_v56 = vpop.f32.mrb[40].mxu1 }
 0x851   : > { %v13566_v36 = vadd.f32 %v13305_v56, %v17004_v32  ;;  %v9153_v41 = vpop.f32.mrb[41].mxu1  ;;  %v18152_v56 = vld [vmem:[#allocation44_spill] sm:$0xff] }
 0x852   : > { %v13568_v37 = vadd.f32 %v9153_v41, %v17009_v52  ;;  %v13306_v39 = vpop.f32.mrb[42].mxu1 }
 0x853   : > { %v17226_v6 = vadd.f32 %v13566_v36, %v17082_v57  ;;  %v13570_v46 = vadd.f32 %v13306_v39, %v17011_v22  ;;  %v9156_v44 = vpop.f32.mrb[43].mxu1  ;;  %v10202_v22 = vld [vmem:[%s18059_s5] sm:$0xff]  ;;  %v18153_v36 = vld [vmem:[#allocation58_spill] sm:$0xff]  ;;  %v17303_v39 = vpop.permute.xlu1 %9962 }
 0x854   : > { %v17230_v53 = vadd.f32 %v13568_v37, %v17084_v15  ;;  %v13572_v40 = vadd.f32 %v9156_v44, %v17013_v3  ;;  %v10203_v3 = vld [vmem:[%s18059_s5 + $0x8] sm:$0xff]  ;;  %v10209_v44 = vld [vmem:[%s18059_s5 + $0x38] sm:$0xff] }
 0x855   : > { %v17234_v35 = vadd.f32 %v13570_v46, %v17087_v63  ;;  %v13487_v33 = vpack.c.bf16 %v10203_v3, %v10202_v22  ;;  %v10213_v22 = vld [vmem:[%s18059_s5 + $0x58] sm:$0xff] }
 0x856   : > { %v17237_v32 = vadd.f32 %v13572_v40, %v17090_v21 }
 0x857   : > { %13488 = vmatpush3.bf16.msra.mxu0 %v13487_v33  ;;  %v10215_v33 = vld [vmem:[%s18059_s5 + $0x68] sm:$0xff] }
 0x858   : > { %v13309_v2 = vpop.f32.mrb[44].mxu1  ;;  %13489 = vmatprep.subr.bf16.mxu0 %v18098_v9 }
 0x859   : > { %v13574_v52 = vadd.f32 %v13309_v2, %v17020_v55  ;;  %v9169_v47 = vpop.f32.mrb[45].mxu1  ;;  %v10210_v2 = vld [vmem:[%s18059_s5 + $0x40] sm:$0xff] }
 0x85a   : > { %v13576_v57 = vadd.f32 %v9169_v47, %v17022_v61  ;;  %v13310_v49 = vpop.f32.mrb[46].mxu1  ;;  %v17324_v47 = vpop.permute.xlu1 %9967 }
 0x85b   : > { %v17248_v63 = vadd.f32 %v13574_v52, %v17095_v11  ;;  %v13578_v15 = vadd.f32 %v13310_v49, %v17024_v20  ;;  %v9172_v21 = vpop.f32.mrb[47].mxu1  ;;  %v10204_v20 = vld [vmem:[%s18059_s5 + $0x10] sm:$0xff]  ;;  %v10205_v11 = vld [vmem:[%s18059_s5 + $0x18] sm:$0xff]  ;;  %v10211_v52 = vld [vmem:[%s18059_s5 + $0x48] sm:$0xff] }
 0x85c   : > { %v17252_v55 = vadd.f32 %v13576_v57, %v17097_v34  ;;  %v13580_v61 = vadd.f32 %v9172_v21, %v17027_v8  ;;  %v13490_v34 = vpack.c.bf16 %v10205_v11, %v10204_v20  ;;  %v13499_v57 = vpack.c.bf16 %v10211_v52, %v10210_v2  ;;  %v10212_v49 = vld [vmem:[%s18059_s5 + $0x50] sm:$0xff]  ;;  %v10214_v21 = vld [vmem:[%s18059_s5 + $0x60] sm:$0xff]  ;;  %v10217_v11 = vld [vmem:[%s18059_s5 + $0x78] sm:$0xff] }
 0x85d   : > { %v17256_v48 = vadd.f32 %v13578_v15, %v17100_v62  ;;  %v13502_v3 = vpack.c.bf16 %v10213_v22, %v10212_v49  ;;  %v10216_v20 = vld [vmem:[%s18059_s5 + $0x70] sm:$0xff] }
 0x85e   : > { %v17259_v38 = vadd.f32 %v13580_v61, %v17103_v7  ;;  %13491 = vmatpush3.bf16.msra.mxu0 %v13490_v34  ;;  %v9953_v15 = vpop.permute.xlu1 %9952  ;;  %v13505_v61 = vpack.c.bf16 %v10215_v33, %v10214_v21  ;;  %v18161_v33 = vld [vmem:[#allocation18_spill] sm:$0xff] }
 0x85f   : > { %13492 = vmatprep.subr.bf16.mxu0 %v18098_v9 }
 0x860   : > { %v13313_v1 = vpop.f32.mrb[48].mxu1 }
 0x861   : > { %v13582_v8 = vadd.f32 %v13313_v1, %v17029_v10  ;;  %v9185_v62 = vpop.f32.mrb[49].mxu1  ;;  %v13508_v1 = vpack.c.bf16 %v10217_v11, %v10216_v20  ;;  %v18162_v11 = vld [vmem:[#allocation19_spill] sm:$0xff] }
 0x862   : > { %v13584_v18 = vadd.f32 %v9185_v62, %v17031_v58  ;;  %v13314_v7 = vpop.f32.mrb[50].mxu1  ;;  %v9973_v34 = vpop.permute.xlu1 %9972 }
 0x863   : > { %v17272_v25 = vadd.f32 %v13582_v8, %v17105_v4  ;;  %v13586_v24 = vadd.f32 %v13314_v7, %v17033_v59  ;;  %v9188_v0 = vpop.f32.mrb[51].mxu1 }
 0x864   : > { %v17278_v26 = vadd.f32 %v13584_v18, %v17107_v28  ;;  %v13588_v10 = vadd.f32 %v9188_v0, %v17035_v43  ;;  %v18155_v18 = vld [vmem:[#allocation13_spill] sm:$0xff]  ;;  %v18156_v0 = vld [vmem:[#allocation12_spill] sm:$0xff] }
 0x865   : > { %v17282_v12 = vadd.f32 %v13586_v24, %v17110_v54 }
 0x866   : > { %v17285_v58 = vadd.f32 %v13588_v10, %v17113_v27  ;;  %v9978_v8 = vpop.permute.xlu1 %9977 }
 0x868   : > { %v13317_v23 = vpop.f32.mrb[52].mxu1 }
 0x869   : > { %v13590_v4 = vadd.f32 %v13317_v23, %v17037_v30  ;;  %v9201_v29 = vpop.f32.mrb[53].mxu1  ;;  %v18154_v30 = vld [vmem:[#allocation59_spill] sm:$0xff] }
 0x86a   : > { %v13592_v59 = vadd.f32 %v9201_v29, %v17039_v51  ;;  %v13318_v45 = vpop.f32.mrb[54].mxu1  ;;  %v10206_v51 = vld [vmem:[%s18059_s5 + $0x20] sm:$0xff]  ;;  %v18157_v29 = vld [vmem:[#allocation14_spill] sm:$0xff] }
 0x86b   : > { %v17290_v50 = vadd.f32 %v13590_v4, %v17115_v13  ;;  %v13594_v28 = vadd.f32 %v13318_v45, %v17041_v14  ;;  %v9204_v43 = vpop.f32.mrb[55].mxu1  ;;  %v10207_v14 = vld [vmem:[%s18059_s5 + $0x28] sm:$0xff]  ;;  %v10208_v13 = vld [vmem:[%s18059_s5 + $0x30] sm:$0xff] }
 0x86c   : > { %v17294_v54 = vadd.f32 %v13592_v59, %v18151_v42  ;;  %v13596_v27 = vadd.f32 %v9204_v43, %v18152_v56  ;;  %v13493_v46 = vpack.c.bf16 %v10207_v14, %v10206_v51  ;;  %v13496_v40 = vpack.c.bf16 %v10209_v44, %v10208_v13  ;;  %v18158_v42 = vld [vmem:[#allocation15_spill] sm:$0xff] }
 0x86d   : > { %v17298_v41 = vadd.f32 %v13594_v28, %v18153_v36  ;;  %v9943_v28 = vpop.permute.xlu0 %9942  ;;  %v9983_v36 = vpop.permute.xlu1 %9982 }
 0x86e   : > { %v17301_v37 = vadd.f32 %v13596_v27, %v18154_v30  ;;  %13494 = vmatpush3.bf16.msra.mxu0 %v13493_v46 }
 0x86f   : > { %13495 = vmatprep.subr.bf16.mxu0 %v18098_v9 }
 0x871   : > { %v9988_v46 = vpop.permute.xlu0 %9987  ;;  %v9993_v20 = vpop.permute.xlu1 %9992 }
 0x872   : > { %13497 = vmatpush3.bf16.msra.mxu0 %v13496_v40 }
 0x873   : > { %13498 = vmatprep.subr.bf16.mxu0 %v18098_v9 }
 0x876   : > { %13500 = vmatpush3.bf16.msra.mxu0 %v13499_v57  ;;  %v18159_v57 = vld [vmem:[#allocation16_spill] sm:$0xff] }
 0x877   : > { %13501 = vmatprep.subr.bf16.mxu0 %v18098_v9 }
 0x87a   : > { %13503 = vmatpush3.bf16.msra.mxu0 %v13502_v3 }
 0x87b   : > { %13504 = vmatprep.subr.bf16.mxu0 %v18098_v9 }
 0x87e   : > { %13506 = vmatpush3.bf16.msra.mxu0 %v13505_v61 }
 0x87f   : > { %13507 = vmatprep.subr.bf16.mxu0 %v18098_v9 }
 0x882   : > { %13509 = vmatpush3.bf16.msra.mxu0 %v13508_v1 }
 0x888   : > { %v13349_v62 = vpop.f32.mrb[4].mxu1 }
 0x889   : > { %v13526_v7 = vadd.f32 %v13349_v62, %v18155_v18  ;;  %v9443_v24 = vpop.f32.mrb[5].mxu1  ;;  %v9998_v18 = vpop.permute.xlu0 %9997 }
 0x88a   : > { %v13527_v10 = vadd.f32 %v9443_v24, %v18156_v0  ;;  %v13350_v23 = vpop.f32.mrb[6].mxu1 }
 0x88b   : > { %v9910_v4 = vsub.f32 %v13526_v7, %v17210_v60  ;;  %v13528_v59 = vadd.f32 %v13350_v23, %v18157_v29  ;;  %v9446_v45 = vpop.f32.mrb[7].mxu1 }
 0x88c   : > { %v9908_v43 = vsub.f32 %v13527_v10, %v17214_v5  ;;  %v13529_v56 = vadd.f32 %v9446_v45, %v18158_v42  ;;  %v10003_v42 = vpop.permute.xlu1 %10002 }
 0x88d   : > { %v10102_v9 = vmul.f32 %v9953_v15, %v9910_v4  ;;  %v9911_v27 = vsub.f32 %v13528_v59, %v17218_v31  ;;  %v18160_v15 = vld [vmem:[#allocation17_spill] sm:$0xff] }
 0x88e   : > { %v10100_v30 = vmul.f32 %v9943_v28, %v9908_v43  ;;  %v9909_v51 = vsub.f32 %v13529_v56, %v17221_v19  ;;  %v18163_v28 = vld [vmem:[#allocation20_spill] sm:$0xff] }
 0x88f   : > { %v17357_v14 = vadd.f32 %v17210_v60, %v10102_v9  ;;  %v10103_v13 = vmul.f32 %v9958_v16, %v9911_v27 }
 0x890   : > { %v17360_v44 = vadd.f32 %v17214_v5, %v10100_v30  ;;  %v10101_v40 = vmul.f32 %v17275_v17, %v9909_v51  ;;  %v13353_v2 = vpop.f32.mrb[8].mxu1  ;;  %v18165_v30 = vld [vmem:[#allocation22_spill] sm:$0xff] }
 0x891   : > { %v17364_v52 = vadd.f32 %v17218_v31, %v10103_v13  ;;  %v13530_v49 = vadd.f32 %v13353_v2, %v18159_v57  ;;  %v9459_v22 = vpop.f32.mrb[9].mxu1  ;;  %v10008_v13 = vpop.permute.xlu0 %10007  ;;  %v18166_v2 = vld [vmem:[#allocation23_spill] sm:$0xff] }
 0x892   : > { %v17368_v3 = vadd.f32 %v17221_v19, %v10101_v40  ;;  %v13531_v60 = vadd.f32 %v9459_v22, %v18160_v15  ;;  %v13354_v21 = vpop.f32.mrb[10].mxu1 }
 0x893   : > { %v9914_v16 = vsub.f32 %v13530_v49, %v17226_v6  ;;  %v13532_v5 = vadd.f32 %v13354_v21, %v18161_v33  ;;  %v9462_v61 = vpop.f32.mrb[11].mxu1  ;;  %v10013_v33 = vpop.permute.xlu1 %10012 }
 0x894   : > { %v10164_v17 = vadd.f32 %v17368_v3, %v17360_v44  ;;  %v9912_v31 = vsub.f32 %v13531_v60, %v17230_v53  ;;  %v13533_v1 = vadd.f32 %v9462_v61, %v18162_v11  ;;  %v18167_v11 = vld [vmem:[#allocation24_spill] sm:$0xff] }
 0x895   : > { %v10106_v62 = vmul.f32 %v9973_v34, %v9914_v16  ;;  %v9915_v19 = vsub.f32 %v13532_v5, %v17234_v35 }
 0x896   : > { %v10165_v7 = vadd.f32 %v10164_v17, %v17357_v14  ;;  %v10104_v24 = vmul.f32 %v17303_v39, %v9912_v31  ;;  %v9913_v0 = vsub.f32 %v13533_v1, %v17237_v32 }
 0x897   : > { %v17382_v10 = vadd.f32 %v17226_v6, %v10106_v62  ;;  %v10107_v23 = vmul.f32 %v9978_v8, %v9915_v19  ;;  %v18164_v8 = vld [vmem:[#allocation21_spill] sm:$0xff]  ;;  %v10018_v62 = vpop.permute.xlu0 %10017 }
 0x898   : > { %v17385_v4 = vadd.f32 %v17230_v53, %v10104_v24  ;;  %v10166_v29 = vadd.f32 %v10165_v7, %v17364_v52  ;;  %v10105_v34 = vmul.f32 %v17324_v47, %v9913_v0  ;;  %v13357_v59 = vpop.f32.mrb[12].mxu1  ;;  %v18169_v24 = vld [vmem:[#allocation26_spill] sm:$0xff] }
 0x899   : > { %v17390_v45 = vadd.f32 %v17234_v35, %v10107_v23  ;;  %v13534_v43 = vadd.f32 %v13357_v59, %v18163_v28  ;;  %v9475_v39 = vpop.f32.mrb[13].mxu1 }
 0x89a   : > { %v10167_v56 = vadd.f32 %v10166_v29, %v17385_v4  ;;  %v17395_v6 = vadd.f32 %v17237_v32, %v10105_v34  ;;  %v13535_v53 = vadd.f32 %v9475_v39, %v18164_v8  ;;  %v13358_v9 = vpop.f32.mrb[14].mxu1  ;;  %v18170_v29 = vld [vmem:[#allocation27_spill] sm:$0xff] }
 0x89b   : > { %v9918_v27 = vsub.f32 %v13534_v43, %v17248_v63  ;;  %v13536_v47 = vadd.f32 %v13358_v9, %v18165_v30  ;;  %v9478_v51 = vpop.f32.mrb[15].mxu1  ;;  %v10023_v43 = vpop.permute.xlu1 %10022 }
 0x89c   : > { %v10168_v35 = vadd.f32 %v10167_v56, %v17395_v6  ;;  %v9916_v40 = vsub.f32 %v13535_v53, %v17252_v55  ;;  %v13537_v57 = vadd.f32 %v9478_v51, %v18166_v2  ;;  %v10028_v53 = vpop.permute.xlu0 %10027 }
 0x89d   : > { %v10110_v49 = vmul.f32 %v9993_v20, %v9918_v27  ;;  %v9919_v22 = vsub.f32 %v13536_v47, %v17256_v48 }
 0x89e   : > { %v10169_v32 = vadd.f32 %v10168_v35, %v17382_v10  ;;  %v10108_v15 = vmul.f32 %v9983_v36, %v9916_v40  ;;  %v9917_v60 = vsub.f32 %v13537_v57, %v17259_v38  ;;  %v18171_v35 = vld [vmem:[#allocation28_spill] sm:$0xff] }
 0x89f   : > { %v17407_v21 = vadd.f32 %v17248_v63, %v10110_v49  ;;  %v10111_v16 = vmul.f32 %v9998_v18, %v9919_v22  ;;  %v18168_v63 = vld [vmem:[#allocation25_spill] sm:$0xff] }
 0x8a0   : > { %v17410_v5 = vadd.f32 %v17252_v55, %v10108_v15  ;;  %v10170_v61 = vadd.f32 %v10169_v32, %v17390_v45  ;;  %v10109_v17 = vmul.f32 %v9988_v46, %v9917_v60  ;;  %v13361_v31 = vpop.f32.mrb[16].mxu1  ;;  %v18173_v32 = vld [vmem:[#allocation30_spill] sm:$0xff]  ;;  %v10033_v60 = vpop.permute.xlu1 %10032 }
 0x8a1   : > { %v17414_v20 = vadd.f32 %v17256_v48, %v10111_v16  ;;  %v13538_v1 = vadd.f32 %v13361_v31, %v18167_v11  ;;  %v9491_v36 = vpop.f32.mrb[17].mxu1  ;;  %v18174_v16 = vld [vmem:[#allocation31_spill] sm:$0xff] }
 0x8a2   : > { %v17418_v19 = vadd.f32 %v17259_v38, %v10109_v17  ;;  %v13539_v18 = vadd.f32 %v9491_v36, %v18168_v63  ;;  %v13362_v7 = vpop.f32.mrb[18].mxu1  ;;  %v10171_v46 = vadd.f32 %v10170_v61, %v17410_v5 }
 0x8a3   : > { %v9922_v55 = vsub.f32 %v13538_v1, %v17272_v25  ;;  %v13540_v0 = vadd.f32 %v13362_v7, %v18169_v24  ;;  %v9494_v23 = vpop.f32.mrb[19].mxu1  ;;  %v18175_v24 = vld [vmem:[#allocation32_spill] sm:$0xff] }
 0x8a4   : > { %v9920_v48 = vsub.f32 %v13539_v18, %v17278_v26  ;;  %v13541_v34 = vadd.f32 %v9494_v23, %v18170_v29  ;;  %v10172_v9 = vadd.f32 %v10171_v46, %v17418_v19 }
 0x8a5   : > { %v10114_v59 = vmul.f32 %v10013_v33, %v9922_v55  ;;  %v9923_v28 = vsub.f32 %v13540_v0, %v17282_v12 }
 0x8a6   : > { %v10112_v38 = vmul.f32 %v10003_v42, %v9920_v48  ;;  %v9921_v39 = vsub.f32 %v13541_v34, %v17285_v58  ;;  %v18176_v48 = vld [vmem:[#allocation33_spill] sm:$0xff]  ;;  %v18177_v34 = vld [vmem:[#allocation34_spill] sm:$0xff] }
 0x8a7   : > { %v17429_v56 = vadd.f32 %v17272_v25, %v10114_v59  ;;  %v10115_v8 = vmul.f32 %v10018_v62, %v9923_v28  ;;  %v18172_v25 = vld [vmem:[#allocation29_spill] sm:$0xff] }
 0x8a8   : > { %v17433_v27 = vadd.f32 %v17278_v26, %v10112_v38  ;;  %v10113_v30 = vmul.f32 %v10008_v13, %v9921_v39  ;;  %v13365_v47 = vpop.f32.mrb[20].mxu1  ;;  %v10173_v13 = vadd.f32 %v10172_v9, %v17407_v21 }
 0x8a9   : > { %v17436_v51 = vadd.f32 %v17282_v12, %v10115_v8  ;;  %v13542_v40 = vadd.f32 %v13365_v47, %v18171_v35  ;;  %v9507_v42 = vpop.f32.mrb[21].mxu1  ;;  %v18179_v8 = vld [vmem:[#allocation36_spill] sm:$0xff]  ;;  %v18181_v35 = vld [vmem:[#allocation38_spill] sm:$0xff] }
 0x8aa   : > { %v17440_v2 = vadd.f32 %v17285_v58, %v10113_v30  ;;  %v13543_v57 = vadd.f32 %v9507_v42, %v18172_v25  ;;  %v13366_v49 = vpop.f32.mrb[22].mxu1  ;;  %v10038_v58 = vpop.permute.xlu0 %10037  ;;  %v10174_v62 = vadd.f32 %v10173_v13, %v17414_v20  ;;  %v18180_v30 = vld [vmem:[#allocation37_spill] sm:$0xff] }
 0x8ab   : > { %v9926_v22 = vsub.f32 %v13542_v40, %v17290_v50  ;;  %v13544_v15 = vadd.f32 %v13366_v49, %v18173_v32  ;;  %v9510_v26 = vpop.f32.mrb[23].mxu1 }
 0x8ac   : > { %v9924_v12 = vsub.f32 %v13543_v57, %v17294_v54  ;;  %v13545_v33 = vadd.f32 %v9510_v26, %v18174_v16  ;;  %v18182_v57 = vld [vmem:[#allocation39_spill] sm:$0xff]  ;;  %v18184_v16 = vld [vmem:[#allocation41_spill] sm:$0xff] }
 0x8ad   : > { %v10118_v61 = vmul.f32 %v10033_v60, %v9926_v22  ;;  %v9927_v17 = vsub.f32 %v13544_v15, %v17298_v41  ;;  %v10043_v22 = vpop.permute.xlu1 %10042  ;;  %v18183_v60 = vld [vmem:[#allocation40_spill] sm:$0xff] }
 0x8ae   : > { %v10116_v31 = vmul.f32 %v10023_v43, %v9924_v12  ;;  %v9925_v11 = vsub.f32 %v13545_v33, %v17301_v37  ;;  %v18178_v43 = vld [vmem:[#allocation35_spill] sm:$0xff]  ;;  %v10048_v32 = vpop.permute.xlu0 %10047 }
 0x8af   : > { %v17451_v1 = vadd.f32 %v17290_v50, %v10118_v61  ;;  %v10119_v36 = vmul.f32 %v10038_v58, %v9927_v17  ;;  %v18185_v17 = vld [vmem:[#allocation42_spill] sm:$0xff] }
 0x8b0   : > { %v17455_v63 = vadd.f32 %v17294_v54, %v10116_v31  ;;  %v10117_v18 = vmul.f32 %v10028_v53, %v9925_v11  ;;  %v13369_v7 = vpop.f32.mrb[24].mxu1  ;;  %v10175_v54 = vadd.f32 %v10174_v62, %v17433_v27  ;;  %v18186_v62 = vld [vmem:[#allocation43_spill] sm:$0xff] }
 0x8b1   : > { %v17458_v55 = vadd.f32 %v17298_v41, %v10119_v36  ;;  %v13546_v0 = vadd.f32 %v13369_v7, %v18175_v24  ;;  %v9523_v23 = vpop.f32.mrb[25].mxu1  ;;  %v10053_v11 = vpop.permute.xlu1 %10052 }
 0x8b2   : > { %v17462_v46 = vadd.f32 %v17301_v37, %v10117_v18  ;;  %v13547_v50 = vadd.f32 %v9523_v23, %v18176_v48  ;;  %v13370_v29 = vpop.f32.mrb[26].mxu1  ;;  %v10176_v39 = vadd.f32 %v10175_v54, %v17440_v2  ;;  %v10058_v7 = vpop.permute.xlu0 %10057  ;;  %v18187_v48 = vld [vmem:[#allocation45_spill] sm:$0xff]  ;;  %v18188_v54 = vld [vmem:[#allocation46_spill] sm:$0xff] }
 0x8b3   : > { %v13548_v59 = vadd.f32 %v13370_v29, %v18177_v34  ;;  %v9526_v28 = vpop.f32.mrb[27].mxu1 }
 0x8b4   : > { %v13549_v38 = vadd.f32 %v9526_v28, %v18178_v43  ;;  %v10177_v25 = vadd.f32 %v10176_v39, %v17429_v56 }
 0x8b5   : > { %v10063_v28 = vpop.permute.xlu1 %10062 }
 0x8b6   : > { %v10178_v15 = vadd.f32 %v10177_v25, %v17436_v51  ;;  %v18190_v25 = vld [vmem:[#allocation48_spill] sm:$0xff] }
 0x8b8   : > { %v13373_v41 = vpop.f32.mrb[28].mxu1  ;;  %v10179_v36 = vadd.f32 %v10178_v15, %v17455_v63 }
 0x8b9   : > { %v13550_v53 = vadd.f32 %v13373_v41, %v18179_v8  ;;  %v9539_v9 = vpop.f32.mrb[29].mxu1  ;;  %v18189_v8 = vld [vmem:[#allocation47_spill] sm:$0xff] }
 0x8ba   : > { %v17471_v47 = vadd.f32 %v9539_v9, %v18180_v30  ;;  %v13374_v37 = vpop.f32.mrb[30].mxu1  ;;  %v10180_v24 = vadd.f32 %v10179_v36, %v17462_v46 }
 0x8bb   : > { %v17474_v40 = vadd.f32 %v13374_v37, %v18181_v35  ;;  %v9542_v42 = vpop.f32.mrb[31].mxu1  ;;  %v10068_v37 = vpop.permute.xlu0 %10067 }
 0x8bc   : > { %v17478_v49 = vadd.f32 %v9542_v42, %v18182_v57  ;;  %v10181_v42 = vadd.f32 %v10180_v24, %v17451_v1 }
 0x8c0   : > { %v13377_v26 = vpop.f32.mrb[32].mxu1 }
 0x8c1   : > { %v17482_v13 = vadd.f32 %v13377_v26, %v18183_v60  ;;  %v9555_v12 = vpop.f32.mrb[33].mxu1 }
 0x8c2   : > { %v17485_v33 = vadd.f32 %v9555_v12, %v18184_v16  ;;  %v13378_v61 = vpop.f32.mrb[34].mxu1 }
 0x8c3   : > { %v17488_v58 = vadd.f32 %v13378_v61, %v18185_v17  ;;  %v9558_v31 = vpop.f32.mrb[35].mxu1  ;;  %v10073_v17 = vpop.permute.xlu1 %10072 }
 0x8c4   : > { %v17492_v18 = vadd.f32 %v9558_v31, %v18186_v62 }
 0x8c8   : > { %v13417_v23 = vpop.f32.mrb[56].mxu1 }
 0x8c9   : > { %v13598_v29 = vadd.f32 %v13417_v23, %v18187_v48  ;;  %v9829_v34 = vpop.f32.mrb[57].mxu1 }
 0x8ca   : > { %v13599_v43 = vadd.f32 %v9829_v34, %v18188_v54  ;;  %v13418_v39 = vpop.f32.mrb[58].mxu1  ;;  %v10078_v34 = vpop.permute.xlu0 %10077  ;;  %v18193_v54 = vld [vmem:[#allocation51_spill] sm:$0xff] }
 0x8cb   : > { %v9930_v41 = vsub.f32 %v13546_v0, %v13598_v29  ;;  %v13600_v9 = vadd.f32 %v13418_v39, %v18189_v8  ;;  %v9832_v30 = vpop.f32.mrb[59].mxu1  ;;  %v10182_v0 = vadd.f32 %v10181_v42, %v17458_v55  ;;  %v18194_v8 = vld [vmem:[#allocation52_spill] sm:$0xff]  ;;  %v10083_v42 = vpop.permute.xlu1 %10082 }
 0x8cc   : > { %v9928_v35 = vsub.f32 %v13547_v50, %v13599_v43  ;;  %v13601_v57 = vadd.f32 %v9832_v30, %v18190_v25  ;;  %v18191_v50 = vld [vmem:[#allocation49_spill] sm:$0xff] }
 0x8cd   : > { %v10122_v15 = vmul.f32 %v10053_v11, %v9930_v41  ;;  %v9931_v26 = vsub.f32 %v13548_v59, %v13600_v9 }
 0x8ce   : > { %v10120_v60 = vmul.f32 %v10043_v22, %v9928_v35  ;;  %v9929_v12 = vsub.f32 %v13549_v38, %v13601_v57  ;;  %v18192_v38 = vld [vmem:[#allocation50_spill] sm:$0xff] }
 0x8cf   : > { %v17500_v16 = vadd.f32 %v13598_v29, %v10122_v15  ;;  %v10123_v61 = vmul.f32 %v10058_v7, %v9931_v26 }
 0x8d0   : > { %v17502_v31 = vadd.f32 %v13599_v43, %v10120_v60  ;;  %v10121_v36 = vmul.f32 %v10048_v32, %v9929_v12  ;;  %v13421_v62 = vpop.f32.mrb[60].mxu1  ;;  %v10088_v60 = vpop.permute.xlu0 %10087 }
 0x8d1   : > { %v17505_v23 = vadd.f32 %v13600_v9, %v10123_v61  ;;  %v13602_v24 = vadd.f32 %v13421_v62, %v18191_v50  ;;  %v9845_v48 = vpop.f32.mrb[61].mxu1 }
 0x8d2   : > { %v10183_v59 = vadd.f32 %v10182_v0, %v17502_v31  ;;  %v17509_v22 = vadd.f32 %v13601_v57, %v10121_v36  ;;  %v13603_v11 = vadd.f32 %v9845_v48, %v18192_v38  ;;  %v13422_v7 = vpop.f32.mrb[62].mxu1 }
 0x8d3   : > { %v9934_v29 = vsub.f32 %v13550_v53, %v13602_v24  ;;  %v13604_v43 = vadd.f32 %v13422_v7, %v18193_v54  ;;  %v9848_v39 = vpop.f32.mrb[63].mxu1  ;;  %v10093_v7 = vpop.permute.xlu1 %10092  ;;  %v18198_v54 = vld [vmem:[#allocation56_spill] sm:$0xff] }
 0x8d4   : > { %v10184_v32 = vadd.f32 %v10183_v59, %v17509_v22  ;;  %v9932_v41 = vsub.f32 %v17471_v47, %v13603_v11  ;;  %v13605_v9 = vadd.f32 %v9848_v39, %v18194_v8  ;;  %v18197_v59 = vld [vmem:[#allocation55_spill] sm:$0xff] }
 0x8d5   : > { %v10126_v30 = vmul.f32 %v10073_v17, %v9934_v29  ;;  %v9935_v35 = vsub.f32 %v17474_v40, %v13604_v43  ;;  %v18195_v17 = vld [vmem:[#allocation53_spill] sm:$0xff] }
 0x8d6   : > { %v10185_v25 = vadd.f32 %v10184_v32, %v17500_v16  ;;  %v10124_v57 = vmul.f32 %v10063_v28, %v9932_v41  ;;  %v9933_v15 = vsub.f32 %v17478_v49, %v13605_v9  ;;  %v18196_v49 = vld [vmem:[#allocation54_spill] sm:$0xff]  ;;  %v10098_v41 = vpop.permute.xlu0 %10097 }
 0x8d7   : > { %v17519_v26 = vadd.f32 %v13602_v24, %v10126_v30  ;;  %v10127_v53 = vmul.f32 %v10078_v34, %v9935_v35 }
 0x8d8   : > { %v17521_v12 = vadd.f32 %v13603_v11, %v10124_v57  ;;  %v10186_v61 = vadd.f32 %v10185_v25, %v17505_v23  ;;  %v10125_v47 = vmul.f32 %v10068_v37, %v9933_v15  ;;  %v13425_v0 = vpop.f32.mrb[64].mxu1 }
 0x8d9   : > { %v17524_v36 = vadd.f32 %v13604_v43, %v10127_v53  ;;  %v13606_v40 = vadd.f32 %v13425_v0, %v18195_v17  ;;  %v9861_v62 = vpop.f32.mrb[65].mxu1 }
 0x8da   : > { %v10187_v50 = vadd.f32 %v10186_v61, %v17521_v12  ;;  %v17528_v28 = vadd.f32 %v13605_v9, %v10125_v47  ;;  %v13607_v24 = vadd.f32 %v9861_v62, %v18196_v49  ;;  %v13426_v48 = vpop.f32.mrb[66].mxu1 }
 0x8db   : > { %v9938_v34 = vsub.f32 %v17482_v13, %v13606_v40  ;;  %v13608_v38 = vadd.f32 %v13426_v48, %v18197_v59  ;;  %v9864_v11 = vpop.f32.mrb[67].mxu1  ;;  %v315_v48 = vld [vmem:[%s18060_s6 + $0x5] sm:$0x1] }
 0x8dc   : > { %v10188_v37 = vadd.f32 %v10187_v50, %v17528_v28  ;;  %v9936_v29 = vsub.f32 %v17485_v33, %v13607_v24  ;;  %v13609_v43 = vadd.f32 %v9864_v11, %v18198_v54  ;;  %v18199_v59 = vld [vmem:[#allocation11_spill] sm:$0xff] }
 0x8dd   : > { %v10130_v39 = vmul.f32 %v10093_v7, %v9938_v34  ;;  %v9939_v32 = vsub.f32 %v17488_v58, %v13608_v38 }
 0x8de   : > { %v10189_v8 = vadd.f32 %v10188_v37, %v17519_v26  ;;  %v10128_v9 = vmul.f32 %v10083_v42, %v9936_v29  ;;  %v9937_v30 = vsub.f32 %v17492_v18, %v13609_v43 }
 0x8df   : > { %v17539_v13 = vadd.f32 %v13606_v40, %v10130_v39  ;;  %v10131_v35 = vmul.f32 %v10098_v41, %v9939_v32 }
 0x8e0   : > { %v17541_v25 = vadd.f32 %v13607_v24, %v10128_v9  ;;  %v10190_v57 = vadd.f32 %v10189_v8, %v17524_v36  ;;  %v10129_v15 = vmul.f32 %v10088_v60, %v9937_v30 }
 0x8e1   : > { %v17544_v33 = vadd.f32 %v13608_v38, %v10131_v35  ;;  %v18200_v38 = vsub.s32 0, %v18199_v59 }
 0x8e2   : > { %v10191_v53 = vadd.f32 %v10190_v57, %v17541_v25  ;;  %v10161_v61 = vadd.f32 %v13609_v43, %v10129_v15  ;;  %v17561_v43 = vld [vmem:[%s18060_s6 + $0x3] ss:$0 sm:$0xff] }
 0x8e4   : > { %v10192_v58 = vadd.f32 %v10191_v53, %v10161_v61 }
 0x8e6   : > { %v10193_v47 = vadd.f32 %v10192_v58, %v17539_v13 }
 0x8e8   : > { %v10194_v42 = vadd.f32 %v10193_v47, %v17544_v33 }
 0x8ea   : > { %v10195_v0 = vrot.slane %v10194_v42, 4 }
 0x8ec   : > { %v10196_v18 = vadd.f32 %v10195_v0, %v10194_v42 }
 0x8ee   : > { %v10197_v17 = vrot.slane %v10196_v18, 2 }
 0x8f0   : > { %v10198_v40 = vadd.f32 %v10197_v17, %v10196_v18 }
 0x8f2   : > { %v10199_v62 = vrot.slane %v10198_v40, 1 }
 0x8f4   : > { %v10200_v50 = vadd.f32 %v10199_v62, %v10198_v40 }
 0x8f6   : > { %v10201_v49 = vmul.f32 0.00390625, %v10200_v50 }
 0x8f8   : > { %13460 = vmatmul.mubr.f32.vlgmr.msra.gmra.mrb[116].mxu0 %v10201_v49 }
 0x9cb   : > { %v10284_v24 = vpop.f32.mrb[116].mxu0 }
 0x9cc   : > { %v13461_v60 = vpop.f32.mrb[117].mxu0  ;;  %v10285_v34 = vadd.f32 %v10284_v24, %v315_v48 }
 0x9ce   : > { %v10291_v11 = vrot.slane %v10285_v34, %v18200_v38 }
 0x9d0   : > { %v10292_v7 = vadd.f32 %v10291_v11, %v17360_v44  ;;  %v10293_v37 = vadd.f32 %v10291_v11, %v17368_v3  ;;  %v10294_v29 = vadd.f32 %v10291_v11, %v17357_v14  ;;  %v10295_v54 = vadd.f32 %v10291_v11, %v17364_v52 }
 0x9d1   : > { %v10296_v39 = vadd.f32 %v10291_v11, %v17385_v4  ;;  %v10297_v32 = vadd.f32 %v10291_v11, %v17395_v6  ;;  %v10298_v41 = vadd.f32 %v10291_v11, %v17382_v10  ;;  %v10299_v8 = vadd.f32 %v10291_v11, %v17390_v45 }
 0x9d2   : > { %v10300_v44 = vadd.f32 %v10291_v11, %v17410_v5  ;;  %v10301_v3 = vadd.f32 %v10291_v11, %v17418_v19  ;;  %v10302_v14 = vadd.f32 %v10291_v11, %v17407_v21  ;;  %v10303_v52 = vadd.f32 %v10291_v11, %v17414_v20  ;;  %v17582_v21 = vld [vmem:[%s18060_s6 + $0x4] ss:$0 sm:$0xff] }
 0x9d3   : > { %v10304_v9 = vadd.f32 %v10291_v11, %v17433_v27  ;;  %v10305_v30 = vadd.f32 %v10291_v11, %v17440_v2  ;;  %v10306_v4 = vadd.f32 %v10291_v11, %v17429_v56  ;;  %v10307_v6 = vadd.f32 %v10291_v11, %v17436_v51 }
 0x9d4   : > { %v10308_v10 = vadd.f32 %v10291_v11, %v17455_v63  ;;  %v10328_v45 = vmul.f32 %v17561_v43, %v10292_v7  ;;  %v10329_v5 = vmul.f32 %v17561_v43, %v10293_v37  ;;  %v10330_v19 = vmul.f32 %v17561_v43, %v10294_v29 }
 0x9d5   : > { %v10309_v20 = vadd.f32 %v10291_v11, %v17462_v46  ;;  %v10310_v27 = vadd.f32 %v10291_v11, %v17451_v1  ;;  %v10311_v56 = vadd.f32 %v10291_v11, %v17458_v55  ;;  %v10331_v51 = vmul.f32 %v17561_v43, %v10295_v54 }
 0x9d6   : > { %v17589_v2 = vadd.f32 %v10291_v11, %v17502_v31  ;;  %v17592_v63 = vadd.f32 %v10291_v11, %v17509_v22  ;;  %v17595_v35 = vadd.f32 %v10291_v11, %v17500_v16  ;;  %v10332_v57 = vmul.f32 %v17561_v43, %v10296_v39 }
 0x9d7   : > { %v17599_v15 = vadd.f32 %v10291_v11, %v17505_v23  ;;  %v17602_v1 = vadd.f32 %v10291_v11, %v17521_v12  ;;  %v17605_v55 = vadd.f32 %v10291_v11, %v17528_v28  ;;  %v10333_v46 = vmul.f32 %v17561_v43, %v10297_v32 }
 0x9d8   : > { %v10334_v31 = vmul.f32 %v17561_v43, %v10298_v41  ;;  %v17610_v22 = vadd.f32 %v17582_v21, %v10328_v45  ;;  %v17613_v16 = vadd.f32 %v17582_v21, %v10329_v5  ;;  %v17616_v53 = vadd.f32 %v17582_v21, %v10330_v19 }
 0x9d9   : > { %v17619_v23 = vadd.f32 %v10291_v11, %v17519_v26  ;;  %v17622_v12 = vadd.f32 %v10291_v11, %v17524_v36  ;;  %v10335_v28 = vmul.f32 %v17561_v43, %v10299_v8  ;;  %v17626_v58 = vadd.f32 %v17582_v21, %v10331_v51 }
 0x9da   : > { %v17629_v47 = vadd.f32 %v10291_v11, %v17541_v25  ;;  %v17631_v42 = vadd.f32 %v10291_v11, %v10161_v61  ;;  %v10336_v0 = vmul.f32 %v17561_v43, %v10300_v44  ;;  %v17635_v18 = vadd.f32 %v17582_v21, %v10332_v57 }
 0x9db   : > { %v17638_v26 = vadd.f32 %v10291_v11, %v17539_v13  ;;  %v10337_v36 = vmul.f32 %v17561_v43, %v10301_v3  ;;  %v10338_v17 = vmul.f32 %v17561_v43, %v10302_v14  ;;  %v17643_v40 = vadd.f32 %v17582_v21, %v10333_v46 }
 0x9dc   : > { %v17646_v25 = vadd.f32 %v17582_v21, %v10334_v31  ;;  %v11220_v61 = vmul.f32 -1.442695, %v17610_v22  ;;  %v11221_v62 = vmul.f32 -1.442695, %v17613_v16  ;;  %v11222_v50 = vmul.f32 -1.442695, %v17616_v53 }
 0x9dd   : > { %v17652_v49 = vadd.f32 %v10291_v11, %v17544_v33  ;;  %v10339_v13 = vmul.f32 %v17561_v43, %v10303_v52  ;;  %v17656_v24 = vadd.f32 %v17582_v21, %v10335_v28  ;;  %v11223_v60 = vmul.f32 -1.442695, %v17626_v58 }
 0x9de   : > { %v10340_v48 = vmul.f32 %v17561_v43, %v10304_v9  ;;  %v17661_v34 = vadd.f32 %v17582_v21, %v10336_v0  ;;  %14691 = vpow2.f32 %v11220_v61  ;;  %v11224_v59 = vmul.f32 -1.442695, %v17635_v18 }
 0x9df   : > { %v10341_v38 = vmul.f32 %v17561_v43, %v10305_v30  ;;  %v17666_v33 = vadd.f32 %v17582_v21, %v10337_v36  ;;  %14693 = vpow2.f32 %v11221_v62  ;;  %v11225_v11 = vmul.f32 -1.442695, %v17643_v40 }
 0x9e0   : > { %v10342_v7 = vmul.f32 %v17561_v43, %v10306_v4  ;;  %v17671_v37 = vadd.f32 %v17582_v21, %v10338_v17  ;;  %14695 = vpow2.f32 %v11222_v50  ;;  %v11226_v29 = vmul.f32 -1.442695, %v17646_v25 }
 0x9e1   : > { %v10343_v54 = vmul.f32 %v17561_v43, %v10307_v6  ;;  %v17676_v39 = vadd.f32 %v17582_v21, %v10339_v13  ;;  %14697 = vpow2.f32 %v11223_v60  ;;  %v11227_v32 = vmul.f32 -1.442695, %v17656_v24 }
 0x9e2   : > { %v10344_v41 = vmul.f32 %v17561_v43, %v10308_v10  ;;  %v17681_v8 = vadd.f32 %v17582_v21, %v10340_v48  ;;  %14699 = vpow2.f32 %v11224_v59  ;;  %v11228_v44 = vmul.f32 -1.442695, %v17661_v34 }
 0x9e3   : > { %v10345_v3 = vmul.f32 %v17561_v43, %v10309_v20  ;;  %v17686_v14 = vadd.f32 %v17582_v21, %v10341_v38  ;;  %14701 = vpow2.f32 %v11225_v11  ;;  %v11229_v52 = vmul.f32 -1.442695, %v17666_v33 }
 0x9e4   : > { %v10346_v9 = vmul.f32 %v17561_v43, %v10310_v27  ;;  %v17691_v30 = vadd.f32 %v17582_v21, %v10342_v7  ;;  %14703 = vpow2.f32 %v11226_v29  ;;  %v11230_v4 = vmul.f32 -1.442695, %v17671_v37 }
 0x9e5   : > { %v10347_v6 = vmul.f32 %v17561_v43, %v10311_v56  ;;  %v17696_v10 = vadd.f32 %v17582_v21, %v10343_v54  ;;  %14705 = vpow2.f32 %v11227_v32  ;;  %v11231_v45 = vmul.f32 -1.442695, %v17676_v39 }
 0x9e6   : > { %v10348_v5 = vmul.f32 %v17561_v43, %v17589_v2  ;;  %v17702_v19 = vadd.f32 %v17582_v21, %v10344_v41  ;;  %14707 = vpow2.f32 %v11228_v44  ;;  %v11232_v20 = vmul.f32 -1.442695, %v17681_v8 }
 0x9e7   : > { %v10349_v27 = vmul.f32 %v17561_v43, %v17592_v63  ;;  %v17708_v56 = vadd.f32 %v17582_v21, %v10345_v3  ;;  %14709 = vpow2.f32 %v11229_v52  ;;  %v11233_v51 = vmul.f32 -1.442695, %v17686_v14 }
 0x9e8   : > { %v17711_v57 = vpop.eup %14691  ;;  %v10350_v2 = vmul.f32 %v17561_v43, %v17595_v35  ;;  %v17716_v46 = vadd.f32 %v17582_v21, %v10346_v9  ;;  %14711 = vpow2.f32 %v11230_v4  ;;  %v11234_v31 = vmul.f32 -1.442695, %v17691_v30 }
 0x9e9   : > { %v17719_v28 = vpop.eup %14693  ;;  %v10351_v63 = vmul.f32 %v17561_v43, %v17599_v15  ;;  %v17724_v0 = vadd.f32 %v17582_v21, %v10347_v6  ;;  %14713 = vpow2.f32 %v11231_v45  ;;  %v11235_v36 = vmul.f32 -1.442695, %v17696_v10 }
 0x9ea   : > { %v17727_v17 = vpop.eup %14695  ;;  %v10352_v35 = vmul.f32 %v17561_v43, %v17602_v1  ;;  %v17732_v61 = vadd.f32 %v17582_v21, %v10348_v5  ;;  %14715 = vpow2.f32 %v11232_v20  ;;  %v11236_v62 = vmul.f32 -1.442695, %v17702_v19 }
 0x9eb   : > { %v17735_v50 = vpop.eup %14697  ;;  %v10353_v15 = vmul.f32 %v17561_v43, %v17605_v55  ;;  %v17740_v13 = vadd.f32 %v17582_v21, %v10349_v27  ;;  %14717 = vpow2.f32 %v11233_v51  ;;  %v11237_v60 = vmul.f32 -1.442695, %v17708_v56 }
 0x9ec   : > { %v17743_v48 = vpop.eup %14699  ;;  %v10354_v1 = vmul.f32 %v17561_v43, %v17619_v23  ;;  %v17748_v59 = vadd.f32 %v17582_v21, %v10350_v2  ;;  %14719 = vpow2.f32 %v11234_v31  ;;  %v11238_v38 = vmul.f32 -1.442695, %v17716_v46 }
 0x9ed   : > { %v17751_v11 = vpop.eup %14701  ;;  %v10355_v55 = vmul.f32 %v17561_v43, %v17622_v12  ;;  %v17756_v7 = vadd.f32 %v17582_v21, %v10351_v63  ;;  %14721 = vpow2.f32 %v11235_v36  ;;  %v11239_v29 = vmul.f32 -1.442695, %v17724_v0 }
 0x9ee   : > { %18201 = vst [vmem:[#allocation57_spill] sm:$0xff] %v17748_v59  ;;  %v17759_v54 = vpop.eup %14703  ;;  %v10356_v23 = vmul.f32 %v17561_v43, %v17629_v47  ;;  %v17764_v32 = vadd.f32 %v17582_v21, %v10352_v35  ;;  %14723 = vpow2.f32 %v11236_v62  ;;  %v11240_v41 = vmul.f32 -1.442695, %v17732_v61 }
 0x9ef   : > { %18202 = vst [vmem:[#allocation44_spill] sm:$0xff] %v17756_v7  ;;  %v17767_v44 = vpop.eup %14705  ;;  %v10357_v12 = vmul.f32 %v17561_v43, %v17631_v42  ;;  %v17772_v3 = vadd.f32 %v17582_v21, %v10353_v15  ;;  %14725 = vpow2.f32 %v11237_v60  ;;  %v11241_v52 = vmul.f32 -1.442695, %v17740_v13 }
 0x9f0   : > { %18203 = vst [vmem:[#allocation58_spill] sm:$0xff] %v17764_v32  ;;  %v17775_v9 = vpop.eup %14707  ;;  %v10358_v47 = vmul.f32 %v17561_v43, %v17638_v26  ;;  %v17780_v4 = vadd.f32 %v17582_v21, %v10354_v1  ;;  %14727 = vpow2.f32 %v11238_v38  ;;  %v11242_v6 = vmul.f32 -1.442695, %v17748_v59 }
 0x9f1   : > { %18204 = vst [vmem:[#allocation59_spill] sm:$0xff] %v17772_v3  ;;  %v17783_v45 = vpop.eup %14709  ;;  %v10359_v42 = vmul.f32 %v17561_v43, %v17652_v49  ;;  %v17788_v5 = vadd.f32 %v17582_v21, %v10355_v55  ;;  %14729 = vpow2.f32 %v11239_v29  ;;  %v11243_v20 = vmul.f32 -1.442695, %v17756_v7 }
 0x9f2   : > { %18205 = vst [vmem:[#allocation13_spill] sm:$0xff] %v17780_v4  ;;  %v17791_v27 = vpop.eup %14711  ;;  %v17794_v26 = vadd.f32 %v17582_v21, %v10356_v23  ;;  %14731 = vpow2.f32 %v11240_v41  ;;  %v11244_v51 = vmul.f32 -1.442695, %v17764_v32  ;;  %v17800_v31 = vadd.f32 %v17582_v21, %v10357_v12 }
 0x9f3   : > { %18206 = vst [vmem:[#allocation12_spill] sm:$0xff] %v17788_v5  ;;  %v17797_v2 = vpop.eup %14713  ;;  %14733 = vpow2.f32 %v11241_v52  ;;  %v11245_v43 = vmul.f32 -1.442695, %v17772_v3  ;;  %v17806_v63 = vadd.f32 %v17582_v21, %v10358_v47  ;;  %v11246_v36 = vmul.f32 -1.442695, %v17780_v4  ;;  %v17891_v4 = vld [vmem:[%s15160_s13 + $0x38] sm:$0xff]  }
 0x9f4   : > { %18207 = vst [vmem:[#allocation14_spill] sm:$0xff] %v17794_v26  ;;  %18208 = vst [vmem:[#allocation15_spill] sm:$0xff] %v17800_v31  ;;  %v17803_v49 = vpop.eup %14715  ;;  %14735 = vpow2.f32 %v11242_v6  ;;  %v17812_v62 = vadd.f32 %v17582_v21, %v10359_v42  ;;  %v11247_v15 = vmul.f32 -1.442695, %v17788_v5  ;;  %v11248_v1 = vmul.f32 -1.442695, %v17794_v26 }
 0x9f5   : > { %18209 = vst [vmem:[#allocation16_spill] sm:$0xff] %v17806_v63  ;;  %v17809_v35 = vpop.eup %14717  ;;  %14737 = vpow2.f32 %v11243_v20  ;;  %v11249_v55 = vmul.f32 -1.442695, %v17800_v31  ;;  %v11250_v23 = vmul.f32 -1.442695, %v17806_v63  ;;  %v10492_v52 = vadd.f32 1.0, %v17711_v57 }
 0x9f6   : > { %18210 = vst [vmem:[#allocation17_spill] sm:$0xff] %v17812_v62  ;;  %v17815_v60 = vpop.eup %14719  ;;  %14739 = vpow2.f32 %v11244_v51  ;;  %v11251_v41 = vmul.f32 -1.442695, %v17812_v62  ;;  %v10493_v6 = vadd.f32 1.0, %v17719_v28  ;;  %v10494_v20 = vadd.f32 1.0, %v17727_v17  ;;  %v17846_v28 = vld [vmem:[%s15160_s13 + $0x8] sm:$0xff]  }
 0x9f7   : > { %v17818_v38 = vpop.eup %14721  ;;  %14741 = vpow2.f32 %v11245_v43  ;;  %v10495_v43 = vadd.f32 1.0, %v17735_v50  ;;  %v10497_v17 = vadd.f32 1.0, %v17751_v11  ;;  %v10498_v50 = vadd.f32 1.0, %v17759_v54  ;;  %v17867_v63 = vld [vmem:[%s15160_s13 + $0x20] sm:$0xff]   ;;  %v17875_v26 = vld [vmem:[%s15160_s13 + $0x28] sm:$0xff]   ;;  %v17883_v5 = vld [vmem:[%s15160_s13 + $0x30] sm:$0xff]  }
 0x9f8   : > { %v17821_v29 = vpop.eup %14723  ;;  %14743 = vpow2.f32 %v11246_v36  ;;  %v17840_v36 = vld [vmem:[%s15160_s13] sm:$0xff]   ;;  %v10499_v62 = vadd.f32 1.0, %v17767_v44  ;;  %v10500_v54 = vadd.f32 1.0, %v17775_v9  ;;  %v17913_v11 = vld [vmem:[%s15160_s13 + $0x48] sm:$0xff]   ;;  %v10507_v59 = vadd.f32 1.0, %v17818_v38 }
 0x9f9   : > { %v17824_v21 = vpop.eup %14725  ;;  %14745 = vpow2.f32 %v11247_v15  ;;  %v10496_v15 = vadd.f32 1.0, %v17743_v48  ;;  %v17859_v48 = vld [vmem:[%s15160_s13 + $0x18] sm:$0xff]   ;;  %v17899_v3 = vld [vmem:[%s15160_s13 + $0x40] sm:$0xff]  }
 0x9fa   : > { %v17827_v12 = vpop.eup %14727  ;;  %14747 = vpow2.f32 %v11248_v1 }
 0x9fb   : > { %v17830_v47 = vpop.eup %14729  ;;  %14749 = vpow2.f32 %v11249_v55  ;;  %v17852_v55 = vld [vmem:[%s15160_s13 + $0x10] sm:$0xff]  }
 0x9fc   : > { %v17833_v42 = vpop.eup %14731  ;;  %14751 = vpow2.f32 %v11250_v23 }
 0x9fd   : > { %v17836_v51 = vpop.eup %14733  ;;  %14753 = vpow2.f32 %v11251_v41  ;;  %v10511_v41 = vadd.f32 1.0, %v17830_v47 }
 0x9fe   : > { %v17842_v57 = vpop.eup %14735  ;;  %14755 = vrcp.f32 %v10492_v52 }
 0x9ff   : > { %v17848_v1 = vpop.eup %14737  ;;  %14757 = vrcp.f32 %v10493_v6  ;;  %v10510_v6 = vadd.f32 1.0, %v17827_v12  ;;  %v10512_v12 = vadd.f32 1.0, %v17833_v42 }
 0xa00   : > { %v17854_v23 = vpop.eup %14739  ;;  %14759 = vrcp.f32 %v10494_v20 }
 0xa01   : > { %v17861_v52 = vpop.eup %14741  ;;  %14761 = vrcp.f32 %v10495_v43  ;;  %v10501_v43 = vadd.f32 1.0, %v17783_v45 }
 0xa02   : > { %v17869_v31 = vpop.eup %14743  ;;  %14763 = vrcp.f32 %v10496_v15  ;;  %v10502_v15 = vadd.f32 1.0, %v17791_v27 }
 0xa03   : > { %v17877_v44 = vpop.eup %14745  ;;  %14765 = vrcp.f32 %v10497_v17  ;;  %v10503_v17 = vadd.f32 1.0, %v17797_v2  ;;  %v10505_v2 = vadd.f32 1.0, %v17809_v35 }
 0xa04   : > { %v17885_v9 = vpop.eup %14747  ;;  %14767 = vrcp.f32 %v10498_v50  ;;  %v10504_v50 = vadd.f32 1.0, %v17803_v49  ;;  %v10506_v49 = vadd.f32 1.0, %v17815_v60  ;;  %v10508_v60 = vadd.f32 1.0, %v17821_v29 }
 0xa05   : > { %v17893_v45 = vpop.eup %14749  ;;  %14769 = vrcp.f32 %v10499_v62 }
 0xa06   : > { %v17901_v27 = vpop.eup %14751  ;;  %14771 = vrcp.f32 %v10500_v54 }
 0xa07   : > { %v17906_v32 = vpop.eup %14753  ;;  %14773 = vrcp.f32 %v10501_v43 }
 0xa08   : > { %v14756_v7 = vpop.eup %14755  ;;  %14775 = vrcp.f32 %v10502_v15 }
 0xa09   : > { %v14758_v20 = vpop.eup %14757  ;;  %14777 = vrcp.f32 %v10503_v17  ;;  %v10588_v35 = vmul.f32 %v14756_v7, %v17610_v22  ;;  %v10509_v17 = vadd.f32 1.0, %v17824_v21  ;;  %v18211_v7 = vunpack.c.l.bf16 %v17840_v36 }
 0xa0a   : > { %v14760_v62 = vpop.eup %14759  ;;  %14779 = vrcp.f32 %v10504_v50  ;;  %v10589_v15 = vmul.f32 %v14758_v20, %v17613_v16  ;;  %v18212_v16 = vunpack.c.h.bf16 %v17840_v36  ;;  %v18213_v21 = vunpack.c.l.bf16 %v17846_v28 }
 0xa0b   : > { %v14762_v38 = vpop.eup %14761  ;;  %14781 = vrcp.f32 %v10505_v2  ;;  %v10590_v22 = vmul.f32 %v14760_v62, %v17616_v53  ;;  %v10684_v43 = vadd.f32 %v18211_v7, %v10588_v35  ;;  %v18214_v36 = vunpack.c.h.bf16 %v17846_v28 }
 0xa0c   : > { %v14764_v54 = vpop.eup %14763  ;;  %14783 = vrcp.f32 %v10506_v49  ;;  %v10591_v29 = vmul.f32 %v14762_v38, %v17626_v58  ;;  %v10685_v20 = vadd.f32 %v18212_v16, %v10589_v15  ;;  %v18216_v28 = vunpack.c.h.bf16 %v17852_v55 }
 0xa0d   : > { %v14766_v50 = vpop.eup %14765  ;;  %14785 = vrcp.f32 %v10507_v59  ;;  %v10592_v53 = vmul.f32 %v14764_v54, %v17635_v18  ;;  %v10686_v2 = vadd.f32 %v18213_v21, %v10590_v22  ;;  %10716 = vst [vmem:[%s17924_s18] sm:$0xff] %v10684_v43  ;;  %v10513_v59 = vadd.f32 1.0, %v17836_v51 }
 0xa0e   : > { %v14768_v62 = vpop.eup %14767  ;;  %14787 = vrcp.f32 %v10508_v60  ;;  %v10593_v58 = vmul.f32 %v14766_v50, %v17643_v40  ;;  %v10687_v49 = vadd.f32 %v18214_v36, %v10591_v29  ;;  %10717 = vst [vmem:[%s17924_s18 + $0x8] sm:$0xff] %v10685_v20  ;;  %v18215_v54 = vunpack.c.l.bf16 %v17852_v55 }
 0xa0f   : > { %v14770_v47 = vpop.eup %14769  ;;  %14789 = vrcp.f32 %v10509_v17  ;;  %v10594_v18 = vmul.f32 %v14768_v62, %v17646_v25  ;;  %10718 = vst [vmem:[%s17924_s18 + $0x10] sm:$0xff] %v10686_v2  ;;  %v10514_v43 = vadd.f32 1.0, %v17842_v57  ;;  %v10515_v15 = vadd.f32 1.0, %v17848_v1 }
 0xa10   : > { %v10688_v35 = vadd.f32 %v18215_v54, %v10592_v53  ;;  %v14772_v42 = vpop.eup %14771  ;;  %14791 = vrcp.f32 %v10510_v6  ;;  %v10595_v40 = vmul.f32 %v14770_v47, %v17656_v24  ;;  %v10689_v60 = vadd.f32 %v18216_v28, %v10593_v58  ;;  %10719 = vst [vmem:[%s17924_s18 + $0x18] sm:$0xff] %v10687_v49 }
 0xa11   : > { %v14774_v51 = vpop.eup %14773  ;;  %14793 = vrcp.f32 %v10511_v41  ;;  %v10596_v25 = vmul.f32 %v14772_v42, %v17661_v34  ;;  %v18217_v38 = vunpack.c.l.bf16 %v17859_v48  ;;  %v10516_v6 = vadd.f32 1.0, %v17854_v23  ;;  %v11409_v42 = vld [vmem:[%s15160_s13 + $0x58] sm:$0xff]  }
 0xa12   : > { %10720 = vst [vmem:[%s17924_s18 + $0x20] sm:$0xff] %v10688_v35  ;;  %v14776_v57 = vpop.eup %14775  ;;  %14795 = vrcp.f32 %v10512_v12  ;;  %v10597_v24 = vmul.f32 %v14774_v51, %v17666_v33  ;;  %v18218_v55 = vunpack.c.h.bf16 %v17859_v48  ;;  %10721 = vst [vmem:[%s17924_s18 + $0x28] sm:$0xff] %v10689_v60  ;;  %v10517_v41 = vadd.f32 1.0, %v17861_v52 }
 0xa13   : > { %v10690_v17 = vadd.f32 %v18217_v38, %v10594_v18  ;;  %v14778_v1 = vpop.eup %14777  ;;  %14797 = vrcp.f32 %v10513_v59  ;;  %v10598_v34 = vmul.f32 %v14776_v57, %v17671_v37  ;;  %v18219_v7 = vunpack.c.l.bf16 %v17867_v63 }
 0xa14   : > { %v10691_v22 = vadd.f32 %v18218_v55, %v10595_v40  ;;  %v14780_v23 = vpop.eup %14779  ;;  %v10518_v16 = vadd.f32 1.0, %v17869_v31  ;;  %14799 = vrcp.f32 %v10514_v43  ;;  %v10599_v33 = vmul.f32 %v14778_v1, %v17676_v39 }
 0xa15   : > { %v10692_v29 = vadd.f32 %v18219_v7, %v10596_v25  ;;  %10722 = vst [vmem:[%s17924_s18 + $0x30] sm:$0xff] %v10690_v17  ;;  %v18220_v48 = vunpack.c.h.bf16 %v17867_v63  ;;  %v14782_v52 = vpop.eup %14781  ;;  %v10519_v50 = vadd.f32 1.0, %v17877_v44  ;;  %14801 = vrcp.f32 %v10515_v15  ;;  %v18230_v7 = vld [vmem:[#allocation57_spill] sm:$0xff] }
 0xa16   : > { %10723 = vst [vmem:[%s17924_s18 + $0x38] sm:$0xff] %v10691_v22  ;;  %v10600_v37 = vmul.f32 %v14780_v23, %v17681_v8  ;;  %v18221_v53 = vunpack.c.l.bf16 %v17875_v26  ;;  %v14784_v31 = vpop.eup %14783  ;;  %v10520_v2 = vadd.f32 1.0, %v17885_v9  ;;  %14803 = vrcp.f32 %v10516_v6 }
 0xa17   : > { %v10693_v20 = vadd.f32 %v18220_v48, %v10597_v24  ;;  %10724 = vst [vmem:[%s17924_s18 + $0x40] sm:$0xff] %v10692_v29  ;;  %v10601_v39 = vmul.f32 %v14782_v52, %v17686_v14  ;;  %v18222_v63 = vunpack.c.h.bf16 %v17875_v26  ;;  %v14786_v44 = vpop.eup %14785  ;;  %v10521_v12 = vadd.f32 1.0, %v17893_v45  ;;  %v11408_v26 = vld [vmem:[%s15160_s13 + $0x50] sm:$0xff]  }
 0xa18   : > { %v10694_v21 = vadd.f32 %v18221_v53, %v10598_v34  ;;  %14805 = vrcp.f32 %v10517_v41  ;;  %v10602_v8 = vmul.f32 %v14784_v31, %v17691_v30  ;;  %v18223_v58 = vunpack.c.l.bf16 %v17883_v5  ;;  %v14788_v9 = vpop.eup %14787  ;;  %v11411_v41 = vld [vmem:[%s15160_s13 + $0x68] sm:$0xff]  }
 0xa19   : > { %v10695_v62 = vadd.f32 %v18222_v63, %v10599_v33  ;;  %10725 = vst [vmem:[%s17924_s18 + $0x48] sm:$0xff] %v10693_v20  ;;  %v10522_v49 = vadd.f32 1.0, %v17901_v27  ;;  %14807 = vrcp.f32 %v10518_v16  ;;  %v10603_v14 = vmul.f32 %v14786_v44, %v17696_v10  ;;  %v14790_v59 = vpop.eup %14789  ;;  %v18231_v16 = vld [vmem:[#allocation44_spill] sm:$0xff]  ;;  %v11412_v20 = vld [vmem:[%s15160_s13 + $0x70] sm:$0xff]  }
 0xa1a   : > { %v10696_v36 = vadd.f32 %v18223_v58, %v10600_v37  ;;  %10726 = vst [vmem:[%s17924_s18 + $0x50] sm:$0xff] %v10694_v21  ;;  %v18224_v47 = vunpack.c.h.bf16 %v17883_v5  ;;  %v10523_v30 = vadd.f32 1.0, %v17906_v32  ;;  %14809 = vrcp.f32 %v10519_v50  ;;  %v14792_v35 = vpop.eup %14791  ;;  %v18232_v50 = vld [vmem:[#allocation58_spill] sm:$0xff] }
 0xa1b   : > { %10727 = vst [vmem:[%s17924_s18 + $0x58] sm:$0xff] %v10695_v62  ;;  %v10604_v18 = vmul.f32 %v14788_v9, %v17702_v19  ;;  %v18225_v54 = vunpack.c.l.bf16 %v17891_v4  ;;  %14811 = vrcp.f32 %v10520_v2  ;;  %v10605_v10 = vmul.f32 %v14790_v59, %v17708_v56  ;;  %v14794_v40 = vpop.eup %14793  ;;  %v18233_v2 = vld [vmem:[#allocation59_spill] sm:$0xff]  ;;  %v11413_v62 = vld [vmem:[%s15160_s13 + $0x78] sm:$0xff]  }
 0xa1c   : > { %v10697_v45 = vadd.f32 %v18224_v47, %v10601_v39  ;;  %10728 = vst [vmem:[%s17924_s18 + $0x60] sm:$0xff] %v10696_v36  ;;  %v11359_v5 = vunpack.c.h.bf16 %v17913_v11  ;;  %v18226_v43 = vunpack.c.h.bf16 %v17891_v4  ;;  %14813 = vrcp.f32 %v10521_v12  ;;  %v14796_v15 = vpop.eup %14795  ;;  %v11410_v4 = vld [vmem:[%s15160_s13 + $0x60] sm:$0xff]  }
 0xa1d   : > { %v10698_v27 = vadd.f32 %v18225_v54, %v10602_v8  ;;  %v10606_v19 = vmul.f32 %v14792_v35, %v17716_v46  ;;  %v11362_v28 = vunpack.c.l.bf16 %v11408_v26  ;;  %v18227_v60 = vunpack.c.l.bf16 %v17899_v3  ;;  %v14798_v57 = vpop.eup %14797  ;;  %v18234_v8 = vld [vmem:[#allocation13_spill] sm:$0xff] }
 0xa1e   : > { %v10699_v32 = vadd.f32 %v18226_v43, %v10603_v14  ;;  %10729 = vst [vmem:[%s17924_s18 + $0x68] sm:$0xff] %v10697_v45  ;;  %14815 = vrcp.f32 %v10522_v49  ;;  %v10607_v56 = vmul.f32 %v14794_v40, %v17724_v0  ;;  %v11363_v25 = vunpack.c.h.bf16 %v11408_v26  ;;  %v14800_v22 = vpop.eup %14799  ;;  %v18235_v14 = vld [vmem:[#allocation12_spill] sm:$0xff] }
 0xa1f   : > { %v10700_v51 = vadd.f32 %v18227_v60, %v10604_v18  ;;  %10730 = vst [vmem:[%s17924_s18 + $0x70] sm:$0xff] %v10698_v27  ;;  %v18228_v38 = vunpack.c.h.bf16 %v17899_v3  ;;  %14817 = vrcp.f32 %v10523_v30  ;;  %v10608_v46 = vmul.f32 %v14796_v15, %v17732_v61  ;;  %v14802_v34 = vpop.eup %14801  ;;  %v18236_v30 = vld [vmem:[#allocation14_spill] sm:$0xff]  ;;  %v18238_v40 = vld [vmem:[#allocation16_spill] sm:$0xff]  ;;  %v18239_v60 = vld [vmem:[#allocation17_spill] sm:$0xff] }
 0xa20   : > { %10731 = vst [vmem:[%s17924_s18 + $0x78] sm:$0xff] %v10699_v32  ;;  %v11366_v6 = vunpack.c.l.bf16 %v11409_v42  ;;  %v18229_v24 = vunpack.c.l.bf16 %v17913_v11  ;;  %v10609_v0 = vmul.f32 %v14798_v57, %v17740_v13  ;;  %v11367_v1 = vunpack.c.h.bf16 %v11409_v42  ;;  %v14804_v11 = vpop.eup %14803 }
 0xa21   : > { %v10701_v17 = vadd.f32 %v18228_v38, %v10605_v10  ;;  %10732 = vst [vmem:[%s17924_s18 + $0x80] sm:$0xff] %v10700_v51  ;;  %v10703_v3 = vadd.f32 %v11359_v5, %v10607_v56  ;;  %v10610_v29 = vmul.f32 %v14800_v22, %v18230_v7  ;;  %v11370_v23 = vunpack.c.l.bf16 %v11410_v4  ;;  %v18237_v10 = vld [vmem:[#allocation15_spill] sm:$0xff] }
 0xa22   : > { %v10702_v55 = vadd.f32 %v18229_v24, %v10606_v19  ;;  %v10704_v61 = vadd.f32 %v11362_v28, %v10608_v46  ;;  %v10611_v33 = vmul.f32 %v14802_v34, %v18231_v16  ;;  %v11371_v48 = vunpack.c.h.bf16 %v11410_v4  ;;  %v14806_v13 = vpop.eup %14805 }
 0xa23   : > { %10733 = vst [vmem:[%s17924_s18 + $0x88] sm:$0xff] %v10701_v17  ;;  %v10705_v52 = vadd.f32 %v11363_v25, %v10609_v0  ;;  %10735 = vst [vmem:[%s17924_s18 + $0x98] sm:$0xff] %v10703_v3  ;;  %v10612_v37 = vmul.f32 %v14804_v11, %v18232_v50  ;;  %v11374_v53 = vunpack.c.l.bf16 %v11411_v41  ;;  %v10706_v21 = vadd.f32 %v11366_v6, %v10610_v29  ;;  %v14808_v31 = vpop.eup %14807 }
 0xa24   : > { %10734 = vst [vmem:[%s17924_s18 + $0x90] sm:$0xff] %v10702_v55  ;;  %10736 = vst [vmem:[%s17924_s18 + $0xa0] sm:$0xff] %v10704_v61  ;;  %v10613_v39 = vmul.f32 %v14806_v13, %v18233_v2  ;;  %v11375_v63 = vunpack.c.h.bf16 %v11411_v41  ;;  %v10707_v44 = vadd.f32 %v11367_v1, %v10611_v33  ;;  %v14810_v12 = vpop.eup %14809  ;;  %v10614_v58 = vmul.f32 %v14808_v31, %v18234_v8 }
 0xa25   : > { %10737 = vst [vmem:[%s17924_s18 + $0xa8] sm:$0xff] %v10705_v52  ;;  %v11378_v36 = vunpack.c.l.bf16 %v11412_v20  ;;  %v10708_v9 = vadd.f32 %v11370_v23, %v10612_v37  ;;  %10738 = vst [vmem:[%s17924_s18 + $0xb0] sm:$0xff] %v10706_v21  ;;  %v14812_v49 = vpop.eup %14811  ;;  %v10615_v26 = vmul.f32 %v14810_v12, %v18235_v14  ;;  %v11379_v47 = vunpack.c.h.bf16 %v11412_v20 }
 0xa26   : > { %v10709_v45 = vadd.f32 %v11371_v48, %v10613_v39  ;;  %10739 = vst [vmem:[%s17924_s18 + $0xb8] sm:$0xff] %v10707_v44  ;;  %v14814_v59 = vpop.eup %14813  ;;  %v10616_v18 = vmul.f32 %v14812_v49, %v18236_v30  ;;  %v11382_v54 = vunpack.c.l.bf16 %v11413_v62  ;;  %v10710_v27 = vadd.f32 %v11374_v53, %v10614_v58 }
 0xa27   : > { %10740 = vst [vmem:[%s17924_s18 + $0xc0] sm:$0xff] %v10708_v9  ;;  %v10617_v5 = vmul.f32 %v14814_v59, %v18237_v10  ;;  %v11383_v42 = vunpack.c.h.bf16 %v11413_v62  ;;  %v10711_v43 = vadd.f32 %v11375_v63, %v10615_v26 }
 0xa28   : > { %v14816_v35 = vpop.eup %14815  ;;  %10741 = vst [vmem:[%s17924_s18 + $0xc8] sm:$0xff] %v10709_v45  ;;  %v10712_v28 = vadd.f32 %v11378_v36, %v10616_v18  ;;  %10742 = vst [vmem:[%s17924_s18 + $0xd0] sm:$0xff] %v10710_v27 }
 0xa29   : > { %v14818_v32 = vpop.eup %14817  ;;  %v10618_v19 = vmul.f32 %v14816_v35, %v18238_v40  ;;  %v10713_v15 = vadd.f32 %v11379_v47, %v10617_v5  ;;  %10743 = vst [vmem:[%s17924_s18 + $0xd8] sm:$0xff] %v10711_v43 }
 0xa2a   : > { %v10619_v51 = vmul.f32 %v14818_v32, %v18239_v60  ;;  %10744 = vst [vmem:[%s17924_s18 + $0xe0] sm:$0xff] %v10712_v28 }
 0xa2b   : > { %v10714_v56 = vadd.f32 %v11382_v54, %v10618_v19  ;;  %10745 = vst [vmem:[%s17924_s18 + $0xe8] sm:$0xff] %v10713_v15 }
 0xa2c   : > { %v10715_v25 = vadd.f32 %v11383_v42, %v10619_v51 }
 0xa2d   : > { %10746 = vst [vmem:[%s17924_s18 + $0xf0] sm:$0xff] %v10714_v56 }
 0xa2e   : > { %10747 = vst [vmem:[%s17924_s18 + $0xf8] sm:$0xff] %v10715_v25 }
 0xa2f PF: > { %s19_s24 = sadd.s32 1, %s14916_s24  }
 0xa30   : > { %p16_p9 = scmp.ge.s32.totalorder %s19_s24, 4  }
 0xa32   :  { %18 = sbr.rel (!%p16_p9) target bundleno = 2 (0x2), region = 127 }
 0xa39   :  { %10769 = vsyncpa [#allocation6], 1 }
 0xa3a   :  { %10771 = vsyncpa [#allocation6 + $0x1], 1 }
 0xa3b   :  { %10772 = vsyncpa [#allocation8], 1 }

</bundles_post_ra>
